<compile_context>
chip_gen: v6e
topology: v6e:2x2x1
jax: 0.10.0
libtpu: 0.0.40
codegen_flags: <defaults>
</compile_context>

<pallas_src>
import functools
import math

import jax
import jax.numpy as jnp
import numpy as np
from jax import lax
from jax.experimental import pallas as pl
from jax.experimental.pallas import tpu as pltpu

# Conv2d hyper-parameters of the reference PyTorch Model.
_LAYERS = (
    dict(kh=8, kw=8, cin=3,  cout=32, stride=5, pad=0, gelu=True),
    dict(kh=8, kw=8, cin=32, cout=64, stride=4, pad=1, gelu=True),
    dict(kh=8, kw=8, cin=64, cout=64, stride=3, pad=2, gelu=True),
    dict(kh=3, kw=3, cin=64, cout=64, stride=2, pad=0, gelu=False),
)

_DIMS = ("NHWC", "HWIO", "NHWC")
_TARGET_A_TILE_BYTES = 4 * 1024 * 1024   # ~4 MiB of A per grid step
_TM_MIN, _TM_MAX = 512, 8192


def _round_up(x, m):
    return ((x + m - 1) // m) * m


def _matmul_bias_act_kernel(a_ref, b_ref, bias_ref, o_ref, *, apply_gelu):
    """One M tile: full-K resident weight, f32 accumulation, fused bias+GELU."""
    acc = jnp.dot(a_ref[...], b_ref[...], preferred_element_type=jnp.float32)
    y = acc + bias_ref[...]
    if apply_gelu:
        # exact GELU: v*0.5 * (erf(v/sqrt(2)) + 1)  -- matches the PyTorch graph.
        y = (y * 0.5) * (lax.erf(y * 0.7071067811865476) + 1.0)
    o_ref[...] = y.astype(o_ref.dtype)


def _patch_channel_order(kh, kw, cin):
    """Patch-channel k -> flat (kh, kw, cin) weight index, discovered from
    conv_general_dilated_patches itself (correct by construction, no reliance
    on the op's channel-ordering convention)."""
    probe = jnp.arange(kh * kw * cin, dtype=jnp.float32).reshape(1, kh, kw, cin)
    p = lax.conv_general_dilated_patches(
        probe, filter_shape=(kh, kw), window_strides=(1, 1), padding="VALID",
        dimension_numbers=_DIMS)
    return np.asarray(p).reshape(kh * kw * cin).astype(np.int64)


def conv2d_gelu_pallas(x_nhwc, w_gemm, bias, *, kh, kw, stride, pad,
                       apply_gelu, out_dtype):
    """x_nhwc: [N,H,W,Cin] bf16; w_gemm: [K,Cout] bf16 (patch order);
    bias: [1,Cout] f32."""
    N = x_nhwc.shape[0]
    K, Cout = w_gemm.shape

    # im2col glue: a single XLA op in bf16 (padding handled inside).
    patches = lax.conv_general_dilated_patches(
        x_nhwc, filter_shape=(kh, kw), window_strides=(stride, stride),
        padding=((pad, pad), (pad, pad)), dimension_numbers=_DIMS)
    _, Hout, Wout, K2 = patches.shape
    assert K2 == K, (K2, K)
    M = N * Hout * Wout
    A = patches.reshape(M, K)                       # free reshape

    # Adaptive M tile: ~4 MiB of A per grid step, 256-row aligned (MXU-friendly).
    tm = _round_up(max(1, _TARGET_A_TILE_BYTES // (K * A.dtype.itemsize)), 256)
    tm = max(_TM_MIN, min(_TM_MAX, tm))
    if M <= tm:
        tm = M            # single full-M block (full-dim blocks are always legal)
    grid_m = pl.cdiv(M, tm)

    # NOTE(correctness): when tm does not divide M, the last A block reads
    # stale VMEM rows past M (possibly NaN/Inf) and runs bias/GELU on them;
    # this is safe because K is fully in-bounds (rows are independent in the
    # GEMM) and Pallas masks out-of-range output rows on writeback.  Do not
    # add any cross-row op (e.g. a reduction over M) without revisiting this.
    out = pl.pallas_call(
        functools.partial(_matmul_bias_act_kernel, apply_gelu=apply_gelu),
        out_shape=jax.ShapeDtypeStruct((M, Cout), out_dtype),
        grid_spec=pltpu.PrefetchScalarGridSpec(
            num_scalar_prefetch=0,
            grid=(grid_m,),
            in_specs=[
                pl.BlockSpec((tm, K), lambda i: (i, 0)),      # A tile, streamed
                pl.BlockSpec((K, Cout), lambda i: (0, 0)),    # resident weight
                pl.BlockSpec((1, Cout), lambda i: (0, 0)),    # resident bias
            ],
            out_specs=pl.BlockSpec((tm, Cout), lambda i: (i, 0)),
        ),
        compiler_params=pltpu.CompilerParams(
            dimension_semantics=("parallel",),
            vmem_limit_bytes=32 * 1024 * 1024),
    )(A, w_gemm, bias)

    return out.reshape(N, Hout, Wout, Cout)


def init_params(key):
    """Returns GEMM-ready params: bf16 [K,Cout] weights in patch order + f32 bias."""
    params = []
    keys = jax.random.split(key, len(_LAYERS))
    for cfg, k in zip(_LAYERS, keys):
        kh, kw, cin, cout = cfg["kh"], cfg["kw"], cfg["cin"], cfg["cout"]
        kw_key, kb_key = jax.random.split(k)
        fan_in = cin * kh * kw
        bound = 1.0 / math.sqrt(fan_in)
        w = jax.random.uniform(kw_key, (kh, kw, cin, cout), jnp.float32, -bound, bound)
        b = jax.random.uniform(kb_key, (cout,), jnp.float32, -bound, bound)
        order = _patch_channel_order(kh, kw, cin)
        w_gemm = w.reshape(kh * kw * cin, cout)[order].astype(jnp.bfloat16)
        params.append(dict(w=w_gemm, b=b.reshape(1, cout).astype(jnp.float32)))
    return params


@jax.jit
def model_forward(x_nchw, params):
    # NCHW -> NHWC, bf16 activations between layers (f32 accumulation in-kernel).
    # bf16 intermediates => ~1e-2 relative divergence vs a float32 PyTorch
    # reference is expected (tolerance choice, not a bug).
    x = jnp.transpose(x_nchw, (0, 2, 3, 1)).astype(jnp.bfloat16)
    n_layers = len(_LAYERS)
    for idx, (cfg, p) in enumerate(zip(_LAYERS, params)):
        last = idx == n_layers - 1
        x = conv2d_gelu_pallas(
            x, p["w"], p["b"],
            kh=cfg["kh"], kw=cfg["kw"], stride=cfg["stride"], pad=cfg["pad"],
            apply_gelu=cfg["gelu"],
            out_dtype=jnp.float32 if last else jnp.bfloat16)
    return jnp.transpose(x, (0, 3, 1, 2))    # NHWC -> NCHW, float32


if __name__ == "__main__":
    key = jax.random.PRNGKey(0)
    k_x, k_p = jax.random.split(key)
    # Small input (original spec used 1x3x1080x1920); 224x224 is about the
    # smallest size that survives the four strided convs (1x1 spatial output).
    x = jax.random.normal(k_x, (1, 3, 224, 224), dtype=jnp.float32)
    params = init_params(k_p)

    y = model_forward(x, params)
    jax.block_until_ready(y)
    assert y.shape == (1, 64, 1, 1), y.shape
    print("KERNEL_OK")
</pallas_src>

<mosaic_0001>
module attributes {stable_mosaic.version = 11 : i64} {
  func.func @_matmul_bias_act_kernel(%arg0: i32, %arg1: memref<1936x192xbf16, #tpu.memory_space<vmem>>, %arg2: memref<192x32xbf16, #tpu.memory_space<vmem>>, %arg3: memref<1x32xf32, #tpu.memory_space<vmem>>, %arg4: memref<1936x32xbf16, #tpu.memory_space<vmem>>) attributes {dimension_semantics = [#tpu.dimension_semantics<parallel>], iteration_bounds = array<i64: 1>, scalar_prefetch = 0 : i64, scratch_operands = 0 : i64, tpu.core_type = #tpu.core_type<tc>, window_params = [{transform_indices = @transform_0, window_bounds = array<i64: 1936, 192>}, {pipeline_mode = #tpu.pipeline_mode<synchronous>, transform_indices = @transform_1, window_bounds = array<i64: 192, 32>}, {pipeline_mode = #tpu.pipeline_mode<synchronous>, transform_indices = @transform_2, window_bounds = array<i64: 1, 32>}, {transform_indices = @transform_3, window_bounds = array<i64: 1936, 32>}]} {
    %c0 = arith.constant 0 : index
    %c0_0 = arith.constant 0 : index
    %0 = vector.load %arg1[%c0, %c0_0] : memref<1936x192xbf16, #tpu.memory_space<vmem>>, vector<1936x192xbf16>
    %c0_1 = arith.constant 0 : index
    %c0_2 = arith.constant 0 : index
    %1 = vector.load %arg2[%c0_1, %c0_2] : memref<192x32xbf16, #tpu.memory_space<vmem>>, vector<192x32xbf16>
    %cst = arith.constant dense<0.000000e+00> : vector<1936x32xf32>
    %2 = tpu.matmul %0, %1, %cst {dimension_numbers = #tpu.dot_dimension_numbers<[1], [0], [0], [1], [0, 0, 1, 1], [], []>} : vector<1936x192xbf16>, vector<192x32xbf16>, vector<1936x32xf32> -> vector<1936x32xf32>
    %c0_3 = arith.constant 0 : index
    %c0_4 = arith.constant 0 : index
    %3 = vector.load %arg3[%c0_3, %c0_4] : memref<1x32xf32, #tpu.memory_space<vmem>>, vector<1x32xf32>
    %4 = vector.broadcast %3 : vector<1x32xf32> to vector<1936x32xf32>
    %5 = arith.addf %2, %4 : vector<1936x32xf32>
    %cst_5 = arith.constant 5.000000e-01 : f32
    %6 = vector.broadcast %cst_5 : f32 to vector<1936x32xf32>
    %7 = arith.mulf %5, %6 : vector<1936x32xf32>
    %cst_6 = arith.constant 0.707106769 : f32
    %8 = vector.broadcast %cst_6 : f32 to vector<1936x32xf32>
    %9 = arith.mulf %5, %8 : vector<1936x32xf32>
    %10 = math.erf %9 : vector<1936x32xf32>
    %cst_7 = arith.constant 1.000000e+00 : f32
    %11 = vector.broadcast %cst_7 : f32 to vector<1936x32xf32>
    %12 = arith.addf %10, %11 : vector<1936x32xf32>
    %13 = arith.mulf %7, %12 : vector<1936x32xf32>
    %14 = arith.truncf %13 : vector<1936x32xf32> to vector<1936x32xbf16>
    %c0_8 = arith.constant 0 : index
    %c0_9 = arith.constant 0 : index
    %15 = vector.load %arg4[%c0_8, %c0_9] : memref<1936x32xbf16, #tpu.memory_space<vmem>>, vector<1936x32xbf16>
    tpu.vector_store %arg4[%c0_8, %c0_9], %14 {strides = array<i32>} : memref<1936x32xbf16, #tpu.memory_space<vmem>>, vector<1936x32xbf16>,
    return
  }
  func.func @transform_0(%arg0: i32) -> (i32, i32) {
    %c0_i32 = arith.constant 0 : i32
    %c0_i32_0 = arith.constant 0 : i32
    return %arg0, %c0_i32 : i32, i32
  }
  func.func @transform_1(%arg0: i32) -> (i32, i32) {
    %c0_i32 = arith.constant 0 : i32
    %c0_i32_0 = arith.constant 0 : i32
    %c0_i32_1 = arith.constant 0 : i32
    return %c0_i32, %c0_i32_0 : i32, i32
  }
  func.func @transform_2(%arg0: i32) -> (i32, i32) {
    %c0_i32 = arith.constant 0 : i32
    %c0_i32_0 = arith.constant 0 : i32
    %c0_i32_1 = arith.constant 0 : i32
    return %c0_i32, %c0_i32_0 : i32, i32
  }
  func.func @transform_3(%arg0: i32) -> (i32, i32) {
    %c0_i32 = arith.constant 0 : i32
    %c0_i32_0 = arith.constant 0 : i32
    return %arg0, %c0_i32 : i32, i32
  }
}

module attributes {stable_mosaic.version = 11 : i64} {
  func.func @_matmul_bias_act_kernel(%arg0: i32, %arg1: memref<100x2048xbf16, #tpu.memory_space<vmem>>, %arg2: memref<2048x64xbf16, #tpu.memory_space<vmem>>, %arg3: memref<1x64xf32, #tpu.memory_space<vmem>>, %arg4: memref<100x64xbf16, #tpu.memory_space<vmem>>) attributes {dimension_semantics = [#tpu.dimension_semantics<parallel>], iteration_bounds = array<i64: 1>, scalar_prefetch = 0 : i64, scratch_operands = 0 : i64, tpu.core_type = #tpu.core_type<tc>, window_params = [{transform_indices = @transform_0, window_bounds = array<i64: 100, 2048>}, {pipeline_mode = #tpu.pipeline_mode<synchronous>, transform_indices = @transform_1, window_bounds = array<i64: 2048, 64>}, {pipeline_mode = #tpu.pipeline_mode<synchronous>, transform_indices = @transform_2, window_bounds = array<i64: 1, 64>}, {transform_indices = @transform_3, window_bounds = array<i64: 100, 64>}]} {
    %c0 = arith.constant 0 : index
    %c0_0 = arith.constant 0 : index
    %0 = vector.load %arg1[%c0, %c0_0] : memref<100x2048xbf16, #tpu.memory_space<vmem>>, vector<100x2048xbf16>
    %c0_1 = arith.constant 0 : index
    %c0_2 = arith.constant 0 : index
    %1 = vector.load %arg2[%c0_1, %c0_2] : memref<2048x64xbf16, #tpu.memory_space<vmem>>, vector<2048x64xbf16>
    %cst = arith.constant dense<0.000000e+00> : vector<100x64xf32>
    %2 = tpu.matmul %0, %1, %cst {dimension_numbers = #tpu.dot_dimension_numbers<[1], [0], [0], [1], [0, 0, 1, 1], [], []>} : vector<100x2048xbf16>, vector<2048x64xbf16>, vector<100x64xf32> -> vector<100x64xf32>
    %c0_3 = arith.constant 0 : index
    %c0_4 = arith.constant 0 : index
    %3 = vector.load %arg3[%c0_3, %c0_4] : memref<1x64xf32, #tpu.memory_space<vmem>>, vector<1x64xf32>
    %4 = vector.broadcast %3 : vector<1x64xf32> to vector<100x64xf32>
    %5 = arith.addf %2, %4 : vector<100x64xf32>
    %cst_5 = arith.constant 5.000000e-01 : f32
    %6 = vector.broadcast %cst_5 : f32 to vector<100x64xf32>
    %7 = arith.mulf %5, %6 : vector<100x64xf32>
    %cst_6 = arith.constant 0.707106769 : f32
    %8 = vector.broadcast %cst_6 : f32 to vector<100x64xf32>
    %9 = arith.mulf %5, %8 : vector<100x64xf32>
    %10 = math.erf %9 : vector<100x64xf32>
    %cst_7 = arith.constant 1.000000e+00 : f32
    %11 = vector.broadcast %cst_7 : f32 to vector<100x64xf32>
    %12 = arith.addf %10, %11 : vector<100x64xf32>
    %13 = arith.mulf %7, %12 : vector<100x64xf32>
    %14 = arith.truncf %13 : vector<100x64xf32> to vector<100x64xbf16>
    %c0_8 = arith.constant 0 : index
    %c0_9 = arith.constant 0 : index
    %15 = vector.load %arg4[%c0_8, %c0_9] : memref<100x64xbf16, #tpu.memory_space<vmem>>, vector<100x64xbf16>
    tpu.vector_store %arg4[%c0_8, %c0_9], %14 {strides = array<i32>} : memref<100x64xbf16, #tpu.memory_space<vmem>>, vector<100x64xbf16>,
    return
  }
  func.func @transform_0(%arg0: i32) -> (i32, i32) {
    %c0_i32 = arith.constant 0 : i32
    %c0_i32_0 = arith.constant 0 : i32
    return %arg0, %c0_i32 : i32, i32
  }
  func.func @transform_1(%arg0: i32) -> (i32, i32) {
    %c0_i32 = arith.constant 0 : i32
    %c0_i32_0 = arith.constant 0 : i32
    %c0_i32_1 = arith.constant 0 : i32
    return %c0_i32, %c0_i32_0 : i32, i32
  }
  func.func @transform_2(%arg0: i32) -> (i32, i32) {
    %c0_i32 = arith.constant 0 : i32
    %c0_i32_0 = arith.constant 0 : i32
    %c0_i32_1 = arith.constant 0 : i32
    return %c0_i32, %c0_i32_0 : i32, i32
  }
  func.func @transform_3(%arg0: i32) -> (i32, i32) {
    %c0_i32 = arith.constant 0 : i32
    %c0_i32_0 = arith.constant 0 : i32
    return %arg0, %c0_i32 : i32, i32
  }
}

module attributes {stable_mosaic.version = 11 : i64} {
  func.func @_matmul_bias_act_kernel(%arg0: i32, %arg1: memref<9x4096xbf16, #tpu.memory_space<vmem>>, %arg2: memref<4096x64xbf16, #tpu.memory_space<vmem>>, %arg3: memref<1x64xf32, #tpu.memory_space<vmem>>, %arg4: memref<9x64xbf16, #tpu.memory_space<vmem>>) attributes {dimension_semantics = [#tpu.dimension_semantics<parallel>], iteration_bounds = array<i64: 1>, scalar_prefetch = 0 : i64, scratch_operands = 0 : i64, tpu.core_type = #tpu.core_type<tc>, window_params = [{transform_indices = @transform_0, window_bounds = array<i64: 9, 4096>}, {pipeline_mode = #tpu.pipeline_mode<synchronous>, transform_indices = @transform_1, window_bounds = array<i64: 4096, 64>}, {pipeline_mode = #tpu.pipeline_mode<synchronous>, transform_indices = @transform_2, window_bounds = array<i64: 1, 64>}, {transform_indices = @transform_3, window_bounds = array<i64: 9, 64>}]} {
    %c0 = arith.constant 0 : index
    %c0_0 = arith.constant 0 : index
    %0 = vector.load %arg1[%c0, %c0_0] : memref<9x4096xbf16, #tpu.memory_space<vmem>>, vector<9x4096xbf16>
    %c0_1 = arith.constant 0 : index
    %c0_2 = arith.constant 0 : index
    %1 = vector.load %arg2[%c0_1, %c0_2] : memref<4096x64xbf16, #tpu.memory_space<vmem>>, vector<4096x64xbf16>
    %cst = arith.constant dense<0.000000e+00> : vector<9x64xf32>
    %2 = tpu.matmul %0, %1, %cst {dimension_numbers = #tpu.dot_dimension_numbers<[1], [0], [0], [1], [0, 0, 1, 1], [], []>} : vector<9x4096xbf16>, vector<4096x64xbf16>, vector<9x64xf32> -> vector<9x64xf32>
    %c0_3 = arith.constant 0 : index
    %c0_4 = arith.constant 0 : index
    %3 = vector.load %arg3[%c0_3, %c0_4] : memref<1x64xf32, #tpu.memory_space<vmem>>, vector<1x64xf32>
    %4 = vector.broadcast %3 : vector<1x64xf32> to vector<9x64xf32>
    %5 = arith.addf %2, %4 : vector<9x64xf32>
    %cst_5 = arith.constant 5.000000e-01 : f32
    %6 = vector.broadcast %cst_5 : f32 to vector<9x64xf32>
    %7 = arith.mulf %5, %6 : vector<9x64xf32>
    %cst_6 = arith.constant 0.707106769 : f32
    %8 = vector.broadcast %cst_6 : f32 to vector<9x64xf32>
    %9 = arith.mulf %5, %8 : vector<9x64xf32>
    %10 = math.erf %9 : vector<9x64xf32>
    %cst_7 = arith.constant 1.000000e+00 : f32
    %11 = vector.broadcast %cst_7 : f32 to vector<9x64xf32>
    %12 = arith.addf %10, %11 : vector<9x64xf32>
    %13 = arith.mulf %7, %12 : vector<9x64xf32>
    %14 = arith.truncf %13 : vector<9x64xf32> to vector<9x64xbf16>
    %c0_8 = arith.constant 0 : index
    %c0_9 = arith.constant 0 : index
    %15 = vector.load %arg4[%c0_8, %c0_9] : memref<9x64xbf16, #tpu.memory_space<vmem>>, vector<9x64xbf16>
    tpu.vector_store %arg4[%c0_8, %c0_9], %14 {strides = array<i32>} : memref<9x64xbf16, #tpu.memory_space<vmem>>, vector<9x64xbf16>,
    return
  }
  func.func @transform_0(%arg0: i32) -> (i32, i32) {
    %c0_i32 = arith.constant 0 : i32
    %c0_i32_0 = arith.constant 0 : i32
    return %arg0, %c0_i32 : i32, i32
  }
  func.func @transform_1(%arg0: i32) -> (i32, i32) {
    %c0_i32 = arith.constant 0 : i32
    %c0_i32_0 = arith.constant 0 : i32
    %c0_i32_1 = arith.constant 0 : i32
    return %c0_i32, %c0_i32_0 : i32, i32
  }
  func.func @transform_2(%arg0: i32) -> (i32, i32) {
    %c0_i32 = arith.constant 0 : i32
    %c0_i32_0 = arith.constant 0 : i32
    %c0_i32_1 = arith.constant 0 : i32
    return %c0_i32, %c0_i32_0 : i32, i32
  }
  func.func @transform_3(%arg0: i32) -> (i32, i32) {
    %c0_i32 = arith.constant 0 : i32
    %c0_i32_0 = arith.constant 0 : i32
    return %arg0, %c0_i32 : i32, i32
  }
}

module attributes {stable_mosaic.version = 11 : i64} {
  func.func @_matmul_bias_act_kernel(%arg0: i32, %arg1: memref<1x576xbf16, #tpu.memory_space<vmem>>, %arg2: memref<576x64xbf16, #tpu.memory_space<vmem>>, %arg3: memref<1x64xf32, #tpu.memory_space<vmem>>, %arg4: memref<1x64xf32, #tpu.memory_space<vmem>>) attributes {dimension_semantics = [#tpu.dimension_semantics<parallel>], iteration_bounds = array<i64: 1>, scalar_prefetch = 0 : i64, scratch_operands = 0 : i64, tpu.core_type = #tpu.core_type<tc>, window_params = [{transform_indices = @transform_0, window_bounds = array<i64: 1, 576>}, {pipeline_mode = #tpu.pipeline_mode<synchronous>, transform_indices = @transform_1, window_bounds = array<i64: 576, 64>}, {pipeline_mode = #tpu.pipeline_mode<synchronous>, transform_indices = @transform_2, window_bounds = array<i64: 1, 64>}, {transform_indices = @transform_3, window_bounds = array<i64: 1, 64>}]} {
    %c0 = arith.constant 0 : index
    %c0_0 = arith.constant 0 : index
    %0 = vector.load %arg1[%c0, %c0_0] : memref<1x576xbf16, #tpu.memory_space<vmem>>, vector<1x576xbf16>
    %c0_1 = arith.constant 0 : index
    %c0_2 = arith.constant 0 : index
    %1 = vector.load %arg2[%c0_1, %c0_2] : memref<576x64xbf16, #tpu.memory_space<vmem>>, vector<576x64xbf16>
    %cst = arith.constant dense<0.000000e+00> : vector<1x64xf32>
    %2 = tpu.matmul %0, %1, %cst {dimension_numbers = #tpu.dot_dimension_numbers<[1], [0], [0], [1], [0, 0, 1, 1], [], []>} : vector<1x576xbf16>, vector<576x64xbf16>, vector<1x64xf32> -> vector<1x64xf32>
    %c0_3 = arith.constant 0 : index
    %c0_4 = arith.constant 0 : index
    %3 = vector.load %arg3[%c0_3, %c0_4] : memref<1x64xf32, #tpu.memory_space<vmem>>, vector<1x64xf32>
    %4 = arith.addf %2, %3 : vector<1x64xf32>
    %c0_5 = arith.constant 0 : index
    %c0_6 = arith.constant 0 : index
    %5 = vector.load %arg4[%c0_5, %c0_6] : memref<1x64xf32, #tpu.memory_space<vmem>>, vector<1x64xf32>
    tpu.vector_store %arg4[%c0_5, %c0_6], %4 {strides = array<i32>} : memref<1x64xf32, #tpu.memory_space<vmem>>, vector<1x64xf32>,
    return
  }
  func.func @transform_0(%arg0: i32) -> (i32, i32) {
    %c0_i32 = arith.constant 0 : i32
    %c0_i32_0 = arith.constant 0 : i32
    return %arg0, %c0_i32 : i32, i32
  }
  func.func @transform_1(%arg0: i32) -> (i32, i32) {
    %c0_i32 = arith.constant 0 : i32
    %c0_i32_0 = arith.constant 0 : i32
    %c0_i32_1 = arith.constant 0 : i32
    return %c0_i32, %c0_i32_0 : i32, i32
  }
  func.func @transform_2(%arg0: i32) -> (i32, i32) {
    %c0_i32 = arith.constant 0 : i32
    %c0_i32_0 = arith.constant 0 : i32
    %c0_i32_1 = arith.constant 0 : i32
    return %c0_i32, %c0_i32_0 : i32, i32
  }
  func.func @transform_3(%arg0: i32) -> (i32, i32) {
    %c0_i32 = arith.constant 0 : i32
    %c0_i32_0 = arith.constant 0 : i32
    return %arg0, %c0_i32 : i32, i32
  }
}

</mosaic_0001>

<bundles_post_ra>
// kernel: model_forward.4
= control target key start
LH: loop header
LB: loop body
LE: loop exit
PB: predicated region body
PF: predicated region fallthrough
CT: control target
= control target key end

     0   :  { %v6915_v0 = vmov 0   ;;  %vm1449_vm0 = vcmask 523264   ;;  %vm4992_vm1 = vcmask 257024   ;;  %s10640_s1 = inlined_call_operand.vmem [shape: bf16[192,32], index: 1, kind: input, shape index: {}]   ;;  %s10641_s0 = inlined_call_operand.vmem [shape: bf16[1936,192], index: 0, kind: input, shape index: {}]   ;;  %s10642_s2 = inlined_call_operand.vmem [shape: f32[1,32], index: 2, kind: input, shape index: {}]   ;;  %s10643_s3 = inlined_call_operand.vmem [shape: bf16[1936,32], index: 3, kind: output, shape index: {}]  }
   0x1   :  { %1813 = vmatprep.subr.bf16.mxu0 %v6915_v0  ;;  %6099 = vmatprep.subr.bf16.mxu1 %v6915_v0  ;;  %v6124_v1 = vld [vmem:[%s10640_s1 + $0x38] sm:$0xff]   ;;  %v6125_v2 = vld [vmem:[%s10640_s1 + $0x30] sm:$0xff]   ;;  %v6126_v3 = vld [vmem:[%s10640_s1 + $0x28] sm:$0xff]  }
   0x2   :  { %1814 = vmatpush1.bf16.msra.mxu0 %v6124_v1  ;;  %6111 = vmatpush1.bf16.msra.mxu1 %v6124_v1  ;;  %v6127_v4 = vld [vmem:[%s10640_s1 + $0x20] sm:$0xff]   ;;  %v6128_v6 = vld [vmem:[%s10640_s1 + $0x18] sm:$0xff]   ;;  %v6129_v8 = vld [vmem:[%s10640_s1 + $0x10] sm:$0xff]  }
   0x3   :  { %1815 = vmatprep.subr.bf16.mxu0 %v6915_v0  ;;  %6100 = vmatprep.subr.bf16.mxu1 %v6915_v0  ;;  %v6138_v5 = vld [vmem:[%s10641_s0 + $0x4] ss:$8 sps:$4 sm:$0xff]   ;;  %v6141_v7 = vld [vmem:[%s10641_s0 + $0x3d4] ss:$8 sps:$4 sm:$0xff]   ;;  %v6136_v15 = vld [vmem:[%s10641_s0] ss:$8 sps:$4 sm:$0xff]  }
   0x4   :  { %5494 = vmatprep.mubr.msk.bf16.mxu0 %vm1449_vm0, %v6138_v5  ;;  %5555 = vmatprep.mubr.msk.bf16.mxu1 %vm1449_vm0, %v6141_v7  ;;  %v6130_v9 = vld [vmem:[%s10640_s1 + $0x8] sm:$0xff]   ;;  %v6131_v10 = vld [vmem:[%s10640_s1] sm:$0xff]   ;;  %v6132_v11 = vld [vmem:[%s10640_s1 + $0x58] sm:$0xff]  }
   0x5   :  { %v6133_v12 = vld [vmem:[%s10640_s1 + $0x50] sm:$0xff]   ;;  %v6134_v13 = vld [vmem:[%s10640_s1 + $0x48] sm:$0xff]   ;;  %v6135_v14 = vld [vmem:[%s10640_s1 + $0x40] sm:$0xff]  }
   0x6   :  { %1816 = vmatpush1.bf16.msra.mxu0 %v6125_v2  ;;  %6112 = vmatpush1.bf16.msra.mxu1 %v6125_v2  ;;  %v6139_v16 = vld [vmem:[%s10641_s0 + $0x3d0] ss:$8 sps:$4 sm:$0xff]   ;;  %v6142_v17 = vld [vmem:[%s10641_s0 + $0x14] ss:$8 sps:$4 sm:$0xff]   ;;  %v6144_v18 = vld [vmem:[%s10641_s0 + $0x3e4] ss:$8 sps:$4 sm:$0xff]  }
   0x7   :  { %1817 = vmatprep.subr.bf16.mxu0 %v6915_v0  ;;  %6101 = vmatprep.subr.bf16.mxu1 %v6915_v0  ;;  %v6146_v19 = vld [vmem:[%s10641_s0 + $0x10] ss:$8 sps:$4 sm:$0xff]   ;;  %v6147_v20 = vld [vmem:[%s10641_s0 + $0x3e0] ss:$8 sps:$4 sm:$0xff]   ;;  %v6148_v21 = vld [vmem:[%s10641_s0 + $0x24] ss:$8 sps:$4 sm:$0xff]  }
   0x8   :  { %v6150_v22 = vld [vmem:[%s10641_s0 + $0x3f4] ss:$8 sps:$4 sm:$0xff]   ;;  %v6152_v23 = vld [vmem:[%s10641_s0 + $0x20] ss:$8 sps:$4 sm:$0xff]   ;;  %v6153_v24 = vld [vmem:[%s10641_s0 + $0x3f0] ss:$8 sps:$4 sm:$0xff]  }
   0x9   :  { %v6154_v25 = vld [vmem:[%s10641_s0 + $0x34] ss:$8 sps:$4 sm:$0xff]   ;;  %v6156_v26 = vld [vmem:[%s10641_s0 + $0x404] ss:$8 sps:$4 sm:$0xff]   ;;  %v6158_v27 = vld [vmem:[%s10641_s0 + $0x30] ss:$8 sps:$4 sm:$0xff]  }
   0xa   :  { %1818 = vmatpush1.bf16.msra.mxu0 %v6126_v3  ;;  %6113 = vmatpush1.bf16.msra.mxu1 %v6126_v3  ;;  %v6159_v28 = vld [vmem:[%s10641_s0 + $0x400] ss:$8 sps:$4 sm:$0xff]   ;;  %v6160_v29 = vld [vmem:[%s10641_s0 + $0x44] ss:$8 sps:$4 sm:$0xff]   ;;  %v6162_v30 = vld [vmem:[%s10641_s0 + $0x414] ss:$8 sps:$4 sm:$0xff]  }
   0xb   :  { %1819 = vmatprep.subr.bf16.mxu0 %v6915_v0  ;;  %6102 = vmatprep.subr.bf16.mxu1 %v6915_v0  ;;  %v6164_v31 = vld [vmem:[%s10641_s0 + $0x40] ss:$8 sps:$4 sm:$0xff]   ;;  %v6165_v32 = vld [vmem:[%s10641_s0 + $0x410] ss:$8 sps:$4 sm:$0xff]   ;;  %v6166_v33 = vld [vmem:[%s10641_s0 + $0x54] ss:$8 sps:$4 sm:$0xff]  }
   0xc   :  { %v6168_v34 = vld [vmem:[%s10641_s0 + $0x424] ss:$8 sps:$4 sm:$0xff]   ;;  %v6170_v35 = vld [vmem:[%s10641_s0 + $0x50] ss:$8 sps:$4 sm:$0xff]   ;;  %v6171_v36 = vld [vmem:[%s10641_s0 + $0x420] ss:$8 sps:$4 sm:$0xff]  }
   0xd   :  { %v6172_v37 = vld [vmem:[%s10641_s0 + $0x64] ss:$8 sps:$4 sm:$0xff]   ;;  %v6174_v38 = vld [vmem:[%s10641_s0 + $0x434] ss:$8 sps:$4 sm:$0xff]   ;;  %v6176_v39 = vld [vmem:[%s10641_s0 + $0x60] ss:$8 sps:$4 sm:$0xff]  }
   0xe   :  { %1820 = vmatpush1.bf16.msra.mxu0 %v6127_v4  ;;  %6114 = vmatpush1.bf16.msra.mxu1 %v6127_v4  ;;  %v6177_v40 = vld [vmem:[%s10641_s0 + $0x430] ss:$8 sps:$4 sm:$0xff]   ;;  %v6178_v41 = vld [vmem:[%s10641_s0 + $0x74] ss:$8 sps:$4 sm:$0xff]   ;;  %v6180_v42 = vld [vmem:[%s10641_s0 + $0x444] ss:$8 sps:$4 sm:$0xff]  }
   0xf   :  { %1821 = vmatprep.subr.bf16.mxu0 %v6915_v0  ;;  %6103 = vmatprep.subr.bf16.mxu1 %v6915_v0  ;;  %v6182_v43 = vld [vmem:[%s10641_s0 + $0x70] ss:$8 sps:$4 sm:$0xff]   ;;  %v6183_v44 = vld [vmem:[%s10641_s0 + $0x440] ss:$8 sps:$4 sm:$0xff]   ;;  %v6184_v45 = vld [vmem:[%s10641_s0 + $0x84] ss:$8 sps:$4 sm:$0xff]  }
  0x10   :  { %v6186_v46 = vld [vmem:[%s10641_s0 + $0x454] ss:$8 sps:$4 sm:$0xff]   ;;  %v6188_v47 = vld [vmem:[%s10641_s0 + $0x80] ss:$8 sps:$4 sm:$0xff]   ;;  %v6189_v48 = vld [vmem:[%s10641_s0 + $0x450] ss:$8 sps:$4 sm:$0xff]  }
  0x11   :  { %v6190_v49 = vld [vmem:[%s10641_s0 + $0x94] ss:$8 sps:$4 sm:$0xff]   ;;  %v6192_v50 = vld [vmem:[%s10641_s0 + $0x464] ss:$8 sps:$4 sm:$0xff]   ;;  %v6194_v51 = vld [vmem:[%s10641_s0 + $0x90] ss:$8 sps:$4 sm:$0xff]  }
  0x12   :  { %1822 = vmatpush1.bf16.msra.mxu0 %v6128_v6  ;;  %6115 = vmatpush1.bf16.msra.mxu1 %v6128_v6  ;;  %v6195_v52 = vld [vmem:[%s10641_s0 + $0x460] ss:$8 sps:$4 sm:$0xff]   ;;  %v6196_v53 = vld [vmem:[%s10641_s0 + $0xa4] ss:$8 sps:$4 sm:$0xff]   ;;  %v6198_v54 = vld [vmem:[%s10641_s0 + $0x474] ss:$8 sps:$4 sm:$0xff]  }
  0x13   :  { %1823 = vmatprep.subr.bf16.mxu0 %v6915_v0  ;;  %6104 = vmatprep.subr.bf16.mxu1 %v6915_v0  ;;  %v6200_v55 = vld [vmem:[%s10641_s0 + $0xa0] ss:$8 sps:$4 sm:$0xff]   ;;  %v6201_v56 = vld [vmem:[%s10641_s0 + $0x470] ss:$8 sps:$4 sm:$0xff]   ;;  %v6202_v57 = vld [vmem:[%s10641_s0 + $0xb4] ss:$8 sps:$4 sm:$0xff]  }
  0x14   :  { %v6204_v58 = vld [vmem:[%s10641_s0 + $0x484] ss:$8 sps:$4 sm:$0xff]   ;;  %v6206_v59 = vld [vmem:[%s10641_s0 + $0xb0] ss:$8 sps:$4 sm:$0xff]   ;;  %v6207_v60 = vld [vmem:[%s10641_s0 + $0x480] ss:$8 sps:$4 sm:$0xff]  }
  0x15   :  { %v6208_v61 = vld [vmem:[%s10641_s0 + $0xc4] ss:$8 sps:$4 sm:$0xff]   ;;  %v6210_v62 = vld [vmem:[%s10641_s0 + $0x494] ss:$8 sps:$4 sm:$0xff]   ;;  %v6212_v63 = vld [vmem:[%s10641_s0 + $0xc0] ss:$8 sps:$4 sm:$0xff]  }
  0x16   :  { %1824 = vmatpush1.bf16.msra.mxu0 %v6129_v8  ;;  %6116 = vmatpush1.bf16.msra.mxu1 %v6129_v8  ;;  %v6214_v1 = vld [vmem:[%s10641_s0 + $0xd4] ss:$8 sps:$4 sm:$0xff]   ;;  %v6216_v2 = vld [vmem:[%s10641_s0 + $0x4a4] ss:$8 sps:$4 sm:$0xff]   ;;  %v6218_v3 = vld [vmem:[%s10641_s0 + $0xd0] ss:$8 sps:$4 sm:$0xff]  }
  0x17   :  { %1825 = vmatprep.subr.bf16.mxu0 %v6915_v0  ;;  %6105 = vmatprep.subr.bf16.mxu1 %v6915_v0  ;;  %v6219_v4 = vld [vmem:[%s10641_s0 + $0x4a0] ss:$8 sps:$4 sm:$0xff]   ;;  %v6220_v5 = vld [vmem:[%s10641_s0 + $0xe4] ss:$8 sps:$4 sm:$0xff]   ;;  %v6222_v6 = vld [vmem:[%s10641_s0 + $0x4b4] ss:$8 sps:$4 sm:$0xff]  }
  0x18   :  { %v6224_v7 = vld [vmem:[%s10641_s0 + $0xe0] ss:$8 sps:$4 sm:$0xff]   ;;  %v6225_v8 = vld [vmem:[%s10641_s0 + $0x4b0] ss:$8 sps:$4 sm:$0xff]  }
  0x1a   :  { %1826 = vmatpush1.bf16.msra.mxu0 %v6130_v9  ;;  %6117 = vmatpush1.bf16.msra.mxu1 %v6130_v9  ;;  %v6226_v9 = vld [vmem:[%s10641_s0 + $0xf4] ss:$8 sps:$4 sm:$0xff]  }
  0x1b   :  { %1827 = vmatprep.subr.bf16.mxu0 %v6915_v0  ;;  %6106 = vmatprep.subr.bf16.mxu1 %v6915_v0 }
  0x1e   :  { %1828 = vmatpush1.bf16.msra.mxu0 %v6131_v10  ;;  %6118 = vmatpush1.bf16.msra.mxu1 %v6131_v10  ;;  %v6228_v10 = vld [vmem:[%s10641_s0 + $0x4c4] ss:$8 sps:$4 sm:$0xff]  }
  0x1f   :  { %1837 = vmatprep.subr.bf16.mxu0 %v6915_v0  ;;  %6107 = vmatprep.subr.bf16.mxu1 %v6915_v0 }
  0x22   :  { %1838 = vmatpush2.bf16.msra.mxu0 %v6132_v11  ;;  %6119 = vmatpush2.bf16.msra.mxu1 %v6132_v11  ;;  %v6230_v11 = vld [vmem:[%s10641_s0 + $0xf0] ss:$8 sps:$4 sm:$0xff]  }
  0x23   :  { %1839 = vmatprep.subr.bf16.mxu0 %v6915_v0  ;;  %6108 = vmatprep.subr.bf16.mxu1 %v6915_v0 }
  0x26   :  { %1840 = vmatpush2.bf16.msra.mxu0 %v6133_v12  ;;  %6120 = vmatpush2.bf16.msra.mxu1 %v6133_v12  ;;  %v6231_v12 = vld [vmem:[%s10641_s0 + $0x4c0] ss:$8 sps:$4 sm:$0xff]  }
  0x27   :  { %1841 = vmatprep.subr.bf16.mxu0 %v6915_v0  ;;  %6109 = vmatprep.subr.bf16.mxu1 %v6915_v0 }
  0x2a   :  { %1842 = vmatpush2.bf16.msra.mxu0 %v6134_v13  ;;  %6121 = vmatpush2.bf16.msra.mxu1 %v6134_v13  ;;  %v6232_v13 = vld [vmem:[%s10641_s0 + $0x104] ss:$8 sps:$4 sm:$0xff]  }
  0x2b   :  { %1843 = vmatprep.subr.bf16.mxu0 %v6915_v0  ;;  %6110 = vmatprep.subr.bf16.mxu1 %v6915_v0  ;;  %v6213_v0 = vld [vmem:[%s10641_s0 + $0x490] ss:$8 sps:$4 sm:$0xff]  }
  0x2e   :  { %1844 = vmatpush2.bf16.msra.mxu0 %v6135_v14  ;;  %6122 = vmatpush2.bf16.msra.mxu1 %v6135_v14  ;;  %v6234_v14 = vld [vmem:[%s10641_s0 + $0x4d4] ss:$8 sps:$4 sm:$0xff]  }
  0x31   :  { %1846 = vmatmul.mubr.bf16.vlgmr.msra.gmra.mxu0 %v6136_v15  ;;  %2334 = vmatmul.mubr.bf16.vlgmr.msra.gmra.mxu1 %v6139_v16  ;;  %v6236_v15 = vld [vmem:[%s10641_s0 + $0x100] ss:$8 sps:$4 sm:$0xff]   ;;  %v6237_v16 = vld [vmem:[%s10641_s0 + $0x4d0] ss:$8 sps:$4 sm:$0xff]  }
  0x32   :  { %5495 = vmatprep.mubr.msk.bf16.mxu0 %vm1449_vm0, %v6142_v17  ;;  %5556 = vmatprep.mubr.msk.bf16.mxu1 %vm1449_vm0, %v6144_v18  ;;  %v6238_v17 = vld [vmem:[%s10641_s0 + $0x114] ss:$8 sps:$4 sm:$0xff]   ;;  %v6240_v18 = vld [vmem:[%s10641_s0 + $0x4e4] ss:$8 sps:$4 sm:$0xff]  }
  0x39   :  { %1854 = vmatmul.mubr.bf16.gmra.mxu0 %v6146_v19  ;;  %2342 = vmatmul.mubr.bf16.gmra.mxu1 %v6147_v20  ;;  %v6242_v19 = vld [vmem:[%s10641_s0 + $0x110] ss:$8 sps:$4 sm:$0xff]   ;;  %v6243_v20 = vld [vmem:[%s10641_s0 + $0x4e0] ss:$8 sps:$4 sm:$0xff]  }
  0x3a   :  { %5496 = vmatprep.mubr.msk.bf16.mxu0 %vm1449_vm0, %v6148_v21  ;;  %5557 = vmatprep.mubr.msk.bf16.mxu1 %vm1449_vm0, %v6150_v22  ;;  %v6244_v21 = vld [vmem:[%s10641_s0 + $0x124] ss:$8 sps:$4 sm:$0xff]   ;;  %v6246_v22 = vld [vmem:[%s10641_s0 + $0x4f4] ss:$8 sps:$4 sm:$0xff]  }
  0x41   :  { %1862 = vmatmul.mubr.bf16.gmra.mxu0 %v6152_v23  ;;  %2350 = vmatmul.mubr.bf16.gmra.mxu1 %v6153_v24  ;;  %v6248_v23 = vld [vmem:[%s10641_s0 + $0x120] ss:$8 sps:$4 sm:$0xff]   ;;  %v6249_v24 = vld [vmem:[%s10641_s0 + $0x4f0] ss:$8 sps:$4 sm:$0xff]  }
  0x42   :  { %5497 = vmatprep.mubr.msk.bf16.mxu0 %vm1449_vm0, %v6154_v25  ;;  %5558 = vmatprep.mubr.msk.bf16.mxu1 %vm1449_vm0, %v6156_v26  ;;  %v6250_v25 = vld [vmem:[%s10641_s0 + $0x134] ss:$8 sps:$4 sm:$0xff]   ;;  %v6252_v26 = vld [vmem:[%s10641_s0 + $0x504] ss:$8 sps:$4 sm:$0xff]  }
  0x49   :  { %1870 = vmatmul.mubr.bf16.gmra.mxu0 %v6158_v27  ;;  %2358 = vmatmul.mubr.bf16.gmra.mxu1 %v6159_v28  ;;  %v6254_v27 = vld [vmem:[%s10641_s0 + $0x130] ss:$8 sps:$4 sm:$0xff]   ;;  %v6255_v28 = vld [vmem:[%s10641_s0 + $0x500] ss:$8 sps:$4 sm:$0xff]  }
  0x4a   :  { %5498 = vmatprep.mubr.msk.bf16.mxu0 %vm1449_vm0, %v6160_v29  ;;  %5559 = vmatprep.mubr.msk.bf16.mxu1 %vm1449_vm0, %v6162_v30  ;;  %v6256_v29 = vld [vmem:[%s10641_s0 + $0x144] ss:$8 sps:$4 sm:$0xff]   ;;  %v6258_v30 = vld [vmem:[%s10641_s0 + $0x514] ss:$8 sps:$4 sm:$0xff]  }
  0x51   :  { %1878 = vmatmul.mubr.bf16.gmra.mxu0 %v6164_v31  ;;  %2366 = vmatmul.mubr.bf16.gmra.mxu1 %v6165_v32  ;;  %v6260_v31 = vld [vmem:[%s10641_s0 + $0x140] ss:$8 sps:$4 sm:$0xff]   ;;  %v6261_v32 = vld [vmem:[%s10641_s0 + $0x510] ss:$8 sps:$4 sm:$0xff]  }
  0x52   :  { %5499 = vmatprep.mubr.msk.bf16.mxu0 %vm1449_vm0, %v6166_v33  ;;  %5560 = vmatprep.mubr.msk.bf16.mxu1 %vm1449_vm0, %v6168_v34  ;;  %v6262_v33 = vld [vmem:[%s10641_s0 + $0x154] ss:$8 sps:$4 sm:$0xff]   ;;  %v6264_v34 = vld [vmem:[%s10641_s0 + $0x524] ss:$8 sps:$4 sm:$0xff]  }
  0x59   :  { %1886 = vmatmul.mubr.bf16.gmra.mxu0 %v6170_v35  ;;  %2374 = vmatmul.mubr.bf16.gmra.mxu1 %v6171_v36  ;;  %v6266_v35 = vld [vmem:[%s10641_s0 + $0x150] ss:$8 sps:$4 sm:$0xff]   ;;  %v6267_v36 = vld [vmem:[%s10641_s0 + $0x520] ss:$8 sps:$4 sm:$0xff]  }
  0x5a   :  { %5500 = vmatprep.mubr.msk.bf16.mxu0 %vm1449_vm0, %v6172_v37  ;;  %5561 = vmatprep.mubr.msk.bf16.mxu1 %vm1449_vm0, %v6174_v38  ;;  %v6268_v37 = vld [vmem:[%s10641_s0 + $0x164] ss:$8 sps:$4 sm:$0xff]   ;;  %v6270_v38 = vld [vmem:[%s10641_s0 + $0x534] ss:$8 sps:$4 sm:$0xff]  }
  0x61   :  { %1894 = vmatmul.mubr.bf16.gmra.mxu0 %v6176_v39  ;;  %2382 = vmatmul.mubr.bf16.gmra.mxu1 %v6177_v40  ;;  %v6272_v39 = vld [vmem:[%s10641_s0 + $0x160] ss:$8 sps:$4 sm:$0xff]   ;;  %v6273_v40 = vld [vmem:[%s10641_s0 + $0x530] ss:$8 sps:$4 sm:$0xff]  }
  0x62   :  { %5501 = vmatprep.mubr.msk.bf16.mxu0 %vm1449_vm0, %v6178_v41  ;;  %5562 = vmatprep.mubr.msk.bf16.mxu1 %vm1449_vm0, %v6180_v42  ;;  %v6274_v41 = vld [vmem:[%s10641_s0 + $0x174] ss:$8 sps:$4 sm:$0xff]   ;;  %v6276_v42 = vld [vmem:[%s10641_s0 + $0x544] ss:$8 sps:$4 sm:$0xff]  }
  0x69   :  { %1902 = vmatmul.mubr.bf16.gmra.mxu0 %v6182_v43  ;;  %2390 = vmatmul.mubr.bf16.gmra.mxu1 %v6183_v44  ;;  %v6278_v43 = vld [vmem:[%s10641_s0 + $0x170] ss:$8 sps:$4 sm:$0xff]   ;;  %v6279_v44 = vld [vmem:[%s10641_s0 + $0x540] ss:$8 sps:$4 sm:$0xff]  }
  0x6a   :  { %5502 = vmatprep.mubr.msk.bf16.mxu0 %vm1449_vm0, %v6184_v45  ;;  %5563 = vmatprep.mubr.msk.bf16.mxu1 %vm1449_vm0, %v6186_v46  ;;  %v6280_v45 = vld [vmem:[%s10641_s0 + $0x184] ss:$8 sps:$4 sm:$0xff]   ;;  %v6282_v46 = vld [vmem:[%s10641_s0 + $0x554] ss:$8 sps:$4 sm:$0xff]  }
  0x71   :  { %1910 = vmatmul.mubr.bf16.gmra.mxu0 %v6188_v47  ;;  %2398 = vmatmul.mubr.bf16.gmra.mxu1 %v6189_v48  ;;  %v63_v47 = vld [vmem:[%s10641_s0 + $0x180] sm:$0xff]  ;;  %v64_v48 = vld [vmem:[%s10641_s0 + $0x188] sm:$0xff] }
  0x72   :  { %5503 = vmatprep.mubr.msk.bf16.mxu0 %vm1449_vm0, %v6190_v49  ;;  %5564 = vmatprep.mubr.msk.bf16.mxu1 %vm1449_vm0, %v6192_v50  ;;  %v185_v49 = vld [vmem:[%s10641_s0 + $0x550] sm:$0xff]  ;;  %v186_v50 = vld [vmem:[%s10641_s0 + $0x558] sm:$0xff] }
  0x79   :  { %1918 = vmatmul.mubr.bf16.gmra.mxu0 %v6194_v51  ;;  %2406 = vmatmul.mubr.bf16.gmra.mxu1 %v6195_v52  ;;  %v5288_v51 = vcombine.low %v63_v47, %v64_v48  ;;  %v5410_v52 = vcombine.low %v185_v49, %v186_v50  ;;  %v192_v47 = vld [vmem:[%s10641_s0 + $0x588] sm:$0xff] }
  0x7a   :  { %5504 = vmatprep.mubr.msk.bf16.mxu0 %vm1449_vm0, %v6196_v53  ;;  %5565 = vmatprep.mubr.msk.bf16.mxu1 %vm1449_vm0, %v6198_v54  ;;  %v6284_v53 = vld [vmem:[%s10641_s0 + $0x194] ss:$8 sps:$4 sm:$0xff]   ;;  %v6286_v54 = vld [vmem:[%s10641_s0 + $0x564] ss:$8 sps:$4 sm:$0xff]  }
  0x81   :  { %1926 = vmatmul.mubr.bf16.gmra.mxu0 %v6200_v55  ;;  %2414 = vmatmul.mubr.bf16.gmra.mxu1 %v6201_v56  ;;  %v7361_v55 = vld [vmem:[%s10642_s2] ss:$0 sm:$0xff] }
  0x82   :  { %5505 = vmatprep.mubr.msk.bf16.mxu0 %vm1449_vm0, %v6202_v57  ;;  %5566 = vmatprep.mubr.msk.bf16.mxu1 %vm1449_vm0, %v6204_v58  ;;  %v65_v58 = vld [vmem:[%s10641_s0 + $0x190] sm:$0xff] }
  0x89   :  { %1934 = vmatmul.mubr.bf16.gmra.mxu0 %v6206_v59  ;;  %2422 = vmatmul.mubr.bf16.gmra.mxu1 %v6207_v60 }
  0x8a   :  { %5506 = vmatprep.mubr.msk.bf16.mxu0 %vm1449_vm0, %v6208_v61  ;;  %5567 = vmatprep.mubr.msk.bf16.mxu1 %vm1449_vm0, %v6210_v62  ;;  %v66_v61 = vld [vmem:[%s10641_s0 + $0x198] sm:$0xff]  ;;  %v187_v62 = vld [vmem:[%s10641_s0 + $0x560] sm:$0xff] }
  0x91   :  { %1942 = vmatmul.mubr.bf16.gmra.mxu0 %v6212_v63  ;;  %2430 = vmatmul.mubr.bf16.gmra.mxu1 %v6213_v0  ;;  %v188_v63 = vld [vmem:[%s10641_s0 + $0x568] sm:$0xff] }
  0x92   :  { %5507 = vmatprep.mubr.msk.bf16.mxu0 %vm1449_vm0, %v6214_v1  ;;  %5568 = vmatprep.mubr.msk.bf16.mxu1 %vm1449_vm0, %v6216_v2 }
  0x99   :  { %1950 = vmatmul.mubr.bf16.gmra.mxu0 %v6218_v3  ;;  %2438 = vmatmul.mubr.bf16.gmra.mxu1 %v6219_v4 }
  0x9a   :  { %5508 = vmatprep.mubr.msk.bf16.mxu0 %vm1449_vm0, %v6220_v5  ;;  %5569 = vmatprep.mubr.msk.bf16.mxu1 %vm1449_vm0, %v6222_v6  ;;  %v5290_v6 = vcombine.low %v65_v58, %v66_v61 }
  0xa1   :  { %1958 = vmatmul.mubr.bf16.gmra.mxu0 %v6224_v7  ;;  %2446 = vmatmul.mubr.bf16.gmra.mxu1 %v6225_v8  ;;  %v5412_v7 = vcombine.low %v187_v62, %v188_v63 }
  0xa2   :  { %5509 = vmatprep.mubr.msk.bf16.mxu0 %vm1449_vm0, %v6226_v9  ;;  %5570 = vmatprep.mubr.msk.bf16.mxu1 %vm1449_vm0, %v6228_v10  ;;  %v6288_v10 = vld [vmem:[%s10641_s0 + $0x1a4] ss:$8 sps:$4 sm:$0xff]  }
  0xa9   :  { %1966 = vmatmul.mubr.bf16.gmra.mxu0 %v6230_v11  ;;  %2454 = vmatmul.mubr.bf16.gmra.mxu1 %v6231_v12  ;;  %v6290_v11 = vld [vmem:[%s10641_s0 + $0x574] ss:$8 sps:$4 sm:$0xff]  }
  0xaa   :  { %5510 = vmatprep.mubr.msk.bf16.mxu0 %vm1449_vm0, %v6232_v13  ;;  %5571 = vmatprep.mubr.msk.bf16.mxu1 %vm1449_vm0, %v6234_v14 }
  0xb1   :  { %1974 = vmatmul.mubr.bf16.gmra.mxu0 %v6236_v15  ;;  %2462 = vmatmul.mubr.bf16.gmra.mxu1 %v6237_v16 }
  0xb2   :  { %5511 = vmatprep.mubr.msk.bf16.mxu0 %vm1449_vm0, %v6238_v17  ;;  %5572 = vmatprep.mubr.msk.bf16.mxu1 %vm1449_vm0, %v6240_v18  ;;  %v67_v18 = vld [vmem:[%s10641_s0 + $0x1a0] sm:$0xff] }
  0xb9   :  { %1982 = vmatmul.mubr.bf16.gmra.mxu0 %v6242_v19  ;;  %2470 = vmatmul.mubr.bf16.gmra.mxu1 %v6243_v20 }
  0xba   :  { %5512 = vmatprep.mubr.msk.bf16.mxu0 %vm1449_vm0, %v6244_v21  ;;  %5573 = vmatprep.mubr.msk.bf16.mxu1 %vm1449_vm0, %v6246_v22  ;;  %v68_v21 = vld [vmem:[%s10641_s0 + $0x1a8] sm:$0xff]  ;;  %v189_v22 = vld [vmem:[%s10641_s0 + $0x570] sm:$0xff] }
  0xc1   :  { %1990 = vmatmul.mubr.bf16.gmra.mxu0 %v6248_v23  ;;  %2478 = vmatmul.mubr.bf16.gmra.mxu1 %v6249_v24  ;;  %v190_v23 = vld [vmem:[%s10641_s0 + $0x578] sm:$0xff] }
  0xc2   :  { %5513 = vmatprep.mubr.msk.bf16.mxu0 %vm1449_vm0, %v6250_v25  ;;  %5574 = vmatprep.mubr.msk.bf16.mxu1 %vm1449_vm0, %v6252_v26 }
  0xc9   :  { %1998 = vmatmul.mubr.bf16.gmra.mxu0 %v6254_v27  ;;  %2486 = vmatmul.mubr.bf16.gmra.mxu1 %v6255_v28 }
  0xca   :  { %5514 = vmatprep.mubr.msk.bf16.mxu0 %vm1449_vm0, %v6256_v29  ;;  %5575 = vmatprep.mubr.msk.bf16.mxu1 %vm1449_vm0, %v6258_v30  ;;  %v5292_v30 = vcombine.low %v67_v18, %v68_v21  ;;  %v7491_v18 = vld [vmem:[%s10641_s0 + $0x598] sm:$0xff] }
  0xd1   :  { %2006 = vmatmul.mubr.bf16.gmra.mxu0 %v6260_v31  ;;  %2494 = vmatmul.mubr.bf16.gmra.mxu1 %v6261_v32  ;;  %v5414_v31 = vcombine.low %v189_v22, %v190_v23 }
  0xd2   :  { %5515 = vmatprep.mubr.msk.bf16.mxu0 %vm1449_vm0, %v6262_v33  ;;  %5576 = vmatprep.mubr.msk.bf16.mxu1 %vm1449_vm0, %v6264_v34  ;;  %v6292_v34 = vld [vmem:[%s10641_s0 + $0x1b4] ss:$8 sps:$4 sm:$0xff]  }
  0xd9   :  { %2014 = vmatmul.mubr.bf16.gmra.mxu0 %v6266_v35  ;;  %2502 = vmatmul.mubr.bf16.gmra.mxu1 %v6267_v36  ;;  %v6294_v35 = vld [vmem:[%s10641_s0 + $0x584] ss:$8 sps:$4 sm:$0xff]  }
  0xda   :  { %5516 = vmatprep.mubr.msk.bf16.mxu0 %vm1449_vm0, %v6268_v37  ;;  %5577 = vmatprep.mubr.msk.bf16.mxu1 %vm1449_vm0, %v6270_v38 }
  0xe1   :  { %2022 = vmatmul.mubr.bf16.gmra.mxu0 %v6272_v39  ;;  %2510 = vmatmul.mubr.bf16.gmra.mxu1 %v6273_v40 }
  0xe2   :  { %5517 = vmatprep.mubr.msk.bf16.mxu0 %vm1449_vm0, %v6274_v41  ;;  %5578 = vmatprep.mubr.msk.bf16.mxu1 %vm1449_vm0, %v6276_v42  ;;  %v69_v42 = vld [vmem:[%s10641_s0 + $0x1b0] sm:$0xff] }
  0xe9   :  { %2030 = vmatmul.mubr.bf16.gmra.mxu0 %v6278_v43  ;;  %2518 = vmatmul.mubr.bf16.gmra.mxu1 %v6279_v44  ;;  %v70_v43 = vld [vmem:[%s10641_s0 + $0x1b8] sm:$0xff] }
  0xea   :  { %5518 = vmatprep.mubr.msk.bf16.mxu0 %vm1449_vm0, %v6280_v45  ;;  %5579 = vmatprep.mubr.msk.bf16.mxu1 %vm1449_vm0, %v6282_v46  ;;  %v191_v46 = vld [vmem:[%s10641_s0 + $0x580] sm:$0xff] }
  0xf1   :  { %v1847_v56 = vpop.f32.mrf.mxu0  ;;  %2038 = vmatmul.mubr.bf16.gmra.mxu0 %v5288_v51  ;;  %v2335_v57 = vpop.f32.mrf.mxu1  ;;  %2526 = vmatmul.mubr.bf16.gmra.mxu1 %v5410_v52 }
  0xf2   :  { %v7367_v59 = vadd.f32 %v7361_v55, %v1847_v56  ;;  %v7370_v60 = vadd.f32 %v7361_v55, %v2335_v57  ;;  %5519 = vmatprep.mubr.msk.bf16.mxu0 %vm1449_vm0, %v6284_v53  ;;  %5580 = vmatprep.mubr.msk.bf16.mxu1 %vm1449_vm0, %v6286_v54  ;;  %v5294_v56 = vcombine.low %v69_v42, %v70_v43 }
  0xf3   :  { %v1849_v0 = vpop.f32.mrf.mxu0  ;;  %v2337_v1 = vpop.f32.mrf.mxu1 }
  0xf4   :  { %v3056_v2 = vmul.f32 0.70710677, %v7367_v59  ;;  %v3178_v3 = vmul.f32 0.70710677, %v7370_v60  ;;  %v2814_v52 = vmul.f32 0.5, %v7367_v59  ;;  %v2936_v57 = vmul.f32 0.5, %v7370_v60 }
  0xf5   :  { %v1850_v4 = vpop.f32.mrf.mxu0  ;;  %v2338_v5 = vpop.f32.mrf.mxu1  ;;  %v5416_v0 = vcombine.low %v191_v46, %v192_v47  ;;  %v6296_v59 = vld [vmem:[%s10641_s0 + $0x1c4] ss:$8 sps:$4 sm:$0xff]   ;;  %v6298_v60 = vld [vmem:[%s10641_s0 + $0x594] ss:$8 sps:$4 sm:$0xff]  }
  0xf6   :  { %6426 = verf.f32 %v3056_v2  ;;  %v7386_v8 = vadd.f32 %v7361_v55, %v1850_v4  ;;  %v7389_v9 = vadd.f32 %v7361_v55, %v2338_v5 }
  0xf7   :  { %6428 = verf.f32 %v3178_v3  ;;  %v1852_v12 = vpop.f32.mrf.mxu0  ;;  %v2340_v13 = vpop.f32.mrf.mxu1 }
  0xf8   :  { %v3057_v14 = vmul.f32 0.70710677, %v7386_v8  ;;  %v3179_v15 = vmul.f32 0.70710677, %v7389_v9  ;;  %v2937_v22 = vmul.f32 0.5, %v7389_v9 }
  0xf9   :  { %v1855_v16 = vpop.f32.mrf.mxu0  ;;  %2046 = vmatmul.mubr.bf16.gmra.mxu0 %v5290_v6  ;;  %v2343_v17 = vpop.f32.mrf.mxu1  ;;  %2534 = vmatmul.mubr.bf16.gmra.mxu1 %v5412_v7 }
  0xfa   :  { %6430 = verf.f32 %v3057_v14  ;;  %v7403_v19 = vadd.f32 %v7361_v55, %v1855_v16  ;;  %v7406_v20 = vadd.f32 %v7361_v55, %v2343_v17  ;;  %5520 = vmatprep.mubr.msk.bf16.mxu0 %vm1449_vm0, %v6288_v10  ;;  %5581 = vmatprep.mubr.msk.bf16.mxu1 %vm1449_vm0, %v6290_v11  ;;  %v7474_v10 = vld [vmem:[%s10641_s0 + $0x1c0] sm:$0xff]  ;;  %v7479_v11 = vld [vmem:[%s10641_s0 + $0x1c8] sm:$0xff]  ;;  %v2815_v14 = vmul.f32 0.5, %v7386_v8  ;;  %v7486_v17 = vld [vmem:[%s10641_s0 + $0x590] sm:$0xff] }
  0xfb   :  { %6432 = verf.f32 %v3179_v15  ;;  %v1857_v24 = vpop.f32.mrf.mxu0  ;;  %v2345_v25 = vpop.f32.mrf.mxu1 }
  0xfc   :  { %v3058_v26 = vmul.f32 0.70710677, %v7403_v19  ;;  %v3180_v27 = vmul.f32 0.70710677, %v7406_v20  ;;  %v2938_v42 = vmul.f32 0.5, %v7406_v20 }
  0xfd   :  { %v1858_v28 = vpop.f32.mrf.mxu0  ;;  %v2346_v29 = vpop.f32.mrf.mxu1  ;;  %v6300_v20 = vld [vmem:[%s10641_s0 + $0x1d4] ss:$8 sps:$4 sm:$0xff]  }
  0xfe   :  { %6434 = verf.f32 %v3058_v26  ;;  %v7422_v32 = vadd.f32 %v7361_v55, %v1858_v28  ;;  %v7425_v33 = vadd.f32 %v7361_v55, %v2346_v29 }
  0xff   :  { %6436 = verf.f32 %v3180_v27  ;;  %v1860_v36 = vpop.f32.mrf.mxu0  ;;  %v2348_v37 = vpop.f32.mrf.mxu1 }
 0x100   :  { %v3059_v38 = vmul.f32 0.70710677, %v7422_v32  ;;  %v3181_v39 = vmul.f32 0.70710677, %v7425_v33 }
 0x101   :  { %v1863_v40 = vpop.f32.mrf.mxu0  ;;  %2054 = vmatmul.mubr.bf16.gmra.mxu0 %v5292_v30  ;;  %v2351_v41 = vpop.f32.mrf.mxu1  ;;  %2542 = vmatmul.mubr.bf16.gmra.mxu1 %v5414_v31 }
 0x102   :  { %6438 = verf.f32 %v3059_v38  ;;  %v7442_v44 = vadd.f32 %v7361_v55, %v1863_v40  ;;  %v7445_v45 = vadd.f32 %v7361_v55, %v2351_v41  ;;  %5521 = vmatprep.mubr.msk.bf16.mxu0 %vm1449_vm0, %v6292_v34  ;;  %5582 = vmatprep.mubr.msk.bf16.mxu1 %vm1449_vm0, %v6294_v35  ;;  %v5296_v34 = vcombine.low %v7474_v10, %v7479_v11 }
 0x103   :  { %v6427_v48 = vpop.eup %6426  ;;  %6440 = verf.f32 %v3181_v39  ;;  %v1865_v49 = vpop.f32.mrf.mxu0  ;;  %v5418_v35 = vcombine.low %v7486_v17, %v7491_v18  ;;  %v2816_v38 = vmul.f32 0.5, %v7403_v19 }
 0x104   :  { %v2353_v50 = vpop.f32.mrf.mxu1  ;;  %v6429_v51 = vpop.eup %6428  ;;  %v3540_v53 = vadd.f32 1.0, %v6427_v48  ;;  %v3060_v54 = vmul.f32 0.70710677, %v7442_v44  ;;  %v3182_v61 = vmul.f32 0.70710677, %v7445_v45 }
 0x105   :  { %v3662_v58 = vadd.f32 1.0, %v6429_v51  ;;  %v1866_v62 = vpop.f32.mrf.mxu0  ;;  %v6302_v51 = vld [vmem:[%s10641_s0 + $0x5a4] ss:$8 sps:$4 sm:$0xff]  }
 0x106   :  { %v2354_v63 = vpop.f32.mrf.mxu1  ;;  %v3782_v1 = vmul.f32 %v3540_v53, %v2814_v52  ;;  %6442 = verf.f32 %v3060_v54  ;;  %v7460_v2 = vadd.f32 %v7361_v55, %v1866_v62 }
 0x107   :  { %v7463_v3 = vadd.f32 %v7361_v55, %v2354_v63  ;;  %v6431_v4 = vpop.eup %6430  ;;  %v3904_v5 = vmul.f32 %v3662_v58, %v2936_v57  ;;  %6444 = verf.f32 %v3182_v61  ;;  %v1868_v6 = vpop.f32.mrf.mxu0  ;;  %v7542_v57 = vld [vmem:[%s10641_s0 + $0x1d0] sm:$0xff]  ;;  %v7547_v58 = vld [vmem:[%s10641_s0 + $0x1d8] sm:$0xff]  ;;  %v2817_v63 = vmul.f32 0.5, %v7422_v32 }
 0x108   :  { %v2356_v7 = vpop.f32.mrf.mxu1  ;;  %v6433_v12 = vpop.eup %6432  ;;  %v5857_v13 = vpack.c.bf16 %v3782_v1, %v3782_v1  ;;  %v3541_v15 = vadd.f32 1.0, %v6431_v4  ;;  %v3061_v16 = vmul.f32 0.70710677, %v7460_v2  ;;  %v5298_v17 = vcombine.low %v7542_v57, %v7547_v58 }
 0x109   :  { %v5979_v21 = vpack.c.bf16 %v3904_v5, %v3904_v5  ;;  %v3663_v23 = vadd.f32 1.0, %v6433_v12  ;;  %v3183_v24 = vmul.f32 0.70710677, %v7463_v3  ;;  %v1871_v8 = vpop.f32.mrf.mxu0  ;;  %2062 = vmatmul.mubr.bf16.gmra.mxu0 %v5294_v56  ;;  %2550 = vmatmul.mubr.bf16.gmra.mxu1 %v5416_v0  ;;  %v2939_v5 = vmul.f32 0.5, %v7425_v33 }
 0x10a   :  { %v2359_v25 = vpop.f32.mrf.mxu1  ;;  %4993 = vst.msk [vmem:[%s10643_s3] sm:$0xf] %vm4992_vm1, %v5857_v13  ;;  %v3783_v26 = vmul.f32 %v3541_v15, %v2815_v14  ;;  %6446 = verf.f32 %v3061_v16  ;;  %v7500_v27 = vadd.f32 %v7361_v55, %v1871_v8  ;;  %5522 = vmatprep.mubr.msk.bf16.mxu0 %vm1449_vm0, %v6296_v59  ;;  %5583 = vmatprep.mubr.msk.bf16.mxu1 %vm1449_vm0, %v6298_v60  ;;  %v7554_v59 = vld [vmem:[%s10641_s0 + $0x5a0] sm:$0xff]  ;;  %v7559_v60 = vld [vmem:[%s10641_s0 + $0x5a8] sm:$0xff] }
 0x10b   :  { %v7503_v28 = vadd.f32 %v7361_v55, %v2359_v25  ;;  %v6435_v9 = vpop.eup %6434  ;;  %5115 = vst.msk [vmem:[%s10643_s3 + $0x1e8] sm:$0xf] %vm4992_vm1, %v5979_v21  ;;  %v3905_v29 = vmul.f32 %v3663_v23, %v2937_v22  ;;  %6448 = verf.f32 %v3183_v24  ;;  %v1873_v30 = vpop.f32.mrf.mxu0  ;;  %v5420_v18 = vcombine.low %v7554_v59, %v7559_v60 }
 0x10c   :  { %v2361_v31 = vpop.f32.mrf.mxu1  ;;  %v6437_v36 = vpop.eup %6436  ;;  %v5858_v37 = vpack.c.bf16 %v3783_v26, %v3783_v26  ;;  %v3542_v39 = vadd.f32 1.0, %v6435_v9  ;;  %v3062_v40 = vmul.f32 0.70710677, %v7500_v27  ;;  %v2818_v23 = vmul.f32 0.5, %v7442_v44 }
 0x10d   :  { %v5980_v41 = vpack.c.bf16 %v3905_v29, %v3905_v29  ;;  %v3664_v43 = vadd.f32 1.0, %v6437_v36  ;;  %v3184_v46 = vmul.f32 0.70710677, %v7503_v28  ;;  %v1874_v47 = vpop.f32.mrf.mxu0  ;;  %v2940_v26 = vmul.f32 0.5, %v7445_v45  ;;  %v6304_v45 = vld [vmem:[%s10641_s0 + $0x1e4] ss:$8 sps:$4 sm:$0xff]  }
 0x10e   :  { %v2362_v48 = vpop.f32.mrf.mxu1  ;;  %4994 = vst.msk [vmem:[%s10643_s3 + $0x4] sm:$0xf] %vm4992_vm1, %v5858_v37  ;;  %v3784_v49 = vmul.f32 %v3542_v39, %v2816_v38  ;;  %6450 = verf.f32 %v3062_v40  ;;  %v7524_v19 = vadd.f32 %v7361_v55, %v1874_v47  ;;  %v6306_v36 = vld [vmem:[%s10641_s0 + $0x5b4] ss:$8 sps:$4 sm:$0xff]   ;;  %v2819_v47 = vmul.f32 0.5, %v7460_v2 }
 0x10f   :  { %v7527_v50 = vadd.f32 %v7361_v55, %v2362_v48  ;;  %v6439_v52 = vpop.eup %6438  ;;  %5116 = vst.msk [vmem:[%s10643_s3 + $0x1ec] sm:$0xf] %vm4992_vm1, %v5980_v41  ;;  %v3906_v53 = vmul.f32 %v3664_v43, %v2938_v42  ;;  %6452 = verf.f32 %v3184_v46  ;;  %v1876_v54 = vpop.f32.mrf.mxu0  ;;  %v7610_v41 = vld [vmem:[%s10641_s0 + $0x1e0] sm:$0xff]  ;;  %v7615_v42 = vld [vmem:[%s10641_s0 + $0x1e8] sm:$0xff] }
 0x110   :  { %v2364_v56 = vpop.f32.mrf.mxu1  ;;  %v6441_v61 = vpop.eup %6440  ;;  %v5859_v62 = vpack.c.bf16 %v3784_v49, %v3784_v49  ;;  %v3543_v0 = vadd.f32 1.0, %v6439_v52  ;;  %v3063_v1 = vmul.f32 0.70710677, %v7524_v19  ;;  %v5300_v59 = vcombine.low %v7610_v41, %v7615_v42 }
 0x111   :  { %v5981_v4 = vpack.c.bf16 %v3906_v53, %v3906_v53  ;;  %v3665_v6 = vadd.f32 1.0, %v6441_v61  ;;  %v3185_v7 = vmul.f32 0.70710677, %v7527_v50  ;;  %v1879_v32 = vpop.f32.mrf.mxu0  ;;  %2070 = vmatmul.mubr.bf16.gmra.mxu0 %v5296_v34  ;;  %2558 = vmatmul.mubr.bf16.gmra.mxu1 %v5418_v35  ;;  %v2941_v53 = vmul.f32 0.5, %v7463_v3 }
 0x112   :  { %v2367_v10 = vpop.f32.mrf.mxu1  ;;  %4995 = vst.msk [vmem:[%s10643_s3 + $0x8] sm:$0xf] %vm4992_vm1, %v5859_v62  ;;  %v3785_v11 = vmul.f32 %v3543_v0, %v2817_v63  ;;  %6454 = verf.f32 %v3063_v1  ;;  %v7568_v12 = vadd.f32 %v7361_v55, %v1879_v32  ;;  %5523 = vmatprep.mubr.msk.bf16.mxu0 %vm1449_vm0, %v6300_v20  ;;  %5584 = vmatprep.mubr.msk.bf16.mxu1 %vm1449_vm0, %v6302_v51  ;;  %v7622_v20 = vld [vmem:[%s10641_s0 + $0x5b0] sm:$0xff]  ;;  %v7627_v51 = vld [vmem:[%s10641_s0 + $0x5b8] sm:$0xff] }
 0x113   :  { %v7571_v13 = vadd.f32 %v7361_v55, %v2367_v10  ;;  %v6443_v33 = vpop.eup %6442  ;;  %5117 = vst.msk [vmem:[%s10643_s3 + $0x1f0] sm:$0xf] %vm4992_vm1, %v5981_v4  ;;  %v3907_v14 = vmul.f32 %v3665_v6, %v2939_v5  ;;  %6456 = verf.f32 %v3185_v7  ;;  %v1881_v15 = vpop.f32.mrf.mxu0  ;;  %v5422_v60 = vcombine.low %v7622_v20, %v7627_v51 }
 0x114   :  { %v2369_v16 = vpop.f32.mrf.mxu1  ;;  %v6445_v21 = vpop.eup %6444  ;;  %v5860_v22 = vpack.c.bf16 %v3785_v11, %v3785_v11  ;;  %v3544_v24 = vadd.f32 1.0, %v6443_v33  ;;  %v3064_v8 = vmul.f32 0.70710677, %v7568_v12  ;;  %v2820_v6 = vmul.f32 0.5, %v7500_v27 }
 0x115   :  { %v5982_v25 = vpack.c.bf16 %v3907_v14, %v3907_v14  ;;  %v3666_v9 = vadd.f32 1.0, %v6445_v21  ;;  %v3186_v29 = vmul.f32 0.70710677, %v7571_v13  ;;  %v1882_v30 = vpop.f32.mrf.mxu0  ;;  %v2942_v11 = vmul.f32 0.5, %v7503_v28  ;;  %v6308_v28 = vld [vmem:[%s10641_s0 + $0x1f4] ss:$8 sps:$4 sm:$0xff]  }
 0x116   :  { %v2370_v31 = vpop.f32.mrf.mxu1  ;;  %4996 = vst.msk [vmem:[%s10643_s3 + $0xc] sm:$0xf] %vm4992_vm1, %v5860_v22  ;;  %v3786_v34 = vmul.f32 %v3544_v24, %v2818_v23  ;;  %6458 = verf.f32 %v3064_v8  ;;  %v7592_v44 = vadd.f32 %v7361_v55, %v1882_v30  ;;  %v6310_v21 = vld [vmem:[%s10641_s0 + $0x5c4] ss:$8 sps:$4 sm:$0xff]   ;;  %v2821_v30 = vmul.f32 0.5, %v7524_v19 }
 0x117   :  { %v7595_v35 = vadd.f32 %v7361_v55, %v2370_v31  ;;  %v6447_v37 = vpop.eup %6446  ;;  %5118 = vst.msk [vmem:[%s10643_s3 + $0x1f4] sm:$0xf] %vm4992_vm1, %v5982_v25  ;;  %v3908_v38 = vmul.f32 %v3666_v9, %v2940_v26  ;;  %6460 = verf.f32 %v3186_v29  ;;  %v1884_v39 = vpop.f32.mrf.mxu0  ;;  %v7678_v25 = vld [vmem:[%s10641_s0 + $0x1f0] sm:$0xff]  ;;  %v7683_v26 = vld [vmem:[%s10641_s0 + $0x1f8] sm:$0xff] }
 0x118   :  { %v2372_v40 = vpop.f32.mrf.mxu1  ;;  %v6449_v43 = vpop.eup %6448  ;;  %v5861_v46 = vpack.c.bf16 %v3786_v34, %v3786_v34  ;;  %v3545_v48 = vadd.f32 1.0, %v6447_v37  ;;  %v3065_v49 = vmul.f32 0.70710677, %v7592_v44  ;;  %v5302_v20 = vcombine.low %v7678_v25, %v7683_v26 }
 0x119   :  { %v5983_v52 = vpack.c.bf16 %v3908_v38, %v3908_v38  ;;  %v3667_v54 = vadd.f32 1.0, %v6449_v43  ;;  %v3187_v56 = vmul.f32 0.70710677, %v7595_v35  ;;  %v1887_v2 = vpop.f32.mrf.mxu0  ;;  %2078 = vmatmul.mubr.bf16.gmra.mxu0 %v5298_v17  ;;  %2566 = vmatmul.mubr.bf16.gmra.mxu1 %v5420_v18  ;;  %v2943_v38 = vmul.f32 0.5, %v7527_v50 }
 0x11a   :  { %v2375_v57 = vpop.f32.mrf.mxu1  ;;  %4997 = vst.msk [vmem:[%s10643_s3 + $0x10] sm:$0xf] %vm4992_vm1, %v5861_v46  ;;  %v3787_v58 = vmul.f32 %v3545_v48, %v2819_v47  ;;  %6462 = verf.f32 %v3065_v49  ;;  %v7636_v61 = vadd.f32 %v7361_v55, %v1887_v2  ;;  %5524 = vmatprep.mubr.msk.bf16.mxu0 %vm1449_vm0, %v6304_v45  ;;  %5585 = vmatprep.mubr.msk.bf16.mxu1 %vm1449_vm0, %v6306_v36  ;;  %v7690_v45 = vld [vmem:[%s10641_s0 + $0x5c0] sm:$0xff]  ;;  %v7695_v36 = vld [vmem:[%s10641_s0 + $0x5c8] sm:$0xff] }
 0x11b   :  { %v7639_v62 = vadd.f32 %v7361_v55, %v2375_v57  ;;  %v6451_v3 = vpop.eup %6450  ;;  %5119 = vst.msk [vmem:[%s10643_s3 + $0x1f8] sm:$0xf] %vm4992_vm1, %v5983_v52  ;;  %v3909_v63 = vmul.f32 %v3667_v54, %v2941_v53  ;;  %6464 = verf.f32 %v3187_v56  ;;  %v1889_v0 = vpop.f32.mrf.mxu0  ;;  %v5424_v51 = vcombine.low %v7690_v45, %v7695_v36 }
 0x11c   :  { %v2377_v1 = vpop.f32.mrf.mxu1  ;;  %v6453_v4 = vpop.eup %6452  ;;  %v5862_v5 = vpack.c.bf16 %v3787_v58, %v3787_v58  ;;  %v3546_v7 = vadd.f32 1.0, %v6451_v3  ;;  %v3066_v32 = vmul.f32 0.70710677, %v7636_v61  ;;  %v2822_v54 = vmul.f32 0.5, %v7568_v12 }
 0x11d   :  { %v5984_v10 = vpack.c.bf16 %v3909_v63, %v3909_v63  ;;  %v3668_v33 = vadd.f32 1.0, %v6453_v4  ;;  %v3188_v14 = vmul.f32 0.70710677, %v7639_v62  ;;  %v1890_v15 = vpop.f32.mrf.mxu0  ;;  %v2944_v58 = vmul.f32 0.5, %v7571_v13  ;;  %v6312_v13 = vld [vmem:[%s10641_s0 + $0x204] ss:$8 sps:$4 sm:$0xff]  }
 0x11e   :  { %v2378_v16 = vpop.f32.mrf.mxu1  ;;  %4998 = vst.msk [vmem:[%s10643_s3 + $0x14] sm:$0xf] %vm4992_vm1, %v5862_v5  ;;  %v3788_v17 = vmul.f32 %v3546_v7, %v2820_v6  ;;  %6466 = verf.f32 %v3066_v32  ;;  %v7660_v27 = vadd.f32 %v7361_v55, %v1890_v15  ;;  %v6314_v4 = vld [vmem:[%s10641_s0 + $0x5d4] ss:$8 sps:$4 sm:$0xff]   ;;  %v2823_v15 = vmul.f32 0.5, %v7592_v44 }
 0x11f   :  { %v7663_v18 = vadd.f32 %v7361_v55, %v2378_v16  ;;  %v6455_v22 = vpop.eup %6454  ;;  %5120 = vst.msk [vmem:[%s10643_s3 + $0x1fc] sm:$0xf] %vm4992_vm1, %v5984_v10  ;;  %v3910_v23 = vmul.f32 %v3668_v33, %v2942_v11  ;;  %6468 = verf.f32 %v3188_v14  ;;  %v1892_v24 = vpop.f32.mrf.mxu0  ;;  %v7746_v10 = vld [vmem:[%s10641_s0 + $0x200] sm:$0xff]  ;;  %v7751_v11 = vld [vmem:[%s10641_s0 + $0x208] sm:$0xff] }
 0x120   :  { %v2380_v8 = vpop.f32.mrf.mxu1  ;;  %v6457_v9 = vpop.eup %6456  ;;  %v5863_v29 = vpack.c.bf16 %v3788_v17, %v3788_v17  ;;  %v3547_v31 = vadd.f32 1.0, %v6455_v22  ;;  %v3067_v34 = vmul.f32 0.70710677, %v7660_v27  ;;  %v5304_v45 = vcombine.low %v7746_v10, %v7751_v11 }
 0x121   :  { %v5985_v37 = vpack.c.bf16 %v3910_v23, %v3910_v23  ;;  %v3669_v39 = vadd.f32 1.0, %v6457_v9  ;;  %v3189_v40 = vmul.f32 0.70710677, %v7663_v18  ;;  %v1895_v19 = vpop.f32.mrf.mxu0  ;;  %2086 = vmatmul.mubr.bf16.gmra.mxu0 %v5300_v59  ;;  %2574 = vmatmul.mubr.bf16.gmra.mxu1 %v5422_v60  ;;  %v2945_v23 = vmul.f32 0.5, %v7595_v35 }
 0x122   :  { %v2383_v41 = vpop.f32.mrf.mxu1  ;;  %4999 = vst.msk [vmem:[%s10643_s3 + $0x18] sm:$0xf] %vm4992_vm1, %v5863_v29  ;;  %v3789_v42 = vmul.f32 %v3547_v31, %v2821_v30  ;;  %6470 = verf.f32 %v3067_v34  ;;  %v7704_v43 = vadd.f32 %v7361_v55, %v1895_v19  ;;  %5525 = vmatprep.mubr.msk.bf16.mxu0 %vm1449_vm0, %v6308_v28  ;;  %5586 = vmatprep.mubr.msk.bf16.mxu1 %vm1449_vm0, %v6310_v21  ;;  %v7758_v28 = vld [vmem:[%s10641_s0 + $0x5d0] sm:$0xff]  ;;  %v7763_v21 = vld [vmem:[%s10641_s0 + $0x5d8] sm:$0xff] }
 0x123   :  { %v7707_v46 = vadd.f32 %v7361_v55, %v2383_v41  ;;  %v6459_v50 = vpop.eup %6458  ;;  %5121 = vst.msk [vmem:[%s10643_s3 + $0x200] sm:$0xf] %vm4992_vm1, %v5985_v37  ;;  %v3911_v47 = vmul.f32 %v3669_v39, %v2943_v38  ;;  %6472 = verf.f32 %v3189_v40  ;;  %v1897_v48 = vpop.f32.mrf.mxu0  ;;  %v5426_v36 = vcombine.low %v7758_v28, %v7763_v21 }
 0x124   :  { %v2385_v49 = vpop.f32.mrf.mxu1  ;;  %v6461_v52 = vpop.eup %6460  ;;  %v5864_v53 = vpack.c.bf16 %v3789_v42, %v3789_v42  ;;  %v3548_v56 = vadd.f32 1.0, %v6459_v50  ;;  %v3068_v2 = vmul.f32 0.70710677, %v7704_v43  ;;  %v2824_v39 = vmul.f32 0.5, %v7636_v61 }
 0x125   :  { %v5986_v57 = vpack.c.bf16 %v3911_v47, %v3911_v47  ;;  %v3670_v3 = vadd.f32 1.0, %v6461_v52  ;;  %v3190_v63 = vmul.f32 0.70710677, %v7707_v46  ;;  %v1898_v0 = vpop.f32.mrf.mxu0  ;;  %v2946_v42 = vmul.f32 0.5, %v7639_v62  ;;  %v6316_v62 = vld [vmem:[%s10641_s0 + $0x214] ss:$8 sps:$4 sm:$0xff]  }
 0x126   :  { %v2386_v1 = vpop.f32.mrf.mxu1  ;;  %5000 = vst.msk [vmem:[%s10643_s3 + $0x1c] sm:$0xf] %vm4992_vm1, %v5864_v53  ;;  %v3790_v59 = vmul.f32 %v3548_v56, %v2822_v54  ;;  %6474 = verf.f32 %v3068_v2  ;;  %v7728_v12 = vadd.f32 %v7361_v55, %v1898_v0  ;;  %v6318_v52 = vld [vmem:[%s10641_s0 + $0x5e4] ss:$8 sps:$4 sm:$0xff]   ;;  %v2825_v0 = vmul.f32 0.5, %v7660_v27 }
 0x127   :  { %v7731_v60 = vadd.f32 %v7361_v55, %v2386_v1  ;;  %v6463_v5 = vpop.eup %6462  ;;  %5122 = vst.msk [vmem:[%s10643_s3 + $0x204] sm:$0xf] %vm4992_vm1, %v5986_v57  ;;  %v3912_v6 = vmul.f32 %v3670_v3, %v2944_v58  ;;  %6476 = verf.f32 %v3190_v63  ;;  %v1900_v7 = vpop.f32.mrf.mxu0  ;;  %v7814_v57 = vld [vmem:[%s10641_s0 + $0x210] sm:$0xff]  ;;  %v7819_v58 = vld [vmem:[%s10641_s0 + $0x218] sm:$0xff] }
 0x128   :  { %v2388_v32 = vpop.f32.mrf.mxu1  ;;  %v6465_v33 = vpop.eup %6464  ;;  %v5865_v14 = vpack.c.bf16 %v3790_v59, %v3790_v59  ;;  %v3549_v16 = vadd.f32 1.0, %v6463_v5  ;;  %v3069_v17 = vmul.f32 0.70710677, %v7728_v12  ;;  %v5306_v28 = vcombine.low %v7814_v57, %v7819_v58 }
 0x129   :  { %v5987_v22 = vpack.c.bf16 %v3912_v6, %v3912_v6  ;;  %v3671_v24 = vadd.f32 1.0, %v6465_v33  ;;  %v3191_v8 = vmul.f32 0.70710677, %v7731_v60  ;;  %v1903_v44 = vpop.f32.mrf.mxu0  ;;  %2094 = vmatmul.mubr.bf16.gmra.mxu0 %v5302_v20  ;;  %2582 = vmatmul.mubr.bf16.gmra.mxu1 %v5424_v51  ;;  %v2947_v6 = vmul.f32 0.5, %v7663_v18 }
 0x12a   :  { %v2391_v25 = vpop.f32.mrf.mxu1  ;;  %5001 = vst.msk [vmem:[%s10643_s3 + $0x20] sm:$0xf] %vm4992_vm1, %v5865_v14  ;;  %v3791_v26 = vmul.f32 %v3549_v16, %v2823_v15  ;;  %6478 = verf.f32 %v3069_v17  ;;  %v7772_v9 = vadd.f32 %v7361_v55, %v1903_v44  ;;  %5526 = vmatprep.mubr.msk.bf16.mxu0 %vm1449_vm0, %v6312_v13  ;;  %5587 = vmatprep.mubr.msk.bf16.mxu1 %vm1449_vm0, %v6314_v4  ;;  %v7826_v13 = vld [vmem:[%s10641_s0 + $0x5e0] sm:$0xff]  ;;  %v7831_v4 = vld [vmem:[%s10641_s0 + $0x5e8] sm:$0xff] }
 0x12b   :  { %v7775_v29 = vadd.f32 %v7361_v55, %v2391_v25  ;;  %v6467_v35 = vpop.eup %6466  ;;  %5123 = vst.msk [vmem:[%s10643_s3 + $0x208] sm:$0xf] %vm4992_vm1, %v5987_v22  ;;  %v3913_v30 = vmul.f32 %v3671_v24, %v2945_v23  ;;  %6480 = verf.f32 %v3191_v8  ;;  %v1905_v31 = vpop.f32.mrf.mxu0  ;;  %v5428_v21 = vcombine.low %v7826_v13, %v7831_v4 }
 0x12c   :  { %v2393_v34 = vpop.f32.mrf.mxu1  ;;  %v6469_v37 = vpop.eup %6468  ;;  %v5866_v38 = vpack.c.bf16 %v3791_v26, %v3791_v26  ;;  %v3550_v40 = vadd.f32 1.0, %v6467_v35  ;;  %v3070_v19 = vmul.f32 0.70710677, %v7772_v9  ;;  %v2826_v24 = vmul.f32 0.5, %v7704_v43 }
 0x12d   :  { %v5988_v41 = vpack.c.bf16 %v3913_v30, %v3913_v30  ;;  %v3672_v50 = vadd.f32 1.0, %v6469_v37  ;;  %v3192_v47 = vmul.f32 0.70710677, %v7775_v29  ;;  %v1906_v48 = vpop.f32.mrf.mxu0  ;;  %v2948_v26 = vmul.f32 0.5, %v7707_v46  ;;  %v6320_v46 = vld [vmem:[%s10641_s0 + $0x224] ss:$8 sps:$4 sm:$0xff]  }
 0x12e   :  { %v2394_v49 = vpop.f32.mrf.mxu1  ;;  %5002 = vst.msk [vmem:[%s10643_s3 + $0x24] sm:$0xf] %vm4992_vm1, %v5866_v38  ;;  %v3792_v20 = vmul.f32 %v3550_v40, %v2824_v39  ;;  %6482 = verf.f32 %v3070_v19  ;;  %v7796_v61 = vadd.f32 %v7361_v55, %v1906_v48  ;;  %v6322_v37 = vld [vmem:[%s10641_s0 + $0x5f4] ss:$8 sps:$4 sm:$0xff]   ;;  %v2827_v48 = vmul.f32 0.5, %v7728_v12 }
 0x12f   :  { %v7799_v51 = vadd.f32 %v7361_v55, %v2394_v49  ;;  %v6471_v53 = vpop.eup %6470  ;;  %5124 = vst.msk [vmem:[%s10643_s3 + $0x20c] sm:$0xf] %vm4992_vm1, %v5988_v41  ;;  %v3914_v54 = vmul.f32 %v3672_v50, %v2946_v42  ;;  %6484 = verf.f32 %v3192_v47  ;;  %v1908_v56 = vpop.f32.mrf.mxu0  ;;  %v7882_v41 = vld [vmem:[%s10641_s0 + $0x220] sm:$0xff]  ;;  %v7887_v42 = vld [vmem:[%s10641_s0 + $0x228] sm:$0xff] }
 0x130   :  { %v2396_v2 = vpop.f32.mrf.mxu1  ;;  %v6473_v3 = vpop.eup %6472  ;;  %v5867_v63 = vpack.c.bf16 %v3792_v20, %v3792_v20  ;;  %v3551_v1 = vadd.f32 1.0, %v6471_v53  ;;  %v3071_v59 = vmul.f32 0.70710677, %v7796_v61  ;;  %v5308_v13 = vcombine.low %v7882_v41, %v7887_v42  ;;  %v7978_v42 = vld [vmem:[%s10642_s2] ss:$0 sm:$0xff] }
 0x131   :  { %v5989_v5 = vpack.c.bf16 %v3914_v54, %v3914_v54  ;;  %v3673_v7 = vadd.f32 1.0, %v6473_v3  ;;  %v3193_v32 = vmul.f32 0.70710677, %v7799_v51  ;;  %v1911_v27 = vpop.f32.mrf.mxu0  ;;  %2102 = vmatmul.mubr.bf16.gmra.mxu0 %v5304_v45  ;;  %2590 = vmatmul.mubr.bf16.gmra.mxu1 %v5426_v36  ;;  %v2949_v54 = vmul.f32 0.5, %v7731_v60 }
 0x132   :  { %v2399_v10 = vpop.f32.mrf.mxu1  ;;  %5003 = vst.msk [vmem:[%s10643_s3 + $0x28] sm:$0xf] %vm4992_vm1, %v5867_v63  ;;  %v3793_v11 = vmul.f32 %v3551_v1, %v2825_v0  ;;  %6486 = verf.f32 %v3071_v59  ;;  %v7840_v33 = vadd.f32 %v7361_v55, %v1911_v27  ;;  %5527 = vmatprep.mubr.msk.bf16.mxu0 %vm1449_vm0, %v6316_v62  ;;  %5588 = vmatprep.mubr.msk.bf16.mxu1 %vm1449_vm0, %v6318_v52  ;;  %v7894_v62 = vld [vmem:[%s10641_s0 + $0x5f0] sm:$0xff]  ;;  %v7899_v52 = vld [vmem:[%s10641_s0 + $0x5f8] sm:$0xff] }
 0x133   :  { %v7843_v14 = vadd.f32 %v7361_v55, %v2399_v10  ;;  %v6475_v18 = vpop.eup %6474  ;;  %5125 = vst.msk [vmem:[%s10643_s3 + $0x210] sm:$0xf] %vm4992_vm1, %v5989_v5  ;;  %v3915_v15 = vmul.f32 %v3673_v7, %v2947_v6  ;;  %6488 = verf.f32 %v3193_v32  ;;  %v1913_v16 = vpop.f32.mrf.mxu0  ;;  %v5430_v4 = vcombine.low %v7894_v62, %v7899_v52 }
 0x134   :  { %v2401_v17 = vpop.f32.mrf.mxu1  ;;  %v6477_v22 = vpop.eup %6476  ;;  %v5868_v23 = vpack.c.bf16 %v3793_v11, %v3793_v11  ;;  %v3552_v8 = vadd.f32 1.0, %v6475_v18  ;;  %v3072_v44 = vmul.f32 0.70710677, %v7840_v33  ;;  %v2828_v7 = vmul.f32 0.5, %v7772_v9 }
 0x135   :  { %v5990_v25 = vpack.c.bf16 %v3915_v15, %v3915_v15  ;;  %v3674_v35 = vadd.f32 1.0, %v6477_v22  ;;  %v3194_v30 = vmul.f32 0.70710677, %v7843_v14  ;;  %v1914_v31 = vpop.f32.mrf.mxu0  ;;  %v2950_v11 = vmul.f32 0.5, %v7775_v29  ;;  %v6324_v29 = vld [vmem:[%s10641_s0 + $0x234] ss:$8 sps:$4 sm:$0xff]  }
 0x136   :  { %v2402_v34 = vpop.f32.mrf.mxu1  ;;  %5004 = vst.msk [vmem:[%s10643_s3 + $0x2c] sm:$0xf] %vm4992_vm1, %v5868_v23  ;;  %v3794_v45 = vmul.f32 %v3552_v8, %v2826_v24  ;;  %6490 = verf.f32 %v3072_v44  ;;  %v7864_v43 = vadd.f32 %v7361_v55, %v1914_v31  ;;  %v6326_v22 = vld [vmem:[%s10641_s0 + $0x604] ss:$8 sps:$4 sm:$0xff]  }
 0x137   :  { %v7867_v36 = vadd.f32 %v7361_v55, %v2402_v34  ;;  %v6479_v38 = vpop.eup %6478  ;;  %5126 = vst.msk [vmem:[%s10643_s3 + $0x214] sm:$0xf] %vm4992_vm1, %v5990_v25  ;;  %v3916_v39 = vmul.f32 %v3674_v35, %v2948_v26  ;;  %6492 = verf.f32 %v3194_v30  ;;  %v1916_v40 = vpop.f32.mrf.mxu0  ;;  %v7955_v25 = vld [vmem:[%s10641_s0 + $0x238] sm:$0xff]  ;;  %v2829_v30 = vmul.f32 0.5, %v7796_v61 }
 0x138   :  { %v2404_v19 = vpop.f32.mrf.mxu1  ;;  %v6481_v50 = vpop.eup %6480  ;;  %v5869_v47 = vpack.c.bf16 %v3794_v45, %v3794_v45  ;;  %v3553_v49 = vadd.f32 1.0, %v6479_v38  ;;  %v3073_v20 = vmul.f32 0.70710677, %v7864_v43  ;;  %v7962_v45 = vld [vmem:[%s10641_s0 + $0x600] sm:$0xff]  ;;  %v2951_v38 = vmul.f32 0.5, %v7799_v51 }
 0x139   :  { %v5991_v53 = vpack.c.bf16 %v3916_v39, %v3916_v39  ;;  %v3675_v56 = vadd.f32 1.0, %v6481_v50  ;;  %v3195_v2 = vmul.f32 0.70710677, %v7867_v36  ;;  %v1919_v12 = vpop.f32.mrf.mxu0  ;;  %2110 = vmatmul.mubr.bf16.gmra.mxu0 %v5306_v28  ;;  %2598 = vmatmul.mubr.bf16.gmra.mxu1 %v5428_v21 }
 0x13a   :  { %v2407_v57 = vpop.f32.mrf.mxu1  ;;  %5005 = vst.msk [vmem:[%s10643_s3 + $0x30] sm:$0xf] %vm4992_vm1, %v5869_v47  ;;  %v3795_v58 = vmul.f32 %v3553_v49, %v2827_v48  ;;  %6494 = verf.f32 %v3073_v20  ;;  %v7908_v3 = vadd.f32 %v7361_v55, %v1919_v12  ;;  %5528 = vmatprep.mubr.msk.bf16.mxu0 %vm1449_vm0, %v6320_v46  ;;  %5589 = vmatprep.mubr.msk.bf16.mxu1 %vm1449_vm0, %v6322_v37  ;;  %v7967_v46 = vld [vmem:[%s10641_s0 + $0x608] sm:$0xff] }
 0x13b   :  { %v7911_v63 = vadd.f32 %v7361_v55, %v2407_v57  ;;  %v6483_v60 = vpop.eup %6482  ;;  %5127 = vst.msk [vmem:[%s10643_s3 + $0x218] sm:$0xf] %vm4992_vm1, %v5991_v53  ;;  %v3917_v0 = vmul.f32 %v3675_v56, %v2949_v54  ;;  %6496 = verf.f32 %v3195_v2  ;;  %v1921_v1 = vpop.f32.mrf.mxu0  ;;  %v5432_v52 = vcombine.low %v7962_v45, %v7967_v46 }
 0x13c   :  { %v2409_v59 = vpop.f32.mrf.mxu1  ;;  %v6485_v5 = vpop.eup %6484  ;;  %v5870_v6 = vpack.c.bf16 %v3795_v58, %v3795_v58  ;;  %v3554_v32 = vadd.f32 1.0, %v6483_v60  ;;  %v3074_v27 = vmul.f32 0.70710677, %v7908_v3  ;;  %v2830_v56 = vmul.f32 0.5, %v7840_v33 }
 0x13d   :  { %v5992_v10 = vpack.c.bf16 %v3917_v0, %v3917_v0  ;;  %v3676_v18 = vadd.f32 1.0, %v6485_v5  ;;  %v3196_v15 = vmul.f32 0.70710677, %v7911_v63  ;;  %v1922_v16 = vpop.f32.mrf.mxu0  ;;  %v2952_v58 = vmul.f32 0.5, %v7843_v14  ;;  %v6328_v14 = vld [vmem:[%s10641_s0 + $0x244] ss:$8 sps:$4 sm:$0xff]  }
 0x13e   :  { %v2410_v17 = vpop.f32.mrf.mxu1  ;;  %5006 = vst.msk [vmem:[%s10643_s3 + $0x34] sm:$0xf] %vm4992_vm1, %v5870_v6  ;;  %v3796_v28 = vmul.f32 %v3554_v32, %v2828_v7  ;;  %6498 = verf.f32 %v3074_v27  ;;  %v7932_v9 = vadd.f32 %v7361_v55, %v1922_v16  ;;  %v6330_v5 = vld [vmem:[%s10641_s0 + $0x614] ss:$8 sps:$4 sm:$0xff]   ;;  %v2831_v16 = vmul.f32 0.5, %v7864_v43 }
 0x13f   :  { %v7935_v21 = vadd.f32 %v7361_v55, %v2410_v17  ;;  %v6487_v23 = vpop.eup %6486  ;;  %5128 = vst.msk [vmem:[%s10643_s3 + $0x21c] sm:$0xf] %vm4992_vm1, %v5992_v10  ;;  %v3918_v24 = vmul.f32 %v3676_v18, %v2950_v11  ;;  %6500 = verf.f32 %v3196_v15  ;;  %v1924_v8 = vpop.f32.mrf.mxu0  ;;  %v7950_v55 = vld [vmem:[%s10641_s0 + $0x230] sm:$0xff]  ;;  %v8023_v10 = vld [vmem:[%s10641_s0 + $0x240] sm:$0xff]  ;;  %v8028_v11 = vld [vmem:[%s10641_s0 + $0x248] sm:$0xff] }
 0x140   :  { %v2412_v44 = vpop.f32.mrf.mxu1  ;;  %v6489_v26 = vpop.eup %6488  ;;  %v5871_v35 = vpack.c.bf16 %v3796_v28, %v3796_v28  ;;  %v3555_v31 = vadd.f32 1.0, %v6487_v23  ;;  %v3075_v34 = vmul.f32 0.70710677, %v7932_v9  ;;  %v5310_v62 = vcombine.low %v7950_v55, %v7955_v25 }
 0x141   :  { %v5993_v37 = vpack.c.bf16 %v3918_v24, %v3918_v24  ;;  %v3677_v39 = vadd.f32 1.0, %v6489_v26  ;;  %v3197_v40 = vmul.f32 0.70710677, %v7935_v21  ;;  %v1927_v61 = vpop.f32.mrf.mxu0  ;;  %2118 = vmatmul.mubr.bf16.gmra.mxu0 %v5308_v13  ;;  %2606 = vmatmul.mubr.bf16.gmra.mxu1 %v5430_v4  ;;  %v2953_v24 = vmul.f32 0.5, %v7867_v36 }
 0x142   :  { %v2415_v19 = vpop.f32.mrf.mxu1  ;;  %5007 = vst.msk [vmem:[%s10643_s3 + $0x38] sm:$0xf] %vm4992_vm1, %v5871_v35  ;;  %v3797_v41 = vmul.f32 %v3555_v31, %v2829_v30  ;;  %6502 = verf.f32 %v3075_v34  ;;  %v7981_v51 = vadd.f32 %v7978_v42, %v1927_v61  ;;  %5529 = vmatprep.mubr.msk.bf16.mxu0 %vm1449_vm0, %v6324_v29  ;;  %5590 = vmatprep.mubr.msk.bf16.mxu1 %vm1449_vm0, %v6326_v22  ;;  %v8035_v29 = vld [vmem:[%s10641_s0 + $0x610] sm:$0xff]  ;;  %v8040_v22 = vld [vmem:[%s10641_s0 + $0x618] sm:$0xff] }
 0x143   :  { %v7984_v50 = vadd.f32 %v7978_v42, %v2415_v19  ;;  %v6491_v47 = vpop.eup %6490  ;;  %5129 = vst.msk [vmem:[%s10643_s3 + $0x220] sm:$0xf] %vm4992_vm1, %v5993_v37  ;;  %v3919_v48 = vmul.f32 %v3677_v39, %v2951_v38  ;;  %6504 = verf.f32 %v3197_v40  ;;  %v1929_v49 = vpop.f32.mrf.mxu0  ;;  %v5312_v45 = vcombine.low %v8023_v10, %v8028_v11 }
 0x144   :  { %v2417_v20 = vpop.f32.mrf.mxu1  ;;  %v6493_v53 = vpop.eup %6492  ;;  %v5872_v54 = vpack.c.bf16 %v3797_v41, %v3797_v41  ;;  %v3556_v2 = vadd.f32 1.0, %v6491_v47  ;;  %v3076_v12 = vmul.f32 0.70710677, %v7981_v51  ;;  %v5434_v46 = vcombine.low %v8035_v29, %v8040_v22 }
 0x145   :  { %v5994_v57 = vpack.c.bf16 %v3919_v48, %v3919_v48  ;;  %v3678_v60 = vadd.f32 1.0, %v6493_v53  ;;  %v3198_v0 = vmul.f32 0.70710677, %v7984_v50  ;;  %v1930_v1 = vpop.f32.mrf.mxu0  ;;  %v2832_v39 = vmul.f32 0.5, %v7908_v3  ;;  %v6334_v53 = vld [vmem:[%s10641_s0 + $0x624] ss:$8 sps:$4 sm:$0xff]  }
 0x146   :  { %v2418_v59 = vpop.f32.mrf.mxu1  ;;  %5008 = vst.msk [vmem:[%s10643_s3 + $0x3c] sm:$0xf] %vm4992_vm1, %v5872_v54  ;;  %v3798_v13 = vmul.f32 %v3556_v2, %v2830_v56  ;;  %6506 = verf.f32 %v3076_v12  ;;  %v8005_v33 = vadd.f32 %v7978_v42, %v1930_v1  ;;  %v2954_v41 = vmul.f32 0.5, %v7911_v63  ;;  %v6332_v63 = vld [vmem:[%s10641_s0 + $0x254] ss:$8 sps:$4 sm:$0xff]  }
 0x147   :  { %v8008_v4 = vadd.f32 %v7978_v42, %v2418_v59  ;;  %v6495_v6 = vpop.eup %6494  ;;  %5130 = vst.msk [vmem:[%s10643_s3 + $0x224] sm:$0xf] %vm4992_vm1, %v5994_v57  ;;  %v3920_v7 = vmul.f32 %v3678_v60, %v2952_v58  ;;  %6508 = verf.f32 %v3198_v0  ;;  %v1932_v32 = vpop.f32.mrf.mxu0  ;;  %v8091_v57 = vld [vmem:[%s10641_s0 + $0x250] sm:$0xff]  ;;  %v8096_v58 = vld [vmem:[%s10641_s0 + $0x258] sm:$0xff]  ;;  %v2833_v1 = vmul.f32 0.5, %v7932_v9 }
 0x148   :  { %v2420_v27 = vpop.f32.mrf.mxu1  ;;  %v6497_v18 = vpop.eup %6496  ;;  %v5873_v15 = vpack.c.bf16 %v3798_v13, %v3798_v13  ;;  %v3557_v17 = vadd.f32 1.0, %v6495_v6  ;;  %v3077_v28 = vmul.f32 0.70710677, %v8005_v33  ;;  %v5314_v29 = vcombine.low %v8091_v57, %v8096_v58 }
 0x149   :  { %v5995_v23 = vpack.c.bf16 %v3920_v7, %v3920_v7  ;;  %v3679_v8 = vadd.f32 1.0, %v6497_v18  ;;  %v3199_v44 = vmul.f32 0.70710677, %v8008_v4  ;;  %v1935_v43 = vpop.f32.mrf.mxu0  ;;  %2126 = vmatmul.mubr.bf16.gmra.mxu0 %v5310_v62  ;;  %2614 = vmatmul.mubr.bf16.gmra.mxu1 %v5432_v52  ;;  %v2955_v7 = vmul.f32 0.5, %v7935_v21 }
 0x14a   :  { %v2423_v55 = vpop.f32.mrf.mxu1  ;;  %5009 = vst.msk [vmem:[%s10643_s3 + $0x40] sm:$0xf] %vm4992_vm1, %v5873_v15  ;;  %v3799_v25 = vmul.f32 %v3557_v17, %v2831_v16  ;;  %6510 = verf.f32 %v3077_v28  ;;  %v8049_v26 = vadd.f32 %v7978_v42, %v1935_v43  ;;  %5530 = vmatprep.mubr.msk.bf16.mxu0 %vm1449_vm0, %v6328_v14  ;;  %5591 = vmatprep.mubr.msk.bf16.mxu1 %vm1449_vm0, %v6330_v5  ;;  %v8103_v14 = vld [vmem:[%s10641_s0 + $0x620] sm:$0xff]  ;;  %v8108_v5 = vld [vmem:[%s10641_s0 + $0x628] sm:$0xff] }
 0x14b   :  { %v8052_v35 = vadd.f32 %v7978_v42, %v2423_v55  ;;  %v6499_v36 = vpop.eup %6498  ;;  %5131 = vst.msk [vmem:[%s10643_s3 + $0x228] sm:$0xf] %vm4992_vm1, %v5995_v23  ;;  %v3921_v30 = vmul.f32 %v3679_v8, %v2953_v24  ;;  %6512 = verf.f32 %v3199_v44  ;;  %v1937_v31 = vpop.f32.mrf.mxu0  ;;  %v5436_v22 = vcombine.low %v8103_v14, %v8108_v5 }
 0x14c   :  { %v2425_v34 = vpop.f32.mrf.mxu1  ;;  %v6501_v37 = vpop.eup %6500  ;;  %v5874_v38 = vpack.c.bf16 %v3799_v25, %v3799_v25  ;;  %v3558_v40 = vadd.f32 1.0, %v6499_v36  ;;  %v3078_v61 = vmul.f32 0.70710677, %v8049_v26  ;;  %v2834_v8 = vmul.f32 0.5, %v7981_v51 }
 0x14d   :  { %v5996_v19 = vpack.c.bf16 %v3921_v30, %v3921_v30  ;;  %v3680_v47 = vadd.f32 1.0, %v6501_v37  ;;  %v3200_v48 = vmul.f32 0.70710677, %v8052_v35  ;;  %v1938_v49 = vpop.f32.mrf.mxu0  ;;  %v2956_v25 = vmul.f32 0.5, %v7984_v50  ;;  %v6336_v50 = vld [vmem:[%s10641_s0 + $0x264] ss:$8 sps:$4 sm:$0xff]  }
 0x14e   :  { %v2426_v20 = vpop.f32.mrf.mxu1  ;;  %5010 = vst.msk [vmem:[%s10643_s3 + $0x44] sm:$0xf] %vm4992_vm1, %v5874_v38  ;;  %v3800_v62 = vmul.f32 %v3558_v40, %v2832_v39  ;;  %6514 = verf.f32 %v3078_v61  ;;  %v8073_v3 = vadd.f32 %v7978_v42, %v1938_v49  ;;  %v6338_v37 = vld [vmem:[%s10641_s0 + $0x634] ss:$8 sps:$4 sm:$0xff]   ;;  %v2835_v49 = vmul.f32 0.5, %v8005_v33 }
 0x14f   :  { %v8076_v52 = vadd.f32 %v7978_v42, %v2426_v20  ;;  %v6503_v54 = vpop.eup %6502  ;;  %5132 = vst.msk [vmem:[%s10643_s3 + $0x22c] sm:$0xf] %vm4992_vm1, %v5996_v19  ;;  %v3922_v56 = vmul.f32 %v3680_v47, %v2954_v41  ;;  %6516 = verf.f32 %v3200_v48  ;;  %v1940_v2 = vpop.f32.mrf.mxu0  ;;  %v8159_v19 = vld [vmem:[%s10641_s0 + $0x260] sm:$0xff]  ;;  %v8164_v41 = vld [vmem:[%s10641_s0 + $0x268] sm:$0xff] }
 0x150   :  { %v2428_v12 = vpop.f32.mrf.mxu1  ;;  %v6505_v60 = vpop.eup %6504  ;;  %v5875_v0 = vpack.c.bf16 %v3800_v62, %v3800_v62  ;;  %v3559_v59 = vadd.f32 1.0, %v6503_v54  ;;  %v3079_v13 = vmul.f32 0.70710677, %v8073_v3  ;;  %v5316_v14 = vcombine.low %v8159_v19, %v8164_v41 }
 0x151   :  { %v5997_v6 = vpack.c.bf16 %v3922_v56, %v3922_v56  ;;  %v3681_v32 = vadd.f32 1.0, %v6505_v60  ;;  %v3201_v27 = vmul.f32 0.70710677, %v8076_v52  ;;  %v1943_v9 = vpop.f32.mrf.mxu0  ;;  %2134 = vmatmul.mubr.bf16.gmra.mxu0 %v5312_v45  ;;  %2622 = vmatmul.mubr.bf16.gmra.mxu1 %v5434_v46  ;;  %v2957_v56 = vmul.f32 0.5, %v8008_v4 }
 0x152   :  { %v2431_v10 = vpop.f32.mrf.mxu1  ;;  %5011 = vst.msk [vmem:[%s10643_s3 + $0x48] sm:$0xf] %vm4992_vm1, %v5875_v0  ;;  %v3801_v11 = vmul.f32 %v3559_v59, %v2833_v1  ;;  %6518 = verf.f32 %v3079_v13  ;;  %v8117_v18 = vadd.f32 %v7978_v42, %v1943_v9  ;;  %5531 = vmatprep.mubr.msk.bf16.mxu0 %vm1449_vm0, %v6332_v63  ;;  %5592 = vmatprep.mubr.msk.bf16.mxu1 %vm1449_vm0, %v6334_v53  ;;  %v8171_v63 = vld [vmem:[%s10641_s0 + $0x630] sm:$0xff]  ;;  %v8176_v53 = vld [vmem:[%s10641_s0 + $0x638] sm:$0xff] }
 0x153   :  { %v8120_v15 = vadd.f32 %v7978_v42, %v2431_v10  ;;  %v6507_v21 = vpop.eup %6506  ;;  %5133 = vst.msk [vmem:[%s10643_s3 + $0x230] sm:$0xf] %vm4992_vm1, %v5997_v6  ;;  %v3923_v16 = vmul.f32 %v3681_v32, %v2955_v7  ;;  %6520 = verf.f32 %v3201_v27  ;;  %v1945_v17 = vpop.f32.mrf.mxu0  ;;  %v5438_v5 = vcombine.low %v8171_v63, %v8176_v53 }
 0x154   :  { %v2433_v28 = vpop.f32.mrf.mxu1  ;;  %v6509_v23 = vpop.eup %6508  ;;  %v5876_v24 = vpack.c.bf16 %v3801_v11, %v3801_v11  ;;  %v3560_v44 = vadd.f32 1.0, %v6507_v21  ;;  %v3080_v43 = vmul.f32 0.70710677, %v8117_v18  ;;  %v2836_v32 = vmul.f32 0.5, %v8049_v26 }
 0x155   :  { %v5998_v55 = vpack.c.bf16 %v3923_v16, %v3923_v16  ;;  %v3682_v36 = vadd.f32 1.0, %v6509_v23  ;;  %v3202_v30 = vmul.f32 0.70710677, %v8120_v15  ;;  %v1946_v31 = vpop.f32.mrf.mxu0  ;;  %v2958_v11 = vmul.f32 0.5, %v8052_v35  ;;  %v6340_v35 = vld [vmem:[%s10641_s0 + $0x274] ss:$8 sps:$4 sm:$0xff]  }
 0x156   :  { %v2434_v34 = vpop.f32.mrf.mxu1  ;;  %5012 = vst.msk [vmem:[%s10643_s3 + $0x4c] sm:$0xf] %vm4992_vm1, %v5876_v24  ;;  %v3802_v45 = vmul.f32 %v3560_v44, %v2834_v8  ;;  %6522 = verf.f32 %v3080_v43  ;;  %v8141_v51 = vadd.f32 %v7978_v42, %v1946_v31  ;;  %v6342_v23 = vld [vmem:[%s10641_s0 + $0x644] ss:$8 sps:$4 sm:$0xff]   ;;  %v2837_v31 = vmul.f32 0.5, %v8073_v3 }
 0x157   :  { %v8144_v46 = vadd.f32 %v7978_v42, %v2434_v34  ;;  %v6511_v38 = vpop.eup %6510  ;;  %5134 = vst.msk [vmem:[%s10643_s3 + $0x234] sm:$0xf] %vm4992_vm1, %v5998_v55  ;;  %v3924_v39 = vmul.f32 %v3682_v36, %v2956_v25  ;;  %6524 = verf.f32 %v3202_v30  ;;  %v1948_v40 = vpop.f32.mrf.mxu0  ;;  %v8227_v55 = vld [vmem:[%s10641_s0 + $0x270] sm:$0xff]  ;;  %v8232_v25 = vld [vmem:[%s10641_s0 + $0x278] sm:$0xff] }
 0x158   :  { %v2436_v61 = vpop.f32.mrf.mxu1  ;;  %v6513_v47 = vpop.eup %6512  ;;  %v5877_v48 = vpack.c.bf16 %v3802_v45, %v3802_v45  ;;  %v3561_v20 = vadd.f32 1.0, %v6511_v38  ;;  %v3081_v62 = vmul.f32 0.70710677, %v8141_v51  ;;  %v5318_v63 = vcombine.low %v8227_v55, %v8232_v25 }
 0x159   :  { %v5999_v54 = vpack.c.bf16 %v3924_v39, %v3924_v39  ;;  %v3683_v2 = vadd.f32 1.0, %v6513_v47  ;;  %v3203_v12 = vmul.f32 0.70710677, %v8144_v46  ;;  %v1951_v33 = vpop.f32.mrf.mxu0  ;;  %2142 = vmatmul.mubr.bf16.gmra.mxu0 %v5314_v29  ;;  %2630 = vmatmul.mubr.bf16.gmra.mxu1 %v5436_v22  ;;  %v2959_v39 = vmul.f32 0.5, %v8076_v52 }
 0x15a   :  { %v2439_v57 = vpop.f32.mrf.mxu1  ;;  %5013 = vst.msk [vmem:[%s10643_s3 + $0x50] sm:$0xf] %vm4992_vm1, %v5877_v48  ;;  %v3803_v58 = vmul.f32 %v3561_v20, %v2835_v49  ;;  %6526 = verf.f32 %v3081_v62  ;;  %v8185_v60 = vadd.f32 %v7978_v42, %v1951_v33  ;;  %5532 = vmatprep.mubr.msk.bf16.mxu0 %vm1449_vm0, %v6336_v50  ;;  %5593 = vmatprep.mubr.msk.bf16.mxu1 %vm1449_vm0, %v6338_v37  ;;  %v8239_v50 = vld [vmem:[%s10641_s0 + $0x640] sm:$0xff]  ;;  %v8244_v37 = vld [vmem:[%s10641_s0 + $0x648] sm:$0xff] }
 0x15b   :  { %v8188_v0 = vadd.f32 %v7978_v42, %v2439_v57  ;;  %v6515_v4 = vpop.eup %6514  ;;  %5135 = vst.msk [vmem:[%s10643_s3 + $0x238] sm:$0xf] %vm4992_vm1, %v5999_v54  ;;  %v3925_v1 = vmul.f32 %v3683_v2, %v2957_v56  ;;  %6528 = verf.f32 %v3203_v12  ;;  %v1953_v59 = vpop.f32.mrf.mxu0  ;;  %v5440_v53 = vcombine.low %v8239_v50, %v8244_v37 }
 0x15c   :  { %v2441_v13 = vpop.f32.mrf.mxu1  ;;  %v6517_v6 = vpop.eup %6516  ;;  %v5878_v7 = vpack.c.bf16 %v3803_v58, %v3803_v58  ;;  %v3562_v27 = vadd.f32 1.0, %v6515_v4  ;;  %v3082_v9 = vmul.f32 0.70710677, %v8185_v60  ;;  %v2838_v2 = vmul.f32 0.5, %v8117_v18 }
 0x15d   :  { %v6000_v10 = vpack.c.bf16 %v3925_v1, %v3925_v1  ;;  %v3684_v21 = vadd.f32 1.0, %v6517_v6  ;;  %v3204_v16 = vmul.f32 0.70710677, %v8188_v0  ;;  %v1954_v17 = vpop.f32.mrf.mxu0  ;;  %v2960_v58 = vmul.f32 0.5, %v8120_v15  ;;  %v6344_v15 = vld [vmem:[%s10641_s0 + $0x284] ss:$8 sps:$4 sm:$0xff]  }
 0x15e   :  { %v2442_v28 = vpop.f32.mrf.mxu1  ;;  %5014 = vst.msk [vmem:[%s10643_s3 + $0x54] sm:$0xf] %vm4992_vm1, %v5878_v7  ;;  %v3804_v29 = vmul.f32 %v3562_v27, %v2836_v32  ;;  %6530 = verf.f32 %v3082_v9  ;;  %v8209_v26 = vadd.f32 %v7978_v42, %v1954_v17  ;;  %v6346_v6 = vld [vmem:[%s10641_s0 + $0x654] ss:$8 sps:$4 sm:$0xff]   ;;  %v2839_v17 = vmul.f32 0.5, %v8141_v51 }
 0x15f   :  { %v8212_v22 = vadd.f32 %v7978_v42, %v2442_v28  ;;  %v6519_v24 = vpop.eup %6518  ;;  %5136 = vst.msk [vmem:[%s10643_s3 + $0x23c] sm:$0xf] %vm4992_vm1, %v6000_v10  ;;  %v3926_v8 = vmul.f32 %v3684_v21, %v2958_v11  ;;  %6532 = verf.f32 %v3204_v16  ;;  %v1956_v44 = vpop.f32.mrf.mxu0  ;;  %v8295_v10 = vld [vmem:[%s10641_s0 + $0x280] sm:$0xff]  ;;  %v8300_v11 = vld [vmem:[%s10641_s0 + $0x288] sm:$0xff] }
 0x160   :  { %v2444_v43 = vpop.f32.mrf.mxu1  ;;  %v6521_v36 = vpop.eup %6520  ;;  %v5879_v30 = vpack.c.bf16 %v3804_v29, %v3804_v29  ;;  %v3563_v34 = vadd.f32 1.0, %v6519_v24  ;;  %v3083_v45 = vmul.f32 0.70710677, %v8209_v26  ;;  %v5320_v50 = vcombine.low %v8295_v10, %v8300_v11 }
 0x161   :  { %v6001_v38 = vpack.c.bf16 %v3926_v8, %v3926_v8  ;;  %v3685_v40 = vadd.f32 1.0, %v6521_v36  ;;  %v3205_v61 = vmul.f32 0.70710677, %v8212_v22  ;;  %v1959_v3 = vpop.f32.mrf.mxu0  ;;  %2150 = vmatmul.mubr.bf16.gmra.mxu0 %v5316_v14  ;;  %2638 = vmatmul.mubr.bf16.gmra.mxu1 %v5438_v5  ;;  %v2961_v8 = vmul.f32 0.5, %v8144_v46 }
 0x162   :  { %v2447_v19 = vpop.f32.mrf.mxu1  ;;  %5015 = vst.msk [vmem:[%s10643_s3 + $0x58] sm:$0xf] %vm4992_vm1, %v5879_v30  ;;  %v3805_v41 = vmul.f32 %v3563_v34, %v2837_v31  ;;  %6534 = verf.f32 %v3083_v45  ;;  %v8253_v47 = vadd.f32 %v7978_v42, %v1959_v3  ;;  %5533 = vmatprep.mubr.msk.bf16.mxu0 %vm1449_vm0, %v6340_v35  ;;  %5594 = vmatprep.mubr.msk.bf16.mxu1 %vm1449_vm0, %v6342_v23  ;;  %v8307_v35 = vld [vmem:[%s10641_s0 + $0x650] sm:$0xff]  ;;  %v8312_v23 = vld [vmem:[%s10641_s0 + $0x658] sm:$0xff] }
 0x163   :  { %v8256_v48 = vadd.f32 %v7978_v42, %v2447_v19  ;;  %v6523_v52 = vpop.eup %6522  ;;  %5137 = vst.msk [vmem:[%s10643_s3 + $0x240] sm:$0xf] %vm4992_vm1, %v6001_v38  ;;  %v3927_v49 = vmul.f32 %v3685_v40, %v2959_v39  ;;  %6536 = verf.f32 %v3205_v61  ;;  %v1961_v20 = vpop.f32.mrf.mxu0  ;;  %v5442_v37 = vcombine.low %v8307_v35, %v8312_v23 }
 0x164   :  { %v2449_v62 = vpop.f32.mrf.mxu1  ;;  %v6525_v54 = vpop.eup %6524  ;;  %v5880_v56 = vpack.c.bf16 %v3805_v41, %v3805_v41  ;;  %v3564_v12 = vadd.f32 1.0, %v6523_v52  ;;  %v3084_v33 = vmul.f32 0.70710677, %v8253_v47  ;;  %v2840_v40 = vmul.f32 0.5, %v8185_v60 }
 0x165   :  { %v6002_v57 = vpack.c.bf16 %v3927_v49, %v3927_v49  ;;  %v3686_v4 = vadd.f32 1.0, %v6525_v54  ;;  %v3206_v1 = vmul.f32 0.70710677, %v8256_v48  ;;  %v1962_v59 = vpop.f32.mrf.mxu0  ;;  %v2962_v41 = vmul.f32 0.5, %v8188_v0  ;;  %v6348_v0 = vld [vmem:[%s10641_s0 + $0x294] ss:$8 sps:$4 sm:$0xff]  }
 0x166   :  { %v2450_v13 = vpop.f32.mrf.mxu1  ;;  %5016 = vst.msk [vmem:[%s10643_s3 + $0x5c] sm:$0xf] %vm4992_vm1, %v5880_v56  ;;  %v3806_v14 = vmul.f32 %v3564_v12, %v2838_v2  ;;  %6538 = verf.f32 %v3084_v33  ;;  %v8277_v18 = vadd.f32 %v7978_v42, %v1962_v59  ;;  %v6350_v54 = vld [vmem:[%s10641_s0 + $0x664] ss:$8 sps:$4 sm:$0xff]   ;;  %v2841_v59 = vmul.f32 0.5, %v8209_v26 }
 0x167   :  { %v8280_v5 = vadd.f32 %v7978_v42, %v2450_v13  ;;  %v6527_v7 = vpop.eup %6526  ;;  %5138 = vst.msk [vmem:[%s10643_s3 + $0x244] sm:$0xf] %vm4992_vm1, %v6002_v57  ;;  %v3928_v32 = vmul.f32 %v3686_v4, %v2960_v58  ;;  %6540 = verf.f32 %v3206_v1  ;;  %v1964_v27 = vpop.f32.mrf.mxu0  ;;  %v8363_v57 = vld [vmem:[%s10641_s0 + $0x290] sm:$0xff]  ;;  %v8368_v58 = vld [vmem:[%s10641_s0 + $0x298] sm:$0xff] }
 0x168   :  { %v2452_v9 = vpop.f32.mrf.mxu1  ;;  %v6529_v21 = vpop.eup %6528  ;;  %v5881_v16 = vpack.c.bf16 %v3806_v14, %v3806_v14  ;;  %v3565_v28 = vadd.f32 1.0, %v6527_v7  ;;  %v3085_v29 = vmul.f32 0.70710677, %v8277_v18  ;;  %v5322_v35 = vcombine.low %v8363_v57, %v8368_v58 }
 0x169   :  { %v6003_v24 = vpack.c.bf16 %v3928_v32, %v3928_v32  ;;  %v3687_v44 = vadd.f32 1.0, %v6529_v21  ;;  %v3207_v43 = vmul.f32 0.70710677, %v8280_v5  ;;  %v1967_v51 = vpop.f32.mrf.mxu0  ;;  %2158 = vmatmul.mubr.bf16.gmra.mxu0 %v5318_v63  ;;  %2646 = vmatmul.mubr.bf16.gmra.mxu1 %v5440_v53  ;;  %v2963_v32 = vmul.f32 0.5, %v8212_v22 }
 0x16a   :  { %v2455_v55 = vpop.f32.mrf.mxu1  ;;  %5017 = vst.msk [vmem:[%s10643_s3 + $0x60] sm:$0xf] %vm4992_vm1, %v5881_v16  ;;  %v3807_v25 = vmul.f32 %v3565_v28, %v2839_v17  ;;  %6542 = verf.f32 %v3085_v29  ;;  %v8321_v36 = vadd.f32 %v7978_v42, %v1967_v51  ;;  %5534 = vmatprep.mubr.msk.bf16.mxu0 %vm1449_vm0, %v6344_v15  ;;  %5595 = vmatprep.mubr.msk.bf16.mxu1 %vm1449_vm0, %v6346_v6  ;;  %v8375_v15 = vld [vmem:[%s10641_s0 + $0x660] sm:$0xff]  ;;  %v8380_v6 = vld [vmem:[%s10641_s0 + $0x668] sm:$0xff] }
 0x16b   :  { %v8324_v30 = vadd.f32 %v7978_v42, %v2455_v55  ;;  %v6531_v46 = vpop.eup %6530  ;;  %5139 = vst.msk [vmem:[%s10643_s3 + $0x248] sm:$0xf] %vm4992_vm1, %v6003_v24  ;;  %v3929_v31 = vmul.f32 %v3687_v44, %v2961_v8  ;;  %6544 = verf.f32 %v3207_v43  ;;  %v1969_v34 = vpop.f32.mrf.mxu0  ;;  %v5444_v23 = vcombine.low %v8375_v15, %v8380_v6 }
 0x16c   :  { %v2457_v45 = vpop.f32.mrf.mxu1  ;;  %v6533_v38 = vpop.eup %6532  ;;  %v5882_v39 = vpack.c.bf16 %v3807_v25, %v3807_v25  ;;  %v3566_v61 = vadd.f32 1.0, %v6531_v46  ;;  %v3086_v3 = vmul.f32 0.70710677, %v8321_v36  ;;  %v2842_v44 = vmul.f32 0.5, %v8253_v47 }
 0x16d   :  { %v6004_v19 = vpack.c.bf16 %v3929_v31, %v3929_v31  ;;  %v3688_v52 = vadd.f32 1.0, %v6533_v38  ;;  %v3208_v49 = vmul.f32 0.70710677, %v8324_v30  ;;  %v1970_v20 = vpop.f32.mrf.mxu0  ;;  %v2964_v25 = vmul.f32 0.5, %v8256_v48  ;;  %v6352_v48 = vld [vmem:[%s10641_s0 + $0x2a4] ss:$8 sps:$4 sm:$0xff]  }
 0x16e   :  { %v2458_v62 = vpop.f32.mrf.mxu1  ;;  %5018 = vst.msk [vmem:[%s10643_s3 + $0x64] sm:$0xf] %vm4992_vm1, %v5882_v39  ;;  %v3808_v63 = vmul.f32 %v3566_v61, %v2840_v40  ;;  %6546 = verf.f32 %v3086_v3  ;;  %v8345_v60 = vadd.f32 %v7978_v42, %v1970_v20  ;;  %v6354_v38 = vld [vmem:[%s10641_s0 + $0x674] ss:$8 sps:$4 sm:$0xff]   ;;  %v2843_v20 = vmul.f32 0.5, %v8277_v18 }
 0x16f   :  { %v8348_v53 = vadd.f32 %v7978_v42, %v2458_v62  ;;  %v6535_v56 = vpop.eup %6534  ;;  %5140 = vst.msk [vmem:[%s10643_s3 + $0x24c] sm:$0xf] %vm4992_vm1, %v6004_v19  ;;  %v3930_v2 = vmul.f32 %v3688_v52, %v2962_v41  ;;  %6548 = verf.f32 %v3208_v49  ;;  %v1972_v12 = vpop.f32.mrf.mxu0  ;;  %v8431_v19 = vld [vmem:[%s10641_s0 + $0x2a0] sm:$0xff]  ;;  %v8436_v41 = vld [vmem:[%s10641_s0 + $0x2a8] sm:$0xff] }
 0x170   :  { %v2460_v33 = vpop.f32.mrf.mxu1  ;;  %v6537_v4 = vpop.eup %6536  ;;  %v5883_v1 = vpack.c.bf16 %v3808_v63, %v3808_v63  ;;  %v3567_v13 = vadd.f32 1.0, %v6535_v56  ;;  %v3087_v14 = vmul.f32 0.70710677, %v8345_v60  ;;  %v5324_v15 = vcombine.low %v8431_v19, %v8436_v41 }
 0x171   :  { %v6005_v7 = vpack.c.bf16 %v3930_v2, %v3930_v2  ;;  %v3689_v27 = vadd.f32 1.0, %v6537_v4  ;;  %v3209_v9 = vmul.f32 0.70710677, %v8348_v53  ;;  %v1975_v26 = vpop.f32.mrf.mxu0  ;;  %2166 = vmatmul.mubr.bf16.gmra.mxu0 %v5320_v50  ;;  %2654 = vmatmul.mubr.bf16.gmra.mxu1 %v5442_v37  ;;  %v2965_v2 = vmul.f32 0.5, %v8280_v5 }
 0x172   :  { %v2463_v10 = vpop.f32.mrf.mxu1  ;;  %5019 = vst.msk [vmem:[%s10643_s3 + $0x68] sm:$0xf] %vm4992_vm1, %v5883_v1  ;;  %v3809_v11 = vmul.f32 %v3567_v13, %v2841_v59  ;;  %6550 = verf.f32 %v3087_v14  ;;  %v8389_v21 = vadd.f32 %v7978_v42, %v1975_v26  ;;  %5535 = vmatprep.mubr.msk.bf16.mxu0 %vm1449_vm0, %v6348_v0  ;;  %5596 = vmatprep.mubr.msk.bf16.mxu1 %vm1449_vm0, %v6350_v54  ;;  %v8443_v0 = vld [vmem:[%s10641_s0 + $0x670] sm:$0xff]  ;;  %v8448_v54 = vld [vmem:[%s10641_s0 + $0x678] sm:$0xff] }
 0x173   :  { %v8392_v16 = vadd.f32 %v7978_v42, %v2463_v10  ;;  %v6539_v22 = vpop.eup %6538  ;;  %5141 = vst.msk [vmem:[%s10643_s3 + $0x250] sm:$0xf] %vm4992_vm1, %v6005_v7  ;;  %v3931_v17 = vmul.f32 %v3689_v27, %v2963_v32  ;;  %6552 = verf.f32 %v3209_v9  ;;  %v1977_v28 = vpop.f32.mrf.mxu0  ;;  %v5446_v6 = vcombine.low %v8443_v0, %v8448_v54 }
 0x174   :  { %v2465_v29 = vpop.f32.mrf.mxu1  ;;  %v6541_v24 = vpop.eup %6540  ;;  %v5884_v8 = vpack.c.bf16 %v3809_v11, %v3809_v11  ;;  %v3568_v43 = vadd.f32 1.0, %v6539_v22  ;;  %v3088_v51 = vmul.f32 0.70710677, %v8389_v21  ;;  %v2844_v27 = vmul.f32 0.5, %v8321_v36 }
 0x175   :  { %v6006_v55 = vpack.c.bf16 %v3931_v17, %v3931_v17  ;;  %v3690_v46 = vadd.f32 1.0, %v6541_v24  ;;  %v3210_v31 = vmul.f32 0.70710677, %v8392_v16  ;;  %v1978_v34 = vpop.f32.mrf.mxu0  ;;  %v2966_v11 = vmul.f32 0.5, %v8324_v30  ;;  %v6356_v30 = vld [vmem:[%s10641_s0 + $0x2b4] ss:$8 sps:$4 sm:$0xff]  }
 0x176   :  { %v2466_v45 = vpop.f32.mrf.mxu1  ;;  %5020 = vst.msk [vmem:[%s10643_s3 + $0x6c] sm:$0xf] %vm4992_vm1, %v5884_v8  ;;  %v3810_v50 = vmul.f32 %v3568_v43, %v2842_v44  ;;  %6554 = verf.f32 %v3088_v51  ;;  %v8413_v47 = vadd.f32 %v7978_v42, %v1978_v34  ;;  %v6358_v24 = vld [vmem:[%s10641_s0 + $0x684] ss:$8 sps:$4 sm:$0xff]   ;;  %v2845_v34 = vmul.f32 0.5, %v8345_v60 }
 0x177   :  { %v8416_v37 = vadd.f32 %v7978_v42, %v2466_v45  ;;  %v6543_v39 = vpop.eup %6542  ;;  %5142 = vst.msk [vmem:[%s10643_s3 + $0x254] sm:$0xf] %vm4992_vm1, %v6006_v55  ;;  %v3932_v40 = vmul.f32 %v3690_v46, %v2964_v25  ;;  %6556 = verf.f32 %v3210_v31  ;;  %v1980_v61 = vpop.f32.mrf.mxu0  ;;  %v8499_v55 = vld [vmem:[%s10641_s0 + $0x2b0] sm:$0xff]  ;;  %v8504_v25 = vld [vmem:[%s10641_s0 + $0x2b8] sm:$0xff] }
 0x178   :  { %v2468_v3 = vpop.f32.mrf.mxu1  ;;  %v6545_v52 = vpop.eup %6544  ;;  %v5885_v49 = vpack.c.bf16 %v3810_v50, %v3810_v50  ;;  %v3569_v62 = vadd.f32 1.0, %v6543_v39  ;;  %v3089_v63 = vmul.f32 0.70710677, %v8413_v47  ;;  %v5326_v0 = vcombine.low %v8499_v55, %v8504_v25 }
 0x179   :  { %v6007_v56 = vpack.c.bf16 %v3932_v40, %v3932_v40  ;;  %v3691_v12 = vadd.f32 1.0, %v6545_v52  ;;  %v3211_v33 = vmul.f32 0.70710677, %v8416_v37  ;;  %v1983_v18 = vpop.f32.mrf.mxu0  ;;  %2174 = vmatmul.mubr.bf16.gmra.mxu0 %v5322_v35  ;;  %2662 = vmatmul.mubr.bf16.gmra.mxu1 %v5444_v23  ;;  %v2967_v40 = vmul.f32 0.5, %v8348_v53 }
 0x17a   :  { %v2471_v57 = vpop.f32.mrf.mxu1  ;;  %5021 = vst.msk [vmem:[%s10643_s3 + $0x70] sm:$0xf] %vm4992_vm1, %v5885_v49  ;;  %v3811_v58 = vmul.f32 %v3569_v62, %v2843_v20  ;;  %6558 = verf.f32 %v3089_v63  ;;  %v8457_v4 = vadd.f32 %v7978_v42, %v1983_v18  ;;  %5536 = vmatprep.mubr.msk.bf16.mxu0 %vm1449_vm0, %v6352_v48  ;;  %5597 = vmatprep.mubr.msk.bf16.mxu1 %vm1449_vm0, %v6354_v38  ;;  %v8511_v48 = vld [vmem:[%s10641_s0 + $0x680] sm:$0xff]  ;;  %v8516_v38 = vld [vmem:[%s10641_s0 + $0x688] sm:$0xff] }
 0x17b   :  { %v8460_v1 = vadd.f32 %v7978_v42, %v2471_v57  ;;  %v6547_v5 = vpop.eup %6546  ;;  %5143 = vst.msk [vmem:[%s10643_s3 + $0x258] sm:$0xf] %vm4992_vm1, %v6007_v56  ;;  %v3933_v59 = vmul.f32 %v3691_v12, %v2965_v2  ;;  %6560 = verf.f32 %v3211_v33  ;;  %v1985_v13 = vpop.f32.mrf.mxu0  ;;  %v5448_v54 = vcombine.low %v8511_v48, %v8516_v38 }
 0x17c   :  { %v2473_v14 = vpop.f32.mrf.mxu1  ;;  %v6549_v7 = vpop.eup %6548  ;;  %v5886_v32 = vpack.c.bf16 %v3811_v58, %v3811_v58  ;;  %v3570_v9 = vadd.f32 1.0, %v6547_v5  ;;  %v3090_v26 = vmul.f32 0.70710677, %v8457_v4  ;;  %v2846_v12 = vmul.f32 0.5, %v8389_v21 }
 0x17d   :  { %v6008_v10 = vpack.c.bf16 %v3933_v59, %v3933_v59  ;;  %v3692_v22 = vadd.f32 1.0, %v6549_v7  ;;  %v3212_v17 = vmul.f32 0.70710677, %v8460_v1  ;;  %v1986_v28 = vpop.f32.mrf.mxu0  ;;  %v2968_v58 = vmul.f32 0.5, %v8392_v16  ;;  %v6360_v16 = vld [vmem:[%s10641_s0 + $0x2c4] ss:$8 sps:$4 sm:$0xff]  }
 0x17e   :  { %v2474_v29 = vpop.f32.mrf.mxu1  ;;  %5022 = vst.msk [vmem:[%s10643_s3 + $0x74] sm:$0xf] %vm4992_vm1, %v5886_v32  ;;  %v3812_v35 = vmul.f32 %v3570_v9, %v2844_v27  ;;  %6562 = verf.f32 %v3090_v26  ;;  %v8481_v36 = vadd.f32 %v7978_v42, %v1986_v28  ;;  %v6362_v7 = vld [vmem:[%s10641_s0 + $0x694] ss:$8 sps:$4 sm:$0xff]   ;;  %v2847_v28 = vmul.f32 0.5, %v8413_v47 }
 0x17f   :  { %v8484_v23 = vadd.f32 %v7978_v42, %v2474_v29  ;;  %v6551_v8 = vpop.eup %6550  ;;  %5144 = vst.msk [vmem:[%s10643_s3 + $0x25c] sm:$0xf] %vm4992_vm1, %v6008_v10  ;;  %v3934_v44 = vmul.f32 %v3692_v22, %v2966_v11  ;;  %6564 = verf.f32 %v3212_v17  ;;  %v1988_v43 = vpop.f32.mrf.mxu0  ;;  %v8567_v10 = vld [vmem:[%s10641_s0 + $0x2c0] sm:$0xff]  ;;  %v8572_v11 = vld [vmem:[%s10641_s0 + $0x2c8] sm:$0xff] }
 0x180   :  { %v2476_v51 = vpop.f32.mrf.mxu1  ;;  %v6553_v46 = vpop.eup %6552  ;;  %v5887_v31 = vpack.c.bf16 %v3812_v35, %v3812_v35  ;;  %v3571_v45 = vadd.f32 1.0, %v6551_v8  ;;  %v3091_v50 = vmul.f32 0.70710677, %v8481_v36  ;;  %v5328_v48 = vcombine.low %v8567_v10, %v8572_v11 }
 0x181   :  { %v6009_v39 = vpack.c.bf16 %v3934_v44, %v3934_v44  ;;  %v3693_v61 = vadd.f32 1.0, %v6553_v46  ;;  %v3213_v3 = vmul.f32 0.70710677, %v8484_v23  ;;  %v1991_v60 = vpop.f32.mrf.mxu0  ;;  %2182 = vmatmul.mubr.bf16.gmra.mxu0 %v5324_v15  ;;  %2670 = vmatmul.mubr.bf16.gmra.mxu1 %v5446_v6  ;;  %v2969_v44 = vmul.f32 0.5, %v8416_v37 }
 0x182   :  { %v2479_v19 = vpop.f32.mrf.mxu1  ;;  %5023 = vst.msk [vmem:[%s10643_s3 + $0x78] sm:$0xf] %vm4992_vm1, %v5887_v31  ;;  %v3813_v41 = vmul.f32 %v3571_v45, %v2845_v34  ;;  %6566 = verf.f32 %v3091_v50  ;;  %v8525_v52 = vadd.f32 %v7978_v42, %v1991_v60  ;;  %5537 = vmatprep.mubr.msk.bf16.mxu0 %vm1449_vm0, %v6356_v30  ;;  %5598 = vmatprep.mubr.msk.bf16.mxu1 %vm1449_vm0, %v6358_v24  ;;  %v8579_v30 = vld [vmem:[%s10641_s0 + $0x690] sm:$0xff]  ;;  %v8584_v24 = vld [vmem:[%s10641_s0 + $0x698] sm:$0xff] }
 0x183   :  { %v8528_v49 = vadd.f32 %v7978_v42, %v2479_v19  ;;  %v6555_v53 = vpop.eup %6554  ;;  %5145 = vst.msk [vmem:[%s10643_s3 + $0x260] sm:$0xf] %vm4992_vm1, %v6009_v39  ;;  %v3935_v20 = vmul.f32 %v3693_v61, %v2967_v40  ;;  %6568 = verf.f32 %v3213_v3  ;;  %v1993_v62 = vpop.f32.mrf.mxu0  ;;  %v2848_v40 = vmul.f32 0.5, %v8457_v4  ;;  %v8619_v4 = vld [vmem:[%s10642_s2] ss:$0 sm:$0xff] }
 0x184   :  { %v2481_v63 = vpop.f32.mrf.mxu1  ;;  %v6557_v56 = vpop.eup %6556  ;;  %v5888_v2 = vpack.c.bf16 %v3813_v41, %v3813_v41  ;;  %v3572_v33 = vadd.f32 1.0, %v6555_v53  ;;  %v3092_v18 = vmul.f32 0.70710677, %v8525_v52  ;;  %v2970_v19 = vmul.f32 0.5, %v8460_v1 }
 0x185   :  { %v6010_v57 = vpack.c.bf16 %v3935_v20, %v3935_v20  ;;  %v3694_v5 = vadd.f32 1.0, %v6557_v56  ;;  %v3214_v59 = vmul.f32 0.70710677, %v8528_v49  ;;  %v1994_v13 = vpop.f32.mrf.mxu0  ;;  %v6366_v56 = vld [vmem:[%s10641_s0 + $0x6a4] ss:$8 sps:$4 sm:$0xff]  }
 0x186   :  { %v2482_v14 = vpop.f32.mrf.mxu1  ;;  %5024 = vst.msk [vmem:[%s10643_s3 + $0x7c] sm:$0xf] %vm4992_vm1, %v5888_v2  ;;  %v3814_v15 = vmul.f32 %v3572_v33, %v2846_v12  ;;  %6570 = verf.f32 %v3092_v18  ;;  %v8549_v21 = vadd.f32 %v7978_v42, %v1994_v13  ;;  %v2849_v13 = vmul.f32 0.5, %v8481_v36 }
 0x187   :  { %v8552_v6 = vadd.f32 %v7978_v42, %v2482_v14  ;;  %v6559_v32 = vpop.eup %6558  ;;  %5146 = vst.msk [vmem:[%s10643_s3 + $0x264] sm:$0xf] %vm4992_vm1, %v6010_v57  ;;  %v3936_v27 = vmul.f32 %v3694_v5, %v2968_v58  ;;  %6572 = verf.f32 %v3214_v59  ;;  %v1996_v9 = vpop.f32.mrf.mxu0  ;;  %v8640_v57 = vld [vmem:[%s10641_s0 + $0x2d0] sm:$0xff]  ;;  %v8645_v58 = vld [vmem:[%s10641_s0 + $0x2d8] sm:$0xff] }
 0x188   :  { %v2484_v26 = vpop.f32.mrf.mxu1  ;;  %v6561_v22 = vpop.eup %6560  ;;  %v5889_v17 = vpack.c.bf16 %v3814_v15, %v3814_v15  ;;  %v3573_v29 = vadd.f32 1.0, %v6559_v32  ;;  %v3093_v35 = vmul.f32 0.70710677, %v8549_v21 }
 0x189   :  { %v6011_v8 = vpack.c.bf16 %v3936_v27, %v3936_v27  ;;  %v3695_v43 = vadd.f32 1.0, %v6561_v22  ;;  %v3215_v51 = vmul.f32 0.70710677, %v8552_v6  ;;  %v1999_v47 = vpop.f32.mrf.mxu0  ;;  %2190 = vmatmul.mubr.bf16.gmra.mxu0 %v5326_v0  ;;  %2678 = vmatmul.mubr.bf16.gmra.mxu1 %v5448_v54  ;;  %v6364_v54 = vld [vmem:[%s10641_s0 + $0x2d4] ss:$8 sps:$4 sm:$0xff]   ;;  %v2971_v27 = vmul.f32 0.5, %v8484_v23 }
 0x18a   :  { %v2487_v55 = vpop.f32.mrf.mxu1  ;;  %5025 = vst.msk [vmem:[%s10643_s3 + $0x80] sm:$0xf] %vm4992_vm1, %v5889_v17  ;;  %v3815_v25 = vmul.f32 %v3573_v29, %v2847_v28  ;;  %6574 = verf.f32 %v3093_v35  ;;  %v8593_v46 = vadd.f32 %v7978_v42, %v1999_v47  ;;  %5538 = vmatprep.mubr.msk.bf16.mxu0 %vm1449_vm0, %v6360_v16  ;;  %5599 = vmatprep.mubr.msk.bf16.mxu1 %vm1449_vm0, %v6362_v7  ;;  %v8652_v16 = vld [vmem:[%s10641_s0 + $0x6a0] sm:$0xff]  ;;  %v8657_v7 = vld [vmem:[%s10641_s0 + $0x6a8] sm:$0xff] }
 0x18b   :  { %v8596_v31 = vadd.f32 %v7978_v42, %v2487_v55  ;;  %v6563_v37 = vpop.eup %6562  ;;  %5147 = vst.msk [vmem:[%s10643_s3 + $0x268] sm:$0xf] %vm4992_vm1, %v6011_v8  ;;  %v3937_v34 = vmul.f32 %v3695_v43, %v2969_v44  ;;  %6576 = verf.f32 %v3215_v51  ;;  %v2001_v45 = vpop.f32.mrf.mxu0  ;;  %v5450_v42 = vcombine.low %v8579_v30, %v8584_v24 }
 0x18c   :  { %v2489_v50 = vpop.f32.mrf.mxu1  ;;  %v6565_v38 = vpop.eup %6564  ;;  %v5890_v39 = vpack.c.bf16 %v3815_v25, %v3815_v25  ;;  %v3574_v61 = vadd.f32 1.0, %v6563_v37  ;;  %v3094_v3 = vmul.f32 0.70710677, %v8593_v46  ;;  %v5330_v30 = vcombine.low %v8640_v57, %v8645_v58 }
 0x18d   :  { %v6012_v60 = vpack.c.bf16 %v3937_v34, %v3937_v34  ;;  %v3696_v41 = vadd.f32 1.0, %v6565_v38  ;;  %v3216_v53 = vmul.f32 0.70710677, %v8596_v31  ;;  %v2002_v20 = vpop.f32.mrf.mxu0  ;;  %v5452_v24 = vcombine.low %v8652_v16, %v8657_v7  ;;  %v6370_v38 = vld [vmem:[%s10641_s0 + $0x6b4] ss:$8 sps:$4 sm:$0xff]  }
 0x18e   :  { %v2490_v62 = vpop.f32.mrf.mxu1  ;;  %5026 = vst.msk [vmem:[%s10643_s3 + $0x84] sm:$0xf] %vm4992_vm1, %v5890_v39  ;;  %v3816_v63 = vmul.f32 %v3574_v61, %v2848_v40  ;;  %6578 = verf.f32 %v3094_v3  ;;  %v8622_v0 = vadd.f32 %v8619_v4, %v2002_v20  ;;  %v2850_v43 = vmul.f32 0.5, %v8525_v52 }
 0x18f   :  { %v8625_v1 = vadd.f32 %v8619_v4, %v2490_v62  ;;  %v6567_v2 = vpop.eup %6566  ;;  %5148 = vst.msk [vmem:[%s10643_s3 + $0x26c] sm:$0xf] %vm4992_vm1, %v6012_v60  ;;  %v3938_v12 = vmul.f32 %v3696_v41, %v2970_v19  ;;  %6580 = verf.f32 %v3216_v53  ;;  %v2004_v33 = vpop.f32.mrf.mxu0  ;;  %v2972_v25 = vmul.f32 0.5, %v8528_v49  ;;  %v6368_v49 = vld [vmem:[%s10641_s0 + $0x2e4] ss:$8 sps:$4 sm:$0xff]  }
 0x190   :  { %v2492_v18 = vpop.f32.mrf.mxu1  ;;  %v6569_v5 = vpop.eup %6568  ;;  %v5891_v59 = vpack.c.bf16 %v3816_v63, %v3816_v63  ;;  %v3575_v14 = vadd.f32 1.0, %v6567_v2  ;;  %v3095_v15 = vmul.f32 0.70710677, %v8622_v0  ;;  %v8708_v60 = vld [vmem:[%s10641_s0 + $0x2e0] sm:$0xff]  ;;  %v8713_v19 = vld [vmem:[%s10641_s0 + $0x2e8] sm:$0xff]  ;;  %v2851_v20 = vmul.f32 0.5, %v8549_v21 }
 0x191   :  { %v6013_v32 = vpack.c.bf16 %v3938_v12, %v3938_v12  ;;  %v3697_v9 = vadd.f32 1.0, %v6569_v5  ;;  %v3217_v26 = vmul.f32 0.70710677, %v8625_v1  ;;  %v2007_v36 = vpop.f32.mrf.mxu0  ;;  %2198 = vmatmul.mubr.bf16.gmra.mxu0 %v5328_v48  ;;  %2686 = vmatmul.mubr.bf16.gmra.mxu1 %v5450_v42  ;;  %v2973_v12 = vmul.f32 0.5, %v8552_v6 }
 0x192   :  { %v2495_v10 = vpop.f32.mrf.mxu1  ;;  %5027 = vst.msk [vmem:[%s10643_s3 + $0x88] sm:$0xf] %vm4992_vm1, %v5891_v59  ;;  %v3817_v11 = vmul.f32 %v3575_v14, %v2849_v13  ;;  %6582 = verf.f32 %v3095_v15  ;;  %v8666_v22 = vadd.f32 %v8619_v4, %v2007_v36  ;;  %5539 = vmatprep.mubr.msk.bf16.mxu0 %vm1449_vm0, %v6364_v54  ;;  %5600 = vmatprep.mubr.msk.bf16.mxu1 %vm1449_vm0, %v6366_v56  ;;  %v8720_v54 = vld [vmem:[%s10641_s0 + $0x6b0] sm:$0xff]  ;;  %v8725_v56 = vld [vmem:[%s10641_s0 + $0x6b8] sm:$0xff] }
 0x193   :  { %v8669_v17 = vadd.f32 %v8619_v4, %v2495_v10  ;;  %v6571_v23 = vpop.eup %6570  ;;  %5149 = vst.msk [vmem:[%s10643_s3 + $0x270] sm:$0xf] %vm4992_vm1, %v6013_v32  ;;  %v3939_v28 = vmul.f32 %v3697_v9, %v2971_v27  ;;  %6584 = verf.f32 %v3217_v26  ;;  %v2009_v29 = vpop.f32.mrf.mxu0  ;;  %v5332_v16 = vcombine.low %v8708_v60, %v8713_v19 }
 0x194   :  { %v2497_v35 = vpop.f32.mrf.mxu1  ;;  %v6573_v8 = vpop.eup %6572  ;;  %v5892_v44 = vpack.c.bf16 %v3817_v11, %v3817_v11  ;;  %v3576_v51 = vadd.f32 1.0, %v6571_v23  ;;  %v3096_v47 = vmul.f32 0.70710677, %v8666_v22  ;;  %v5454_v7 = vcombine.low %v8720_v54, %v8725_v56 }
 0x195   :  { %v6014_v55 = vpack.c.bf16 %v3939_v28, %v3939_v28  ;;  %v3698_v37 = vadd.f32 1.0, %v6573_v8  ;;  %v3218_v34 = vmul.f32 0.70710677, %v8669_v17  ;;  %v2010_v45 = vpop.f32.mrf.mxu0  ;;  %v2852_v9 = vmul.f32 0.5, %v8593_v46  ;;  %v6374_v8 = vld [vmem:[%s10641_s0 + $0x6c4] ss:$8 sps:$4 sm:$0xff]  }
 0x196   :  { %v2498_v50 = vpop.f32.mrf.mxu1  ;;  %5028 = vst.msk [vmem:[%s10643_s3 + $0x8c] sm:$0xf] %vm4992_vm1, %v5892_v44  ;;  %v3818_v48 = vmul.f32 %v3576_v51, %v2850_v43  ;;  %6586 = verf.f32 %v3096_v47  ;;  %v8690_v52 = vadd.f32 %v8619_v4, %v2010_v45  ;;  %v2974_v11 = vmul.f32 0.5, %v8596_v31  ;;  %v6372_v31 = vld [vmem:[%s10641_s0 + $0x2f4] ss:$8 sps:$4 sm:$0xff]  }
 0x197   :  { %v8693_v42 = vadd.f32 %v8619_v4, %v2498_v50  ;;  %v6575_v39 = vpop.eup %6574  ;;  %5150 = vst.msk [vmem:[%s10643_s3 + $0x274] sm:$0xf] %vm4992_vm1, %v6014_v55  ;;  %v3940_v40 = vmul.f32 %v3698_v37, %v2972_v25  ;;  %6588 = verf.f32 %v3218_v34  ;;  %v2012_v61 = vpop.f32.mrf.mxu0  ;;  %v8776_v55 = vld [vmem:[%s10641_s0 + $0x2f0] sm:$0xff]  ;;  %v8781_v25 = vld [vmem:[%s10641_s0 + $0x2f8] sm:$0xff]  ;;  %v2853_v45 = vmul.f32 0.5, %v8622_v0 }
 0x198   :  { %v2500_v3 = vpop.f32.mrf.mxu1  ;;  %v6577_v41 = vpop.eup %6576  ;;  %v5893_v53 = vpack.c.bf16 %v3818_v48, %v3818_v48  ;;  %v3577_v62 = vadd.f32 1.0, %v6575_v39  ;;  %v3097_v63 = vmul.f32 0.70710677, %v8690_v52  ;;  %v5334_v54 = vcombine.low %v8776_v55, %v8781_v25 }
 0x199   :  { %v6015_v2 = vpack.c.bf16 %v3940_v40, %v3940_v40  ;;  %v3699_v33 = vadd.f32 1.0, %v6577_v41  ;;  %v3219_v18 = vmul.f32 0.70710677, %v8693_v42  ;;  %v2015_v21 = vpop.f32.mrf.mxu0  ;;  %2206 = vmatmul.mubr.bf16.gmra.mxu0 %v5330_v30  ;;  %2694 = vmatmul.mubr.bf16.gmra.mxu1 %v5452_v24  ;;  %v2975_v40 = vmul.f32 0.5, %v8625_v1 }
 0x19a   :  { %v2503_v57 = vpop.f32.mrf.mxu1  ;;  %5029 = vst.msk [vmem:[%s10643_s3 + $0x90] sm:$0xf] %vm4992_vm1, %v5893_v53  ;;  %v3819_v58 = vmul.f32 %v3577_v62, %v2851_v20  ;;  %6590 = verf.f32 %v3097_v63  ;;  %v8734_v5 = vadd.f32 %v8619_v4, %v2015_v21  ;;  %5540 = vmatprep.mubr.msk.bf16.mxu0 %vm1449_vm0, %v6368_v49  ;;  %5601 = vmatprep.mubr.msk.bf16.mxu1 %vm1449_vm0, %v6370_v38  ;;  %v8788_v49 = vld [vmem:[%s10641_s0 + $0x6c0] sm:$0xff]  ;;  %v8793_v38 = vld [vmem:[%s10641_s0 + $0x6c8] sm:$0xff] }
 0x19b   :  { %v8737_v59 = vadd.f32 %v8619_v4, %v2503_v57  ;;  %v6579_v6 = vpop.eup %6578  ;;  %5151 = vst.msk [vmem:[%s10643_s3 + $0x278] sm:$0xf] %vm4992_vm1, %v6015_v2  ;;  %v3941_v13 = vmul.f32 %v3699_v33, %v2973_v12  ;;  %6592 = verf.f32 %v3219_v18  ;;  %v2017_v14 = vpop.f32.mrf.mxu0  ;;  %v5456_v56 = vcombine.low %v8788_v49, %v8793_v38 }
 0x19c   :  { %v2505_v15 = vpop.f32.mrf.mxu1  ;;  %v6581_v32 = vpop.eup %6580  ;;  %v5894_v27 = vpack.c.bf16 %v3819_v58, %v3819_v58  ;;  %v3578_v26 = vadd.f32 1.0, %v6579_v6  ;;  %v3098_v36 = vmul.f32 0.70710677, %v8734_v5  ;;  %v2854_v33 = vmul.f32 0.5, %v8666_v22 }
 0x19d   :  { %v6016_v10 = vpack.c.bf16 %v3941_v13, %v3941_v13  ;;  %v3700_v23 = vadd.f32 1.0, %v6581_v32  ;;  %v3220_v28 = vmul.f32 0.70710677, %v8737_v59  ;;  %v2018_v29 = vpop.f32.mrf.mxu0  ;;  %v2976_v58 = vmul.f32 0.5, %v8669_v17  ;;  %v6376_v17 = vld [vmem:[%s10641_s0 + $0x304] ss:$8 sps:$4 sm:$0xff]  }
 0x19e   :  { %v2506_v35 = vpop.f32.mrf.mxu1  ;;  %5030 = vst.msk [vmem:[%s10643_s3 + $0x94] sm:$0xf] %vm4992_vm1, %v5894_v27  ;;  %v3820_v30 = vmul.f32 %v3578_v26, %v2852_v9  ;;  %6594 = verf.f32 %v3098_v36  ;;  %v8758_v46 = vadd.f32 %v8619_v4, %v2018_v29  ;;  %v6378_v32 = vld [vmem:[%s10641_s0 + $0x6d4] ss:$8 sps:$4 sm:$0xff]   ;;  %v2855_v29 = vmul.f32 0.5, %v8690_v52 }
 0x19f   :  { %v8761_v24 = vadd.f32 %v8619_v4, %v2506_v35  ;;  %v6583_v44 = vpop.eup %6582  ;;  %5152 = vst.msk [vmem:[%s10643_s3 + $0x27c] sm:$0xf] %vm4992_vm1, %v6016_v10  ;;  %v3942_v43 = vmul.f32 %v3700_v23, %v2974_v11  ;;  %6596 = verf.f32 %v3220_v28  ;;  %v2020_v51 = vpop.f32.mrf.mxu0  ;;  %v8844_v10 = vld [vmem:[%s10641_s0 + $0x300] sm:$0xff]  ;;  %v8849_v11 = vld [vmem:[%s10641_s0 + $0x308] sm:$0xff] }
 0x1a0   :  { %v2508_v47 = vpop.f32.mrf.mxu1  ;;  %v6585_v37 = vpop.eup %6584  ;;  %v5895_v34 = vpack.c.bf16 %v3820_v30, %v3820_v30  ;;  %v3579_v50 = vadd.f32 1.0, %v6583_v44  ;;  %v3099_v48 = vmul.f32 0.70710677, %v8758_v46  ;;  %v5336_v49 = vcombine.low %v8844_v10, %v8849_v11 }
 0x1a1   :  { %v6017_v39 = vpack.c.bf16 %v3942_v43, %v3942_v43  ;;  %v3701_v61 = vadd.f32 1.0, %v6585_v37  ;;  %v3221_v3 = vmul.f32 0.70710677, %v8761_v24  ;;  %v2023_v0 = vpop.f32.mrf.mxu0  ;;  %2214 = vmatmul.mubr.bf16.gmra.mxu0 %v5332_v16  ;;  %2702 = vmatmul.mubr.bf16.gmra.mxu1 %v5454_v7  ;;  %v2977_v43 = vmul.f32 0.5, %v8693_v42 }
 0x1a2   :  { %v2511_v60 = vpop.f32.mrf.mxu1  ;;  %5031 = vst.msk [vmem:[%s10643_s3 + $0x98] sm:$0xf] %vm4992_vm1, %v5895_v34  ;;  %v3821_v19 = vmul.f32 %v3579_v50, %v2853_v45  ;;  %6598 = verf.f32 %v3099_v48  ;;  %v8802_v41 = vadd.f32 %v8619_v4, %v2023_v0  ;;  %5541 = vmatprep.mubr.msk.bf16.mxu0 %vm1449_vm0, %v6372_v31  ;;  %5602 = vmatprep.mubr.msk.bf16.mxu1 %vm1449_vm0, %v6374_v8  ;;  %v8856_v31 = vld [vmem:[%s10641_s0 + $0x6d0] sm:$0xff]  ;;  %v8861_v8 = vld [vmem:[%s10641_s0 + $0x6d8] sm:$0xff] }
 0x1a3   :  { %v8805_v53 = vadd.f32 %v8619_v4, %v2511_v60  ;;  %v6587_v1 = vpop.eup %6586  ;;  %5153 = vst.msk [vmem:[%s10643_s3 + $0x280] sm:$0xf] %vm4992_vm1, %v6017_v39  ;;  %v3943_v20 = vmul.f32 %v3701_v61, %v2975_v40  ;;  %6600 = verf.f32 %v3221_v3  ;;  %v2025_v62 = vpop.f32.mrf.mxu0  ;;  %v5458_v38 = vcombine.low %v8856_v31, %v8861_v8 }
 0x1a4   :  { %v2513_v63 = vpop.f32.mrf.mxu1  ;;  %v6589_v2 = vpop.eup %6588  ;;  %v5896_v12 = vpack.c.bf16 %v3821_v19, %v3821_v19  ;;  %v3580_v18 = vadd.f32 1.0, %v6587_v1  ;;  %v3100_v21 = vmul.f32 0.70710677, %v8802_v41  ;;  %v2856_v61 = vmul.f32 0.5, %v8734_v5 }
 0x1a5   :  { %v6018_v57 = vpack.c.bf16 %v3943_v20, %v3943_v20  ;;  %v3702_v6 = vadd.f32 1.0, %v6589_v2  ;;  %v3222_v13 = vmul.f32 0.70710677, %v8805_v53  ;;  %v2026_v14 = vpop.f32.mrf.mxu0  ;;  %v2978_v19 = vmul.f32 0.5, %v8737_v59  ;;  %v6380_v59 = vld [vmem:[%s10641_s0 + $0x314] ss:$8 sps:$4 sm:$0xff]  }
 0x1a6   :  { %v2514_v15 = vpop.f32.mrf.mxu1  ;;  %5032 = vst.msk [vmem:[%s10643_s3 + $0x9c] sm:$0xf] %vm4992_vm1, %v5896_v12  ;;  %v3822_v16 = vmul.f32 %v3580_v18, %v2854_v33  ;;  %6602 = verf.f32 %v3100_v21  ;;  %v8826_v22 = vadd.f32 %v8619_v4, %v2026_v14  ;;  %v6382_v2 = vld [vmem:[%s10641_s0 + $0x6e4] ss:$8 sps:$4 sm:$0xff]   ;;  %v2857_v14 = vmul.f32 0.5, %v8758_v46 }
 0x1a7   :  { %v8829_v7 = vadd.f32 %v8619_v4, %v2514_v15  ;;  %v6591_v27 = vpop.eup %6590  ;;  %5154 = vst.msk [vmem:[%s10643_s3 + $0x284] sm:$0xf] %vm4992_vm1, %v6018_v57  ;;  %v3944_v9 = vmul.f32 %v3702_v6, %v2976_v58  ;;  %6604 = verf.f32 %v3222_v13  ;;  %v2028_v26 = vpop.f32.mrf.mxu0  ;;  %v8912_v57 = vld [vmem:[%s10641_s0 + $0x310] sm:$0xff]  ;;  %v8917_v58 = vld [vmem:[%s10641_s0 + $0x318] sm:$0xff] }
 0x1a8   :  { %v2516_v36 = vpop.f32.mrf.mxu1  ;;  %v6593_v23 = vpop.eup %6592  ;;  %v5897_v28 = vpack.c.bf16 %v3822_v16, %v3822_v16  ;;  %v3581_v35 = vadd.f32 1.0, %v6591_v27  ;;  %v3101_v30 = vmul.f32 0.70710677, %v8826_v22  ;;  %v5338_v31 = vcombine.low %v8912_v57, %v8917_v58 }
 0x1a9   :  { %v6019_v44 = vpack.c.bf16 %v3944_v9, %v3944_v9  ;;  %v3703_v51 = vadd.f32 1.0, %v6593_v23  ;;  %v3223_v47 = vmul.f32 0.70710677, %v8829_v7  ;;  %v2031_v52 = vpop.f32.mrf.mxu0  ;;  %2222 = vmatmul.mubr.bf16.gmra.mxu0 %v5334_v54  ;;  %2710 = vmatmul.mubr.bf16.gmra.mxu1 %v5456_v56  ;;  %v2979_v9 = vmul.f32 0.5, %v8761_v24 }
 0x1aa   :  { %v2519_v55 = vpop.f32.mrf.mxu1  ;;  %5033 = vst.msk [vmem:[%s10643_s3 + $0xa0] sm:$0xf] %vm4992_vm1, %v5897_v28  ;;  %v3823_v25 = vmul.f32 %v3581_v35, %v2855_v29  ;;  %6606 = verf.f32 %v3101_v30  ;;  %v8870_v37 = vadd.f32 %v8619_v4, %v2031_v52  ;;  %5542 = vmatprep.mubr.msk.bf16.mxu0 %vm1449_vm0, %v6376_v17  ;;  %5603 = vmatprep.mubr.msk.bf16.mxu1 %vm1449_vm0, %v6378_v32  ;;  %v8924_v17 = vld [vmem:[%s10641_s0 + $0x6e0] sm:$0xff]  ;;  %v8929_v32 = vld [vmem:[%s10641_s0 + $0x6e8] sm:$0xff] }
 0x1ab   :  { %v8873_v34 = vadd.f32 %v8619_v4, %v2519_v55  ;;  %v6595_v42 = vpop.eup %6594  ;;  %5155 = vst.msk [vmem:[%s10643_s3 + $0x288] sm:$0xf] %vm4992_vm1, %v6019_v44  ;;  %v3945_v45 = vmul.f32 %v3703_v51, %v2977_v43  ;;  %6608 = verf.f32 %v3223_v47  ;;  %v2033_v50 = vpop.f32.mrf.mxu0  ;;  %v5460_v8 = vcombine.low %v8924_v17, %v8929_v32 }
 0x1ac   :  { %v2521_v48 = vpop.f32.mrf.mxu1  ;;  %v6597_v39 = vpop.eup %6596  ;;  %v5898_v40 = vpack.c.bf16 %v3823_v25, %v3823_v25  ;;  %v3582_v3 = vadd.f32 1.0, %v6595_v42  ;;  %v3102_v0 = vmul.f32 0.70710677, %v8870_v37  ;;  %v2858_v51 = vmul.f32 0.5, %v8802_v41 }
 0x1ad   :  { %v6020_v60 = vpack.c.bf16 %v3945_v45, %v3945_v45  ;;  %v3704_v1 = vadd.f32 1.0, %v6597_v39  ;;  %v3224_v20 = vmul.f32 0.70710677, %v8873_v34  ;;  %v2034_v62 = vpop.f32.mrf.mxu0  ;;  %v2980_v25 = vmul.f32 0.5, %v8805_v53  ;;  %v6384_v53 = vld [vmem:[%s10641_s0 + $0x324] ss:$8 sps:$4 sm:$0xff]  }
 0x1ae   :  { %v2522_v63 = vpop.f32.mrf.mxu1  ;;  %5034 = vst.msk [vmem:[%s10643_s3 + $0xa4] sm:$0xf] %vm4992_vm1, %v5898_v40  ;;  %v3824_v54 = vmul.f32 %v3582_v3, %v2856_v61  ;;  %6610 = verf.f32 %v3102_v0  ;;  %v8894_v5 = vadd.f32 %v8619_v4, %v2034_v62  ;;  %v6386_v39 = vld [vmem:[%s10641_s0 + $0x6f4] ss:$8 sps:$4 sm:$0xff]   ;;  %v2859_v62 = vmul.f32 0.5, %v8826_v22 }
 0x1af   :  { %v8897_v56 = vadd.f32 %v8619_v4, %v2522_v63  ;;  %v6599_v12 = vpop.eup %6598  ;;  %5156 = vst.msk [vmem:[%s10643_s3 + $0x28c] sm:$0xf] %vm4992_vm1, %v6020_v60  ;;  %v3946_v33 = vmul.f32 %v3704_v1, %v2978_v19  ;;  %6612 = verf.f32 %v3224_v20  ;;  %v2036_v18 = vpop.f32.mrf.mxu0  ;;  %v8980_v60 = vld [vmem:[%s10641_s0 + $0x320] sm:$0xff]  ;;  %v8985_v19 = vld [vmem:[%s10641_s0 + $0x328] sm:$0xff] }
 0x1b0   :  { %v2524_v21 = vpop.f32.mrf.mxu1  ;;  %v6601_v6 = vpop.eup %6600  ;;  %v5899_v13 = vpack.c.bf16 %v3824_v54, %v3824_v54  ;;  %v3583_v15 = vadd.f32 1.0, %v6599_v12  ;;  %v3103_v16 = vmul.f32 0.70710677, %v8894_v5  ;;  %v5340_v17 = vcombine.low %v8980_v60, %v8985_v19 }
 0x1b1   :  { %v6021_v27 = vpack.c.bf16 %v3946_v33, %v3946_v33  ;;  %v3705_v26 = vadd.f32 1.0, %v6601_v6  ;;  %v3225_v36 = vmul.f32 0.70710677, %v8897_v56  ;;  %v2039_v46 = vpop.f32.mrf.mxu0  ;;  %2230 = vmatmul.mubr.bf16.gmra.mxu0 %v5336_v49  ;;  %2718 = vmatmul.mubr.bf16.gmra.mxu1 %v5458_v38  ;;  %v2981_v33 = vmul.f32 0.5, %v8829_v7 }
 0x1b2   :  { %v2527_v10 = vpop.f32.mrf.mxu1  ;;  %5035 = vst.msk [vmem:[%s10643_s3 + $0xa8] sm:$0xf] %vm4992_vm1, %v5899_v13  ;;  %v3825_v11 = vmul.f32 %v3583_v15, %v2857_v14  ;;  %6614 = verf.f32 %v3103_v16  ;;  %v8938_v23 = vadd.f32 %v8619_v4, %v2039_v46  ;;  %5543 = vmatprep.mubr.msk.bf16.mxu0 %vm1449_vm0, %v6380_v59  ;;  %5604 = vmatprep.mubr.msk.bf16.mxu1 %vm1449_vm0, %v6382_v2  ;;  %v8992_v59 = vld [vmem:[%s10641_s0 + $0x6f0] sm:$0xff]  ;;  %v8997_v2 = vld [vmem:[%s10641_s0 + $0x6f8] sm:$0xff] }
 0x1b3   :  { %v8941_v28 = vadd.f32 %v8619_v4, %v2527_v10  ;;  %v6603_v24 = vpop.eup %6602  ;;  %5157 = vst.msk [vmem:[%s10643_s3 + $0x290] sm:$0xf] %vm4992_vm1, %v6021_v27  ;;  %v3947_v29 = vmul.f32 %v3705_v26, %v2979_v9  ;;  %6616 = verf.f32 %v3225_v36  ;;  %v2041_v35 = vpop.f32.mrf.mxu0  ;;  %v5462_v32 = vcombine.low %v8992_v59, %v8997_v2 }
 0x1b4   :  { %v2529_v30 = vpop.f32.mrf.mxu1  ;;  %v6605_v44 = vpop.eup %6604  ;;  %v5900_v43 = vpack.c.bf16 %v3825_v11, %v3825_v11  ;;  %v3584_v47 = vadd.f32 1.0, %v6603_v24  ;;  %v3104_v52 = vmul.f32 0.70710677, %v8938_v23  ;;  %v2860_v26 = vmul.f32 0.5, %v8870_v37 }
 0x1b5   :  { %v6022_v55 = vpack.c.bf16 %v3947_v29, %v3947_v29  ;;  %v3706_v42 = vadd.f32 1.0, %v6605_v44  ;;  %v3226_v45 = vmul.f32 0.70710677, %v8941_v28  ;;  %v2042_v50 = vpop.f32.mrf.mxu0  ;;  %v2982_v11 = vmul.f32 0.5, %v8873_v34  ;;  %v6388_v34 = vld [vmem:[%s10641_s0 + $0x334] ss:$8 sps:$4 sm:$0xff]  }
 0x1b6   :  { %v2530_v48 = vpop.f32.mrf.mxu1  ;;  %5036 = vst.msk [vmem:[%s10643_s3 + $0xac] sm:$0xf] %vm4992_vm1, %v5900_v43  ;;  %v3826_v49 = vmul.f32 %v3584_v47, %v2858_v51  ;;  %6618 = verf.f32 %v3104_v52  ;;  %v8962_v41 = vadd.f32 %v8619_v4, %v2042_v50  ;;  %v6390_v44 = vld [vmem:[%s10641_s0 + $0x704] ss:$8 sps:$4 sm:$0xff]   ;;  %v2861_v50 = vmul.f32 0.5, %v8894_v5 }
 0x1b7   :  { %v8965_v38 = vadd.f32 %v8619_v4, %v2530_v48  ;;  %v6607_v40 = vpop.eup %6606  ;;  %5158 = vst.msk [vmem:[%s10643_s3 + $0x294] sm:$0xf] %vm4992_vm1, %v6022_v55  ;;  %v3948_v61 = vmul.f32 %v3706_v42, %v2980_v25  ;;  %6620 = verf.f32 %v3226_v45  ;;  %v2044_v3 = vpop.f32.mrf.mxu0  ;;  %v9048_v55 = vld [vmem:[%s10641_s0 + $0x330] sm:$0xff]  ;;  %v9053_v25 = vld [vmem:[%s10641_s0 + $0x338] sm:$0xff] }
 0x1b8   :  { %v2532_v0 = vpop.f32.mrf.mxu1  ;;  %v6609_v1 = vpop.eup %6608  ;;  %v5901_v20 = vpack.c.bf16 %v3826_v49, %v3826_v49  ;;  %v3585_v63 = vadd.f32 1.0, %v6607_v40  ;;  %v3105_v54 = vmul.f32 0.70710677, %v8962_v41  ;;  %v5342_v59 = vcombine.low %v9048_v55, %v9053_v25 }
 0x1b9   :  { %v6023_v12 = vpack.c.bf16 %v3948_v61, %v3948_v61  ;;  %v3707_v18 = vadd.f32 1.0, %v6609_v1  ;;  %v3227_v21 = vmul.f32 0.70710677, %v8965_v38  ;;  %v2047_v22 = vpop.f32.mrf.mxu0  ;;  %2238 = vmatmul.mubr.bf16.gmra.mxu0 %v5338_v31  ;;  %2726 = vmatmul.mubr.bf16.gmra.mxu1 %v5460_v8  ;;  %v2983_v61 = vmul.f32 0.5, %v8897_v56 }
 0x1ba   :  { %v2535_v57 = vpop.f32.mrf.mxu1  ;;  %5037 = vst.msk [vmem:[%s10643_s3 + $0xb0] sm:$0xf] %vm4992_vm1, %v5901_v20  ;;  %v3827_v58 = vmul.f32 %v3585_v63, %v2859_v62  ;;  %6622 = verf.f32 %v3105_v54  ;;  %v9006_v6 = vadd.f32 %v8619_v4, %v2047_v22  ;;  %5544 = vmatprep.mubr.msk.bf16.mxu0 %vm1449_vm0, %v6384_v53  ;;  %5605 = vmatprep.mubr.msk.bf16.mxu1 %vm1449_vm0, %v6386_v39  ;;  %v9060_v53 = vld [vmem:[%s10641_s0 + $0x700] sm:$0xff]  ;;  %v9065_v39 = vld [vmem:[%s10641_s0 + $0x708] sm:$0xff] }
 0x1bb   :  { %v9009_v13 = vadd.f32 %v8619_v4, %v2535_v57  ;;  %v6611_v7 = vpop.eup %6610  ;;  %5159 = vst.msk [vmem:[%s10643_s3 + $0x298] sm:$0xf] %vm4992_vm1, %v6023_v12  ;;  %v3949_v14 = vmul.f32 %v3707_v18, %v2981_v33  ;;  %6624 = verf.f32 %v3227_v21  ;;  %v2049_v15 = vpop.f32.mrf.mxu0  ;;  %v5464_v2 = vcombine.low %v9060_v53, %v9065_v39 }
 0x1bc   :  { %v2537_v16 = vpop.f32.mrf.mxu1  ;;  %v6613_v27 = vpop.eup %6612  ;;  %v5902_v9 = vpack.c.bf16 %v3827_v58, %v3827_v58  ;;  %v3586_v36 = vadd.f32 1.0, %v6611_v7  ;;  %v3106_v46 = vmul.f32 0.70710677, %v9006_v6  ;;  %v2862_v18 = vmul.f32 0.5, %v8938_v23 }
 0x1bd   :  { %v6024_v10 = vpack.c.bf16 %v3949_v14, %v3949_v14  ;;  %v3708_v24 = vadd.f32 1.0, %v6613_v27  ;;  %v3228_v29 = vmul.f32 0.70710677, %v9009_v13  ;;  %v2050_v35 = vpop.f32.mrf.mxu0  ;;  %v2984_v58 = vmul.f32 0.5, %v8941_v28  ;;  %v6392_v28 = vld [vmem:[%s10641_s0 + $0x344] ss:$8 sps:$4 sm:$0xff]  }
 0x1be   :  { %v2538_v30 = vpop.f32.mrf.mxu1  ;;  %5038 = vst.msk [vmem:[%s10643_s3 + $0xb4] sm:$0xf] %vm4992_vm1, %v5902_v9  ;;  %v3828_v31 = vmul.f32 %v3586_v36, %v2860_v26  ;;  %6626 = verf.f32 %v3106_v46  ;;  %v9030_v37 = vadd.f32 %v8619_v4, %v2050_v35  ;;  %v6394_v27 = vld [vmem:[%s10641_s0 + $0x714] ss:$8 sps:$4 sm:$0xff]   ;;  %v2863_v35 = vmul.f32 0.5, %v8962_v41 }
 0x1bf   :  { %v9033_v8 = vadd.f32 %v8619_v4, %v2538_v30  ;;  %v6615_v43 = vpop.eup %6614  ;;  %5160 = vst.msk [vmem:[%s10643_s3 + $0x29c] sm:$0xf] %vm4992_vm1, %v6024_v10  ;;  %v3950_v51 = vmul.f32 %v3708_v24, %v2982_v11  ;;  %6628 = verf.f32 %v3228_v29  ;;  %v2052_v47 = vpop.f32.mrf.mxu0  ;;  %v9116_v10 = vld [vmem:[%s10641_s0 + $0x340] sm:$0xff]  ;;  %v9121_v11 = vld [vmem:[%s10641_s0 + $0x348] sm:$0xff] }
 0x1c0   :  { %v2540_v52 = vpop.f32.mrf.mxu1  ;;  %v6617_v42 = vpop.eup %6616  ;;  %v5903_v45 = vpack.c.bf16 %v3828_v31, %v3828_v31  ;;  %v3587_v48 = vadd.f32 1.0, %v6615_v43  ;;  %v3107_v49 = vmul.f32 0.70710677, %v9030_v37  ;;  %v5344_v53 = vcombine.low %v9116_v10, %v9121_v11 }
 0x1c1   :  { %v6025_v40 = vpack.c.bf16 %v3950_v51, %v3950_v51  ;;  %v3709_v3 = vadd.f32 1.0, %v6617_v42  ;;  %v3229_v0 = vmul.f32 0.70710677, %v9033_v8  ;;  %v2055_v5 = vpop.f32.mrf.mxu0  ;;  %2246 = vmatmul.mubr.bf16.gmra.mxu0 %v5340_v17  ;;  %2734 = vmatmul.mubr.bf16.gmra.mxu1 %v5462_v32  ;;  %v2985_v51 = vmul.f32 0.5, %v8965_v38 }
 0x1c2   :  { %v2543_v60 = vpop.f32.mrf.mxu1  ;;  %5039 = vst.msk [vmem:[%s10643_s3 + $0xb8] sm:$0xf] %vm4992_vm1, %v5903_v45  ;;  %v3829_v19 = vmul.f32 %v3587_v48, %v2861_v50  ;;  %6630 = verf.f32 %v3107_v49  ;;  %v9074_v1 = vadd.f32 %v8619_v4, %v2055_v5  ;;  %5545 = vmatprep.mubr.msk.bf16.mxu0 %vm1449_vm0, %v6388_v34  ;;  %5606 = vmatprep.mubr.msk.bf16.mxu1 %vm1449_vm0, %v6390_v44  ;;  %v9128_v34 = vld [vmem:[%s10641_s0 + $0x710] sm:$0xff]  ;;  %v9133_v44 = vld [vmem:[%s10641_s0 + $0x718] sm:$0xff] }
 0x1c3   :  { %v9077_v20 = vadd.f32 %v8619_v4, %v2543_v60  ;;  %v6619_v56 = vpop.eup %6618  ;;  %5161 = vst.msk [vmem:[%s10643_s3 + $0x2a0] sm:$0xf] %vm4992_vm1, %v6025_v40  ;;  %v3951_v62 = vmul.f32 %v3709_v3, %v2983_v61  ;;  %6632 = verf.f32 %v3229_v0  ;;  %v2057_v63 = vpop.f32.mrf.mxu0  ;;  %v5466_v39 = vcombine.low %v9128_v34, %v9133_v44 }
 0x1c4   :  { %v2545_v54 = vpop.f32.mrf.mxu1  ;;  %v6621_v12 = vpop.eup %6620  ;;  %v5904_v33 = vpack.c.bf16 %v3829_v19, %v3829_v19  ;;  %v3588_v21 = vadd.f32 1.0, %v6619_v56  ;;  %v3108_v22 = vmul.f32 0.70710677, %v9074_v1  ;;  %v2864_v3 = vmul.f32 0.5, %v9006_v6 }
 0x1c5   :  { %v6026_v57 = vpack.c.bf16 %v3951_v62, %v3951_v62  ;;  %v3710_v7 = vadd.f32 1.0, %v6621_v12  ;;  %v3230_v14 = vmul.f32 0.70710677, %v9077_v20  ;;  %v2058_v15 = vpop.f32.mrf.mxu0  ;;  %v2986_v19 = vmul.f32 0.5, %v9009_v13  ;;  %v6396_v13 = vld [vmem:[%s10641_s0 + $0x354] ss:$8 sps:$4 sm:$0xff]  }
 0x1c6   :  { %v2546_v16 = vpop.f32.mrf.mxu1  ;;  %5040 = vst.msk [vmem:[%s10643_s3 + $0xbc] sm:$0xf] %vm4992_vm1, %v5904_v33  ;;  %v3830_v17 = vmul.f32 %v3588_v21, %v2862_v18  ;;  %6634 = verf.f32 %v3108_v22  ;;  %v9098_v23 = vadd.f32 %v8619_v4, %v2058_v15  ;;  %v6398_v12 = vld [vmem:[%s10641_s0 + $0x724] ss:$8 sps:$4 sm:$0xff]   ;;  %v2865_v15 = vmul.f32 0.5, %v9030_v37 }
 0x1c7   :  { %v9101_v32 = vadd.f32 %v8619_v4, %v2546_v16  ;;  %v6623_v9 = vpop.eup %6622  ;;  %5162 = vst.msk [vmem:[%s10643_s3 + $0x2a4] sm:$0xf] %vm4992_vm1, %v6026_v57  ;;  %v3952_v26 = vmul.f32 %v3710_v7, %v2984_v58  ;;  %6636 = verf.f32 %v3230_v14  ;;  %v2060_v36 = vpop.f32.mrf.mxu0  ;;  %v9184_v57 = vld [vmem:[%s10641_s0 + $0x350] sm:$0xff]  ;;  %v9189_v58 = vld [vmem:[%s10641_s0 + $0x358] sm:$0xff] }
 0x1c8   :  { %v2548_v46 = vpop.f32.mrf.mxu1  ;;  %v6625_v24 = vpop.eup %6624  ;;  %v5905_v29 = vpack.c.bf16 %v3830_v17, %v3830_v17  ;;  %v3589_v30 = vadd.f32 1.0, %v6623_v9  ;;  %v3109_v31 = vmul.f32 0.70710677, %v9098_v23  ;;  %v5346_v34 = vcombine.low %v9184_v57, %v9189_v58  ;;  %v9280_v58 = vld [vmem:[%s10642_s2] ss:$0 sm:$0xff] }
 0x1c9   :  { %v6027_v43 = vpack.c.bf16 %v3952_v26, %v3952_v26  ;;  %v3711_v47 = vadd.f32 1.0, %v6625_v24  ;;  %v3231_v52 = vmul.f32 0.70710677, %v9101_v32  ;;  %v2063_v41 = vpop.f32.mrf.mxu0  ;;  %2254 = vmatmul.mubr.bf16.gmra.mxu0 %v5342_v59  ;;  %2742 = vmatmul.mubr.bf16.gmra.mxu1 %v5464_v2  ;;  %v2987_v26 = vmul.f32 0.5, %v9033_v8 }
 0x1ca   :  { %v2551_v55 = vpop.f32.mrf.mxu1  ;;  %5041 = vst.msk [vmem:[%s10643_s3 + $0xc0] sm:$0xf] %vm4992_vm1, %v5905_v29  ;;  %v3831_v25 = vmul.f32 %v3589_v30, %v2863_v35  ;;  %6638 = verf.f32 %v3109_v31  ;;  %v9142_v42 = vadd.f32 %v8619_v4, %v2063_v41  ;;  %5546 = vmatprep.mubr.msk.bf16.mxu0 %vm1449_vm0, %v6392_v28  ;;  %5607 = vmatprep.mubr.msk.bf16.mxu1 %vm1449_vm0, %v6394_v27  ;;  %v9196_v28 = vld [vmem:[%s10641_s0 + $0x720] sm:$0xff]  ;;  %v9201_v27 = vld [vmem:[%s10641_s0 + $0x728] sm:$0xff] }
 0x1cb   :  { %v9145_v45 = vadd.f32 %v8619_v4, %v2551_v55  ;;  %v6627_v38 = vpop.eup %6626  ;;  %5163 = vst.msk [vmem:[%s10643_s3 + $0x2a8] sm:$0xf] %vm4992_vm1, %v6027_v43  ;;  %v3953_v50 = vmul.f32 %v3711_v47, %v2985_v51  ;;  %6640 = verf.f32 %v3231_v52  ;;  %v2065_v48 = vpop.f32.mrf.mxu0  ;;  %v5468_v44 = vcombine.low %v9196_v28, %v9201_v27 }
 0x1cc   :  { %v2553_v49 = vpop.f32.mrf.mxu1  ;;  %v6629_v40 = vpop.eup %6628  ;;  %v5906_v61 = vpack.c.bf16 %v3831_v25, %v3831_v25  ;;  %v3590_v0 = vadd.f32 1.0, %v6627_v38  ;;  %v3110_v5 = vmul.f32 0.70710677, %v9142_v42  ;;  %v2866_v47 = vmul.f32 0.5, %v9074_v1 }
 0x1cd   :  { %v6028_v60 = vpack.c.bf16 %v3953_v50, %v3953_v50  ;;  %v3712_v56 = vadd.f32 1.0, %v6629_v40  ;;  %v3232_v62 = vmul.f32 0.70710677, %v9145_v45  ;;  %v2066_v63 = vpop.f32.mrf.mxu0  ;;  %v2988_v25 = vmul.f32 0.5, %v9077_v20  ;;  %v6400_v20 = vld [vmem:[%s10641_s0 + $0x364] ss:$8 sps:$4 sm:$0xff]  }
 0x1ce   :  { %v2554_v54 = vpop.f32.mrf.mxu1  ;;  %5042 = vst.msk [vmem:[%s10643_s3 + $0xc4] sm:$0xf] %vm4992_vm1, %v5906_v61  ;;  %v3832_v59 = vmul.f32 %v3590_v0, %v2864_v3  ;;  %6642 = verf.f32 %v3110_v5  ;;  %v9166_v6 = vadd.f32 %v8619_v4, %v2066_v63  ;;  %v6402_v40 = vld [vmem:[%s10641_s0 + $0x734] ss:$8 sps:$4 sm:$0xff]  }
 0x1cf   :  { %v9169_v2 = vadd.f32 %v8619_v4, %v2554_v54  ;;  %v6631_v33 = vpop.eup %6630  ;;  %5164 = vst.msk [vmem:[%s10643_s3 + $0x2ac] sm:$0xf] %vm4992_vm1, %v6028_v60  ;;  %v3954_v18 = vmul.f32 %v3712_v56, %v2986_v19  ;;  %6644 = verf.f32 %v3232_v62  ;;  %v2068_v21 = vpop.f32.mrf.mxu0  ;;  %v9257_v60 = vld [vmem:[%s10641_s0 + $0x368] sm:$0xff]  ;;  %v2867_v62 = vmul.f32 0.5, %v9098_v23 }
 0x1d0   :  { %v2556_v22 = vpop.f32.mrf.mxu1  ;;  %v6633_v7 = vpop.eup %6632  ;;  %v5907_v14 = vpack.c.bf16 %v3832_v59, %v3832_v59  ;;  %v3591_v16 = vadd.f32 1.0, %v6631_v33  ;;  %v3111_v17 = vmul.f32 0.70710677, %v9166_v6  ;;  %v9264_v59 = vld [vmem:[%s10641_s0 + $0x730] sm:$0xff]  ;;  %v2989_v33 = vmul.f32 0.5, %v9101_v32 }
 0x1d1   :  { %v6029_v9 = vpack.c.bf16 %v3954_v18, %v3954_v18  ;;  %v3713_v36 = vadd.f32 1.0, %v6633_v7  ;;  %v3233_v46 = vmul.f32 0.70710677, %v9169_v2  ;;  %v2071_v37 = vpop.f32.mrf.mxu0  ;;  %2262 = vmatmul.mubr.bf16.gmra.mxu0 %v5344_v53  ;;  %2750 = vmatmul.mubr.bf16.gmra.mxu1 %v5466_v39 }
 0x1d2   :  { %v2559_v10 = vpop.f32.mrf.mxu1  ;;  %5043 = vst.msk [vmem:[%s10643_s3 + $0xc8] sm:$0xf] %vm4992_vm1, %v5907_v14  ;;  %v3833_v11 = vmul.f32 %v3591_v16, %v2865_v15  ;;  %6646 = verf.f32 %v3111_v17  ;;  %v9210_v24 = vadd.f32 %v8619_v4, %v2071_v37  ;;  %5547 = vmatprep.mubr.msk.bf16.mxu0 %vm1449_vm0, %v6396_v13  ;;  %5608 = vmatprep.mubr.msk.bf16.mxu1 %vm1449_vm0, %v6398_v12  ;;  %v9269_v13 = vld [vmem:[%s10641_s0 + $0x738] sm:$0xff] }
 0x1d3   :  { %v9213_v29 = vadd.f32 %v8619_v4, %v2559_v10  ;;  %v6635_v8 = vpop.eup %6634  ;;  %5165 = vst.msk [vmem:[%s10643_s3 + $0x2b0] sm:$0xf] %vm4992_vm1, %v6029_v9  ;;  %v3955_v35 = vmul.f32 %v3713_v36, %v2987_v26  ;;  %6648 = verf.f32 %v3233_v46  ;;  %v2073_v30 = vpop.f32.mrf.mxu0  ;;  %v5470_v27 = vcombine.low %v9264_v59, %v9269_v13 }
 0x1d4   :  { %v2561_v31 = vpop.f32.mrf.mxu1  ;;  %v6637_v43 = vpop.eup %6636  ;;  %v5908_v51 = vpack.c.bf16 %v3833_v11, %v3833_v11  ;;  %v3592_v52 = vadd.f32 1.0, %v6635_v8  ;;  %v3112_v41 = vmul.f32 0.70710677, %v9210_v24  ;;  %v2868_v36 = vmul.f32 0.5, %v9142_v42 }
 0x1d5   :  { %v6030_v55 = vpack.c.bf16 %v3955_v35, %v3955_v35  ;;  %v3714_v38 = vadd.f32 1.0, %v6637_v43  ;;  %v3234_v50 = vmul.f32 0.70710677, %v9213_v29  ;;  %v2074_v48 = vpop.f32.mrf.mxu0  ;;  %v2990_v11 = vmul.f32 0.5, %v9145_v45  ;;  %v6404_v45 = vld [vmem:[%s10641_s0 + $0x374] ss:$8 sps:$4 sm:$0xff]  }
 0x1d6   :  { %v2562_v49 = vpop.f32.mrf.mxu1  ;;  %5044 = vst.msk [vmem:[%s10643_s3 + $0xcc] sm:$0xf] %vm4992_vm1, %v5908_v51  ;;  %v3834_v53 = vmul.f32 %v3592_v52, %v2866_v47  ;;  %6650 = verf.f32 %v3112_v41  ;;  %v9234_v1 = vadd.f32 %v8619_v4, %v2074_v48  ;;  %v6406_v43 = vld [vmem:[%s10641_s0 + $0x744] ss:$8 sps:$4 sm:$0xff]   ;;  %v2869_v48 = vmul.f32 0.5, %v9166_v6 }
 0x1d7   :  { %v9237_v39 = vadd.f32 %v8619_v4, %v2562_v49  ;;  %v6639_v61 = vpop.eup %6638  ;;  %5166 = vst.msk [vmem:[%s10643_s3 + $0x2b4] sm:$0xf] %vm4992_vm1, %v6030_v55  ;;  %v3956_v3 = vmul.f32 %v3714_v38, %v2988_v25  ;;  %6652 = verf.f32 %v3234_v50  ;;  %v2076_v0 = vpop.f32.mrf.mxu0  ;;  %v9252_v4 = vld [vmem:[%s10641_s0 + $0x360] sm:$0xff]  ;;  %v9325_v55 = vld [vmem:[%s10641_s0 + $0x370] sm:$0xff]  ;;  %v9330_v25 = vld [vmem:[%s10641_s0 + $0x378] sm:$0xff] }
 0x1d8   :  { %v2564_v5 = vpop.f32.mrf.mxu1  ;;  %v6641_v19 = vpop.eup %6640  ;;  %v5909_v56 = vpack.c.bf16 %v3834_v53, %v3834_v53  ;;  %v3593_v63 = vadd.f32 1.0, %v6639_v61  ;;  %v3113_v54 = vmul.f32 0.70710677, %v9234_v1  ;;  %v5348_v28 = vcombine.low %v9252_v4, %v9257_v60 }
 0x1d9   :  { %v6031_v12 = vpack.c.bf16 %v3956_v3, %v3956_v3  ;;  %v3715_v18 = vadd.f32 1.0, %v6641_v19  ;;  %v3235_v21 = vmul.f32 0.70710677, %v9237_v39  ;;  %v2079_v23 = vpop.f32.mrf.mxu0  ;;  %2270 = vmatmul.mubr.bf16.gmra.mxu0 %v5346_v34  ;;  %2758 = vmatmul.mubr.bf16.gmra.mxu1 %v5468_v44  ;;  %v2991_v3 = vmul.f32 0.5, %v9169_v2 }
 0x1da   :  { %v2567_v22 = vpop.f32.mrf.mxu1  ;;  %5045 = vst.msk [vmem:[%s10643_s3 + $0xd0] sm:$0xf] %vm4992_vm1, %v5909_v56  ;;  %v3835_v57 = vmul.f32 %v3593_v63, %v2867_v62  ;;  %6654 = verf.f32 %v3113_v54  ;;  %v9283_v32 = vadd.f32 %v9280_v58, %v2079_v23  ;;  %5548 = vmatprep.mubr.msk.bf16.mxu0 %vm1449_vm0, %v6400_v20  ;;  %5609 = vmatprep.mubr.msk.bf16.mxu1 %vm1449_vm0, %v6402_v40  ;;  %v9337_v20 = vld [vmem:[%s10641_s0 + $0x740] sm:$0xff]  ;;  %v9342_v40 = vld [vmem:[%s10641_s0 + $0x748] sm:$0xff] }
 0x1db   :  { %v9286_v7 = vadd.f32 %v9280_v58, %v2567_v22  ;;  %v6643_v14 = vpop.eup %6642  ;;  %5167 = vst.msk [vmem:[%s10643_s3 + $0x2b8] sm:$0xf] %vm4992_vm1, %v6031_v12  ;;  %v3957_v15 = vmul.f32 %v3715_v18, %v2989_v33  ;;  %6656 = verf.f32 %v3235_v21  ;;  %v2081_v16 = vpop.f32.mrf.mxu0  ;;  %v5350_v59 = vcombine.low %v9325_v55, %v9330_v25 }
 0x1dc   :  { %v2569_v17 = vpop.f32.mrf.mxu1  ;;  %v6645_v9 = vpop.eup %6644  ;;  %v5910_v26 = vpack.c.bf16 %v3835_v57, %v3835_v57  ;;  %v3594_v46 = vadd.f32 1.0, %v6643_v14  ;;  %v3114_v37 = vmul.f32 0.70710677, %v9283_v32  ;;  %v5472_v13 = vcombine.low %v9337_v20, %v9342_v40 }
 0x1dd   :  { %v6032_v10 = vpack.c.bf16 %v3957_v15, %v3957_v15  ;;  %v3716_v8 = vadd.f32 1.0, %v6645_v9  ;;  %v3236_v35 = vmul.f32 0.70710677, %v9286_v7  ;;  %v2082_v30 = vpop.f32.mrf.mxu0  ;;  %v2870_v18 = vmul.f32 0.5, %v9210_v24  ;;  %v6410_v9 = vld [vmem:[%s10641_s0 + $0x754] ss:$8 sps:$4 sm:$0xff]  }
 0x1de   :  { %v2570_v31 = vpop.f32.mrf.mxu1  ;;  %5046 = vst.msk [vmem:[%s10643_s3 + $0xd4] sm:$0xf] %vm4992_vm1, %v5910_v26  ;;  %v3836_v34 = vmul.f32 %v3594_v46, %v2868_v36  ;;  %6658 = verf.f32 %v3114_v37  ;;  %v9307_v42 = vadd.f32 %v9280_v58, %v2082_v30  ;;  %v2992_v57 = vmul.f32 0.5, %v9213_v29  ;;  %v6408_v29 = vld [vmem:[%s10641_s0 + $0x384] ss:$8 sps:$4 sm:$0xff]  }
 0x1df   :  { %v9310_v44 = vadd.f32 %v9280_v58, %v2570_v31  ;;  %v6647_v51 = vpop.eup %6646  ;;  %5168 = vst.msk [vmem:[%s10643_s3 + $0x2bc] sm:$0xf] %vm4992_vm1, %v6032_v10  ;;  %v3958_v47 = vmul.f32 %v3716_v8, %v2990_v11  ;;  %6660 = verf.f32 %v3236_v35  ;;  %v2084_v52 = vpop.f32.mrf.mxu0  ;;  %v9393_v10 = vld [vmem:[%s10641_s0 + $0x380] sm:$0xff]  ;;  %v9398_v11 = vld [vmem:[%s10641_s0 + $0x388] sm:$0xff]  ;;  %v2871_v30 = vmul.f32 0.5, %v9234_v1 }
 0x1e0   :  { %v2572_v41 = vpop.f32.mrf.mxu1  ;;  %v6649_v38 = vpop.eup %6648  ;;  %v5911_v50 = vpack.c.bf16 %v3836_v34, %v3836_v34  ;;  %v3595_v49 = vadd.f32 1.0, %v6647_v51  ;;  %v3115_v53 = vmul.f32 0.70710677, %v9307_v42  ;;  %v5352_v20 = vcombine.low %v9393_v10, %v9398_v11 }
 0x1e1   :  { %v6033_v61 = vpack.c.bf16 %v3958_v47, %v3958_v47  ;;  %v3717_v0 = vadd.f32 1.0, %v6649_v38  ;;  %v3237_v5 = vmul.f32 0.70710677, %v9310_v44  ;;  %v2087_v6 = vpop.f32.mrf.mxu0  ;;  %2278 = vmatmul.mubr.bf16.gmra.mxu0 %v5348_v28  ;;  %2766 = vmatmul.mubr.bf16.gmra.mxu1 %v5470_v27  ;;  %v2993_v47 = vmul.f32 0.5, %v9237_v39 }
 0x1e2   :  { %v2575_v4 = vpop.f32.mrf.mxu1  ;;  %5047 = vst.msk [vmem:[%s10643_s3 + $0xd8] sm:$0xf] %vm4992_vm1, %v5911_v50  ;;  %v3837_v60 = vmul.f32 %v3595_v49, %v2869_v48  ;;  %6662 = verf.f32 %v3115_v53  ;;  %v9351_v19 = vadd.f32 %v9280_v58, %v2087_v6  ;;  %5549 = vmatprep.mubr.msk.bf16.mxu0 %vm1449_vm0, %v6404_v45  ;;  %5610 = vmatprep.mubr.msk.bf16.mxu1 %vm1449_vm0, %v6406_v43  ;;  %v9405_v45 = vld [vmem:[%s10641_s0 + $0x750] sm:$0xff]  ;;  %v9410_v43 = vld [vmem:[%s10641_s0 + $0x758] sm:$0xff] }
 0x1e3   :  { %v9354_v56 = vadd.f32 %v9280_v58, %v2575_v4  ;;  %v6651_v2 = vpop.eup %6650  ;;  %5169 = vst.msk [vmem:[%s10643_s3 + $0x2c0] sm:$0xf] %vm4992_vm1, %v6033_v61  ;;  %v3959_v62 = vmul.f32 %v3717_v0, %v2991_v3  ;;  %6664 = verf.f32 %v3237_v5  ;;  %v2089_v63 = vpop.f32.mrf.mxu0  ;;  %v5474_v40 = vcombine.low %v9405_v45, %v9410_v43 }
 0x1e4   :  { %v2577_v54 = vpop.f32.mrf.mxu1  ;;  %v6653_v12 = vpop.eup %6652  ;;  %v5912_v33 = vpack.c.bf16 %v3837_v60, %v3837_v60  ;;  %v3596_v21 = vadd.f32 1.0, %v6651_v2  ;;  %v3116_v23 = vmul.f32 0.70710677, %v9351_v19  ;;  %v2872_v0 = vmul.f32 0.5, %v9283_v32 }
 0x1e5   :  { %v6034_v22 = vpack.c.bf16 %v3959_v62, %v3959_v62  ;;  %v3718_v14 = vadd.f32 1.0, %v6653_v12  ;;  %v3238_v15 = vmul.f32 0.70710677, %v9354_v56  ;;  %v2090_v16 = vpop.f32.mrf.mxu0  ;;  %v2994_v60 = vmul.f32 0.5, %v9286_v7  ;;  %v6412_v7 = vld [vmem:[%s10641_s0 + $0x394] ss:$8 sps:$4 sm:$0xff]  }
 0x1e6   :  { %v2578_v17 = vpop.f32.mrf.mxu1  ;;  %5048 = vst.msk [vmem:[%s10643_s3 + $0xdc] sm:$0xf] %vm4992_vm1, %v5912_v33  ;;  %v3838_v28 = vmul.f32 %v3596_v21, %v2870_v18  ;;  %6666 = verf.f32 %v3116_v23  ;;  %v9375_v24 = vadd.f32 %v9280_v58, %v2090_v16  ;;  %v6414_v12 = vld [vmem:[%s10641_s0 + $0x764] ss:$8 sps:$4 sm:$0xff]   ;;  %v2873_v16 = vmul.f32 0.5, %v9307_v42 }
 0x1e7   :  { %v9378_v27 = vadd.f32 %v9280_v58, %v2578_v17  ;;  %v6655_v26 = vpop.eup %6654  ;;  %5170 = vst.msk [vmem:[%s10643_s3 + $0x2c4] sm:$0xf] %vm4992_vm1, %v6034_v22  ;;  %v3960_v36 = vmul.f32 %v3718_v14, %v2992_v57  ;;  %6668 = verf.f32 %v3238_v15  ;;  %v2092_v46 = vpop.f32.mrf.mxu0  ;;  %v9461_v22 = vld [vmem:[%s10641_s0 + $0x390] sm:$0xff]  ;;  %v9466_v57 = vld [vmem:[%s10641_s0 + $0x398] sm:$0xff] }
 0x1e8   :  { %v2580_v37 = vpop.f32.mrf.mxu1  ;;  %v6657_v8 = vpop.eup %6656  ;;  %v5913_v35 = vpack.c.bf16 %v3838_v28, %v3838_v28  ;;  %v3597_v31 = vadd.f32 1.0, %v6655_v26  ;;  %v3117_v34 = vmul.f32 0.70710677, %v9375_v24  ;;  %v5354_v45 = vcombine.low %v9461_v22, %v9466_v57 }
 0x1e9   :  { %v6035_v51 = vpack.c.bf16 %v3960_v36, %v3960_v36  ;;  %v3719_v52 = vadd.f32 1.0, %v6657_v8  ;;  %v3239_v41 = vmul.f32 0.70710677, %v9378_v27  ;;  %v2095_v1 = vpop.f32.mrf.mxu0  ;;  %2286 = vmatmul.mubr.bf16.gmra.mxu0 %v5350_v59  ;;  %2774 = vmatmul.mubr.bf16.gmra.mxu1 %v5472_v13  ;;  %v2995_v36 = vmul.f32 0.5, %v9310_v44 }
 0x1ea   :  { %v2583_v55 = vpop.f32.mrf.mxu1  ;;  %5049 = vst.msk [vmem:[%s10643_s3 + $0xe0] sm:$0xf] %vm4992_vm1, %v5913_v35  ;;  %v3839_v25 = vmul.f32 %v3597_v31, %v2871_v30  ;;  %6670 = verf.f32 %v3117_v34  ;;  %v9419_v38 = vadd.f32 %v9280_v58, %v2095_v1  ;;  %5550 = vmatprep.mubr.msk.bf16.mxu0 %vm1449_vm0, %v6408_v29  ;;  %5611 = vmatprep.mubr.msk.bf16.mxu1 %vm1449_vm0, %v6410_v9  ;;  %v9473_v29 = vld [vmem:[%s10641_s0 + $0x760] sm:$0xff]  ;;  %v9478_v9 = vld [vmem:[%s10641_s0 + $0x768] sm:$0xff] }
 0x1eb   :  { %v9422_v50 = vadd.f32 %v9280_v58, %v2583_v55  ;;  %v6659_v39 = vpop.eup %6658  ;;  %5171 = vst.msk [vmem:[%s10643_s3 + $0x2c8] sm:$0xf] %vm4992_vm1, %v6035_v51  ;;  %v3961_v48 = vmul.f32 %v3719_v52, %v2993_v47  ;;  %6672 = verf.f32 %v3239_v41  ;;  %v2097_v49 = vpop.f32.mrf.mxu0  ;;  %v5476_v43 = vcombine.low %v9473_v29, %v9478_v9 }
 0x1ec   :  { %v2585_v53 = vpop.f32.mrf.mxu1  ;;  %v6661_v61 = vpop.eup %6660  ;;  %v5914_v3 = vpack.c.bf16 %v3839_v25, %v3839_v25  ;;  %v3598_v5 = vadd.f32 1.0, %v6659_v39  ;;  %v3118_v6 = vmul.f32 0.70710677, %v9419_v38  ;;  %v2874_v52 = vmul.f32 0.5, %v9351_v19 }
 0x1ed   :  { %v6036_v4 = vpack.c.bf16 %v3961_v48, %v3961_v48  ;;  %v3720_v2 = vadd.f32 1.0, %v6661_v61  ;;  %v3240_v62 = vmul.f32 0.70710677, %v9422_v50  ;;  %v2098_v63 = vpop.f32.mrf.mxu0  ;;  %v2996_v25 = vmul.f32 0.5, %v9354_v56  ;;  %v6416_v56 = vld [vmem:[%s10641_s0 + $0x3a4] ss:$8 sps:$4 sm:$0xff]  }
 0x1ee   :  { %v2586_v54 = vpop.f32.mrf.mxu1  ;;  %5050 = vst.msk [vmem:[%s10643_s3 + $0xe4] sm:$0xf] %vm4992_vm1, %v5914_v3  ;;  %v3840_v59 = vmul.f32 %v3598_v5, %v2872_v0  ;;  %6674 = verf.f32 %v3118_v6  ;;  %v9443_v32 = vadd.f32 %v9280_v58, %v2098_v63  ;;  %v6418_v61 = vld [vmem:[%s10641_s0 + $0x774] ss:$8 sps:$4 sm:$0xff]   ;;  %v2875_v63 = vmul.f32 0.5, %v9375_v24 }
 0x1ef   :  { %v9446_v13 = vadd.f32 %v9280_v58, %v2586_v54  ;;  %v6663_v33 = vpop.eup %6662  ;;  %5172 = vst.msk [vmem:[%s10643_s3 + $0x2cc] sm:$0xf] %vm4992_vm1, %v6036_v4  ;;  %v3962_v18 = vmul.f32 %v3720_v2, %v2994_v60  ;;  %6676 = verf.f32 %v3240_v62  ;;  %v2100_v21 = vpop.f32.mrf.mxu0  ;;  %v9529_v4 = vld [vmem:[%s10641_s0 + $0x3a0] sm:$0xff]  ;;  %v9534_v60 = vld [vmem:[%s10641_s0 + $0x3a8] sm:$0xff] }
 0x1f0   :  { %v2588_v23 = vpop.f32.mrf.mxu1  ;;  %v6665_v14 = vpop.eup %6664  ;;  %v5915_v15 = vpack.c.bf16 %v3840_v59, %v3840_v59  ;;  %v3599_v17 = vadd.f32 1.0, %v6663_v33  ;;  %v3119_v28 = vmul.f32 0.70710677, %v9443_v32  ;;  %v5356_v29 = vcombine.low %v9529_v4, %v9534_v60 }
 0x1f1   :  { %v6037_v26 = vpack.c.bf16 %v3962_v18, %v3962_v18  ;;  %v3721_v46 = vadd.f32 1.0, %v6665_v14  ;;  %v3241_v37 = vmul.f32 0.70710677, %v9446_v13  ;;  %v2103_v42 = vpop.f32.mrf.mxu0  ;;  %2294 = vmatmul.mubr.bf16.gmra.mxu0 %v5352_v20  ;;  %2782 = vmatmul.mubr.bf16.gmra.mxu1 %v5474_v40  ;;  %v2997_v18 = vmul.f32 0.5, %v9378_v27 }
 0x1f2   :  { %v2591_v10 = vpop.f32.mrf.mxu1  ;;  %5051 = vst.msk [vmem:[%s10643_s3 + $0xe8] sm:$0xf] %vm4992_vm1, %v5915_v15  ;;  %v3841_v11 = vmul.f32 %v3599_v17, %v2873_v16  ;;  %6678 = verf.f32 %v3119_v28  ;;  %v9487_v8 = vadd.f32 %v9280_v58, %v2103_v42  ;;  %5551 = vmatprep.mubr.msk.bf16.mxu0 %vm1449_vm0, %v6412_v7  ;;  %5612 = vmatprep.mubr.msk.bf16.mxu1 %vm1449_vm0, %v6414_v12  ;;  %v9541_v7 = vld [vmem:[%s10641_s0 + $0x770] sm:$0xff]  ;;  %v9546_v12 = vld [vmem:[%s10641_s0 + $0x778] sm:$0xff] }
 0x1f3   :  { %v9490_v35 = vadd.f32 %v9280_v58, %v2591_v10  ;;  %v6667_v44 = vpop.eup %6666  ;;  %5173 = vst.msk [vmem:[%s10643_s3 + $0x2d0] sm:$0xf] %vm4992_vm1, %v6037_v26  ;;  %v3963_v30 = vmul.f32 %v3721_v46, %v2995_v36  ;;  %6680 = verf.f32 %v3241_v37  ;;  %v2105_v31 = vpop.f32.mrf.mxu0  ;;  %v5478_v9 = vcombine.low %v9541_v7, %v9546_v12 }
 0x1f4   :  { %v2593_v34 = vpop.f32.mrf.mxu1  ;;  %v6669_v51 = vpop.eup %6668  ;;  %v5916_v47 = vpack.c.bf16 %v3841_v11, %v3841_v11  ;;  %v3600_v41 = vadd.f32 1.0, %v6667_v44  ;;  %v3120_v1 = vmul.f32 0.70710677, %v9487_v8  ;;  %v2876_v46 = vmul.f32 0.5, %v9419_v38 }
 0x1f5   :  { %v6038_v55 = vpack.c.bf16 %v3963_v30, %v3963_v30  ;;  %v3722_v39 = vadd.f32 1.0, %v6669_v51  ;;  %v3242_v48 = vmul.f32 0.70710677, %v9490_v35  ;;  %v2106_v49 = vpop.f32.mrf.mxu0  ;;  %v2998_v11 = vmul.f32 0.5, %v9422_v50  ;;  %v6420_v50 = vld [vmem:[%s10641_s0 + $0x3b4] ss:$8 sps:$4 sm:$0xff]  }
 0x1f6   :  { %v2594_v53 = vpop.f32.mrf.mxu1  ;;  %5052 = vst.msk [vmem:[%s10643_s3 + $0xec] sm:$0xf] %vm4992_vm1, %v5916_v47  ;;  %v3842_v20 = vmul.f32 %v3600_v41, %v2874_v52  ;;  %6682 = verf.f32 %v3120_v1  ;;  %v9511_v19 = vadd.f32 %v9280_v58, %v2106_v49  ;;  %v6422_v51 = vld [vmem:[%s10641_s0 + $0x784] ss:$8 sps:$4 sm:$0xff]   ;;  %v2877_v49 = vmul.f32 0.5, %v9443_v32 }
 0x1f7   :  { %v9514_v40 = vadd.f32 %v9280_v58, %v2594_v53  ;;  %v6671_v3 = vpop.eup %6670  ;;  %5174 = vst.msk [vmem:[%s10643_s3 + $0x2d4] sm:$0xf] %vm4992_vm1, %v6038_v55  ;;  %v3964_v0 = vmul.f32 %v3722_v39, %v2996_v25  ;;  %6684 = verf.f32 %v3242_v48  ;;  %v2108_v5 = vpop.f32.mrf.mxu0  ;;  %v9597_v55 = vld [vmem:[%s10641_s0 + $0x3b0] sm:$0xff]  ;;  %v9602_v25 = vld [vmem:[%s10641_s0 + $0x3b8] sm:$0xff] }
 0x1f8   :  { %v2596_v6 = vpop.f32.mrf.mxu1  ;;  %v6673_v2 = vpop.eup %6672  ;;  %v5917_v62 = vpack.c.bf16 %v3842_v20, %v3842_v20  ;;  %v3601_v54 = vadd.f32 1.0, %v6671_v3  ;;  %v3121_v59 = vmul.f32 0.70710677, %v9511_v19  ;;  %v5358_v7 = vcombine.low %v9597_v55, %v9602_v25 }
 0x1f9   :  { %v6039_v33 = vpack.c.bf16 %v3964_v0, %v3964_v0  ;;  %v3723_v21 = vadd.f32 1.0, %v6673_v2  ;;  %v3243_v23 = vmul.f32 0.70710677, %v9514_v40  ;;  %v2111_v24 = vpop.f32.mrf.mxu0  ;;  %2302 = vmatmul.mubr.bf16.gmra.mxu0 %v5354_v45  ;;  %2790 = vmatmul.mubr.bf16.gmra.mxu1 %v5476_v43  ;;  %v2999_v0 = vmul.f32 0.5, %v9446_v13 }
 0x1fa   :  { %v2599_v22 = vpop.f32.mrf.mxu1  ;;  %5053 = vst.msk [vmem:[%s10643_s3 + $0xf0] sm:$0xf] %vm4992_vm1, %v5917_v62  ;;  %v3843_v57 = vmul.f32 %v3601_v54, %v2875_v63  ;;  %6686 = verf.f32 %v3121_v59  ;;  %v9555_v14 = vadd.f32 %v9280_v58, %v2111_v24  ;;  %5552 = vmatprep.mubr.msk.bf16.mxu0 %vm1449_vm0, %v6416_v56  ;;  %5613 = vmatprep.mubr.msk.bf16.mxu1 %vm1449_vm0, %v6418_v61  ;;  %v255_v56 = vld [vmem:[%s10641_s0 + $0x780] sm:$0xff]  ;;  %v256_v61 = vld [vmem:[%s10641_s0 + $0x788] sm:$0xff] }
 0x1fb   :  { %v9558_v15 = vadd.f32 %v9280_v58, %v2599_v22  ;;  %v6675_v27 = vpop.eup %6674  ;;  %5175 = vst.msk [vmem:[%s10643_s3 + $0x2d8] sm:$0xf] %vm4992_vm1, %v6039_v33  ;;  %v3965_v16 = vmul.f32 %v3723_v21, %v2997_v18  ;;  %6688 = verf.f32 %v3243_v23  ;;  %v2113_v17 = vpop.f32.mrf.mxu0  ;;  %v5480_v12 = vcombine.low %v255_v56, %v256_v61 }
 0x1fc   :  { %v2601_v28 = vpop.f32.mrf.mxu1  ;;  %v6677_v26 = vpop.eup %6676  ;;  %v5918_v36 = vpack.c.bf16 %v3843_v57, %v3843_v57  ;;  %v3602_v37 = vadd.f32 1.0, %v6675_v27  ;;  %v3122_v42 = vmul.f32 0.70710677, %v9555_v14  ;;  %v2878_v21 = vmul.f32 0.5, %v9487_v8 }
 0x1fd   :  { %v6040_v10 = vpack.c.bf16 %v3965_v16, %v3965_v16  ;;  %v3724_v44 = vadd.f32 1.0, %v6677_v26  ;;  %v3244_v30 = vmul.f32 0.70710677, %v9558_v15  ;;  %v2114_v31 = vpop.f32.mrf.mxu0  ;;  %v3000_v57 = vmul.f32 0.5, %v9490_v35  ;;  %v6424_v35 = vld [vmem:[%s10641_s0 + $0x3c4] ss:$8 sps:$4 sm:$0xff]  }
 0x1fe   :  { %v2602_v34 = vpop.f32.mrf.mxu1  ;;  %5054 = vst.msk [vmem:[%s10643_s3 + $0xf4] sm:$0xf] %vm4992_vm1, %v5918_v36  ;;  %v3844_v45 = vmul.f32 %v3602_v37, %v2876_v46  ;;  %6690 = verf.f32 %v3122_v42  ;;  %v9579_v38 = vadd.f32 %v9280_v58, %v2114_v31  ;;  %v135_v31 = vld [vmem:[%s10641_s0 + $0x3c0] sm:$0xff]  ;;  %v2880_v56 = vmul.f32 0.5, %v9555_v14 }
 0x1ff   :  { %v9582_v43 = vadd.f32 %v9280_v58, %v2602_v34  ;;  %v6679_v47 = vpop.eup %6678  ;;  %5176 = vst.msk [vmem:[%s10643_s3 + $0x2dc] sm:$0xf] %vm4992_vm1, %v6040_v10  ;;  %v3966_v52 = vmul.f32 %v3724_v44, %v2998_v11  ;;  %6692 = verf.f32 %v3244_v30  ;;  %v2116_v41 = vpop.f32.mrf.mxu0  ;;  %v2879_v11 = vmul.f32 0.5, %v9511_v19  ;;  %v136_v34 = vld [vmem:[%s10641_s0 + $0x3c8] sm:$0xff] }
 0x200   :  { %v2604_v1 = vpop.f32.mrf.mxu1  ;;  %v6681_v39 = vpop.eup %6680  ;;  %v5919_v48 = vpack.c.bf16 %v3844_v45, %v3844_v45  ;;  %v3603_v53 = vadd.f32 1.0, %v6679_v47  ;;  %v3123_v20 = vmul.f32 0.70710677, %v9579_v38 }
 0x201   :  { %v6041_v3 = vpack.c.bf16 %v3966_v52, %v3966_v52  ;;  %v3725_v5 = vadd.f32 1.0, %v6681_v39  ;;  %v3245_v6 = vmul.f32 0.70710677, %v9582_v43  ;;  %v2119_v4 = vpop.f32.mrf.mxu0  ;;  %2310 = vmatmul.mubr.bf16.gmra.mxu0 %v5356_v29  ;;  %2798 = vmatmul.mubr.bf16.gmra.mxu1 %v5478_v9 }
 0x202   :  { %v2607_v32 = vpop.f32.mrf.mxu1  ;;  %5055 = vst.msk [vmem:[%s10643_s3 + $0xf8] sm:$0xf] %vm4992_vm1, %v5919_v48  ;;  %v3845_v60 = vmul.f32 %v3603_v53, %v2877_v49  ;;  %6694 = verf.f32 %v3123_v20  ;;  %v9619_v2 = vadd.f32 %v9280_v58, %v2119_v4  ;;  %5553 = vmatprep.mubr.msk.bf16.mxu0 %vm1449_vm0, %v6420_v50  ;;  %5614 = vmatprep.mubr.msk.bf16.mxu1 %vm1449_vm0, %v6422_v51  ;;  %v3001_v50 = vmul.f32 0.5, %v9514_v40 }
 0x203   :  { %v9622_v62 = vadd.f32 %v9280_v58, %v2607_v32  ;;  %v6683_v13 = vpop.eup %6682  ;;  %5177 = vst.msk [vmem:[%s10643_s3 + $0x2e0] sm:$0xf] %vm4992_vm1, %v6041_v3  ;;  %v3967_v63 = vmul.f32 %v3725_v5, %v2999_v0  ;;  %6696 = verf.f32 %v3245_v6  ;;  %v2121_v54 = vpop.f32.mrf.mxu0  ;;  %v5360_v49 = vcombine.low %v135_v31, %v136_v34 }
 0x204   :  { %v2609_v59 = vpop.f32.mrf.mxu1  ;;  %v6685_v33 = vpop.eup %6684  ;;  %v5920_v18 = vpack.c.bf16 %v3845_v60, %v3845_v60  ;;  %v3604_v23 = vadd.f32 1.0, %v6683_v13  ;;  %v3124_v24 = vmul.f32 0.70710677, %v9619_v2  ;;  %v3002_v5 = vmul.f32 0.5, %v9558_v15 }
 0x205   :  { %v6042_v22 = vpack.c.bf16 %v3967_v63, %v3967_v63  ;;  %v3726_v27 = vadd.f32 1.0, %v6685_v33  ;;  %v3246_v16 = vmul.f32 0.70710677, %v9622_v62  ;;  %v2122_v17 = vpop.f32.mrf.mxu0 }
 0x206   :  { %v2610_v28 = vpop.f32.mrf.mxu1  ;;  %5056 = vst.msk [vmem:[%s10643_s3 + $0xfc] sm:$0xf] %vm4992_vm1, %v5920_v18  ;;  %v3846_v29 = vmul.f32 %v3604_v23, %v2878_v21  ;;  %6698 = verf.f32 %v3124_v24  ;;  %v9641_v8 = vadd.f32 %v9280_v58, %v2122_v17  ;;  %v2881_v18 = vmul.f32 0.5, %v9579_v38 }
 0x207   :  { %v9644_v9 = vadd.f32 %v9280_v58, %v2610_v28  ;;  %v6687_v26 = vpop.eup %6686  ;;  %5178 = vst.msk [vmem:[%s10643_s3 + $0x2e4] sm:$0xf] %vm4992_vm1, %v6042_v22  ;;  %v3968_v36 = vmul.f32 %v3726_v27, %v3000_v57  ;;  %6700 = verf.f32 %v3246_v16  ;;  %v2124_v46 = vpop.f32.mrf.mxu0  ;;  %v3003_v22 = vmul.f32 0.5, %v9582_v43 }
 0x208   :  { %v2612_v37 = vpop.f32.mrf.mxu1  ;;  %v6689_v42 = vpop.eup %6688  ;;  %v5921_v10 = vpack.c.bf16 %v3846_v29, %v3846_v29  ;;  %v3605_v44 = vadd.f32 1.0, %v6687_v26  ;;  %v3125_v30 = vmul.f32 0.70710677, %v9641_v8 }
 0x209   :  { %v6043_v45 = vpack.c.bf16 %v3968_v36, %v3968_v36  ;;  %v3727_v51 = vadd.f32 1.0, %v6689_v42  ;;  %v3247_v47 = vmul.f32 0.70710677, %v9644_v9  ;;  %v2127_v52 = vpop.f32.mrf.mxu0  ;;  %2318 = vmatmul.mubr.bf16.gmra.mxu0 %v5358_v7  ;;  %2806 = vmatmul.mubr.bf16.gmra.mxu1 %v5480_v12  ;;  %v2882_v42 = vmul.f32 0.5, %v9619_v2 }
 0x20a   :  { %v2615_v19 = vpop.f32.mrf.mxu1  ;;  %5057 = vst.msk [vmem:[%s10643_s3 + $0x100] sm:$0xf] %vm4992_vm1, %v5921_v10  ;;  %v3847_v41 = vmul.f32 %v3605_v44, %v2879_v11  ;;  %6702 = verf.f32 %v3125_v30  ;;  %v9668_v1 = vadd.f32 %v9280_v58, %v2127_v52  ;;  %5554 = vmatprep.mubr.msk.bf16.mxu0 %vm1449_vm0, %v6424_v35  ;;  %v3004_v30 = vmul.f32 0.5, %v9622_v62 }
 0x20b   :  { %v9671_v55 = vadd.f32 %v9280_v58, %v2615_v19  ;;  %v6691_v40 = vpop.eup %6690  ;;  %5179 = vst.msk [vmem:[%s10643_s3 + $0x2e8] sm:$0xf] %vm4992_vm1, %v6043_v45  ;;  %v3969_v25 = vmul.f32 %v3727_v51, %v3001_v50  ;;  %6704 = verf.f32 %v3247_v47  ;;  %v2129_v39 = vpop.f32.mrf.mxu0 }
 0x20c   :  { %v2617_v48 = vpop.f32.mrf.mxu1  ;;  %v6693_v53 = vpop.eup %6692  ;;  %v5922_v20 = vpack.c.bf16 %v3847_v41, %v3847_v41  ;;  %v3606_v61 = vadd.f32 1.0, %v6691_v40  ;;  %v3126_v3 = vmul.f32 0.70710677, %v9668_v1  ;;  %v2883_v39 = vmul.f32 0.5, %v9641_v8 }
 0x20d   :  { %v6044_v0 = vpack.c.bf16 %v3969_v25, %v3969_v25  ;;  %v3728_v6 = vadd.f32 1.0, %v6693_v53  ;;  %v3248_v4 = vmul.f32 0.70710677, %v9671_v55  ;;  %v2130_v32 = vpop.f32.mrf.mxu0 }
 0x20e   :  { %v2618_v60 = vpop.f32.mrf.mxu1  ;;  %5058 = vst.msk [vmem:[%s10643_s3 + $0x104] sm:$0xf] %vm4992_vm1, %v5922_v20  ;;  %v3848_v13 = vmul.f32 %v3606_v61, %v2880_v56  ;;  %6706 = verf.f32 %v3126_v3  ;;  %v9687_v14 = vadd.f32 %v9280_v58, %v2130_v32  ;;  %v3005_v20 = vmul.f32 0.5, %v9644_v9 }
 0x20f   :  { %v9690_v63 = vadd.f32 %v9280_v58, %v2618_v60  ;;  %v6695_v54 = vpop.eup %6694  ;;  %5180 = vst.msk [vmem:[%s10643_s3 + $0x2ec] sm:$0xf] %vm4992_vm1, %v6044_v0  ;;  %v3970_v15 = vmul.f32 %v3728_v6, %v3002_v5  ;;  %6708 = verf.f32 %v3248_v4  ;;  %v2132_v59 = vpop.f32.mrf.mxu0 }
 0x210   :  { %v2620_v7 = vpop.f32.mrf.mxu1  ;;  %v6697_v12 = vpop.eup %6696  ;;  %v5923_v33 = vpack.c.bf16 %v3848_v13, %v3848_v13  ;;  %v3607_v21 = vadd.f32 1.0, %v6695_v54  ;;  %v3127_v23 = vmul.f32 0.70710677, %v9687_v14 }
 0x211   :  { %v6045_v24 = vpack.c.bf16 %v3970_v15, %v3970_v15  ;;  %v3729_v57 = vadd.f32 1.0, %v6697_v12  ;;  %v3249_v27 = vmul.f32 0.70710677, %v9690_v63  ;;  %v2135_v16 = vpop.f32.mrf.mxu0  ;;  %2326 = vmatmul.mubr.bf16.gmra.mxu0 %v5360_v49  ;;  %v2884_v15 = vmul.f32 0.5, %v9668_v1 }
 0x212   :  { %v2623_v17 = vpop.f32.mrf.mxu1  ;;  %5059 = vst.msk [vmem:[%s10643_s3 + $0x108] sm:$0xf] %vm4992_vm1, %v5923_v33  ;;  %v3849_v28 = vmul.f32 %v3607_v21, %v2881_v18  ;;  %6710 = verf.f32 %v3127_v23  ;;  %v9705_v38 = vadd.f32 %v9280_v58, %v2135_v16  ;;  %v3006_v33 = vmul.f32 0.5, %v9671_v55 }
 0x213   :  { %v9708_v29 = vadd.f32 %v9280_v58, %v2623_v17  ;;  %v6699_v43 = vpop.eup %6698  ;;  %5181 = vst.msk [vmem:[%s10643_s3 + $0x2f0] sm:$0xf] %vm4992_vm1, %v6045_v24  ;;  %v3971_v35 = vmul.f32 %v3729_v57, %v3003_v22  ;;  %6712 = verf.f32 %v3249_v27  ;;  %v2137_v26 = vpop.f32.mrf.mxu0 }
 0x214   :  { %v2625_v36 = vpop.f32.mrf.mxu1  ;;  %v6701_v46 = vpop.eup %6700  ;;  %v5924_v37 = vpack.c.bf16 %v3849_v28, %v3849_v28  ;;  %v3608_v10 = vadd.f32 1.0, %v6699_v43  ;;  %v3128_v11 = vmul.f32 0.70710677, %v9705_v38 }
 0x215   :  { %v6046_v44 = vpack.c.bf16 %v3971_v35, %v3971_v35  ;;  %v3730_v31 = vadd.f32 1.0, %v6701_v46  ;;  %v3250_v34 = vmul.f32 0.70710677, %v9708_v29  ;;  %v2138_v45 = vpop.f32.mrf.mxu0  ;;  %v2885_v35 = vmul.f32 0.5, %v9687_v14 }
 0x216   :  { %v2626_v50 = vpop.f32.mrf.mxu1  ;;  %5060 = vst.msk [vmem:[%s10643_s3 + $0x10c] sm:$0xf] %vm4992_vm1, %v5924_v37  ;;  %v3850_v51 = vmul.f32 %v3608_v10, %v2882_v42  ;;  %6714 = verf.f32 %v3128_v11  ;;  %v9723_v2 = vadd.f32 %v9280_v58, %v2138_v45  ;;  %v3007_v37 = vmul.f32 0.5, %v9690_v63 }
 0x217   :  { %v9726_v47 = vadd.f32 %v9280_v58, %v2626_v50  ;;  %v6703_v52 = vpop.eup %6702  ;;  %5182 = vst.msk [vmem:[%s10643_s3 + $0x2f4] sm:$0xf] %vm4992_vm1, %v6046_v44  ;;  %v3972_v62 = vmul.f32 %v3730_v31, %v3004_v30  ;;  %6716 = verf.f32 %v3250_v34  ;;  %v2140_v19 = vpop.f32.mrf.mxu0 }
 0x218   :  { %v2628_v41 = vpop.f32.mrf.mxu1  ;;  %v6705_v40 = vpop.eup %6704  ;;  %v5925_v25 = vpack.c.bf16 %v3850_v51, %v3850_v51  ;;  %v3609_v48 = vadd.f32 1.0, %v6703_v52  ;;  %v3129_v49 = vmul.f32 0.70710677, %v9723_v2 }
 0x219   :  { %v6047_v53 = vpack.c.bf16 %v3972_v62, %v3972_v62  ;;  %v3731_v56 = vadd.f32 1.0, %v6705_v40  ;;  %v3251_v61 = vmul.f32 0.70710677, %v9726_v47  ;;  %v2143_v3 = vpop.f32.mrf.mxu0  ;;  %v2886_v62 = vmul.f32 0.5, %v9705_v38 }
 0x21a   :  { %v2631_v0 = vpop.f32.mrf.mxu1  ;;  %5061 = vst.msk [vmem:[%s10643_s3 + $0x110] sm:$0xf] %vm4992_vm1, %v5925_v25  ;;  %v3851_v5 = vmul.f32 %v3609_v48, %v2883_v39  ;;  %6718 = verf.f32 %v3129_v49  ;;  %v9741_v8 = vadd.f32 %v9280_v58, %v2143_v3  ;;  %v3008_v25 = vmul.f32 0.5, %v9708_v29 }
 0x21b   :  { %v9744_v6 = vadd.f32 %v9280_v58, %v2631_v0  ;;  %v6707_v4 = vpop.eup %6706  ;;  %5183 = vst.msk [vmem:[%s10643_s3 + $0x2f8] sm:$0xf] %vm4992_vm1, %v6047_v53  ;;  %v3973_v9 = vmul.f32 %v3731_v56, %v3005_v20  ;;  %6720 = verf.f32 %v3251_v61  ;;  %v2145_v32 = vpop.f32.mrf.mxu0 }
 0x21c   :  { %v2633_v60 = vpop.f32.mrf.mxu1  ;;  %v6709_v13 = vpop.eup %6708  ;;  %v5926_v54 = vpack.c.bf16 %v3851_v5, %v3851_v5  ;;  %v3610_v59 = vadd.f32 1.0, %v6707_v4  ;;  %v3130_v7 = vmul.f32 0.70710677, %v9741_v8 }
 0x21d   :  { %v6048_v12 = vpack.c.bf16 %v3973_v9, %v3973_v9  ;;  %v3732_v18 = vadd.f32 1.0, %v6709_v13  ;;  %v3252_v21 = vmul.f32 0.70710677, %v9744_v6  ;;  %v2146_v23 = vpop.f32.mrf.mxu0  ;;  %v2887_v9 = vmul.f32 0.5, %v9723_v2  ;;  %v9815_v2 = vld [vmem:[%s10642_s2] ss:$0 sm:$0xff] }
 0x21e   :  { %v2634_v24 = vpop.f32.mrf.mxu1  ;;  %5062 = vst.msk [vmem:[%s10643_s3 + $0x114] sm:$0xf] %vm4992_vm1, %v5926_v54  ;;  %v3852_v22 = vmul.f32 %v3610_v59, %v2884_v15  ;;  %6722 = verf.f32 %v3130_v7  ;;  %v9759_v1 = vadd.f32 %v9280_v58, %v2146_v23 }
 0x21f   :  { %v9762_v57 = vadd.f32 %v9280_v58, %v2634_v24  ;;  %v6711_v27 = vpop.eup %6710  ;;  %5184 = vst.msk [vmem:[%s10643_s3 + $0x2fc] sm:$0xf] %vm4992_vm1, %v6048_v12  ;;  %v3974_v55 = vmul.f32 %v3732_v18, %v3006_v33  ;;  %6724 = verf.f32 %v3252_v21  ;;  %v2148_v16 = vpop.f32.mrf.mxu0 }
 0x220   :  { %v2636_v17 = vpop.f32.mrf.mxu1  ;;  %v6713_v28 = vpop.eup %6712  ;;  %v5927_v43 = vpack.c.bf16 %v3852_v22, %v3852_v22  ;;  %v3611_v26 = vadd.f32 1.0, %v6711_v27  ;;  %v3131_v36 = vmul.f32 0.70710677, %v9759_v1 }
 0x221   :  { %v6049_v46 = vpack.c.bf16 %v3974_v55, %v3974_v55  ;;  %v3733_v42 = vadd.f32 1.0, %v6713_v28  ;;  %v3253_v10 = vmul.f32 0.70710677, %v9762_v57  ;;  %v2151_v11 = vpop.f32.mrf.mxu0  ;;  %v2888_v55 = vmul.f32 0.5, %v9741_v8 }
 0x222   :  { %v2639_v44 = vpop.f32.mrf.mxu1  ;;  %5063 = vst.msk [vmem:[%s10643_s3 + $0x118] sm:$0xf] %vm4992_vm1, %v5927_v43  ;;  %v3853_v30 = vmul.f32 %v3611_v26, %v2885_v35  ;;  %6726 = verf.f32 %v3131_v36  ;;  %v9777_v14 = vadd.f32 %v9280_v58, %v2151_v11  ;;  %v3010_v43 = vmul.f32 0.5, %v9744_v6 }
 0x223   :  { %v9780_v31 = vadd.f32 %v9280_v58, %v2639_v44  ;;  %v6715_v34 = vpop.eup %6714  ;;  %5185 = vst.msk [vmem:[%s10643_s3 + $0x300] sm:$0xf] %vm4992_vm1, %v6049_v46  ;;  %v3975_v63 = vmul.f32 %v3733_v42, %v3007_v37  ;;  %6728 = verf.f32 %v3253_v10  ;;  %v2153_v45 = vpop.f32.mrf.mxu0 }
 0x224   :  { %v2641_v50 = vpop.f32.mrf.mxu1  ;;  %v6717_v51 = vpop.eup %6716  ;;  %v5928_v52 = vpack.c.bf16 %v3853_v30, %v3853_v30  ;;  %v3612_v19 = vadd.f32 1.0, %v6715_v34  ;;  %v3132_v41 = vmul.f32 0.70710677, %v9777_v14 }
 0x225   :  { %v6050_v40 = vpack.c.bf16 %v3975_v63, %v3975_v63  ;;  %v3734_v39 = vadd.f32 1.0, %v6717_v51  ;;  %v3254_v48 = vmul.f32 0.70710677, %v9780_v31  ;;  %v2154_v49 = vpop.f32.mrf.mxu0  ;;  %v2889_v63 = vmul.f32 0.5, %v9759_v1 }
 0x226   :  { %v2642_v53 = vpop.f32.mrf.mxu1  ;;  %5064 = vst.msk [vmem:[%s10643_s3 + $0x11c] sm:$0xf] %vm4992_vm1, %v5928_v52  ;;  %v3854_v20 = vmul.f32 %v3612_v19, %v2886_v62  ;;  %6730 = verf.f32 %v3132_v41  ;;  %v9795_v38 = vadd.f32 %v9280_v58, %v2154_v49  ;;  %v3011_v52 = vmul.f32 0.5, %v9762_v57 }
 0x227   :  { %v9798_v56 = vadd.f32 %v9280_v58, %v2642_v53  ;;  %v6719_v61 = vpop.eup %6718  ;;  %5186 = vst.msk [vmem:[%s10643_s3 + $0x304] sm:$0xf] %vm4992_vm1, %v6050_v40  ;;  %v3976_v29 = vmul.f32 %v3734_v39, %v3008_v25  ;;  %6732 = verf.f32 %v3254_v48  ;;  %v2156_v3 = vpop.f32.mrf.mxu0  ;;  %v3009_v58 = vmul.f32 0.5, %v9726_v47 }
 0x228   :  { %v2644_v0 = vpop.f32.mrf.mxu1  ;;  %v6721_v5 = vpop.eup %6720  ;;  %v5929_v4 = vpack.c.bf16 %v3854_v20, %v3854_v20  ;;  %v3613_v32 = vadd.f32 1.0, %v6719_v61  ;;  %v3133_v60 = vmul.f32 0.70710677, %v9795_v38 }
 0x229   :  { %v6051_v13 = vpack.c.bf16 %v3976_v29, %v3976_v29  ;;  %v3735_v54 = vadd.f32 1.0, %v6721_v5  ;;  %v3255_v15 = vmul.f32 0.70710677, %v9798_v56  ;;  %v2159_v59 = vpop.f32.mrf.mxu0  ;;  %v2890_v29 = vmul.f32 0.5, %v9777_v14 }
 0x22a   :  { %v2647_v7 = vpop.f32.mrf.mxu1  ;;  %5065 = vst.msk [vmem:[%s10643_s3 + $0x120] sm:$0xf] %vm4992_vm1, %v5929_v4  ;;  %v3855_v12 = vmul.f32 %v3613_v32, %v2887_v9  ;;  %6734 = verf.f32 %v3133_v60  ;;  %v9818_v33 = vadd.f32 %v9815_v2, %v2159_v59  ;;  %v3012_v4 = vmul.f32 0.5, %v9780_v31 }
 0x22b   :  { %v9821_v47 = vadd.f32 %v9815_v2, %v2647_v7  ;;  %v6723_v18 = vpop.eup %6722  ;;  %5187 = vst.msk [vmem:[%s10643_s3 + $0x308] sm:$0xf] %vm4992_vm1, %v6051_v13  ;;  %v3977_v21 = vmul.f32 %v3735_v54, %v3009_v58  ;;  %6736 = verf.f32 %v3255_v15  ;;  %v2161_v23 = vpop.f32.mrf.mxu0 }
 0x22c   :  { %v2649_v24 = vpop.f32.mrf.mxu1  ;;  %v6725_v22 = vpop.eup %6724  ;;  %v5930_v27 = vpack.c.bf16 %v3855_v12, %v3855_v12  ;;  %v3614_v16 = vadd.f32 1.0, %v6723_v18  ;;  %v3134_v17 = vmul.f32 0.70710677, %v9818_v33 }
 0x22d   :  { %v6052_v28 = vpack.c.bf16 %v3977_v21, %v3977_v21  ;;  %v3736_v35 = vadd.f32 1.0, %v6725_v22  ;;  %v3256_v26 = vmul.f32 0.70710677, %v9821_v47  ;;  %v2162_v36 = vpop.f32.mrf.mxu0  ;;  %v2891_v21 = vmul.f32 0.5, %v9795_v38 }
 0x22e   :  { %v2650_v46 = vpop.f32.mrf.mxu1  ;;  %5066 = vst.msk [vmem:[%s10643_s3 + $0x124] sm:$0xf] %vm4992_vm1, %v5930_v27  ;;  %v3856_v37 = vmul.f32 %v3614_v16, %v2888_v55  ;;  %6738 = verf.f32 %v3134_v17  ;;  %v9836_v8 = vadd.f32 %v9815_v2, %v2162_v36  ;;  %v3013_v27 = vmul.f32 0.5, %v9798_v56 }
 0x22f   :  { %v9839_v42 = vadd.f32 %v9815_v2, %v2650_v46  ;;  %v6727_v10 = vpop.eup %6726  ;;  %5188 = vst.msk [vmem:[%s10643_s3 + $0x30c] sm:$0xf] %vm4992_vm1, %v6052_v28  ;;  %v3978_v6 = vmul.f32 %v3736_v35, %v3010_v43  ;;  %6740 = verf.f32 %v3256_v26  ;;  %v2164_v11 = vpop.f32.mrf.mxu0 }
 0x230   :  { %v2652_v44 = vpop.f32.mrf.mxu1  ;;  %v6729_v30 = vpop.eup %6728  ;;  %v5931_v34 = vpack.c.bf16 %v3856_v37, %v3856_v37  ;;  %v3615_v45 = vadd.f32 1.0, %v6727_v10  ;;  %v3135_v50 = vmul.f32 0.70710677, %v9836_v8 }
 0x231   :  { %v6053_v51 = vpack.c.bf16 %v3978_v6, %v3978_v6  ;;  %v3737_v62 = vadd.f32 1.0, %v6729_v30  ;;  %v3257_v19 = vmul.f32 0.70710677, %v9839_v42  ;;  %v2167_v41 = vpop.f32.mrf.mxu0  ;;  %v2892_v6 = vmul.f32 0.5, %v9818_v33 }
 0x232   :  { %v2655_v40 = vpop.f32.mrf.mxu1  ;;  %5067 = vst.msk [vmem:[%s10643_s3 + $0x128] sm:$0xf] %vm4992_vm1, %v5931_v34  ;;  %v3857_v25 = vmul.f32 %v3615_v45, %v2889_v63  ;;  %6742 = verf.f32 %v3135_v50  ;;  %v9854_v1 = vadd.f32 %v9815_v2, %v2167_v41  ;;  %v3014_v34 = vmul.f32 0.5, %v9821_v47 }
 0x233   :  { %v9857_v39 = vadd.f32 %v9815_v2, %v2655_v40  ;;  %v6731_v48 = vpop.eup %6730  ;;  %5189 = vst.msk [vmem:[%s10643_s3 + $0x310] sm:$0xf] %vm4992_vm1, %v6053_v51  ;;  %v3979_v57 = vmul.f32 %v3737_v62, %v3011_v52  ;;  %6744 = verf.f32 %v3257_v19  ;;  %v2169_v49 = vpop.f32.mrf.mxu0 }
 0x234   :  { %v2657_v53 = vpop.f32.mrf.mxu1  ;;  %v6733_v20 = vpop.eup %6732  ;;  %v5932_v61 = vpack.c.bf16 %v3857_v25, %v3857_v25  ;;  %v3616_v3 = vadd.f32 1.0, %v6731_v48  ;;  %v3136_v0 = vmul.f32 0.70710677, %v9854_v1 }
 0x235   :  { %v6054_v5 = vpack.c.bf16 %v3979_v57, %v3979_v57  ;;  %v3738_v9 = vadd.f32 1.0, %v6733_v20  ;;  %v3258_v32 = vmul.f32 0.70710677, %v9857_v39  ;;  %v2170_v60 = vpop.f32.mrf.mxu0  ;;  %v2893_v57 = vmul.f32 0.5, %v9836_v8 }
 0x236   :  { %v2658_v13 = vpop.f32.mrf.mxu1  ;;  %5068 = vst.msk [vmem:[%s10643_s3 + $0x12c] sm:$0xf] %vm4992_vm1, %v5932_v61  ;;  %v3858_v58 = vmul.f32 %v3616_v3, %v2890_v29  ;;  %6746 = verf.f32 %v3136_v0  ;;  %v9872_v14 = vadd.f32 %v9815_v2, %v2170_v60  ;;  %v3015_v61 = vmul.f32 0.5, %v9839_v42 }
 0x237   :  { %v9875_v54 = vadd.f32 %v9815_v2, %v2658_v13  ;;  %v6735_v15 = vpop.eup %6734  ;;  %5190 = vst.msk [vmem:[%s10643_s3 + $0x314] sm:$0xf] %vm4992_vm1, %v6054_v5  ;;  %v3980_v31 = vmul.f32 %v3738_v9, %v3012_v4  ;;  %6748 = verf.f32 %v3258_v32  ;;  %v2172_v59 = vpop.f32.mrf.mxu0 }
 0x238   :  { %v2660_v7 = vpop.f32.mrf.mxu1  ;;  %v6737_v12 = vpop.eup %6736  ;;  %v5933_v18 = vpack.c.bf16 %v3858_v58, %v3858_v58  ;;  %v3617_v23 = vadd.f32 1.0, %v6735_v15  ;;  %v3137_v24 = vmul.f32 0.70710677, %v9872_v14 }
 0x239   :  { %v6055_v22 = vpack.c.bf16 %v3980_v31, %v3980_v31  ;;  %v3739_v55 = vadd.f32 1.0, %v6737_v12  ;;  %v3259_v16 = vmul.f32 0.70710677, %v9875_v54  ;;  %v2175_v17 = vpop.f32.mrf.mxu0  ;;  %v2894_v31 = vmul.f32 0.5, %v9854_v1 }
 0x23a   :  { %v2663_v28 = vpop.f32.mrf.mxu1  ;;  %5069 = vst.msk [vmem:[%s10643_s3 + $0x130] sm:$0xf] %vm4992_vm1, %v5933_v18  ;;  %v3859_v43 = vmul.f32 %v3617_v23, %v2891_v21  ;;  %6750 = verf.f32 %v3137_v24  ;;  %v9890_v38 = vadd.f32 %v9815_v2, %v2175_v17  ;;  %v3016_v18 = vmul.f32 0.5, %v9857_v39 }
 0x23b   :  { %v9893_v35 = vadd.f32 %v9815_v2, %v2663_v28  ;;  %v6739_v26 = vpop.eup %6738  ;;  %5191 = vst.msk [vmem:[%s10643_s3 + $0x318] sm:$0xf] %vm4992_vm1, %v6055_v22  ;;  %v3981_v56 = vmul.f32 %v3739_v55, %v3013_v27  ;;  %6752 = verf.f32 %v3259_v16  ;;  %v2177_v36 = vpop.f32.mrf.mxu0 }
 0x23c   :  { %v2665_v46 = vpop.f32.mrf.mxu1  ;;  %v6741_v37 = vpop.eup %6740  ;;  %v5934_v10 = vpack.c.bf16 %v3859_v43, %v3859_v43  ;;  %v3618_v11 = vadd.f32 1.0, %v6739_v26  ;;  %v3138_v44 = vmul.f32 0.70710677, %v9890_v38 }
 0x23d   :  { %v6056_v30 = vpack.c.bf16 %v3981_v56, %v3981_v56  ;;  %v3740_v63 = vadd.f32 1.0, %v6741_v37  ;;  %v3260_v45 = vmul.f32 0.70710677, %v9893_v35  ;;  %v2178_v50 = vpop.f32.mrf.mxu0  ;;  %v2895_v56 = vmul.f32 0.5, %v9872_v14 }
 0x23e   :  { %v2666_v51 = vpop.f32.mrf.mxu1  ;;  %5070 = vst.msk [vmem:[%s10643_s3 + $0x134] sm:$0xf] %vm4992_vm1, %v5934_v10  ;;  %v3860_v52 = vmul.f32 %v3618_v11, %v2892_v6  ;;  %6754 = verf.f32 %v3138_v44  ;;  %v9908_v33 = vadd.f32 %v9815_v2, %v2178_v50  ;;  %v3017_v10 = vmul.f32 0.5, %v9875_v54 }
 0x23f   :  { %v9911_v62 = vadd.f32 %v9815_v2, %v2666_v51  ;;  %v6743_v19 = vpop.eup %6742  ;;  %5192 = vst.msk [vmem:[%s10643_s3 + $0x31c] sm:$0xf] %vm4992_vm1, %v6056_v30  ;;  %v3982_v47 = vmul.f32 %v3740_v63, %v3014_v34  ;;  %6756 = verf.f32 %v3260_v45  ;;  %v2180_v41 = vpop.f32.mrf.mxu0 }
 0x240   :  { %v2668_v40 = vpop.f32.mrf.mxu1  ;;  %v6745_v25 = vpop.eup %6744  ;;  %v5935_v48 = vpack.c.bf16 %v3860_v52, %v3860_v52  ;;  %v3619_v49 = vadd.f32 1.0, %v6743_v19  ;;  %v3139_v53 = vmul.f32 0.70710677, %v9908_v33 }
 0x241   :  { %v6057_v20 = vpack.c.bf16 %v3982_v47, %v3982_v47  ;;  %v3741_v29 = vadd.f32 1.0, %v6745_v25  ;;  %v3261_v3 = vmul.f32 0.70710677, %v9911_v62  ;;  %v2183_v0 = vpop.f32.mrf.mxu0  ;;  %v2896_v47 = vmul.f32 0.5, %v9890_v38 }
 0x242   :  { %v2671_v5 = vpop.f32.mrf.mxu1  ;;  %5071 = vst.msk [vmem:[%s10643_s3 + $0x138] sm:$0xf] %vm4992_vm1, %v5935_v48  ;;  %v3861_v4 = vmul.f32 %v3619_v49, %v2893_v57  ;;  %6758 = verf.f32 %v3139_v53  ;;  %v9926_v8 = vadd.f32 %v9815_v2, %v2183_v0  ;;  %v3018_v48 = vmul.f32 0.5, %v9893_v35 }
 0x243   :  { %v9929_v9 = vadd.f32 %v9815_v2, %v2671_v5  ;;  %v6747_v32 = vpop.eup %6746  ;;  %5193 = vst.msk [vmem:[%s10643_s3 + $0x320] sm:$0xf] %vm4992_vm1, %v6057_v20  ;;  %v3983_v42 = vmul.f32 %v3741_v29, %v3015_v61  ;;  %6760 = verf.f32 %v3261_v3  ;;  %v2185_v60 = vpop.f32.mrf.mxu0 }
 0x244   :  { %v2673_v13 = vpop.f32.mrf.mxu1  ;;  %v6749_v58 = vpop.eup %6748  ;;  %v5936_v15 = vpack.c.bf16 %v3861_v4, %v3861_v4  ;;  %v3620_v59 = vadd.f32 1.0, %v6747_v32  ;;  %v3140_v7 = vmul.f32 0.70710677, %v9926_v8 }
 0x245   :  { %v6058_v12 = vpack.c.bf16 %v3983_v42, %v3983_v42  ;;  %v3742_v21 = vadd.f32 1.0, %v6749_v58  ;;  %v3262_v23 = vmul.f32 0.70710677, %v9929_v9  ;;  %v2186_v24 = vpop.f32.mrf.mxu0  ;;  %v2897_v42 = vmul.f32 0.5, %v9908_v33 }
 0x246   :  { %v2674_v22 = vpop.f32.mrf.mxu1  ;;  %5072 = vst.msk [vmem:[%s10643_s3 + $0x13c] sm:$0xf] %vm4992_vm1, %v5936_v15  ;;  %v3862_v27 = vmul.f32 %v3620_v59, %v2894_v31  ;;  %6762 = verf.f32 %v3140_v7  ;;  %v9944_v1 = vadd.f32 %v9815_v2, %v2186_v24  ;;  %v3019_v15 = vmul.f32 0.5, %v9911_v62 }
 0x247   :  { %v9947_v55 = vadd.f32 %v9815_v2, %v2674_v22  ;;  %v6751_v16 = vpop.eup %6750  ;;  %5194 = vst.msk [vmem:[%s10643_s3 + $0x324] sm:$0xf] %vm4992_vm1, %v6058_v12  ;;  %v3984_v39 = vmul.f32 %v3742_v21, %v3016_v18  ;;  %6764 = verf.f32 %v3262_v23  ;;  %v2188_v17 = vpop.f32.mrf.mxu0 }
 0x248   :  { %v2676_v28 = vpop.f32.mrf.mxu1  ;;  %v6753_v43 = vpop.eup %6752  ;;  %v5937_v26 = vpack.c.bf16 %v3862_v27, %v3862_v27  ;;  %v3621_v36 = vadd.f32 1.0, %v6751_v16  ;;  %v3141_v46 = vmul.f32 0.70710677, %v9944_v1 }
 0x249   :  { %v6059_v37 = vpack.c.bf16 %v3984_v39, %v3984_v39  ;;  %v3743_v6 = vadd.f32 1.0, %v6753_v43  ;;  %v3263_v11 = vmul.f32 0.70710677, %v9947_v55  ;;  %v2191_v44 = vpop.f32.mrf.mxu0  ;;  %v2898_v39 = vmul.f32 0.5, %v9926_v8 }
 0x24a   :  { %v2679_v30 = vpop.f32.mrf.mxu1  ;;  %5073 = vst.msk [vmem:[%s10643_s3 + $0x140] sm:$0xf] %vm4992_vm1, %v5937_v26  ;;  %v3863_v34 = vmul.f32 %v3621_v36, %v2895_v56  ;;  %6766 = verf.f32 %v3141_v46  ;;  %v9962_v14 = vadd.f32 %v9815_v2, %v2191_v44  ;;  %v3020_v26 = vmul.f32 0.5, %v9929_v9 }
 0x24b   :  { %v9965_v63 = vadd.f32 %v9815_v2, %v2679_v30  ;;  %v6755_v45 = vpop.eup %6754  ;;  %5195 = vst.msk [vmem:[%s10643_s3 + $0x328] sm:$0xf] %vm4992_vm1, %v6059_v37  ;;  %v3985_v54 = vmul.f32 %v3743_v6, %v3017_v10  ;;  %6768 = verf.f32 %v3263_v11  ;;  %v2193_v50 = vpop.f32.mrf.mxu0 }
 0x24c   :  { %v2681_v51 = vpop.f32.mrf.mxu1  ;;  %v6757_v52 = vpop.eup %6756  ;;  %v5938_v19 = vpack.c.bf16 %v3863_v34, %v3863_v34  ;;  %v3622_v41 = vadd.f32 1.0, %v6755_v45  ;;  %v3142_v40 = vmul.f32 0.70710677, %v9962_v14 }
 0x24d   :  { %v6060_v25 = vpack.c.bf16 %v3985_v54, %v3985_v54  ;;  %v3744_v57 = vadd.f32 1.0, %v6757_v52  ;;  %v3264_v49 = vmul.f32 0.70710677, %v9965_v63  ;;  %v2194_v53 = vpop.f32.mrf.mxu0  ;;  %v2899_v54 = vmul.f32 0.5, %v9944_v1 }
 0x24e   :  { %v2682_v20 = vpop.f32.mrf.mxu1  ;;  %5074 = vst.msk [vmem:[%s10643_s3 + $0x144] sm:$0xf] %vm4992_vm1, %v5938_v19  ;;  %v3864_v61 = vmul.f32 %v3622_v41, %v2896_v47  ;;  %6770 = verf.f32 %v3142_v40  ;;  %v9980_v38 = vadd.f32 %v9815_v2, %v2194_v53  ;;  %v3021_v19 = vmul.f32 0.5, %v9947_v55 }
 0x24f   :  { %v9983_v29 = vadd.f32 %v9815_v2, %v2682_v20  ;;  %v6759_v3 = vpop.eup %6758  ;;  %5196 = vst.msk [vmem:[%s10643_s3 + $0x32c] sm:$0xf] %vm4992_vm1, %v6060_v25  ;;  %v3986_v35 = vmul.f32 %v3744_v57, %v3018_v48  ;;  %6772 = verf.f32 %v3264_v49  ;;  %v2196_v0 = vpop.f32.mrf.mxu0 }
 0x250   :  { %v2684_v5 = vpop.f32.mrf.mxu1  ;;  %v6761_v4 = vpop.eup %6760  ;;  %v5939_v32 = vpack.c.bf16 %v3864_v61, %v3864_v61  ;;  %v3623_v60 = vadd.f32 1.0, %v6759_v3  ;;  %v3143_v13 = vmul.f32 0.70710677, %v9980_v38 }
 0x251   :  { %v6061_v58 = vpack.c.bf16 %v3986_v35, %v3986_v35  ;;  %v3745_v31 = vadd.f32 1.0, %v6761_v4  ;;  %v3265_v59 = vmul.f32 0.70710677, %v9983_v29  ;;  %v2199_v7 = vpop.f32.mrf.mxu0  ;;  %v2900_v35 = vmul.f32 0.5, %v9962_v14 }
 0x252   :  { %v2687_v12 = vpop.f32.mrf.mxu1  ;;  %5075 = vst.msk [vmem:[%s10643_s3 + $0x148] sm:$0xf] %vm4992_vm1, %v5939_v32  ;;  %v3865_v18 = vmul.f32 %v3623_v60, %v2897_v42  ;;  %6774 = verf.f32 %v3143_v13  ;;  %v9998_v33 = vadd.f32 %v9815_v2, %v2199_v7  ;;  %v3022_v32 = vmul.f32 0.5, %v9965_v63 }
 0x253   :  { %v10001_v21 = vadd.f32 %v9815_v2, %v2687_v12  ;;  %v6763_v23 = vpop.eup %6762  ;;  %5197 = vst.msk [vmem:[%s10643_s3 + $0x330] sm:$0xf] %vm4992_vm1, %v6061_v58  ;;  %v3987_v62 = vmul.f32 %v3745_v31, %v3019_v15  ;;  %6776 = verf.f32 %v3265_v59  ;;  %v2201_v24 = vpop.f32.mrf.mxu0 }
 0x254   :  { %v2689_v22 = vpop.f32.mrf.mxu1  ;;  %v6765_v27 = vpop.eup %6764  ;;  %v5940_v16 = vpack.c.bf16 %v3865_v18, %v3865_v18  ;;  %v3624_v17 = vadd.f32 1.0, %v6763_v23  ;;  %v3144_v28 = vmul.f32 0.70710677, %v9998_v33 }
 0x255   :  { %v6062_v43 = vpack.c.bf16 %v3987_v62, %v3987_v62  ;;  %v3746_v56 = vadd.f32 1.0, %v6765_v27  ;;  %v3266_v36 = vmul.f32 0.70710677, %v10001_v21  ;;  %v2202_v46 = vpop.f32.mrf.mxu0  ;;  %v2901_v62 = vmul.f32 0.5, %v9980_v38 }
 0x256   :  { %v2690_v37 = vpop.f32.mrf.mxu1  ;;  %5076 = vst.msk [vmem:[%s10643_s3 + $0x14c] sm:$0xf] %vm4992_vm1, %v5940_v16  ;;  %v3866_v10 = vmul.f32 %v3624_v17, %v2898_v39  ;;  %6778 = verf.f32 %v3144_v28  ;;  %v10016_v8 = vadd.f32 %v9815_v2, %v2202_v46  ;;  %v3023_v16 = vmul.f32 0.5, %v9983_v29 }
 0x257   :  { %v10019_v6 = vadd.f32 %v9815_v2, %v2690_v37  ;;  %v6767_v11 = vpop.eup %6766  ;;  %5198 = vst.msk [vmem:[%s10643_s3 + $0x334] sm:$0xf] %vm4992_vm1, %v6062_v43  ;;  %v3988_v9 = vmul.f32 %v3746_v56, %v3020_v26  ;;  %6780 = verf.f32 %v3266_v36  ;;  %v2204_v44 = vpop.f32.mrf.mxu0 }
 0x258   :  { %v2692_v30 = vpop.f32.mrf.mxu1  ;;  %v6769_v34 = vpop.eup %6768  ;;  %v5941_v45 = vpack.c.bf16 %v3866_v10, %v3866_v10  ;;  %v3625_v50 = vadd.f32 1.0, %v6767_v11  ;;  %v3145_v51 = vmul.f32 0.70710677, %v10016_v8 }
 0x259   :  { %v6063_v52 = vpack.c.bf16 %v3988_v9, %v3988_v9  ;;  %v3747_v47 = vadd.f32 1.0, %v6769_v34  ;;  %v3267_v41 = vmul.f32 0.70710677, %v10019_v6  ;;  %v2207_v40 = vpop.f32.mrf.mxu0  ;;  %v2902_v9 = vmul.f32 0.5, %v9998_v33 }
 0x25a   :  { %v2695_v25 = vpop.f32.mrf.mxu1  ;;  %5077 = vst.msk [vmem:[%s10643_s3 + $0x150] sm:$0xf] %vm4992_vm1, %v5941_v45  ;;  %v3867_v48 = vmul.f32 %v3625_v50, %v2899_v54  ;;  %6782 = verf.f32 %v3145_v51  ;;  %v10034_v1 = vadd.f32 %v9815_v2, %v2207_v40  ;;  %v3024_v45 = vmul.f32 0.5, %v10001_v21 }
 0x25b   :  { %v10037_v57 = vadd.f32 %v9815_v2, %v2695_v25  ;;  %v6771_v49 = vpop.eup %6770  ;;  %5199 = vst.msk [vmem:[%s10643_s3 + $0x338] sm:$0xf] %vm4992_vm1, %v6063_v52  ;;  %v3989_v55 = vmul.f32 %v3747_v47, %v3021_v19  ;;  %6784 = verf.f32 %v3267_v41  ;;  %v2209_v53 = vpop.f32.mrf.mxu0 }
 0x25c   :  { %v2697_v20 = vpop.f32.mrf.mxu1  ;;  %v6773_v61 = vpop.eup %6772  ;;  %v5942_v3 = vpack.c.bf16 %v3867_v48, %v3867_v48  ;;  %v3626_v0 = vadd.f32 1.0, %v6771_v49  ;;  %v3146_v5 = vmul.f32 0.70710677, %v10034_v1 }
 0x25d   :  { %v6064_v4 = vpack.c.bf16 %v3989_v55, %v3989_v55  ;;  %v3748_v42 = vadd.f32 1.0, %v6773_v61  ;;  %v3268_v60 = vmul.f32 0.70710677, %v10037_v57  ;;  %v2210_v13 = vpop.f32.mrf.mxu0  ;;  %v2903_v55 = vmul.f32 0.5, %v10016_v8 }
 0x25e   :  { %v2698_v58 = vpop.f32.mrf.mxu1  ;;  %5078 = vst.msk [vmem:[%s10643_s3 + $0x154] sm:$0xf] %vm4992_vm1, %v5942_v3  ;;  %v3868_v15 = vmul.f32 %v3626_v0, %v2900_v35  ;;  %6786 = verf.f32 %v3146_v5  ;;  %v10052_v14 = vadd.f32 %v9815_v2, %v2210_v13  ;;  %v3025_v3 = vmul.f32 0.5, %v10019_v6 }
 0x25f   :  { %v10055_v31 = vadd.f32 %v9815_v2, %v2698_v58  ;;  %v6775_v59 = vpop.eup %6774  ;;  %5200 = vst.msk [vmem:[%s10643_s3 + $0x33c] sm:$0xf] %vm4992_vm1, %v6064_v4  ;;  %v3990_v63 = vmul.f32 %v3748_v42, %v3022_v32  ;;  %6788 = verf.f32 %v3268_v60  ;;  %v2212_v7 = vpop.f32.mrf.mxu0 }
 0x260   :  { %v2700_v12 = vpop.f32.mrf.mxu1  ;;  %v6777_v18 = vpop.eup %6776  ;;  %v5943_v23 = vpack.c.bf16 %v3868_v15, %v3868_v15  ;;  %v3627_v24 = vadd.f32 1.0, %v6775_v59  ;;  %v3147_v22 = vmul.f32 0.70710677, %v10052_v14 }
 0x261   :  { %v6065_v27 = vpack.c.bf16 %v3990_v63, %v3990_v63  ;;  %v3749_v39 = vadd.f32 1.0, %v6777_v18  ;;  %v3269_v17 = vmul.f32 0.70710677, %v10055_v31  ;;  %v2215_v28 = vpop.f32.mrf.mxu0  ;;  %v2904_v63 = vmul.f32 0.5, %v10034_v1 }
 0x262   :  { %v2703_v43 = vpop.f32.mrf.mxu1  ;;  %5079 = vst.msk [vmem:[%s10643_s3 + $0x158] sm:$0xf] %vm4992_vm1, %v5943_v23  ;;  %v3869_v26 = vmul.f32 %v3627_v24, %v2901_v62  ;;  %6790 = verf.f32 %v3147_v22  ;;  %v10070_v38 = vadd.f32 %v9815_v2, %v2215_v28  ;;  %v3026_v23 = vmul.f32 0.5, %v10037_v57 }
 0x263   :  { %v10073_v56 = vadd.f32 %v9815_v2, %v2703_v43  ;;  %v6779_v36 = vpop.eup %6778  ;;  %5201 = vst.msk [vmem:[%s10643_s3 + $0x340] sm:$0xf] %vm4992_vm1, %v6065_v27  ;;  %v3991_v29 = vmul.f32 %v3749_v39, %v3023_v16  ;;  %6792 = verf.f32 %v3269_v17  ;;  %v2217_v46 = vpop.f32.mrf.mxu0 }
 0x264   :  { %v2705_v37 = vpop.f32.mrf.mxu1  ;;  %v6781_v10 = vpop.eup %6780  ;;  %v5944_v11 = vpack.c.bf16 %v3869_v26, %v3869_v26  ;;  %v3628_v44 = vadd.f32 1.0, %v6779_v36  ;;  %v3148_v30 = vmul.f32 0.70710677, %v10070_v38 }
 0x265   :  { %v6066_v34 = vpack.c.bf16 %v3991_v29, %v3991_v29  ;;  %v3750_v54 = vadd.f32 1.0, %v6781_v10  ;;  %v3270_v50 = vmul.f32 0.70710677, %v10073_v56  ;;  %v2218_v51 = vpop.f32.mrf.mxu0  ;;  %v2905_v29 = vmul.f32 0.5, %v10052_v14 }
 0x266   :  { %v2706_v52 = vpop.f32.mrf.mxu1  ;;  %5080 = vst.msk [vmem:[%s10643_s3 + $0x15c] sm:$0xf] %vm4992_vm1, %v5944_v11  ;;  %v3870_v19 = vmul.f32 %v3628_v44, %v2902_v9  ;;  %6794 = verf.f32 %v3148_v30  ;;  %v10088_v33 = vadd.f32 %v9815_v2, %v2218_v51  ;;  %v3027_v11 = vmul.f32 0.5, %v10055_v31 }
 0x267   :  { %v10091_v47 = vadd.f32 %v9815_v2, %v2706_v52  ;;  %v6783_v41 = vpop.eup %6782  ;;  %5202 = vst.msk [vmem:[%s10643_s3 + $0x344] sm:$0xf] %vm4992_vm1, %v6066_v34  ;;  %v3992_v21 = vmul.f32 %v3750_v54, %v3024_v45  ;;  %6796 = verf.f32 %v3270_v50  ;;  %v2220_v40 = vpop.f32.mrf.mxu0 }
 0x268   :  { %v2708_v25 = vpop.f32.mrf.mxu1  ;;  %v6785_v48 = vpop.eup %6784  ;;  %v5945_v49 = vpack.c.bf16 %v3870_v19, %v3870_v19  ;;  %v3629_v53 = vadd.f32 1.0, %v6783_v41  ;;  %v3149_v20 = vmul.f32 0.70710677, %v10088_v33 }
 0x269   :  { %v6067_v61 = vpack.c.bf16 %v3992_v21, %v3992_v21  ;;  %v3751_v35 = vadd.f32 1.0, %v6785_v48  ;;  %v3271_v0 = vmul.f32 0.70710677, %v10091_v47  ;;  %v2223_v5 = vpop.f32.mrf.mxu0  ;;  %v2906_v21 = vmul.f32 0.5, %v10070_v38 }
 0x26a   :  { %v2711_v4 = vpop.f32.mrf.mxu1  ;;  %5081 = vst.msk [vmem:[%s10643_s3 + $0x160] sm:$0xf] %vm4992_vm1, %v5945_v49  ;;  %v3871_v32 = vmul.f32 %v3629_v53, %v2903_v55  ;;  %6798 = verf.f32 %v3149_v20  ;;  %v10106_v8 = vadd.f32 %v9815_v2, %v2223_v5  ;;  %v3028_v49 = vmul.f32 0.5, %v10073_v56 }
 0x26b   :  { %v10109_v42 = vadd.f32 %v9815_v2, %v2711_v4  ;;  %v6787_v60 = vpop.eup %6786  ;;  %5203 = vst.msk [vmem:[%s10643_s3 + $0x348] sm:$0xf] %vm4992_vm1, %v6067_v61  ;;  %v3993_v6 = vmul.f32 %v3751_v35, %v3025_v3  ;;  %6800 = verf.f32 %v3271_v0  ;;  %v2225_v13 = vpop.f32.mrf.mxu0 }
 0x26c   :  { %v2713_v58 = vpop.f32.mrf.mxu1  ;;  %v6789_v15 = vpop.eup %6788  ;;  %v5946_v59 = vpack.c.bf16 %v3871_v32, %v3871_v32  ;;  %v3630_v7 = vadd.f32 1.0, %v6787_v60  ;;  %v3150_v12 = vmul.f32 0.70710677, %v10106_v8 }
 0x26d   :  { %v6068_v18 = vpack.c.bf16 %v3993_v6, %v3993_v6  ;;  %v3752_v62 = vadd.f32 1.0, %v6789_v15  ;;  %v3272_v24 = vmul.f32 0.70710677, %v10109_v42  ;;  %v2226_v22 = vpop.f32.mrf.mxu0  ;;  %v2907_v6 = vmul.f32 0.5, %v10088_v33 }
 0x26e   :  { %v2714_v27 = vpop.f32.mrf.mxu1  ;;  %5082 = vst.msk [vmem:[%s10643_s3 + $0x164] sm:$0xf] %vm4992_vm1, %v5946_v59  ;;  %v3872_v16 = vmul.f32 %v3630_v7, %v2904_v63  ;;  %6802 = verf.f32 %v3150_v12  ;;  %v10124_v1 = vadd.f32 %v9815_v2, %v2226_v22  ;;  %v3029_v59 = vmul.f32 0.5, %v10091_v47 }
 0x26f   :  { %v10127_v39 = vadd.f32 %v9815_v2, %v2714_v27  ;;  %v6791_v17 = vpop.eup %6790  ;;  %5204 = vst.msk [vmem:[%s10643_s3 + $0x34c] sm:$0xf] %vm4992_vm1, %v6068_v18  ;;  %v3994_v57 = vmul.f32 %v3752_v62, %v3026_v23  ;;  %6804 = verf.f32 %v3272_v24  ;;  %v2228_v28 = vpop.f32.mrf.mxu0 }
 0x270   :  { %v2716_v43 = vpop.f32.mrf.mxu1  ;;  %v6793_v26 = vpop.eup %6792  ;;  %v5947_v36 = vpack.c.bf16 %v3872_v16, %v3872_v16  ;;  %v3631_v46 = vadd.f32 1.0, %v6791_v17  ;;  %v3151_v37 = vmul.f32 0.70710677, %v10124_v1 }
 0x271   :  { %v6069_v10 = vpack.c.bf16 %v3994_v57, %v3994_v57  ;;  %v3753_v9 = vadd.f32 1.0, %v6793_v26  ;;  %v3273_v44 = vmul.f32 0.70710677, %v10127_v39  ;;  %v2231_v30 = vpop.f32.mrf.mxu0  ;;  %v2908_v57 = vmul.f32 0.5, %v10106_v8 }
 0x272   :  { %v2719_v34 = vpop.f32.mrf.mxu1  ;;  %5083 = vst.msk [vmem:[%s10643_s3 + $0x168] sm:$0xf] %vm4992_vm1, %v5947_v36  ;;  %v3873_v45 = vmul.f32 %v3631_v46, %v2905_v29  ;;  %6806 = verf.f32 %v3151_v37  ;;  %v10142_v14 = vadd.f32 %v9815_v2, %v2231_v30  ;;  %v3030_v36 = vmul.f32 0.5, %v10109_v42 }
 0x273   :  { %v10145_v54 = vadd.f32 %v9815_v2, %v2719_v34  ;;  %v6795_v50 = vpop.eup %6794  ;;  %5205 = vst.msk [vmem:[%s10643_s3 + $0x350] sm:$0xf] %vm4992_vm1, %v6069_v10  ;;  %v3995_v31 = vmul.f32 %v3753_v9, %v3027_v11  ;;  %6808 = verf.f32 %v3273_v44  ;;  %v2233_v51 = vpop.f32.mrf.mxu0 }
 0x274   :  { %v2721_v52 = vpop.f32.mrf.mxu1  ;;  %v6797_v19 = vpop.eup %6796  ;;  %v5948_v41 = vpack.c.bf16 %v3873_v45, %v3873_v45  ;;  %v3632_v40 = vadd.f32 1.0, %v6795_v50  ;;  %v3152_v25 = vmul.f32 0.70710677, %v10142_v14 }
 0x275   :  { %v6070_v48 = vpack.c.bf16 %v3995_v31, %v3995_v31  ;;  %v3754_v55 = vadd.f32 1.0, %v6797_v19  ;;  %v3274_v53 = vmul.f32 0.70710677, %v10145_v54  ;;  %v2234_v20 = vpop.f32.mrf.mxu0  ;;  %v2909_v31 = vmul.f32 0.5, %v10124_v1 }
 0x276   :  { %v2722_v61 = vpop.f32.mrf.mxu1  ;;  %5084 = vst.msk [vmem:[%s10643_s3 + $0x16c] sm:$0xf] %vm4992_vm1, %v5948_v41  ;;  %v3874_v3 = vmul.f32 %v3632_v40, %v2906_v21  ;;  %6810 = verf.f32 %v3152_v25  ;;  %v10160_v38 = vadd.f32 %v9815_v2, %v2234_v20  ;;  %v3031_v41 = vmul.f32 0.5, %v10127_v39 }
 0x277   :  { %v10163_v35 = vadd.f32 %v9815_v2, %v2722_v61  ;;  %v6799_v0 = vpop.eup %6798  ;;  %5206 = vst.msk [vmem:[%s10643_s3 + $0x354] sm:$0xf] %vm4992_vm1, %v6070_v48  ;;  %v3996_v56 = vmul.f32 %v3754_v55, %v3028_v49  ;;  %6812 = verf.f32 %v3274_v53  ;;  %v2236_v5 = vpop.f32.mrf.mxu0 }
 0x278   :  { %v2724_v4 = vpop.f32.mrf.mxu1  ;;  %v6801_v32 = vpop.eup %6800  ;;  %v5949_v60 = vpack.c.bf16 %v3874_v3, %v3874_v3  ;;  %v3633_v13 = vadd.f32 1.0, %v6799_v0  ;;  %v3153_v58 = vmul.f32 0.70710677, %v10160_v38 }
 0x279   :  { %v6071_v15 = vpack.c.bf16 %v3996_v56, %v3996_v56  ;;  %v3755_v63 = vadd.f32 1.0, %v6801_v32  ;;  %v3275_v7 = vmul.f32 0.70710677, %v10163_v35  ;;  %v2239_v12 = vpop.f32.mrf.mxu0  ;;  %v2910_v56 = vmul.f32 0.5, %v10142_v14 }
 0x27a   :  { %v2727_v18 = vpop.f32.mrf.mxu1  ;;  %5085 = vst.msk [vmem:[%s10643_s3 + $0x170] sm:$0xf] %vm4992_vm1, %v5949_v60  ;;  %v3875_v23 = vmul.f32 %v3633_v13, %v2907_v6  ;;  %6814 = verf.f32 %v3153_v58  ;;  %v10178_v33 = vadd.f32 %v9815_v2, %v2239_v12  ;;  %v3032_v60 = vmul.f32 0.5, %v10145_v54 }
 0x27b   :  { %v10181_v62 = vadd.f32 %v9815_v2, %v2727_v18  ;;  %v6803_v24 = vpop.eup %6802  ;;  %5207 = vst.msk [vmem:[%s10643_s3 + $0x358] sm:$0xf] %vm4992_vm1, %v6071_v15  ;;  %v3997_v47 = vmul.f32 %v3755_v63, %v3029_v59  ;;  %6816 = verf.f32 %v3275_v7  ;;  %v2241_v22 = vpop.f32.mrf.mxu0 }
 0x27c   :  { %v2729_v27 = vpop.f32.mrf.mxu1  ;;  %v6805_v16 = vpop.eup %6804  ;;  %v5950_v17 = vpack.c.bf16 %v3875_v23, %v3875_v23  ;;  %v3634_v28 = vadd.f32 1.0, %v6803_v24  ;;  %v3154_v43 = vmul.f32 0.70710677, %v10178_v33 }
 0x27d   :  { %v6072_v26 = vpack.c.bf16 %v3997_v47, %v3997_v47  ;;  %v3756_v29 = vadd.f32 1.0, %v6805_v16  ;;  %v3276_v46 = vmul.f32 0.70710677, %v10181_v62  ;;  %v2242_v37 = vpop.f32.mrf.mxu0  ;;  %v2911_v47 = vmul.f32 0.5, %v10160_v38  ;;  %v10252_v38 = vld [vmem:[%s10642_s2] ss:$0 sm:$0xff] }
 0x27e   :  { %v2730_v10 = vpop.f32.mrf.mxu1  ;;  %5086 = vst.msk [vmem:[%s10643_s3 + $0x174] sm:$0xf] %vm4992_vm1, %v5950_v17  ;;  %v3876_v11 = vmul.f32 %v3634_v28, %v2908_v57  ;;  %6818 = verf.f32 %v3154_v43  ;;  %v10196_v8 = vadd.f32 %v9815_v2, %v2242_v37 }
 0x27f   :  { %v10199_v9 = vadd.f32 %v9815_v2, %v2730_v10  ;;  %v6807_v44 = vpop.eup %6806  ;;  %5208 = vst.msk [vmem:[%s10643_s3 + $0x35c] sm:$0xf] %vm4992_vm1, %v6072_v26  ;;  %v3998_v42 = vmul.f32 %v3756_v29, %v3030_v36  ;;  %6820 = verf.f32 %v3276_v46  ;;  %v2244_v30 = vpop.f32.mrf.mxu0 }
 0x280   :  { %v2732_v34 = vpop.f32.mrf.mxu1  ;;  %v6809_v45 = vpop.eup %6808  ;;  %v5951_v50 = vpack.c.bf16 %v3876_v11, %v3876_v11  ;;  %v3635_v51 = vadd.f32 1.0, %v6807_v44  ;;  %v3155_v52 = vmul.f32 0.70710677, %v10196_v8 }
 0x281   :  { %v6073_v19 = vpack.c.bf16 %v3998_v42, %v3998_v42  ;;  %v3757_v21 = vadd.f32 1.0, %v6809_v45  ;;  %v3277_v40 = vmul.f32 0.70710677, %v10199_v9  ;;  %v2247_v25 = vpop.f32.mrf.mxu0  ;;  %v2912_v42 = vmul.f32 0.5, %v10178_v33 }
 0x282   :  { %v2735_v48 = vpop.f32.mrf.mxu1  ;;  %5087 = vst.msk [vmem:[%s10643_s3 + $0x178] sm:$0xf] %vm4992_vm1, %v5951_v50  ;;  %v3877_v49 = vmul.f32 %v3635_v51, %v2909_v31  ;;  %6822 = verf.f32 %v3155_v52  ;;  %v10214_v1 = vadd.f32 %v9815_v2, %v2247_v25  ;;  %v3034_v50 = vmul.f32 0.5, %v10181_v62 }
 0x283   :  { %v10217_v55 = vadd.f32 %v9815_v2, %v2735_v48  ;;  %v6811_v53 = vpop.eup %6810  ;;  %5209 = vst.msk [vmem:[%s10643_s3 + $0x360] sm:$0xf] %vm4992_vm1, %v6073_v19  ;;  %v3999_v39 = vmul.f32 %v3757_v21, %v3031_v41  ;;  %6824 = verf.f32 %v3277_v40  ;;  %v2249_v20 = vpop.f32.mrf.mxu0 }
 0x284   :  { %v2737_v61 = vpop.f32.mrf.mxu1  ;;  %v6813_v3 = vpop.eup %6812  ;;  %v5952_v0 = vpack.c.bf16 %v3877_v49, %v3877_v49  ;;  %v3636_v5 = vadd.f32 1.0, %v6811_v53  ;;  %v3156_v4 = vmul.f32 0.70710677, %v10214_v1 }
 0x285   :  { %v6074_v32 = vpack.c.bf16 %v3999_v39, %v3999_v39  ;;  %v3758_v6 = vadd.f32 1.0, %v6813_v3  ;;  %v3278_v13 = vmul.f32 0.70710677, %v10217_v55  ;;  %v2250_v58 = vpop.f32.mrf.mxu0  ;;  %v2913_v39 = vmul.f32 0.5, %v10196_v8 }
 0x286   :  { %v2738_v15 = vpop.f32.mrf.mxu1  ;;  %5088 = vst.msk [vmem:[%s10643_s3 + $0x17c] sm:$0xf] %vm4992_vm1, %v5952_v0  ;;  %v3878_v59 = vmul.f32 %v3636_v5, %v2910_v56  ;;  %6826 = verf.f32 %v3156_v4  ;;  %v10232_v14 = vadd.f32 %v9815_v2, %v2250_v58  ;;  %v3035_v0 = vmul.f32 0.5, %v10199_v9 }
 0x287   :  { %v10235_v63 = vadd.f32 %v9815_v2, %v2738_v15  ;;  %v6815_v7 = vpop.eup %6814  ;;  %5210 = vst.msk [vmem:[%s10643_s3 + $0x364] sm:$0xf] %vm4992_vm1, %v6074_v32  ;;  %v4000_v54 = vmul.f32 %v3758_v6, %v3032_v60  ;;  %6828 = verf.f32 %v3278_v13  ;;  %v2252_v12 = vpop.f32.mrf.mxu0  ;;  %v3033_v2 = vmul.f32 0.5, %v10163_v35 }
 0x288   :  { %v2740_v18 = vpop.f32.mrf.mxu1  ;;  %v6817_v23 = vpop.eup %6816  ;;  %v5953_v24 = vpack.c.bf16 %v3878_v59, %v3878_v59  ;;  %v3637_v22 = vadd.f32 1.0, %v6815_v7  ;;  %v3157_v27 = vmul.f32 0.70710677, %v10232_v14 }
 0x289   :  { %v6075_v16 = vpack.c.bf16 %v4000_v54, %v4000_v54  ;;  %v3759_v17 = vadd.f32 1.0, %v6817_v23  ;;  %v3279_v57 = vmul.f32 0.70710677, %v10235_v63  ;;  %v2255_v28 = vpop.f32.mrf.mxu0  ;;  %v2914_v54 = vmul.f32 0.5, %v10214_v1 }
 0x28a   :  { %v2743_v43 = vpop.f32.mrf.mxu1  ;;  %5089 = vst.msk [vmem:[%s10643_s3 + $0x180] sm:$0xf] %vm4992_vm1, %v5953_v24  ;;  %v3879_v26 = vmul.f32 %v3637_v22, %v2911_v47  ;;  %6830 = verf.f32 %v3157_v27  ;;  %v10255_v36 = vadd.f32 %v10252_v38, %v2255_v28  ;;  %v3036_v24 = vmul.f32 0.5, %v10217_v55 }
 0x28b   :  { %v10258_v35 = vadd.f32 %v10252_v38, %v2743_v43  ;;  %v6819_v29 = vpop.eup %6818  ;;  %5211 = vst.msk [vmem:[%s10643_s3 + $0x368] sm:$0xf] %vm4992_vm1, %v6075_v16  ;;  %v4001_v46 = vmul.f32 %v3759_v17, %v3033_v2  ;;  %6832 = verf.f32 %v3279_v57  ;;  %v2257_v37 = vpop.f32.mrf.mxu0 }
 0x28c   :  { %v2745_v10 = vpop.f32.mrf.mxu1  ;;  %v6821_v11 = vpop.eup %6820  ;;  %v5954_v44 = vpack.c.bf16 %v3879_v26, %v3879_v26  ;;  %v3638_v30 = vadd.f32 1.0, %v6819_v29  ;;  %v3158_v34 = vmul.f32 0.70710677, %v10255_v36 }
 0x28d   :  { %v6076_v45 = vpack.c.bf16 %v4001_v46, %v4001_v46  ;;  %v3760_v31 = vadd.f32 1.0, %v6821_v11  ;;  %v3280_v51 = vmul.f32 0.70710677, %v10258_v35  ;;  %v2258_v52 = vpop.f32.mrf.mxu0  ;;  %v2915_v46 = vmul.f32 0.5, %v10232_v14 }
 0x28e   :  { %v2746_v19 = vpop.f32.mrf.mxu1  ;;  %5090 = vst.msk [vmem:[%s10643_s3 + $0x184] sm:$0xf] %vm4992_vm1, %v5954_v44  ;;  %v3880_v41 = vmul.f32 %v3638_v30, %v2912_v42  ;;  %6834 = verf.f32 %v3158_v34  ;;  %v10273_v33 = vadd.f32 %v10252_v38, %v2258_v52  ;;  %v3037_v44 = vmul.f32 0.5, %v10235_v63 }
 0x28f   :  { %v10276_v21 = vadd.f32 %v10252_v38, %v2746_v19  ;;  %v6823_v40 = vpop.eup %6822  ;;  %5212 = vst.msk [vmem:[%s10643_s3 + $0x36c] sm:$0xf] %vm4992_vm1, %v6076_v45  ;;  %v4002_v62 = vmul.f32 %v3760_v31, %v3034_v50  ;;  %6836 = verf.f32 %v3280_v51  ;;  %v2260_v25 = vpop.f32.mrf.mxu0 }
 0x290   :  { %v2748_v48 = vpop.f32.mrf.mxu1  ;;  %v6825_v49 = vpop.eup %6824  ;;  %v5955_v53 = vpack.c.bf16 %v3880_v41, %v3880_v41  ;;  %v3639_v20 = vadd.f32 1.0, %v6823_v40  ;;  %v3159_v61 = vmul.f32 0.70710677, %v10273_v33 }
 0x291   :  { %v6077_v3 = vpack.c.bf16 %v4002_v62, %v4002_v62  ;;  %v3761_v56 = vadd.f32 1.0, %v6825_v49  ;;  %v3281_v5 = vmul.f32 0.70710677, %v10276_v21  ;;  %v2263_v4 = vpop.f32.mrf.mxu0  ;;  %v2916_v62 = vmul.f32 0.5, %v10255_v36 }
 0x292   :  { %v2751_v32 = vpop.f32.mrf.mxu1  ;;  %5091 = vst.msk [vmem:[%s10643_s3 + $0x188] sm:$0xf] %vm4992_vm1, %v5955_v53  ;;  %v3881_v60 = vmul.f32 %v3639_v20, %v2913_v39  ;;  %6838 = verf.f32 %v3159_v61  ;;  %v10291_v8 = vadd.f32 %v10252_v38, %v2263_v4  ;;  %v3038_v53 = vmul.f32 0.5, %v10258_v35 }
 0x293   :  { %v10294_v6 = vadd.f32 %v10252_v38, %v2751_v32  ;;  %v6827_v13 = vpop.eup %6826  ;;  %5213 = vst.msk [vmem:[%s10643_s3 + $0x370] sm:$0xf] %vm4992_vm1, %v6077_v3  ;;  %v4003_v9 = vmul.f32 %v3761_v56, %v3035_v0  ;;  %6840 = verf.f32 %v3281_v5  ;;  %v2265_v58 = vpop.f32.mrf.mxu0 }
 0x294   :  { %v2753_v15 = vpop.f32.mrf.mxu1  ;;  %v6829_v59 = vpop.eup %6828  ;;  %v5956_v7 = vpack.c.bf16 %v3881_v60, %v3881_v60  ;;  %v3640_v12 = vadd.f32 1.0, %v6827_v13  ;;  %v3160_v18 = vmul.f32 0.70710677, %v10291_v8 }
 0x295   :  { %v6078_v23 = vpack.c.bf16 %v4003_v9, %v4003_v9  ;;  %v3762_v47 = vadd.f32 1.0, %v6829_v59  ;;  %v3282_v22 = vmul.f32 0.70710677, %v10294_v6  ;;  %v2266_v27 = vpop.f32.mrf.mxu0  ;;  %v2917_v9 = vmul.f32 0.5, %v10273_v33 }
 0x296   :  { %v2754_v16 = vpop.f32.mrf.mxu1  ;;  %5092 = vst.msk [vmem:[%s10643_s3 + $0x18c] sm:$0xf] %vm4992_vm1, %v5956_v7  ;;  %v3882_v2 = vmul.f32 %v3640_v12, %v2914_v54  ;;  %6842 = verf.f32 %v3160_v18  ;;  %v10309_v1 = vadd.f32 %v10252_v38, %v2266_v27  ;;  %v3039_v7 = vmul.f32 0.5, %v10276_v21 }
 0x297   :  { %v10312_v17 = vadd.f32 %v10252_v38, %v2754_v16  ;;  %v6831_v57 = vpop.eup %6830  ;;  %5214 = vst.msk [vmem:[%s10643_s3 + $0x374] sm:$0xf] %vm4992_vm1, %v6078_v23  ;;  %v4004_v55 = vmul.f32 %v3762_v47, %v3036_v24  ;;  %6844 = verf.f32 %v3282_v22  ;;  %v2268_v28 = vpop.f32.mrf.mxu0 }
 0x298   :  { %v2756_v43 = vpop.f32.mrf.mxu1  ;;  %v6833_v26 = vpop.eup %6832  ;;  %v5957_v29 = vpack.c.bf16 %v3882_v2, %v3882_v2  ;;  %v3641_v37 = vadd.f32 1.0, %v6831_v57  ;;  %v3161_v10 = vmul.f32 0.70710677, %v10309_v1 }
 0x299   :  { %v6079_v11 = vpack.c.bf16 %v4004_v55, %v4004_v55  ;;  %v3763_v42 = vadd.f32 1.0, %v6833_v26  ;;  %v3283_v30 = vmul.f32 0.70710677, %v10312_v17  ;;  %v2271_v34 = vpop.f32.mrf.mxu0  ;;  %v2918_v55 = vmul.f32 0.5, %v10291_v8 }
 0x29a   :  { %v2759_v45 = vpop.f32.mrf.mxu1  ;;  %5093 = vst.msk [vmem:[%s10643_s3 + $0x190] sm:$0xf] %vm4992_vm1, %v5957_v29  ;;  %v3883_v50 = vmul.f32 %v3641_v37, %v2915_v46  ;;  %6846 = verf.f32 %v3161_v10  ;;  %v10327_v14 = vadd.f32 %v10252_v38, %v2271_v34  ;;  %v3040_v29 = vmul.f32 0.5, %v10294_v6 }
 0x29b   :  { %v10330_v31 = vadd.f32 %v10252_v38, %v2759_v45  ;;  %v6835_v51 = vpop.eup %6834  ;;  %5215 = vst.msk [vmem:[%s10643_s3 + $0x378] sm:$0xf] %vm4992_vm1, %v6079_v11  ;;  %v4005_v63 = vmul.f32 %v3763_v42, %v3037_v44  ;;  %6848 = verf.f32 %v3283_v30  ;;  %v2273_v52 = vpop.f32.mrf.mxu0 }
 0x29c   :  { %v2761_v19 = vpop.f32.mrf.mxu1  ;;  %v6837_v41 = vpop.eup %6836  ;;  %v5958_v40 = vpack.c.bf16 %v3883_v50, %v3883_v50  ;;  %v3642_v25 = vadd.f32 1.0, %v6835_v51  ;;  %v3162_v48 = vmul.f32 0.70710677, %v10327_v14 }
 0x29d   :  { %v6080_v49 = vpack.c.bf16 %v4005_v63, %v4005_v63  ;;  %v3764_v39 = vadd.f32 1.0, %v6837_v41  ;;  %v3284_v20 = vmul.f32 0.70710677, %v10330_v31  ;;  %v2274_v61 = vpop.f32.mrf.mxu0  ;;  %v2919_v63 = vmul.f32 0.5, %v10309_v1 }
 0x29e   :  { %v2762_v3 = vpop.f32.mrf.mxu1  ;;  %5094 = vst.msk [vmem:[%s10643_s3 + $0x194] sm:$0xf] %vm4992_vm1, %v5958_v40  ;;  %v3884_v0 = vmul.f32 %v3642_v25, %v2916_v62  ;;  %6850 = verf.f32 %v3162_v48  ;;  %v10345_v36 = vadd.f32 %v10252_v38, %v2274_v61  ;;  %v3041_v40 = vmul.f32 0.5, %v10312_v17 }
 0x29f   :  { %v10348_v56 = vadd.f32 %v10252_v38, %v2762_v3  ;;  %v6839_v5 = vpop.eup %6838  ;;  %5216 = vst.msk [vmem:[%s10643_s3 + $0x37c] sm:$0xf] %vm4992_vm1, %v6080_v49  ;;  %v4006_v35 = vmul.f32 %v3764_v39, %v3038_v53  ;;  %6852 = verf.f32 %v3284_v20  ;;  %v2276_v4 = vpop.f32.mrf.mxu0 }
 0x2a0   :  { %v2764_v32 = vpop.f32.mrf.mxu1  ;;  %v6841_v60 = vpop.eup %6840  ;;  %v5959_v13 = vpack.c.bf16 %v3884_v0, %v3884_v0  ;;  %v3643_v58 = vadd.f32 1.0, %v6839_v5  ;;  %v3163_v15 = vmul.f32 0.70710677, %v10345_v36 }
 0x2a1   :  { %v6081_v59 = vpack.c.bf16 %v4006_v35, %v4006_v35  ;;  %v3765_v54 = vadd.f32 1.0, %v6841_v60  ;;  %v3285_v12 = vmul.f32 0.70710677, %v10348_v56  ;;  %v2279_v18 = vpop.f32.mrf.mxu0  ;;  %v2920_v35 = vmul.f32 0.5, %v10327_v14 }
 0x2a2   :  { %v2767_v23 = vpop.f32.mrf.mxu1  ;;  %5095 = vst.msk [vmem:[%s10643_s3 + $0x198] sm:$0xf] %vm4992_vm1, %v5959_v13  ;;  %v3885_v24 = vmul.f32 %v3643_v58, %v2917_v9  ;;  %6854 = verf.f32 %v3163_v15  ;;  %v10363_v33 = vadd.f32 %v10252_v38, %v2279_v18  ;;  %v3042_v13 = vmul.f32 0.5, %v10330_v31 }
 0x2a3   :  { %v10366_v47 = vadd.f32 %v10252_v38, %v2767_v23  ;;  %v6843_v22 = vpop.eup %6842  ;;  %5217 = vst.msk [vmem:[%s10643_s3 + $0x380] sm:$0xf] %vm4992_vm1, %v6081_v59  ;;  %v4007_v21 = vmul.f32 %v3765_v54, %v3039_v7  ;;  %6856 = verf.f32 %v3285_v12  ;;  %v2281_v27 = vpop.f32.mrf.mxu0 }
 0x2a4   :  { %v2769_v16 = vpop.f32.mrf.mxu1  ;;  %v6845_v2 = vpop.eup %6844  ;;  %v5960_v57 = vpack.c.bf16 %v3885_v24, %v3885_v24  ;;  %v3644_v28 = vadd.f32 1.0, %v6843_v22  ;;  %v3164_v43 = vmul.f32 0.70710677, %v10363_v33 }
 0x2a5   :  { %v6082_v26 = vpack.c.bf16 %v4007_v21, %v4007_v21  ;;  %v3766_v46 = vadd.f32 1.0, %v6845_v2  ;;  %v3286_v37 = vmul.f32 0.70710677, %v10366_v47  ;;  %v2282_v10 = vpop.f32.mrf.mxu0  ;;  %v2921_v21 = vmul.f32 0.5, %v10345_v36 }
 0x2a6   :  { %v2770_v11 = vpop.f32.mrf.mxu1  ;;  %5096 = vst.msk [vmem:[%s10643_s3 + $0x19c] sm:$0xf] %vm4992_vm1, %v5960_v57  ;;  %v3886_v44 = vmul.f32 %v3644_v28, %v2918_v55  ;;  %6858 = verf.f32 %v3164_v43  ;;  %v10381_v8 = vadd.f32 %v10252_v38, %v2282_v10  ;;  %v3043_v57 = vmul.f32 0.5, %v10348_v56 }
 0x2a7   :  { %v10384_v42 = vadd.f32 %v10252_v38, %v2770_v11  ;;  %v6847_v30 = vpop.eup %6846  ;;  %5218 = vst.msk [vmem:[%s10643_s3 + $0x384] sm:$0xf] %vm4992_vm1, %v6082_v26  ;;  %v4008_v6 = vmul.f32 %v3766_v46, %v3040_v29  ;;  %6860 = verf.f32 %v3286_v37  ;;  %v2284_v34 = vpop.f32.mrf.mxu0 }
 0x2a8   :  { %v2772_v45 = vpop.f32.mrf.mxu1  ;;  %v6849_v50 = vpop.eup %6848  ;;  %v5961_v51 = vpack.c.bf16 %v3886_v44, %v3886_v44  ;;  %v3645_v52 = vadd.f32 1.0, %v6847_v30  ;;  %v3165_v19 = vmul.f32 0.70710677, %v10381_v8 }
 0x2a9   :  { %v6083_v41 = vpack.c.bf16 %v4008_v6, %v4008_v6  ;;  %v3767_v62 = vadd.f32 1.0, %v6849_v50  ;;  %v3287_v25 = vmul.f32 0.70710677, %v10384_v42  ;;  %v2287_v48 = vpop.f32.mrf.mxu0  ;;  %v2922_v6 = vmul.f32 0.5, %v10363_v33 }
 0x2aa   :  { %v2775_v49 = vpop.f32.mrf.mxu1  ;;  %5097 = vst.msk [vmem:[%s10643_s3 + $0x1a0] sm:$0xf] %vm4992_vm1, %v5961_v51  ;;  %v3887_v53 = vmul.f32 %v3645_v52, %v2919_v63  ;;  %6862 = verf.f32 %v3165_v19  ;;  %v10399_v1 = vadd.f32 %v10252_v38, %v2287_v48  ;;  %v3044_v51 = vmul.f32 0.5, %v10366_v47 }
 0x2ab   :  { %v10402_v39 = vadd.f32 %v10252_v38, %v2775_v49  ;;  %v6851_v20 = vpop.eup %6850  ;;  %5219 = vst.msk [vmem:[%s10643_s3 + $0x388] sm:$0xf] %vm4992_vm1, %v6083_v41  ;;  %v4009_v17 = vmul.f32 %v3767_v62, %v3041_v40  ;;  %6864 = verf.f32 %v3287_v25  ;;  %v2289_v61 = vpop.f32.mrf.mxu0 }
 0x2ac   :  { %v2777_v3 = vpop.f32.mrf.mxu1  ;;  %v6853_v0 = vpop.eup %6852  ;;  %v5962_v5 = vpack.c.bf16 %v3887_v53, %v3887_v53  ;;  %v3646_v4 = vadd.f32 1.0, %v6851_v20  ;;  %v3166_v32 = vmul.f32 0.70710677, %v10399_v1 }
 0x2ad   :  { %v6084_v60 = vpack.c.bf16 %v4009_v17, %v4009_v17  ;;  %v3768_v9 = vadd.f32 1.0, %v6853_v0  ;;  %v3288_v58 = vmul.f32 0.70710677, %v10402_v39  ;;  %v2290_v15 = vpop.f32.mrf.mxu0  ;;  %v2923_v17 = vmul.f32 0.5, %v10381_v8 }
 0x2ae   :  { %v2778_v59 = vpop.f32.mrf.mxu1  ;;  %5098 = vst.msk [vmem:[%s10643_s3 + $0x1a4] sm:$0xf] %vm4992_vm1, %v5962_v5  ;;  %v3888_v7 = vmul.f32 %v3646_v4, %v2920_v35  ;;  %6866 = verf.f32 %v3166_v32  ;;  %v10417_v14 = vadd.f32 %v10252_v38, %v2290_v15  ;;  %v3045_v5 = vmul.f32 0.5, %v10384_v42 }
 0x2af   :  { %v10420_v54 = vadd.f32 %v10252_v38, %v2778_v59  ;;  %v6855_v12 = vpop.eup %6854  ;;  %5220 = vst.msk [vmem:[%s10643_s3 + $0x38c] sm:$0xf] %vm4992_vm1, %v6084_v60  ;;  %v4010_v31 = vmul.f32 %v3768_v9, %v3042_v13  ;;  %6868 = verf.f32 %v3288_v58  ;;  %v2292_v18 = vpop.f32.mrf.mxu0 }
 0x2b0   :  { %v2780_v23 = vpop.f32.mrf.mxu1  ;;  %v6857_v24 = vpop.eup %6856  ;;  %v5963_v22 = vpack.c.bf16 %v3888_v7, %v3888_v7  ;;  %v3647_v27 = vadd.f32 1.0, %v6855_v12  ;;  %v3167_v16 = vmul.f32 0.70710677, %v10417_v14 }
 0x2b1   :  { %v6085_v2 = vpack.c.bf16 %v4010_v31, %v4010_v31  ;;  %v3769_v55 = vadd.f32 1.0, %v6857_v24  ;;  %v3289_v28 = vmul.f32 0.70710677, %v10420_v54  ;;  %v2295_v43 = vpop.f32.mrf.mxu0  ;;  %v2924_v31 = vmul.f32 0.5, %v10399_v1 }
 0x2b2   :  { %v2783_v26 = vpop.f32.mrf.mxu1  ;;  %5099 = vst.msk [vmem:[%s10643_s3 + $0x1a8] sm:$0xf] %vm4992_vm1, %v5963_v22  ;;  %v3889_v29 = vmul.f32 %v3647_v27, %v2921_v21  ;;  %6870 = verf.f32 %v3167_v16  ;;  %v10435_v36 = vadd.f32 %v10252_v38, %v2295_v43  ;;  %v3046_v22 = vmul.f32 0.5, %v10402_v39 }
 0x2b3   :  { %v10438_v46 = vadd.f32 %v10252_v38, %v2783_v26  ;;  %v6859_v37 = vpop.eup %6858  ;;  %5221 = vst.msk [vmem:[%s10643_s3 + $0x390] sm:$0xf] %vm4992_vm1, %v6085_v2  ;;  %v4011_v56 = vmul.f32 %v3769_v55, %v3043_v57  ;;  %6872 = verf.f32 %v3289_v28  ;;  %v2297_v10 = vpop.f32.mrf.mxu0 }
 0x2b4   :  { %v2785_v11 = vpop.f32.mrf.mxu1  ;;  %v6861_v44 = vpop.eup %6860  ;;  %v5964_v30 = vpack.c.bf16 %v3889_v29, %v3889_v29  ;;  %v3648_v34 = vadd.f32 1.0, %v6859_v37  ;;  %v3168_v45 = vmul.f32 0.70710677, %v10435_v36 }
 0x2b5   :  { %v6086_v50 = vpack.c.bf16 %v4011_v56, %v4011_v56  ;;  %v3770_v63 = vadd.f32 1.0, %v6861_v44  ;;  %v3290_v52 = vmul.f32 0.70710677, %v10438_v46  ;;  %v2298_v19 = vpop.f32.mrf.mxu0  ;;  %v2925_v56 = vmul.f32 0.5, %v10417_v14 }
 0x2b6   :  { %v2786_v41 = vpop.f32.mrf.mxu1  ;;  %5100 = vst.msk [vmem:[%s10643_s3 + $0x1ac] sm:$0xf] %vm4992_vm1, %v5964_v30  ;;  %v3890_v40 = vmul.f32 %v3648_v34, %v2922_v6  ;;  %6874 = verf.f32 %v3168_v45  ;;  %v10453_v33 = vadd.f32 %v10252_v38, %v2298_v19  ;;  %v3047_v30 = vmul.f32 0.5, %v10420_v54 }
 0x2b7   :  { %v10456_v62 = vadd.f32 %v10252_v38, %v2786_v41  ;;  %v6863_v25 = vpop.eup %6862  ;;  %5222 = vst.msk [vmem:[%s10643_s3 + $0x394] sm:$0xf] %vm4992_vm1, %v6086_v50  ;;  %v4012_v47 = vmul.f32 %v3770_v63, %v3044_v51  ;;  %6876 = verf.f32 %v3290_v52  ;;  %v2300_v48 = vpop.f32.mrf.mxu0 }
 0x2b8   :  { %v2788_v49 = vpop.f32.mrf.mxu1  ;;  %v6865_v53 = vpop.eup %6864  ;;  %v5965_v20 = vpack.c.bf16 %v3890_v40, %v3890_v40  ;;  %v3649_v61 = vadd.f32 1.0, %v6863_v25  ;;  %v3169_v3 = vmul.f32 0.70710677, %v10453_v33 }
 0x2b9   :  { %v6087_v0 = vpack.c.bf16 %v4012_v47, %v4012_v47  ;;  %v3771_v35 = vadd.f32 1.0, %v6865_v53  ;;  %v3291_v4 = vmul.f32 0.70710677, %v10456_v62  ;;  %v2303_v32 = vpop.f32.mrf.mxu0  ;;  %v2926_v47 = vmul.f32 0.5, %v10435_v36 }
 0x2ba   :  { %v2791_v60 = vpop.f32.mrf.mxu1  ;;  %5101 = vst.msk [vmem:[%s10643_s3 + $0x1b0] sm:$0xf] %vm4992_vm1, %v5965_v20  ;;  %v3891_v13 = vmul.f32 %v3649_v61, %v2923_v17  ;;  %6878 = verf.f32 %v3169_v3  ;;  %v10471_v8 = vadd.f32 %v10252_v38, %v2303_v32  ;;  %v3048_v20 = vmul.f32 0.5, %v10438_v46 }
 0x2bb   :  { %v10474_v9 = vadd.f32 %v10252_v38, %v2791_v60  ;;  %v6867_v58 = vpop.eup %6866  ;;  %5223 = vst.msk [vmem:[%s10643_s3 + $0x398] sm:$0xf] %vm4992_vm1, %v6087_v0  ;;  %v4013_v42 = vmul.f32 %v3771_v35, %v3045_v5  ;;  %6880 = verf.f32 %v3291_v4  ;;  %v2305_v15 = vpop.f32.mrf.mxu0 }
 0x2bc   :  { %v2793_v59 = vpop.f32.mrf.mxu1  ;;  %v6869_v7 = vpop.eup %6868  ;;  %v5966_v12 = vpack.c.bf16 %v3891_v13, %v3891_v13  ;;  %v3650_v18 = vadd.f32 1.0, %v6867_v58  ;;  %v3170_v23 = vmul.f32 0.70710677, %v10471_v8 }
 0x2bd   :  { %v6088_v24 = vpack.c.bf16 %v4013_v42, %v4013_v42  ;;  %v3772_v21 = vadd.f32 1.0, %v6869_v7  ;;  %v3292_v27 = vmul.f32 0.70710677, %v10474_v9  ;;  %v2306_v16 = vpop.f32.mrf.mxu0  ;;  %v2927_v42 = vmul.f32 0.5, %v10453_v33 }
 0x2be   :  { %v2794_v2 = vpop.f32.mrf.mxu1  ;;  %5102 = vst.msk [vmem:[%s10643_s3 + $0x1b4] sm:$0xf] %vm4992_vm1, %v5966_v12  ;;  %v3892_v57 = vmul.f32 %v3650_v18, %v2924_v31  ;;  %6882 = verf.f32 %v3170_v23  ;;  %v10489_v1 = vadd.f32 %v10252_v38, %v2306_v16  ;;  %v3049_v12 = vmul.f32 0.5, %v10456_v62 }
 0x2bf   :  { %v10492_v55 = vadd.f32 %v10252_v38, %v2794_v2  ;;  %v6871_v28 = vpop.eup %6870  ;;  %5224 = vst.msk [vmem:[%s10643_s3 + $0x39c] sm:$0xf] %vm4992_vm1, %v6088_v24  ;;  %v4014_v39 = vmul.f32 %v3772_v21, %v3046_v22  ;;  %6884 = verf.f32 %v3292_v27  ;;  %v2308_v43 = vpop.f32.mrf.mxu0 }
 0x2c0   :  { %v2796_v26 = vpop.f32.mrf.mxu1  ;;  %v6873_v29 = vpop.eup %6872  ;;  %v5967_v37 = vpack.c.bf16 %v3892_v57, %v3892_v57  ;;  %v3651_v10 = vadd.f32 1.0, %v6871_v28  ;;  %v3171_v11 = vmul.f32 0.70710677, %v10489_v1 }
 0x2c1   :  { %v6089_v44 = vpack.c.bf16 %v4014_v39, %v4014_v39  ;;  %v3773_v6 = vadd.f32 1.0, %v6873_v29  ;;  %v3293_v34 = vmul.f32 0.70710677, %v10492_v55  ;;  %v2311_v45 = vpop.f32.mrf.mxu0  ;;  %v2928_v39 = vmul.f32 0.5, %v10471_v8 }
 0x2c2   :  { %v2799_v50 = vpop.f32.mrf.mxu1  ;;  %5103 = vst.msk [vmem:[%s10643_s3 + $0x1b8] sm:$0xf] %vm4992_vm1, %v5967_v37  ;;  %v3893_v51 = vmul.f32 %v3651_v10, %v2925_v56  ;;  %6886 = verf.f32 %v3171_v11  ;;  %v10507_v14 = vadd.f32 %v10252_v38, %v2311_v45  ;;  %v3050_v37 = vmul.f32 0.5, %v10474_v9 }
 0x2c3   :  { %v10510_v63 = vadd.f32 %v10252_v38, %v2799_v50  ;;  %v6875_v52 = vpop.eup %6874  ;;  %5225 = vst.msk [vmem:[%s10643_s3 + $0x3a0] sm:$0xf] %vm4992_vm1, %v6089_v44  ;;  %v4015_v54 = vmul.f32 %v3773_v6, %v3047_v30  ;;  %6888 = verf.f32 %v3293_v34  ;;  %v2313_v19 = vpop.f32.mrf.mxu0 }
 0x2c4   :  { %v2801_v41 = vpop.f32.mrf.mxu1  ;;  %v6877_v40 = vpop.eup %6876  ;;  %v5968_v25 = vpack.c.bf16 %v3893_v51, %v3893_v51  ;;  %v3652_v48 = vadd.f32 1.0, %v6875_v52  ;;  %v3172_v49 = vmul.f32 0.70710677, %v10507_v14 }
 0x2c5   :  { %v6090_v53 = vpack.c.bf16 %v4015_v54, %v4015_v54  ;;  %v3774_v17 = vadd.f32 1.0, %v6877_v40  ;;  %v3294_v61 = vmul.f32 0.70710677, %v10510_v63  ;;  %v2314_v3 = vpop.f32.mrf.mxu0  ;;  %v2929_v54 = vmul.f32 0.5, %v10489_v1 }
 0x2c6   :  { %v2802_v0 = vpop.f32.mrf.mxu1  ;;  %5104 = vst.msk [vmem:[%s10643_s3 + $0x1bc] sm:$0xf] %vm4992_vm1, %v5968_v25  ;;  %v3894_v5 = vmul.f32 %v3652_v48, %v2926_v47  ;;  %6890 = verf.f32 %v3172_v49  ;;  %v10525_v36 = vadd.f32 %v10252_v38, %v2314_v3  ;;  %v3051_v25 = vmul.f32 0.5, %v10492_v55 }
 0x2c7   :  { %v10528_v35 = vadd.f32 %v10252_v38, %v2802_v0  ;;  %v6879_v4 = vpop.eup %6878  ;;  %5226 = vst.msk [vmem:[%s10643_s3 + $0x3a4] sm:$0xf] %vm4992_vm1, %v6090_v53  ;;  %v4016_v46 = vmul.f32 %v3774_v17, %v3048_v20  ;;  %6892 = verf.f32 %v3294_v61  ;;  %v2316_v32 = vpop.f32.mrf.mxu0  ;;  %v2930_v0 = vmul.f32 0.5, %v10507_v14 }
 0x2c8   :  { %v2804_v60 = vpop.f32.mrf.mxu1  ;;  %v6881_v13 = vpop.eup %6880  ;;  %v5969_v58 = vpack.c.bf16 %v3894_v5, %v3894_v5  ;;  %v3653_v15 = vadd.f32 1.0, %v6879_v4  ;;  %v3173_v59 = vmul.f32 0.70710677, %v10525_v36  ;;  %v3052_v32 = vmul.f32 0.5, %v10510_v63 }
 0x2c9   :  { %v6091_v7 = vpack.c.bf16 %v4016_v46, %v4016_v46  ;;  %v3775_v31 = vadd.f32 1.0, %v6881_v13  ;;  %v3295_v18 = vmul.f32 0.70710677, %v10528_v35  ;;  %v2319_v23 = vpop.f32.mrf.mxu0 }
 0x2ca   :  { %v2807_v24 = vpop.f32.mrf.mxu1  ;;  %5105 = vst.msk [vmem:[%s10643_s3 + $0x1c0] sm:$0xf] %vm4992_vm1, %v5969_v58  ;;  %v3895_v22 = vmul.f32 %v3653_v15, %v2927_v42  ;;  %6894 = verf.f32 %v3173_v59  ;;  %v10543_v33 = vadd.f32 %v10252_v38, %v2319_v23 }
 0x2cb   :  { %v10546_v21 = vadd.f32 %v10252_v38, %v2807_v24  ;;  %v6883_v27 = vpop.eup %6882  ;;  %5227 = vst.msk [vmem:[%s10643_s3 + $0x3a8] sm:$0xf] %vm4992_vm1, %v6091_v7  ;;  %v4017_v62 = vmul.f32 %v3775_v31, %v3049_v12  ;;  %6896 = verf.f32 %v3295_v18  ;;  %v2321_v16 = vpop.f32.mrf.mxu0  ;;  %v2931_v12 = vmul.f32 0.5, %v10525_v36 }
 0x2cc   :  { %v2809_v2 = vpop.f32.mrf.mxu1  ;;  %v6885_v57 = vpop.eup %6884  ;;  %v5970_v28 = vpack.c.bf16 %v3895_v22, %v3895_v22  ;;  %v3654_v43 = vadd.f32 1.0, %v6883_v27  ;;  %v3174_v26 = vmul.f32 0.70710677, %v10543_v33  ;;  %v3053_v24 = vmul.f32 0.5, %v10528_v35 }
 0x2cd   :  { %v6092_v29 = vpack.c.bf16 %v4017_v62, %v4017_v62  ;;  %v3776_v56 = vadd.f32 1.0, %v6885_v57  ;;  %v3296_v10 = vmul.f32 0.70710677, %v10546_v21  ;;  %v2322_v11 = vpop.f32.mrf.mxu0  ;;  %v2932_v2 = vmul.f32 0.5, %v10543_v33 }
 0x2ce   :  { %v2810_v44 = vpop.f32.mrf.mxu1  ;;  %5106 = vst.msk [vmem:[%s10643_s3 + $0x1c4] sm:$0xf] %vm4992_vm1, %v5970_v28  ;;  %v3896_v30 = vmul.f32 %v3654_v43, %v2928_v39  ;;  %6898 = verf.f32 %v3174_v26  ;;  %v10561_v8 = vadd.f32 %v10252_v38, %v2322_v11  ;;  %v3054_v28 = vmul.f32 0.5, %v10546_v21 }
 0x2cf   :  { %v10564_v6 = vadd.f32 %v10252_v38, %v2810_v44  ;;  %v6887_v34 = vpop.eup %6886  ;;  %5228 = vst.msk [vmem:[%s10643_s3 + $0x3ac] sm:$0xf] %vm4992_vm1, %v6092_v29  ;;  %v4018_v9 = vmul.f32 %v3776_v56, %v3050_v37  ;;  %6900 = verf.f32 %v3296_v10  ;;  %v2324_v45 = vpop.f32.mrf.mxu0 }
 0x2d0   :  { %v2812_v50 = vpop.f32.mrf.mxu1  ;;  %v6889_v51 = vpop.eup %6888  ;;  %v5971_v52 = vpack.c.bf16 %v3896_v30, %v3896_v30  ;;  %v3655_v19 = vadd.f32 1.0, %v6887_v34  ;;  %v3175_v41 = vmul.f32 0.70710677, %v10561_v8  ;;  %v2933_v56 = vmul.f32 0.5, %v10561_v8 }
 0x2d1   :  { %v6093_v40 = vpack.c.bf16 %v4018_v9, %v4018_v9  ;;  %v3777_v47 = vadd.f32 1.0, %v6889_v51  ;;  %v3297_v48 = vmul.f32 0.70710677, %v10564_v6  ;;  %v2327_v49 = vpop.f32.mrf.mxu0  ;;  %v3055_v11 = vmul.f32 0.5, %v10564_v6 }
 0x2d2   :  { %5107 = vst.msk [vmem:[%s10643_s3 + $0x1c8] sm:$0xf] %vm4992_vm1, %v5971_v52  ;;  %v3897_v53 = vmul.f32 %v3655_v19, %v2929_v54  ;;  %6902 = verf.f32 %v3175_v41  ;;  %v2328_v20 = vadd.f32 %v10252_v38, %v2327_v49 }
 0x2d3   :  { %v6891_v1 = vpop.eup %6890  ;;  %5229 = vst.msk [vmem:[%s10643_s3 + $0x3b0] sm:$0xf] %vm4992_vm1, %v6093_v40  ;;  %v4019_v55 = vmul.f32 %v3777_v47, %v3051_v25  ;;  %6904 = verf.f32 %v3297_v48  ;;  %v2329_v17 = vpop.f32.mrf.mxu0 }
 0x2d4   :  { %v6893_v61 = vpop.eup %6892  ;;  %v5972_v3 = vpack.c.bf16 %v3897_v53, %v3897_v53  ;;  %v3656_v5 = vadd.f32 1.0, %v6891_v1  ;;  %v3176_v4 = vmul.f32 0.70710677, %v2328_v20  ;;  %v2934_v8 = vmul.f32 0.5, %v2328_v20 }
 0x2d5   :  { %v6094_v46 = vpack.c.bf16 %v4019_v55, %v4019_v55  ;;  %v3778_v60 = vadd.f32 1.0, %v6893_v61  ;;  %v2330_v13 = vpop.f32.mrf.mxu0 }
 0x2d6   :  { %5108 = vst.msk [vmem:[%s10643_s3 + $0x1cc] sm:$0xf] %vm4992_vm1, %v5972_v3  ;;  %v3898_v58 = vmul.f32 %v3656_v5, %v2930_v0  ;;  %6906 = verf.f32 %v3176_v4  ;;  %v2331_v42 = vadd.f32 %v10252_v38, %v2330_v13 }
 0x2d7   :  { %v6895_v15 = vpop.eup %6894  ;;  %5230 = vst.msk [vmem:[%s10643_s3 + $0x3b4] sm:$0xf] %vm4992_vm1, %v6094_v46  ;;  %v4020_v14 = vmul.f32 %v3778_v60, %v3052_v32  ;;  %v2332_v59 = vpop.f32.mrf.mxu0 }
 0x2d8   :  { %v6897_v63 = vpop.eup %6896  ;;  %v5973_v7 = vpack.c.bf16 %v3898_v58, %v3898_v58  ;;  %v3657_v31 = vadd.f32 1.0, %v6895_v15  ;;  %v3177_v18 = vmul.f32 0.70710677, %v2331_v42  ;;  %v2935_v19 = vmul.f32 0.5, %v2331_v42 }
 0x2d9   :  { %v6095_v23 = vpack.c.bf16 %v4020_v14, %v4020_v14  ;;  %v3779_v22 = vadd.f32 1.0, %v6897_v63 }
 0x2da   :  { %5109 = vst.msk [vmem:[%s10643_s3 + $0x1d0] sm:$0xf] %vm4992_vm1, %v5973_v7  ;;  %v3899_v38 = vmul.f32 %v3657_v31, %v2931_v12  ;;  %6908 = verf.f32 %v3177_v18 }
 0x2db   :  { %v6899_v27 = vpop.eup %6898  ;;  %5231 = vst.msk [vmem:[%s10643_s3 + $0x3b8] sm:$0xf] %vm4992_vm1, %v6095_v23  ;;  %v4021_v36 = vmul.f32 %v3779_v22, %v3053_v24 }
 0x2dc   :  { %v6901_v62 = vpop.eup %6900  ;;  %v5974_v16 = vpack.c.bf16 %v3899_v38, %v3899_v38  ;;  %v3658_v35 = vadd.f32 1.0, %v6899_v27 }
 0x2dd   :  { %v6096_v57 = vpack.c.bf16 %v4021_v36, %v4021_v36  ;;  %v3780_v39 = vadd.f32 1.0, %v6901_v62 }
 0x2de   :  { %5110 = vst.msk [vmem:[%s10643_s3 + $0x1d4] sm:$0xf] %vm4992_vm1, %v5974_v16  ;;  %v3900_v43 = vmul.f32 %v3658_v35, %v2932_v2 }
 0x2df   :  { %v6903_v26 = vpop.eup %6902  ;;  %5232 = vst.msk [vmem:[%s10643_s3 + $0x3bc] sm:$0xf] %vm4992_vm1, %v6096_v57  ;;  %v4022_v29 = vmul.f32 %v3780_v39, %v3054_v28 }
 0x2e0   :  { %v6905_v37 = vpop.eup %6904  ;;  %v5975_v33 = vpack.c.bf16 %v3900_v43, %v3900_v43  ;;  %v3659_v10 = vadd.f32 1.0, %v6903_v26 }
 0x2e1   :  { %v6097_v21 = vpack.c.bf16 %v4022_v29, %v4022_v29  ;;  %v3781_v44 = vadd.f32 1.0, %v6905_v37 }
 0x2e2   :  { %5111 = vst.msk [vmem:[%s10643_s3 + $0x1d8] sm:$0xf] %vm4992_vm1, %v5975_v33  ;;  %v3901_v30 = vmul.f32 %v3659_v10, %v2933_v56 }
 0x2e3   :  { %v6907_v34 = vpop.eup %6906  ;;  %5233 = vst.msk [vmem:[%s10643_s3 + $0x3c0] sm:$0xf] %vm4992_vm1, %v6097_v21  ;;  %v4023_v9 = vmul.f32 %v3781_v44, %v3055_v11 }
 0x2e4   :  { %v5976_v45 = vpack.c.bf16 %v3901_v30, %v3901_v30  ;;  %v3660_v50 = vadd.f32 1.0, %v6907_v34 }
 0x2e5   :  { %v6098_v51 = vpack.c.bf16 %v4023_v9, %v4023_v9 }
 0x2e6   :  { %5112 = vst.msk [vmem:[%s10643_s3 + $0x1dc] sm:$0xf] %vm4992_vm1, %v5976_v45  ;;  %v3902_v6 = vmul.f32 %v3660_v50, %v2934_v8 }
 0x2e7   :  { %v6909_v52 = vpop.eup %6908  ;;  %5234 = vst.msk [vmem:[%s10643_s3 + $0x3c4] sm:$0xf] %vm4992_vm1, %v6098_v51 }
 0x2e8   :  { %v5977_v54 = vpack.c.bf16 %v3902_v6, %v3902_v6  ;;  %v3661_v41 = vadd.f32 1.0, %v6909_v52 }
 0x2ea   :  { %5113 = vst.msk [vmem:[%s10643_s3 + $0x1e0] sm:$0xf] %vm4992_vm1, %v5977_v54  ;;  %v3903_v40 = vmul.f32 %v3661_v41, %v2935_v19 }
 0x2ec   :  { %v5978_v25 = vpack.c.bf16 %v3903_v40, %v3903_v40 }
 0x2ee   :  { %5114 = vst.msk [vmem:[%s10643_s3 + $0x1e4] sm:$0xf] %vm4992_vm1, %v5978_v25 }

// kernel: model_forward.5
= control target key start
LH: loop header
LB: loop body
LE: loop exit
PB: predicated region body
PF: predicated region fallthrough
CT: control target
= control target key end

     0   :  { %vm2508_vm0 = vcmask 519168   ;;  %vm2521_vm1 = vcmask 517120   ;;  %s4450_s1 = inlined_call_operand.vmem [shape: bf16[2048,64], index: 1, kind: input, shape index: {}]   ;;  %s4451_s0 = inlined_call_operand.vmem [shape: bf16[100,2048], index: 0, kind: input, shape index: {}]   ;;  %s4452_s2 = inlined_call_operand.vmem [shape: f32[1,64], index: 2, kind: input, shape index: {}]   ;;  %s4453_s3 = inlined_call_operand.vmem [shape: bf16[100,64], index: 3, kind: output, shape index: {}]  }
   0x1   :  { %v3258_v0 = vld [vmem:[%s4450_s1 + $0x78] sm:$0xff]   ;;  %v3262_v4 = vld [vmem:[%s4450_s1 + $0x70] sm:$0xff]   ;;  %v3266_v8 = vld [vmem:[%s4450_s1 + $0x68] sm:$0xff]  }
   0x2   :  { %v3259_v1 = vld [vmem:[%s4450_s1 + $0xf8] sm:$0xff]   ;;  %2794 = vmatprep.subr.bf16.mxu0 %v3258_v0  ;;  %v3263_v5 = vld [vmem:[%s4450_s1 + $0xf0] sm:$0xff]   ;;  %v3267_v9 = vld [vmem:[%s4450_s1 + $0xe8] sm:$0xff]  }
   0x3   :  { %v3260_v2 = vld [vmem:[%s4450_s1 + $0x38] sm:$0xff]   ;;  %2852 = vmatprep.subr.bf16.mxu1 %v3259_v1  ;;  %v3264_v6 = vld [vmem:[%s4450_s1 + $0x30] sm:$0xff]   ;;  %v3268_v10 = vld [vmem:[%s4450_s1 + $0x28] sm:$0xff]  }
   0x4   :  { %v3261_v3 = vld [vmem:[%s4450_s1 + $0xb8] sm:$0xff]   ;;  %2795 = vmatpush3.bf16.msra.mxu0 %v3260_v2  ;;  %v3265_v7 = vld [vmem:[%s4450_s1 + $0xb0] sm:$0xff]   ;;  %v3269_v11 = vld [vmem:[%s4450_s1 + $0xa8] sm:$0xff]  }
   0x5   :  { %2853 = vmatpush3.bf16.msra.mxu1 %v3261_v3  ;;  %2796 = vmatprep.subr.bf16.mxu0 %v3262_v4  ;;  %v3270_v12 = vld [vmem:[%s4450_s1 + $0x60] sm:$0xff]   ;;  %v3274_v16 = vld [vmem:[%s4450_s1 + $0x58] sm:$0xff]   ;;  %v3278_v20 = vld [vmem:[%s4450_s1 + $0x50] sm:$0xff]  }
   0x6   :  { %2854 = vmatprep.subr.bf16.mxu1 %v3263_v5  ;;  %v3271_v13 = vld [vmem:[%s4450_s1 + $0xe0] sm:$0xff]   ;;  %v3275_v17 = vld [vmem:[%s4450_s1 + $0xd8] sm:$0xff]   ;;  %v3279_v21 = vld [vmem:[%s4450_s1 + $0xd0] sm:$0xff]  }
   0x7   :  { %v3272_v14 = vld [vmem:[%s4450_s1 + $0x20] sm:$0xff]   ;;  %v3276_v18 = vld [vmem:[%s4450_s1 + $0x18] sm:$0xff]   ;;  %v3280_v22 = vld [vmem:[%s4450_s1 + $0x10] sm:$0xff]  }
   0x8   :  { %2797 = vmatpush3.bf16.msra.mxu0 %v3264_v6  ;;  %v3273_v15 = vld [vmem:[%s4450_s1 + $0xa0] sm:$0xff]   ;;  %v3277_v19 = vld [vmem:[%s4450_s1 + $0x98] sm:$0xff]   ;;  %v3281_v23 = vld [vmem:[%s4450_s1 + $0x90] sm:$0xff]  }
   0x9   :  { %2855 = vmatpush3.bf16.msra.mxu1 %v3265_v7  ;;  %2798 = vmatprep.subr.bf16.mxu0 %v3266_v8  ;;  %v3282_v24 = vld [vmem:[%s4450_s1 + $0x48] sm:$0xff]   ;;  %v3286_v28 = vld [vmem:[%s4450_s1 + $0x40] sm:$0xff]   ;;  %v3290_v40 = vld [vmem:[%s4450_s1 + $0x178] sm:$0xff]  }
   0xa   :  { %2856 = vmatprep.subr.bf16.mxu1 %v3267_v9  ;;  %v3283_v25 = vld [vmem:[%s4450_s1 + $0xc8] sm:$0xff]   ;;  %v3287_v29 = vld [vmem:[%s4450_s1 + $0xc0] sm:$0xff]   ;;  %v3291_v41 = vld [vmem:[%s4450_s1 + $0x138] sm:$0xff]  }
   0xb   :  { %v3284_v26 = vld [vmem:[%s4450_s1 + $0x8] sm:$0xff]   ;;  %v3288_v30 = vld [vmem:[%s4450_s1] sm:$0xff]   ;;  %v3292_v42 = vld [vmem:[%s4450_s1 + $0x1f8] sm:$0xff]  }
   0xc   :  { %2799 = vmatpush3.bf16.msra.mxu0 %v3268_v10  ;;  %v3285_v27 = vld [vmem:[%s4450_s1 + $0x88] sm:$0xff]   ;;  %v3289_v31 = vld [vmem:[%s4450_s1 + $0x80] sm:$0xff]   ;;  %v3293_v43 = vld [vmem:[%s4450_s1 + $0x1b8] sm:$0xff]  }
   0xd   :  { %2857 = vmatpush3.bf16.msra.mxu1 %v3269_v11  ;;  %2800 = vmatprep.subr.bf16.mxu0 %v3270_v12  ;;  %v15_v32 = vld [vmem:[%s4451_s0] sm:$0xff]  ;;  %v16_v34 = vld [vmem:[%s4451_s0 + $0x8] sm:$0xff]  ;;  %v3294_v50 = vld [vmem:[%s4450_s1 + $0x170] sm:$0xff]  }
   0xe   :  { %2858 = vmatprep.subr.bf16.mxu1 %v3271_v13  ;;  %v23_v33 = vld [vmem:[%s4451_s0 + $0x40] sm:$0xff]  ;;  %v24_v37 = vld [vmem:[%s4451_s0 + $0x48] sm:$0xff]  ;;  %v3295_v52 = vld [vmem:[%s4450_s1 + $0x130] sm:$0xff]  }
   0xf   :  { %v2528_v35 = vcombine.low %v15_v32, %v23_v33  ;;  %v2529_v36 = vcombine.high %v15_v32, %v23_v33  ;;  %v2530_v38 = vcombine.low %v16_v34, %v24_v37  ;;  %v2531_v39 = vcombine.high %v16_v34, %v24_v37  ;;  %v31_v44 = vld [vmem:[%s4451_s0 + $0x80] sm:$0xff]  ;;  %v32_v47 = vld [vmem:[%s4451_s0 + $0x88] sm:$0xff]  ;;  %v3296_v54 = vld [vmem:[%s4450_s1 + $0x1f0] sm:$0xff]  }
  0x10   :  { %2801 = vmatpush3.bf16.msra.mxu0 %v3272_v14  ;;  %v39_v45 = vld [vmem:[%s4451_s0 + $0xc0] sm:$0xff]  ;;  %v40_v48 = vld [vmem:[%s4451_s0 + $0xc8] sm:$0xff]  ;;  %v3297_v55 = vld [vmem:[%s4450_s1 + $0x1b0] sm:$0xff]  }
  0x11   :  { %2859 = vmatpush3.bf16.msra.mxu1 %v3273_v15  ;;  %2802 = vmatprep.subr.bf16.mxu0 %v3274_v16  ;;  %v2545_v46 = vcombine.high %v31_v44, %v39_v45  ;;  %v2547_v49 = vcombine.high %v32_v47, %v40_v48  ;;  %v2544_v51 = vcombine.low %v31_v44, %v39_v45  ;;  %v3298_v56 = vld [vmem:[%s4450_s1 + $0x168] sm:$0xff]   ;;  %v47_v57 = vld [vmem:[%s4451_s0 + $0x100] sm:$0xff]  ;;  %v3306_v14 = vld [vmem:[%s4450_s1 + $0x158] sm:$0xff]  }
  0x12   :  { %2860 = vmatprep.subr.bf16.mxu1 %v3275_v17  ;;  %1718 = vmatprep.mubr.bf16.mxu0 %v2529_v36  ;;  %v2546_v53 = vcombine.low %v32_v47, %v40_v48  ;;  %v55_v58 = vld [vmem:[%s4451_s0 + $0x140] sm:$0xff]  ;;  %v48_v59 = vld [vmem:[%s4451_s0 + $0x108] sm:$0xff]  ;;  %v3307_v15 = vld [vmem:[%s4450_s1 + $0x118] sm:$0xff]  }
  0x13   :  { %1806 = vmatprep.mubr.bf16.mxu1 %v2531_v39  ;;  %v56_v60 = vld [vmem:[%s4451_s0 + $0x148] sm:$0xff]  ;;  %v2561_v61 = vcombine.high %v47_v57, %v55_v58  ;;  %v2560_v2 = vcombine.low %v47_v57, %v55_v58  ;;  %v3302_v3 = vld [vmem:[%s4450_s1 + $0x160] sm:$0xff]   ;;  %v3308_v17 = vld [vmem:[%s4450_s1 + $0x1d8] sm:$0xff]  }
  0x14   :  { %2803 = vmatpush3.bf16.msra.mxu0 %v3276_v18  ;;  %v2563_v62 = vcombine.high %v48_v59, %v56_v60  ;;  %v3299_v63 = vld [vmem:[%s4450_s1 + $0x128] sm:$0xff]   ;;  %v2562_v4 = vcombine.low %v48_v59, %v56_v60  ;;  %v3303_v5 = vld [vmem:[%s4450_s1 + $0x120] sm:$0xff]   ;;  %v26_v57 = vld [vmem:[%s4451_s0 + $0x58] sm:$0xff] }
  0x15   :  { %2861 = vmatpush3.bf16.msra.mxu1 %v3277_v19  ;;  %2804 = vmatprep.subr.bf16.mxu0 %v3278_v20  ;;  %v3300_v0 = vld [vmem:[%s4450_s1 + $0x1e8] sm:$0xff]   ;;  %v63_v6 = vld [vmem:[%s4451_s0 + $0x180] sm:$0xff] }
  0x16   :  { %2862 = vmatprep.subr.bf16.mxu1 %v3279_v21  ;;  %v3301_v1 = vld [vmem:[%s4450_s1 + $0x1a8] sm:$0xff]   ;;  %v71_v7 = vld [vmem:[%s4451_s0 + $0x1c0] sm:$0xff] }
  0x17   :  { %v64_v8 = vld [vmem:[%s4451_s0 + $0x188] sm:$0xff]  ;;  %v2577_v9 = vcombine.high %v63_v6, %v71_v7  ;;  %v3304_v12 = vld [vmem:[%s4450_s1 + $0x1e0] sm:$0xff]   ;;  %v2576_v16 = vcombine.low %v63_v6, %v71_v7 }
  0x18   :  { %2805 = vmatpush3.bf16.msra.mxu0 %v3280_v22  ;;  %v72_v10 = vld [vmem:[%s4451_s0 + $0x1c8] sm:$0xff]  ;;  %v3305_v13 = vld [vmem:[%s4450_s1 + $0x1a0] sm:$0xff]  }
  0x19   :  { %2863 = vmatpush3.bf16.msra.mxu1 %v3281_v23  ;;  %2806 = vmatprep.subr.bf16.mxu0 %v3282_v24  ;;  %v2579_v11 = vcombine.high %v64_v8, %v72_v10  ;;  %v79_v18 = vld [vmem:[%s4451_s0 + $0x200] sm:$0xff]  ;;  %v2578_v20 = vcombine.low %v64_v8, %v72_v10  ;;  %v80_v22 = vld [vmem:[%s4451_s0 + $0x208] sm:$0xff]  ;;  %v3330_v8 = vld [vmem:[%s4450_s1 + $0x270] sm:$0xff]  }
  0x1a   :  { %2864 = vmatprep.subr.bf16.mxu1 %v3283_v25  ;;  %v87_v19 = vld [vmem:[%s4451_s0 + $0x240] sm:$0xff]  ;;  %v88_v23 = vld [vmem:[%s4451_s0 + $0x248] sm:$0xff]  ;;  %v3309_v25 = vld [vmem:[%s4450_s1 + $0x198] sm:$0xff]  }
  0x1b   :  { %v2593_v21 = vcombine.high %v79_v18, %v87_v19  ;;  %v2595_v24 = vcombine.high %v80_v22, %v88_v23  ;;  %v96_v32 = vld [vmem:[%s4451_s0 + $0x288] sm:$0xff]  ;;  %v2592_v34 = vcombine.low %v79_v18, %v87_v19  ;;  %v2594_v36 = vcombine.low %v80_v22, %v88_v23  ;;  %v3322_v44 = vld [vmem:[%s4450_s1 + $0x140] sm:$0xff]   ;;  %v3332_v10 = vld [vmem:[%s4450_s1 + $0x2f0] sm:$0xff]  }
  0x1c   :  { %2807 = vmatpush3.bf16.msra.mxu0 %v3284_v26  ;;  %v3310_v26 = vld [vmem:[%s4450_s1 + $0x150] sm:$0xff]   ;;  %v104_v33 = vld [vmem:[%s4451_s0 + $0x2c8] sm:$0xff]  ;;  %v3323_v45 = vld [vmem:[%s4450_s1 + $0x100] sm:$0xff]  }
  0x1d   :  { %2865 = vmatpush3.bf16.msra.mxu1 %v3285_v27  ;;  %2808 = vmatprep.subr.bf16.mxu0 %v3286_v28  ;;  %v3311_v27 = vld [vmem:[%s4450_s1 + $0x110] sm:$0xff]   ;;  %v2611_v39 = vcombine.high %v96_v32, %v104_v33  ;;  %v3325_v48 = vld [vmem:[%s4450_s1 + $0x180] sm:$0xff]   ;;  %v3337_v23 = vld [vmem:[%s4450_s1 + $0x2a8] sm:$0xff]  }
  0x1e   :  { %2866 = vmatprep.subr.bf16.mxu1 %v3287_v29  ;;  %v3312_v28 = vld [vmem:[%s4450_s1 + $0x1d0] sm:$0xff]  }
  0x1f   :  { %v3313_v29 = vld [vmem:[%s4450_s1 + $0x190] sm:$0xff]  }
  0x20   :  { %2809 = vmatpush3.bf16.msra.mxu0 %v3288_v30  ;;  %v95_v30 = vld [vmem:[%s4451_s0 + $0x280] sm:$0xff] }
  0x21   :  { %2867 = vmatpush3.bf16.msra.mxu1 %v3289_v31  ;;  %2910 = vmatprep.subr.bf16.mxu0 %v3290_v40  ;;  %v103_v31 = vld [vmem:[%s4451_s0 + $0x2c0] sm:$0xff]  ;;  %v3316_v40 = vld [vmem:[%s4450_s1 + $0x1c8] sm:$0xff]  }
  0x22   :  { %2968 = vmatprep.subr.bf16.mxu1 %v3292_v42  ;;  %v2609_v37 = vcombine.high %v95_v30, %v103_v31  ;;  %v111_v42 = vld [vmem:[%s4451_s0 + $0x300] sm:$0x33]  ;;  %v2608_v47 = vcombine.low %v95_v30, %v103_v31  ;;  %v74_v30 = vld [vmem:[%s4451_s0 + $0x1d8] sm:$0xff] }
  0x23   :  { %1719 = vmatmul.mubr.bf16.vlgmr.msra.gmra.mxu0 %v2528_v35  ;;  %v3314_v35 = vld [vmem:[%s4450_s1 + $0x148] sm:$0xff]   ;;  %v2624_v58 = vcombine.low %v111_v42, %v111_v42  ;;  %v3341_v31 = vld [vmem:[%s4450_s1 + $0x2a0] sm:$0xff]  }
  0x24   :  { %1807 = vmatmul.mubr.bf16.vlgmr.msra.gmra.mxu1 %v2530_v38  ;;  %2911 = vmatpush3.bf16.msra.mxu0 %v3291_v41  ;;  %v3315_v38 = vld [vmem:[%s4450_s1 + $0x108] sm:$0xff]  }
  0x25   :  { %2969 = vmatpush3.bf16.msra.mxu1 %v3293_v43  ;;  %1726 = vmatprep.mubr.bf16.mxu0 %v2545_v46  ;;  %v3317_v41 = vld [vmem:[%s4450_s1 + $0x188] sm:$0xff]   ;;  %v3324_v46 = vld [vmem:[%s4450_s1 + $0x1c0] sm:$0xff]  }
  0x26   :  { %1814 = vmatprep.mubr.bf16.mxu1 %v2547_v49  ;;  %2912 = vmatprep.subr.bf16.mxu0 %v3294_v50  ;;  %v112_v43 = vld [vmem:[%s4451_s0 + $0x308] sm:$0x33]  ;;  %v2610_v49 = vcombine.low %v96_v32, %v104_v33  ;;  %v2625_v50 = vcombine.high %v111_v42, %v111_v42  ;;  %v3342_v32 = vld [vmem:[%s4450_s1 + $0x258] sm:$0xff]   ;;  %v89_v42 = vld [vmem:[%s4451_s0 + $0x250] sm:$0xff] }
  0x27   :  { %2970 = vmatprep.subr.bf16.mxu1 %v3296_v54  ;;  %v17_v54 = vld [vmem:[%s4451_s0 + $0x10] sm:$0xff]  ;;  %v2626_v59 = vcombine.low %v112_v43, %v112_v43 }
  0x28   :  { %2913 = vmatpush3.bf16.msra.mxu0 %v3295_v52  ;;  %v3326_v52 = vld [vmem:[%s4450_s1 + $0x278] sm:$0xff]  }
  0x29   :  { %2971 = vmatpush3.bf16.msra.mxu1 %v3297_v55  ;;  %2914 = vmatprep.subr.bf16.mxu0 %v3298_v56  ;;  %v25_v55 = vld [vmem:[%s4451_s0 + $0x50] sm:$0xff]  ;;  %v18_v56 = vld [vmem:[%s4451_s0 + $0x18] sm:$0xff] }
  0x2a   :  { %2972 = vmatprep.subr.bf16.mxu1 %v3300_v0  ;;  %v2533_v60 = vcombine.high %v17_v54, %v25_v55  ;;  %v34_v0 = vld [vmem:[%s4451_s0 + $0x98] sm:$0xff] }
  0x2b   :  { %1727 = vmatmul.mubr.bf16.gmra.mxu0 %v2544_v51  ;;  %v2627_v51 = vcombine.high %v112_v43, %v112_v43  ;;  %v3348_v43 = vld [vmem:[%s4450_s1 + $0x2d0] sm:$0xff]  }
  0x2c   :  { %1815 = vmatmul.mubr.bf16.gmra.mxu1 %v2546_v53  ;;  %1734 = vmatprep.mubr.bf16.mxu0 %v2561_v61  ;;  %v3328_v53 = vld [vmem:[%s4450_s1 + $0x2f8] sm:$0xff]   ;;  %v2535_v61 = vcombine.high %v18_v56, %v26_v57 }
  0x2d   :  { %1822 = vmatprep.mubr.bf16.mxu1 %v2563_v62  ;;  %2915 = vmatpush3.bf16.msra.mxu0 %v3299_v63  ;;  %v33_v62 = vld [vmem:[%s4451_s0 + $0x90] sm:$0xff] }
  0x2e   :  { %2973 = vmatpush3.bf16.msra.mxu1 %v3301_v1  ;;  %2916 = vmatprep.subr.bf16.mxu0 %v3302_v3  ;;  %v41_v63 = vld [vmem:[%s4451_s0 + $0xd0] sm:$0xff]  ;;  %v2532_v1 = vcombine.low %v17_v54, %v25_v55  ;;  %v2534_v3 = vcombine.low %v18_v56, %v26_v57  ;;  %v3351_v54 = vld [vmem:[%s4450_s1 + $0x208] sm:$0xff]   ;;  %v3358_v56 = vld [vmem:[%s4450_s1 + $0x240] sm:$0xff]  }
  0x2f   :  { %2974 = vmatprep.subr.bf16.mxu1 %v3304_v12  ;;  %v2549_v6 = vcombine.high %v33_v62, %v41_v63  ;;  %v3334_v12 = vld [vmem:[%s4450_s1 + $0x268] sm:$0xff]   ;;  %v2548_v18 = vcombine.low %v33_v62, %v41_v63  ;;  %v97_v57 = vld [vmem:[%s4451_s0 + $0x290] sm:$0xff]  ;;  %v106_v62 = vld [vmem:[%s4451_s0 + $0x2d8] sm:$0xff] }
  0x30   :  { %v3353_v55 = vld [vmem:[%s4450_s1 + $0x288] sm:$0xff]   ;;  %v3361_v63 = vld [vmem:[%s4450_s1 + $0x280] sm:$0xff]  }
  0x31   :  { %2917 = vmatpush3.bf16.msra.mxu0 %v3303_v5  ;;  %v3329_v5 = vld [vmem:[%s4450_s1 + $0x2b8] sm:$0xff]  }
  0x32   :  { %2975 = vmatpush3.bf16.msra.mxu1 %v3305_v13  ;;  %2918 = vmatprep.subr.bf16.mxu0 %v3306_v14  ;;  %v49_v13 = vld [vmem:[%s4451_s0 + $0x110] sm:$0xff] }
  0x33   :  { %1735 = vmatmul.mubr.bf16.gmra.mxu0 %v2560_v2  ;;  %2976 = vmatprep.subr.bf16.mxu1 %v3308_v17  ;;  %v42_v2 = vld [vmem:[%s4451_s0 + $0xd8] sm:$0xff]  ;;  %v57_v14 = vld [vmem:[%s4451_s0 + $0x150] sm:$0xff]  ;;  %v3336_v17 = vld [vmem:[%s4450_s1 + $0x2e8] sm:$0xff]  }
  0x34   :  { %1823 = vmatmul.mubr.bf16.gmra.mxu1 %v2562_v4  ;;  %1742 = vmatprep.mubr.bf16.mxu0 %v2577_v9  ;;  %v3327_v4 = vld [vmem:[%s4450_s1 + $0x238] sm:$0xff]   ;;  %v2551_v7 = vcombine.high %v34_v0, %v42_v2  ;;  %v3331_v9 = vld [vmem:[%s4450_s1 + $0x230] sm:$0xff]   ;;  %v2550_v19 = vcombine.low %v34_v0, %v42_v2  ;;  %v2564_v33 = vcombine.low %v49_v13, %v57_v14 }
  0x35   :  { %1830 = vmatprep.mubr.bf16.mxu1 %v2579_v11  ;;  %2919 = vmatpush3.bf16.msra.mxu0 %v3307_v15  ;;  %v3333_v11 = vld [vmem:[%s4450_s1 + $0x2b0] sm:$0xff]   ;;  %v50_v15 = vld [vmem:[%s4451_s0 + $0x118] sm:$0xff] }
  0x36   :  { %2977 = vmatpush3.bf16.msra.mxu1 %v3309_v25  ;;  %2920 = vmatprep.subr.bf16.mxu0 %v3310_v26  ;;  %v3339_v25 = vld [vmem:[%s4450_s1 + $0x220] sm:$0xff]   ;;  %v65_v26 = vld [vmem:[%s4451_s0 + $0x190] sm:$0xff]  ;;  %v3362_v0 = vld [vmem:[%s4450_s1 + $0x378] sm:$0xff]  }
  0x37   :  { %2978 = vmatprep.subr.bf16.mxu1 %v3312_v28  ;;  %v73_v28 = vld [vmem:[%s4451_s0 + $0x1d0] sm:$0xff]  ;;  %v3364_v2 = vld [vmem:[%s4450_s1 + $0x3f8] sm:$0xff]  }
  0x39   :  { %2921 = vmatpush3.bf16.msra.mxu0 %v3311_v27  ;;  %v3340_v27 = vld [vmem:[%s4450_s1 + $0x2e0] sm:$0xff]  }
  0x3a   :  { %2979 = vmatpush3.bf16.msra.mxu1 %v3313_v29  ;;  %2922 = vmatprep.subr.bf16.mxu0 %v3314_v35  ;;  %v66_v29 = vld [vmem:[%s4451_s0 + $0x198] sm:$0xff] }
  0x3b   :  { %1743 = vmatmul.mubr.bf16.gmra.mxu0 %v2576_v16  ;;  %2980 = vmatprep.subr.bf16.mxu1 %v3316_v40  ;;  %v58_v16 = vld [vmem:[%s4451_s0 + $0x158] sm:$0xff]  ;;  %v3346_v40 = vld [vmem:[%s4450_s1 + $0x250] sm:$0xff]  }
  0x3c   :  { %1831 = vmatmul.mubr.bf16.gmra.mxu1 %v2578_v20  ;;  %1750 = vmatprep.mubr.bf16.mxu0 %v2593_v21  ;;  %v2565_v20 = vcombine.high %v49_v13, %v57_v14  ;;  %v3335_v21 = vld [vmem:[%s4450_s1 + $0x228] sm:$0xff]   ;;  %v2567_v22 = vcombine.high %v50_v15, %v58_v16  ;;  %v2566_v35 = vcombine.low %v50_v15, %v58_v16  ;;  %v27_v13 = vld [vmem:[%s4451_s0 + $0x60] sm:$0xff] }
  0x3d   :  { %1838 = vmatprep.mubr.bf16.mxu1 %v2595_v24  ;;  %2923 = vmatpush3.bf16.msra.mxu0 %v3315_v38  ;;  %v3338_v24 = vld [vmem:[%s4450_s1 + $0x260] sm:$0xff]   ;;  %v2583_v38 = vcombine.high %v66_v29, %v74_v30  ;;  %v20_v14 = vld [vmem:[%s4451_s0 + $0x28] sm:$0xff] }
  0x3e   :  { %2981 = vmatpush3.bf16.msra.mxu1 %v3317_v41  ;;  %2924 = vmatprep.subr.bf16.mxu0 %v3322_v44  ;;  %v81_v41 = vld [vmem:[%s4451_s0 + $0x210] sm:$0xff]  ;;  %v82_v44 = vld [vmem:[%s4451_s0 + $0x218] sm:$0xff]  ;;  %v28_v15 = vld [vmem:[%s4451_s0 + $0x68] sm:$0xff] }
  0x3f   :  { %2982 = vmatprep.subr.bf16.mxu1 %v3324_v46  ;;  %v3347_v46 = vld [vmem:[%s4450_s1 + $0x210] sm:$0xff]  }
  0x41   :  { %2925 = vmatpush3.bf16.msra.mxu0 %v3323_v45  ;;  %v90_v45 = vld [vmem:[%s4451_s0 + $0x258] sm:$0xff] }
  0x42   :  { %2983 = vmatpush3.bf16.msra.mxu1 %v3325_v48  ;;  %3026 = vmatprep.subr.bf16.mxu0 %v3326_v52  ;;  %v3350_v48 = vld [vmem:[%s4450_s1 + $0x248] sm:$0xff]   ;;  %v2597_v52 = vcombine.high %v81_v41, %v89_v42 }
  0x43   :  { %1751 = vmatmul.mubr.bf16.gmra.mxu0 %v2592_v34  ;;  %3084 = vmatprep.subr.bf16.mxu1 %v3328_v53  ;;  %v3344_v34 = vld [vmem:[%s4450_s1 + $0x2d8] sm:$0xff]   ;;  %v2599_v53 = vcombine.high %v82_v44, %v90_v45 }
  0x44   :  { %1839 = vmatmul.mubr.bf16.gmra.mxu1 %v2594_v36  ;;  %1758 = vmatprep.mubr.bf16.mxu0 %v2609_v37  ;;  %v2581_v36 = vcombine.high %v65_v26, %v73_v28  ;;  %v3343_v37 = vld [vmem:[%s4450_s1 + $0x218] sm:$0xff]  }
  0x45   :  { %1846 = vmatprep.mubr.bf16.mxu1 %v2611_v39  ;;  %v3345_v39 = vld [vmem:[%s4450_s1 + $0x298] sm:$0xff]  }
  0x4b   :  { %1759 = vmatmul.mubr.bf16.gmra.mxu0 %v2608_v47  ;;  %v3349_v47 = vld [vmem:[%s4450_s1 + $0x290] sm:$0xff]  }
  0x4c   :  { %1847 = vmatmul.mubr.bf16.gmra.mxu1 %v2610_v49  ;;  %1766 = vmatprep.mubr.bf16.mxu0 %v2625_v50  ;;  %v2580_v49 = vcombine.low %v65_v26, %v73_v28  ;;  %v3352_v50 = vld [vmem:[%s4450_s1 + $0x2c8] sm:$0xff]   ;;  %v2538_v26 = vcombine.low %v20_v14, %v28_v15 }
  0x4d   :  { %1854 = vmatprep.mubr.bf16.mxu1 %v2627_v51  ;;  %v2582_v51 = vcombine.low %v66_v29, %v74_v30  ;;  %v3366_v29 = vld [vmem:[%s4450_s1 + $0x370] sm:$0xff]  }
  0x53   :  { %1767 = vmatmul.mubr.bf16.gmra.mxu0 %v2624_v58  ;;  %v3360_v58 = vld [vmem:[%s4450_s1 + $0x2c0] sm:$0xff]  }
  0x54   :  { %1855 = vmatmul.mubr.bf16.gmra.mxu1 %v2626_v59  ;;  %1894 = vmatprep.mubr.bf16.mxu0 %v2533_v60  ;;  %v105_v59 = vld [vmem:[%s4451_s0 + $0x2d0] sm:$0xff]  ;;  %v98_v60 = vld [vmem:[%s4451_s0 + $0x298] sm:$0xff] }
  0x55   :  { %1982 = vmatprep.mubr.bf16.mxu1 %v2535_v61  ;;  %v3359_v61 = vld [vmem:[%s4450_s1 + $0x200] sm:$0xff]  }
  0x5b   :  { %1895 = vmatmul.mubr.bf16.vlgmr.msra.gmra.mxu0 %v2532_v1  ;;  %v2596_v1 = vcombine.low %v81_v41, %v89_v42 }
  0x5c   :  { %1983 = vmatmul.mubr.bf16.vlgmr.msra.gmra.mxu1 %v2534_v3  ;;  %3027 = vmatpush3.bf16.msra.mxu0 %v3327_v4  ;;  %v2598_v3 = vcombine.low %v82_v44, %v90_v45  ;;  %v2613_v4 = vcombine.high %v97_v57, %v105_v59  ;;  %v3371_v44 = vld [vmem:[%s4450_s1 + $0x328] sm:$0xff]  }
  0x5d   :  { %3085 = vmatpush3.bf16.msra.mxu1 %v3329_v5  ;;  %1902 = vmatprep.mubr.bf16.mxu0 %v2549_v6  ;;  %v2615_v5 = vcombine.high %v98_v60, %v106_v62  ;;  %v113_v6 = vld [vmem:[%s4451_s0 + $0x310] sm:$0x33]  ;;  %v3373_v45 = vld [vmem:[%s4450_s1 + $0x3a8] sm:$0xff]  }
  0x5e   :  { %1990 = vmatprep.mubr.bf16.mxu1 %v2551_v7  ;;  %3028 = vmatprep.subr.bf16.mxu0 %v3330_v8  ;;  %v114_v7 = vld [vmem:[%s4451_s0 + $0x318] sm:$0x33]  ;;  %v2612_v8 = vcombine.low %v97_v57, %v105_v59  ;;  %v2628_v16 = vcombine.low %v113_v6, %v113_v6 }
  0x5f   :  { %3086 = vmatprep.subr.bf16.mxu1 %v3332_v10  ;;  %v2629_v10 = vcombine.high %v113_v6, %v113_v6  ;;  %v3386_v6 = vld [vmem:[%s4450_s1 + $0x348] sm:$0xff]  }
  0x60   :  { %3029 = vmatpush3.bf16.msra.mxu0 %v3331_v9  ;;  %v2614_v9 = vcombine.low %v98_v60, %v106_v62  ;;  %v3379_v60 = vld [vmem:[%s4450_s1 + $0x318] sm:$0xff]   ;;  %v3382_v62 = vld [vmem:[%s4450_s1 + $0x350] sm:$0xff]  }
  0x61   :  { %3087 = vmatpush3.bf16.msra.mxu1 %v3333_v11  ;;  %3030 = vmatprep.subr.bf16.mxu0 %v3334_v12  ;;  %v2631_v11 = vcombine.high %v114_v7, %v114_v7  ;;  %v19_v12 = vld [vmem:[%s4451_s0 + $0x20] sm:$0xff] }
  0x62   :  { %3088 = vmatprep.subr.bf16.mxu1 %v3336_v17  ;;  %v2630_v17 = vcombine.low %v114_v7, %v114_v7 }
  0x63   :  { %1903 = vmatmul.mubr.bf16.gmra.mxu0 %v2548_v18  ;;  %v2537_v18 = vcombine.high %v19_v12, %v27_v13 }
  0x64   :  { %1991 = vmatmul.mubr.bf16.gmra.mxu1 %v2550_v19  ;;  %1910 = vmatprep.mubr.bf16.mxu0 %v2565_v20  ;;  %v2539_v19 = vcombine.high %v20_v14, %v28_v15  ;;  %v35_v20 = vld [vmem:[%s4451_s0 + $0xa0] sm:$0xff] }
  0x65   :  { %1998 = vmatprep.mubr.bf16.mxu1 %v2567_v22  ;;  %3031 = vmatpush3.bf16.msra.mxu0 %v3335_v21  ;;  %v43_v21 = vld [vmem:[%s4451_s0 + $0xe0] sm:$0xff]  ;;  %v2536_v22 = vcombine.low %v19_v12, %v27_v13  ;;  %v3387_v12 = vld [vmem:[%s4450_s1 + $0x308] sm:$0xff]  }
  0x66   :  { %3089 = vmatpush3.bf16.msra.mxu1 %v3337_v23  ;;  %3032 = vmatprep.subr.bf16.mxu0 %v3338_v24  ;;  %v3363_v23 = vld [vmem:[%s4450_s1 + $0x338] sm:$0xff]   ;;  %v36_v24 = vld [vmem:[%s4451_s0 + $0xa8] sm:$0xff]  ;;  %v2553_v28 = vcombine.high %v35_v20, %v43_v21  ;;  %v3394_v14 = vld [vmem:[%s4450_s1 + $0x340] sm:$0xff]  }
  0x67   :  { %3090 = vmatprep.subr.bf16.mxu1 %v3340_v27  ;;  %v3365_v27 = vld [vmem:[%s4450_s1 + $0x3b8] sm:$0xff]   ;;  %v3389_v13 = vld [vmem:[%s4450_s1 + $0x388] sm:$0xff]   ;;  %v3396_v15 = vld [vmem:[%s4450_s1 + $0x3c0] sm:$0xff]  }
  0x69   :  { %3033 = vmatpush3.bf16.msra.mxu0 %v3339_v25  ;;  %v44_v25 = vld [vmem:[%s4451_s0 + $0xe8] sm:$0xff] }
  0x6a   :  { %3091 = vmatpush3.bf16.msra.mxu1 %v3341_v31  ;;  %3034 = vmatprep.subr.bf16.mxu0 %v3342_v32  ;;  %v2555_v30 = vcombine.high %v36_v24, %v44_v25  ;;  %v3367_v31 = vld [vmem:[%s4450_s1 + $0x330] sm:$0xff]   ;;  %v2554_v41 = vcombine.low %v36_v24, %v44_v25 }
  0x6b   :  { %1911 = vmatmul.mubr.bf16.gmra.mxu0 %v2564_v33  ;;  %3092 = vmatprep.subr.bf16.mxu1 %v3344_v34  ;;  %v3368_v32 = vld [vmem:[%s4450_s1 + $0x3f0] sm:$0xff]   ;;  %v3370_v34 = vld [vmem:[%s4450_s1 + $0x368] sm:$0xff]  }
  0x6c   :  { %1999 = vmatmul.mubr.bf16.gmra.mxu1 %v2566_v35  ;;  %1918 = vmatprep.mubr.bf16.mxu0 %v2581_v36  ;;  %v3369_v33 = vld [vmem:[%s4450_s1 + $0x3b0] sm:$0xff]   ;;  %v51_v35 = vld [vmem:[%s4451_s0 + $0x120] sm:$0xff] }
  0x6d   :  { %2006 = vmatprep.mubr.bf16.mxu1 %v2583_v38  ;;  %3035 = vmatpush3.bf16.msra.mxu0 %v3343_v37  ;;  %v59_v36 = vld [vmem:[%s4451_s0 + $0x160] sm:$0xff]  ;;  %v52_v37 = vld [vmem:[%s4451_s0 + $0x128] sm:$0xff] }
  0x6e   :  { %3093 = vmatpush3.bf16.msra.mxu1 %v3345_v39  ;;  %3036 = vmatprep.subr.bf16.mxu0 %v3346_v40  ;;  %v60_v38 = vld [vmem:[%s4451_s0 + $0x168] sm:$0xff]  ;;  %v2552_v40 = vcombine.low %v35_v20, %v43_v21  ;;  %v2569_v42 = vcombine.high %v51_v35, %v59_v36  ;;  %v3397_v21 = vld [vmem:[%s4450_s1 + $0x380] sm:$0xff]  }
  0x6f   :  { %3094 = vmatprep.subr.bf16.mxu1 %v3348_v43  ;;  %v3372_v39 = vld [vmem:[%s4450_s1 + $0x3e8] sm:$0xff]   ;;  %v2571_v43 = vcombine.high %v52_v37, %v60_v38  ;;  %v2570_v57 = vcombine.low %v52_v37, %v60_v38 }
  0x70   :  { %v108_v20 = vld [vmem:[%s4451_s0 + $0x2e8] sm:$0xff] }
  0x71   :  { %3037 = vmatpush3.bf16.msra.mxu0 %v3347_v46  ;;  %v3374_v46 = vld [vmem:[%s4450_s1 + $0x360] sm:$0xff]  }
  0x72   :  { %3095 = vmatpush3.bf16.msra.mxu1 %v3349_v47  ;;  %3038 = vmatprep.subr.bf16.mxu0 %v3350_v48  ;;  %v3376_v47 = vld [vmem:[%s4450_s1 + $0x3e0] sm:$0xff]  }
  0x73   :  { %1919 = vmatmul.mubr.bf16.gmra.mxu0 %v2580_v49  ;;  %3096 = vmatprep.subr.bf16.mxu1 %v3352_v50  ;;  %v3375_v48 = vld [vmem:[%s4450_s1 + $0x320] sm:$0xff]  }
  0x74   :  { %2007 = vmatmul.mubr.bf16.gmra.mxu1 %v2582_v51  ;;  %1926 = vmatprep.mubr.bf16.mxu0 %v2597_v52  ;;  %v67_v49 = vld [vmem:[%s4451_s0 + $0x1a0] sm:$0xff]  ;;  %v68_v51 = vld [vmem:[%s4451_s0 + $0x1a8] sm:$0xff] }
  0x75   :  { %2014 = vmatprep.mubr.bf16.mxu1 %v2599_v53  ;;  %3039 = vmatpush3.bf16.msra.mxu0 %v3351_v54  ;;  %v75_v50 = vld [vmem:[%s4451_s0 + $0x1e0] sm:$0xff]  ;;  %v76_v52 = vld [vmem:[%s4451_s0 + $0x1e8] sm:$0xff]  ;;  %v3378_v54 = vld [vmem:[%s4450_s1 + $0x358] sm:$0xff]  }
  0x76   :  { %3097 = vmatpush3.bf16.msra.mxu1 %v3353_v55  ;;  %3040 = vmatprep.subr.bf16.mxu0 %v3358_v56  ;;  %v3377_v53 = vld [vmem:[%s4450_s1 + $0x3a0] sm:$0xff]   ;;  %v2568_v55 = vcombine.low %v51_v35, %v59_v36  ;;  %v3380_v56 = vld [vmem:[%s4450_s1 + $0x3d8] sm:$0xff]   ;;  %v2587_v59 = vcombine.high %v68_v51, %v76_v52  ;;  %v2584_v7 = vcombine.low %v67_v49, %v75_v50 }
  0x77   :  { %3098 = vmatprep.subr.bf16.mxu1 %v3360_v58  ;;  %v2585_v58 = vcombine.high %v67_v49, %v75_v50  ;;  %v30_v35 = vld [vmem:[%s4451_s0 + $0x78] sm:$0xff]  ;;  %v61_v49 = vld [vmem:[%s4451_s0 + $0x170] sm:$0xff] }
  0x78   :  { %v54_v50 = vld [vmem:[%s4451_s0 + $0x138] sm:$0xff] }
  0x79   :  { %3041 = vmatpush3.bf16.msra.mxu0 %v3359_v61  ;;  %v3381_v61 = vld [vmem:[%s4450_s1 + $0x398] sm:$0xff]  }
  0x7a   :  { %3099 = vmatpush3.bf16.msra.mxu1 %v3361_v63  ;;  %3142 = vmatprep.subr.bf16.mxu0 %v3362_v0  ;;  %v3384_v63 = vld [vmem:[%s4450_s1 + $0x3d0] sm:$0xff]   ;;  %v83_v0 = vld [vmem:[%s4451_s0 + $0x220] sm:$0xff] }
  0x7b   :  { %1927 = vmatmul.mubr.bf16.gmra.mxu0 %v2596_v1  ;;  %3200 = vmatprep.subr.bf16.mxu1 %v3364_v2  ;;  %v91_v1 = vld [vmem:[%s4451_s0 + $0x260] sm:$0xff]  ;;  %v84_v2 = vld [vmem:[%s4451_s0 + $0x228] sm:$0xff] }
  0x7c   :  { %2015 = vmatmul.mubr.bf16.gmra.mxu1 %v2598_v3  ;;  %1934 = vmatprep.mubr.bf16.mxu0 %v2613_v4  ;;  %v3383_v3 = vld [vmem:[%s4450_s1 + $0x310] sm:$0xff]   ;;  %v92_v4 = vld [vmem:[%s4451_s0 + $0x268] sm:$0xff] }
  0x7d   :  { %2022 = vmatprep.mubr.bf16.mxu1 %v2615_v5  ;;  %v3385_v5 = vld [vmem:[%s4450_s1 + $0x390] sm:$0xff]  }
  0x83   :  { %1935 = vmatmul.mubr.bf16.gmra.mxu0 %v2612_v8  ;;  %v3388_v8 = vld [vmem:[%s4450_s1 + $0x3c8] sm:$0xff]  }
  0x84   :  { %2023 = vmatmul.mubr.bf16.gmra.mxu1 %v2614_v9  ;;  %1942 = vmatprep.mubr.bf16.mxu0 %v2629_v10  ;;  %v2586_v9 = vcombine.low %v68_v51, %v76_v52  ;;  %v2601_v10 = vcombine.high %v83_v0, %v91_v1  ;;  %v62_v51 = vld [vmem:[%s4451_s0 + $0x178] sm:$0xff] }
  0x85   :  { %2030 = vmatprep.mubr.bf16.mxu1 %v2631_v11  ;;  %v2603_v11 = vcombine.high %v84_v2, %v92_v4 }
  0x8b   :  { %1943 = vmatmul.mubr.bf16.gmra.mxu0 %v2628_v16  ;;  %v99_v16 = vld [vmem:[%s4451_s0 + $0x2a0] sm:$0xff] }
  0x8c   :  { %2031 = vmatmul.mubr.bf16.gmra.mxu1 %v2630_v17  ;;  %2070 = vmatprep.mubr.bf16.mxu0 %v2537_v18  ;;  %v107_v17 = vld [vmem:[%s4451_s0 + $0x2e0] sm:$0xff] }
  0x8d   :  { %2158 = vmatprep.mubr.bf16.mxu1 %v2539_v19  ;;  %v3395_v18 = vld [vmem:[%s4450_s1 + $0x300] sm:$0xff]   ;;  %v100_v19 = vld [vmem:[%s4451_s0 + $0x2a8] sm:$0xff]  ;;  %v2617_v24 = vcombine.high %v99_v16, %v107_v17 }
  0x8e   :  { %v2619_v25 = vcombine.high %v100_v19, %v108_v20 }
  0x93   :  { %2071 = vmatmul.mubr.bf16.vlgmr.msra.gmra.mxu0 %v2536_v22  ;;  %v2600_v22 = vcombine.low %v83_v0, %v91_v1  ;;  %v85_v0 = vld [vmem:[%s4451_s0 + $0x230] sm:$0xff] }
  0x94   :  { %2159 = vmatmul.mubr.bf16.vlgmr.msra.gmra.mxu1 %v2538_v26  ;;  %3143 = vmatpush3.bf16.msra.mxu0 %v3363_v23  ;;  %v2602_v23 = vcombine.low %v84_v2, %v92_v4  ;;  %v115_v26 = vld [vmem:[%s4451_s0 + $0x320] sm:$0x33]  ;;  %v93_v1 = vld [vmem:[%s4451_s0 + $0x270] sm:$0xff]  ;;  %v86_v2 = vld [vmem:[%s4451_s0 + $0x238] sm:$0xff] }
  0x95   :  { %3201 = vmatpush3.bf16.msra.mxu1 %v3365_v27  ;;  %2078 = vmatprep.mubr.bf16.mxu0 %v2553_v28  ;;  %v116_v27 = vld [vmem:[%s4451_s0 + $0x328] sm:$0x33]  ;;  %v2616_v28 = vcombine.low %v99_v16, %v107_v17  ;;  %v2632_v36 = vcombine.low %v115_v26, %v115_v26  ;;  %v102_v16 = vld [vmem:[%s4451_s0 + $0x2b8] sm:$0xff] }
  0x96   :  { %2166 = vmatprep.mubr.bf16.mxu1 %v2555_v30  ;;  %3144 = vmatprep.subr.bf16.mxu0 %v3366_v29  ;;  %v2618_v29 = vcombine.low %v100_v19, %v108_v20  ;;  %v2633_v30 = vcombine.high %v115_v26, %v115_v26  ;;  %v2634_v37 = vcombine.low %v116_v27, %v116_v27  ;;  %v110_v17 = vld [vmem:[%s4451_s0 + $0x2f8] sm:$0xff] }
  0x97   :  { %3202 = vmatprep.subr.bf16.mxu1 %v3368_v32  ;;  %v21_v32 = vld [vmem:[%s4451_s0 + $0x30] sm:$0xff]  ;;  %v2604_v20 = vcombine.low %v85_v0, %v93_v1  ;;  %v2623_v26 = vcombine.high %v102_v16, %v110_v17 }
  0x98   :  { %3145 = vmatpush3.bf16.msra.mxu0 %v3367_v31  ;;  %v2635_v31 = vcombine.high %v116_v27, %v116_v27 }
  0x99   :  { %3203 = vmatpush3.bf16.msra.mxu1 %v3369_v33  ;;  %3146 = vmatprep.subr.bf16.mxu0 %v3370_v34  ;;  %v29_v33 = vld [vmem:[%s4451_s0 + $0x70] sm:$0xff]  ;;  %v22_v34 = vld [vmem:[%s4451_s0 + $0x38] sm:$0xff] }
  0x9a   :  { %3204 = vmatprep.subr.bf16.mxu1 %v3372_v39  ;;  %v2541_v38 = vcombine.high %v21_v32, %v29_v33  ;;  %v2543_v39 = vcombine.high %v22_v34, %v30_v35 }
  0x9b   :  { %2079 = vmatmul.mubr.bf16.gmra.mxu0 %v2552_v40  ;;  %v37_v40 = vld [vmem:[%s4451_s0 + $0xb0] sm:$0xff] }
  0x9c   :  { %2167 = vmatmul.mubr.bf16.gmra.mxu1 %v2554_v41  ;;  %2086 = vmatprep.mubr.bf16.mxu0 %v2569_v42  ;;  %v45_v41 = vld [vmem:[%s4451_s0 + $0xf0] sm:$0xff]  ;;  %v38_v42 = vld [vmem:[%s4451_s0 + $0xb8] sm:$0xff] }
  0x9d   :  { %2174 = vmatprep.mubr.bf16.mxu1 %v2571_v43  ;;  %3147 = vmatpush3.bf16.msra.mxu0 %v3371_v44  ;;  %v46_v43 = vld [vmem:[%s4451_s0 + $0xf8] sm:$0xff]  ;;  %v2540_v44 = vcombine.low %v21_v32, %v29_v33  ;;  %v2556_v52 = vcombine.low %v37_v40, %v45_v41 }
  0x9e   :  { %3205 = vmatpush3.bf16.msra.mxu1 %v3373_v45  ;;  %3148 = vmatprep.subr.bf16.mxu0 %v3374_v46  ;;  %v2542_v45 = vcombine.low %v22_v34, %v30_v35  ;;  %v2557_v46 = vcombine.high %v37_v40, %v45_v41  ;;  %v117_v35 = vld [vmem:[%s4451_s0 + $0x330] sm:$0x33] }
  0x9f   :  { %3206 = vmatprep.subr.bf16.mxu1 %v3376_v47  ;;  %v2559_v47 = vcombine.high %v38_v42, %v46_v43 }
  0xa1   :  { %3149 = vmatpush3.bf16.msra.mxu0 %v3375_v48  ;;  %v53_v48 = vld [vmem:[%s4451_s0 + $0x130] sm:$0xff] }
  0xa2   :  { %3207 = vmatpush3.bf16.msra.mxu1 %v3377_v53  ;;  %3150 = vmatprep.subr.bf16.mxu0 %v3378_v54  ;;  %v2558_v53 = vcombine.low %v38_v42, %v46_v43  ;;  %v2573_v54 = vcombine.high %v53_v48, %v61_v49 }
  0xa3   :  { %2087 = vmatmul.mubr.bf16.gmra.mxu0 %v2568_v55  ;;  %3208 = vmatprep.subr.bf16.mxu1 %v3380_v56  ;;  %v2575_v55 = vcombine.high %v54_v50, %v62_v51  ;;  %v69_v56 = vld [vmem:[%s4451_s0 + $0x1b0] sm:$0xff] }
  0xa4   :  { %2175 = vmatmul.mubr.bf16.gmra.mxu1 %v2570_v57  ;;  %2094 = vmatprep.mubr.bf16.mxu0 %v2585_v58  ;;  %v77_v57 = vld [vmem:[%s4451_s0 + $0x1f0] sm:$0xff]  ;;  %v70_v58 = vld [vmem:[%s4451_s0 + $0x1b8] sm:$0xff] }
  0xa5   :  { %2182 = vmatprep.mubr.bf16.mxu1 %v2587_v59  ;;  %3151 = vmatpush3.bf16.msra.mxu0 %v3379_v60  ;;  %v78_v59 = vld [vmem:[%s4451_s0 + $0x1f8] sm:$0xff]  ;;  %v2572_v60 = vcombine.low %v53_v48, %v61_v49  ;;  %v2588_v4 = vcombine.low %v69_v56, %v77_v57 }
  0xa6   :  { %3209 = vmatpush3.bf16.msra.mxu1 %v3381_v61  ;;  %3152 = vmatprep.subr.bf16.mxu0 %v3382_v62  ;;  %v2574_v61 = vcombine.low %v54_v50, %v62_v51  ;;  %v2589_v62 = vcombine.high %v69_v56, %v77_v57 }
  0xa7   :  { %3210 = vmatprep.subr.bf16.mxu1 %v3384_v63  ;;  %v2591_v63 = vcombine.high %v70_v58, %v78_v59 }
  0xa9   :  { %3153 = vmatpush3.bf16.msra.mxu0 %v3383_v3  ;;  %v94_v3 = vld [vmem:[%s4451_s0 + $0x278] sm:$0xff] }
  0xaa   :  { %3211 = vmatpush3.bf16.msra.mxu1 %v3385_v5  ;;  %3154 = vmatprep.subr.bf16.mxu0 %v3386_v6  ;;  %v2590_v5 = vcombine.low %v70_v58, %v78_v59  ;;  %v2605_v6 = vcombine.high %v85_v0, %v93_v1 }
  0xab   :  { %2095 = vmatmul.mubr.bf16.gmra.mxu0 %v2584_v7  ;;  %3212 = vmatprep.subr.bf16.mxu1 %v3388_v8  ;;  %v2607_v7 = vcombine.high %v86_v2, %v94_v3 }
  0xac   :  { %2183 = vmatmul.mubr.bf16.gmra.mxu1 %v2586_v9  ;;  %2102 = vmatprep.mubr.bf16.mxu0 %v2601_v10  ;;  %v4129_v10 = vld [vmem:[%s4452_s2] ss:$0 sm:$0xff] }
  0xad   :  { %2190 = vmatprep.mubr.bf16.mxu1 %v2603_v11  ;;  %3155 = vmatpush3.bf16.msra.mxu0 %v3387_v12  ;;  %v101_v12 = vld [vmem:[%s4451_s0 + $0x2b0] sm:$0xff] }
  0xae   :  { %3213 = vmatpush3.bf16.msra.mxu1 %v3389_v13  ;;  %3156 = vmatprep.subr.bf16.mxu0 %v3394_v14  ;;  %v109_v13 = vld [vmem:[%s4451_s0 + $0x2f0] sm:$0xff] }
  0xaf   :  { %3214 = vmatprep.subr.bf16.mxu1 %v3396_v15  ;;  %v2620_v42 = vcombine.low %v101_v12, %v109_v13 }
  0xb1   :  { %3157 = vmatpush3.bf16.msra.mxu0 %v3395_v18 }
  0xb2   :  { %3215 = vmatpush3.bf16.msra.mxu1 %v3397_v21 }
  0xb3   :  { %2103 = vmatmul.mubr.bf16.gmra.mxu0 %v2600_v22 }
  0xb4   :  { %2191 = vmatmul.mubr.bf16.gmra.mxu1 %v2602_v23  ;;  %2110 = vmatprep.mubr.bf16.mxu0 %v2617_v24  ;;  %v2606_v23 = vcombine.low %v86_v2, %v94_v3  ;;  %v2621_v24 = vcombine.high %v101_v12, %v109_v13 }
  0xb5   :  { %2198 = vmatprep.mubr.bf16.mxu1 %v2619_v25 }
  0xbb   :  { %2111 = vmatmul.mubr.bf16.gmra.mxu0 %v2616_v28 }
  0xbc   :  { %2199 = vmatmul.mubr.bf16.gmra.mxu1 %v2618_v29  ;;  %2118 = vmatprep.mubr.bf16.mxu0 %v2633_v30 }
  0xbd   :  { %2206 = vmatprep.mubr.bf16.mxu1 %v2635_v31 }
  0xc3   :  { %2119 = vmatmul.mubr.bf16.gmra.mxu0 %v2632_v36 }
  0xc4   :  { %2207 = vmatmul.mubr.bf16.gmra.mxu1 %v2634_v37  ;;  %2246 = vmatprep.mubr.bf16.mxu0 %v2541_v38 }
  0xc5   :  { %2334 = vmatprep.mubr.bf16.mxu1 %v2543_v39  ;;  %v118_v39 = vld [vmem:[%s4451_s0 + $0x338] sm:$0x33] }
  0xc6   :  { %v2639_v48 = vcombine.high %v118_v39, %v118_v39  ;;  %v2638_v1 = vcombine.low %v118_v39, %v118_v39 }
  0xcb   :  { %2247 = vmatmul.mubr.bf16.vlgmr.msra.gmra.mxu0 %v2540_v44 }
  0xcc   :  { %2335 = vmatmul.mubr.bf16.vlgmr.msra.gmra.mxu1 %v2542_v45  ;;  %2254 = vmatprep.mubr.bf16.mxu0 %v2557_v46  ;;  %v2622_v45 = vcombine.low %v102_v16, %v110_v17  ;;  %v2637_v46 = vcombine.high %v117_v35, %v117_v35 }
  0xcd   :  { %2342 = vmatprep.mubr.bf16.mxu1 %v2559_v47 }
  0xd3   :  { %2255 = vmatmul.mubr.bf16.gmra.mxu0 %v2556_v52 }
  0xd4   :  { %2343 = vmatmul.mubr.bf16.gmra.mxu1 %v2558_v53  ;;  %2262 = vmatprep.mubr.bf16.mxu0 %v2573_v54 }
  0xd5   :  { %2350 = vmatprep.mubr.bf16.mxu1 %v2575_v55 }
  0xdb   :  { %2263 = vmatmul.mubr.bf16.gmra.mxu0 %v2572_v60 }
  0xdc   :  { %2351 = vmatmul.mubr.bf16.gmra.mxu1 %v2574_v61  ;;  %2270 = vmatprep.mubr.bf16.mxu0 %v2589_v62  ;;  %v2636_v62 = vcombine.low %v117_v35, %v117_v35 }
  0xdd   :  { %2358 = vmatprep.mubr.bf16.mxu1 %v2591_v63 }
  0xe3   :  { %v2810_v8 = vpop.f32.mrf.mxu0  ;;  %2271 = vmatmul.mubr.bf16.gmra.mxu0 %v2588_v4 }
  0xe4   :  { %v2868_v9 = vpop.f32.mrf.mxu1  ;;  %2359 = vmatmul.mubr.bf16.gmra.mxu1 %v2590_v5  ;;  %2278 = vmatprep.mubr.bf16.mxu0 %v2605_v6 }
  0xe5   :  { %v2811_v11 = vpop.f32.mrf.mxu0  ;;  %2366 = vmatprep.mubr.bf16.mxu1 %v2607_v7 }
  0xe6   :  { %v2812_v14 = vadd.f32 %v2811_v11, %v2810_v8  ;;  %v2869_v15 = vpop.f32.mrf.mxu1 }
  0xe7   :  { %v2870_v18 = vadd.f32 %v2869_v15, %v2868_v9  ;;  %v2813_v19 = vpop.f32.mrf.mxu0 }
  0xe8   :  { %v1721_v21 = vadd.f32 %v2812_v14, %v4129_v10  ;;  %v2871_v22 = vpop.f32.mrf.mxu1 }
  0xe9   :  { %v2814_v25 = vpop.f32.mrf.mxu0 }
  0xea   :  { %v4144_v27 = vadd.f32 %v2870_v18, %v1721_v21  ;;  %v2815_v28 = vadd.f32 %v2814_v25, %v2813_v19  ;;  %v2872_v29 = vpop.f32.mrf.mxu1 }
  0xeb   :  { %v2873_v30 = vadd.f32 %v2872_v29, %v2871_v22  ;;  %v2816_v31 = vpop.f32.mrf.mxu0  ;;  %2279 = vmatmul.mubr.bf16.gmra.mxu0 %v2604_v20 }
  0xec   :  { %v1724_v32 = vadd.f32 %v2815_v28, %v4129_v10  ;;  %v2874_v33 = vpop.f32.mrf.mxu1  ;;  %2367 = vmatmul.mubr.bf16.gmra.mxu1 %v2606_v23  ;;  %2286 = vmatprep.mubr.bf16.mxu0 %v2621_v24 }
  0xed   :  { %v2817_v34 = vpop.f32.mrf.mxu0  ;;  %2374 = vmatprep.mubr.bf16.mxu1 %v2623_v26 }
  0xee   :  { %v4150_v36 = vadd.f32 %v2873_v30, %v1724_v32  ;;  %v2818_v37 = vadd.f32 %v2817_v34, %v2816_v31  ;;  %v2875_v38 = vpop.f32.mrf.mxu1 }
  0xef   :  { %v2876_v40 = vadd.f32 %v2875_v38, %v2874_v33  ;;  %v2819_v41 = vpop.f32.mrf.mxu0 }
  0xf0   :  { %v1729_v43 = vadd.f32 %v2818_v37, %v4129_v10  ;;  %v2877_v44 = vpop.f32.mrf.mxu1 }
  0xf1   :  { %v2820_v47 = vpop.f32.mrf.mxu0 }
  0xf2   :  { %v4156_v49 = vadd.f32 %v2876_v40, %v1729_v43  ;;  %v2821_v50 = vadd.f32 %v2820_v47, %v2819_v41  ;;  %v2878_v51 = vpop.f32.mrf.mxu1 }
  0xf3   :  { %v2879_v52 = vadd.f32 %v2878_v51, %v2877_v44  ;;  %v2822_v53 = vpop.f32.mrf.mxu0  ;;  %2287 = vmatmul.mubr.bf16.gmra.mxu0 %v2620_v42 }
  0xf4   :  { %v1732_v54 = vadd.f32 %v2821_v50, %v4129_v10  ;;  %v2880_v55 = vpop.f32.mrf.mxu1  ;;  %2375 = vmatmul.mubr.bf16.gmra.mxu1 %v2622_v45  ;;  %2294 = vmatprep.mubr.bf16.mxu0 %v2637_v46 }
  0xf5   :  { %v2823_v56 = vpop.f32.mrf.mxu0  ;;  %2382 = vmatprep.mubr.bf16.mxu1 %v2639_v48 }
  0xf6   :  { %v4159_v57 = vadd.f32 %v2879_v52, %v1732_v54  ;;  %v2824_v58 = vadd.f32 %v2823_v56, %v2822_v53  ;;  %v2881_v59 = vpop.f32.mrf.mxu1 }
  0xf7   :  { %v2882_v60 = vadd.f32 %v2881_v59, %v2880_v55  ;;  %v2825_v61 = vpop.f32.mrf.mxu0 }
  0xf8   :  { %v1737_v63 = vadd.f32 %v2824_v58, %v4129_v10  ;;  %v2883_v0 = vpop.f32.mrf.mxu1 }
  0xf9   :  { %v2826_v2 = vpop.f32.mrf.mxu0 }
  0xfa   :  { %v4162_v3 = vadd.f32 %v2882_v60, %v1737_v63  ;;  %v2827_v4 = vadd.f32 %v2826_v2, %v2825_v61  ;;  %v2884_v5 = vpop.f32.mrf.mxu1 }
  0xfb   :  { %v2885_v6 = vadd.f32 %v2884_v5, %v2883_v0  ;;  %v2828_v7 = vpop.f32.mrf.mxu0  ;;  %2295 = vmatmul.mubr.bf16.gmra.mxu0 %v2636_v62 }
  0xfc   :  { %v1740_v8 = vadd.f32 %v2827_v4, %v4129_v10  ;;  %v2886_v9 = vpop.f32.mrf.mxu1  ;;  %2383 = vmatmul.mubr.bf16.gmra.mxu1 %v2638_v1 }
  0xfd   :  { %v2829_v11 = vpop.f32.mrf.mxu0 }
  0xfe   :  { %v4165_v12 = vadd.f32 %v2885_v6, %v1740_v8  ;;  %v2830_v13 = vadd.f32 %v2829_v11, %v2828_v7  ;;  %v2887_v14 = vpop.f32.mrf.mxu1 }
  0xff   :  { %v2888_v15 = vadd.f32 %v2887_v14, %v2886_v9  ;;  %v2831_v16 = vpop.f32.mrf.mxu0 }
 0x100   :  { %v1745_v17 = vadd.f32 %v2830_v13, %v4129_v10  ;;  %v2889_v18 = vpop.f32.mrf.mxu1 }
 0x101   :  { %v2832_v19 = vpop.f32.mrf.mxu0 }
 0x102   :  { %v4168_v20 = vadd.f32 %v2888_v15, %v1745_v17  ;;  %v2833_v21 = vadd.f32 %v2832_v19, %v2831_v16  ;;  %v2890_v22 = vpop.f32.mrf.mxu1 }
 0x103   :  { %v2891_v23 = vadd.f32 %v2890_v22, %v2889_v18  ;;  %v2834_v24 = vpop.f32.mrf.mxu0 }
 0x104   :  { %v1748_v25 = vadd.f32 %v2833_v21, %v4129_v10  ;;  %v2892_v26 = vpop.f32.mrf.mxu1 }
 0x105   :  { %v2835_v28 = vpop.f32.mrf.mxu0 }
 0x106   :  { %v4171_v29 = vadd.f32 %v2891_v23, %v1748_v25  ;;  %v2836_v30 = vadd.f32 %v2835_v28, %v2834_v24  ;;  %v2893_v31 = vpop.f32.mrf.mxu1 }
 0x107   :  { %v2894_v32 = vadd.f32 %v2893_v31, %v2892_v26  ;;  %v2837_v33 = vpop.f32.mrf.mxu0 }
 0x108   :  { %v1753_v34 = vadd.f32 %v2836_v30, %v4129_v10  ;;  %v2895_v35 = vpop.f32.mrf.mxu1 }
 0x109   :  { %v2838_v37 = vpop.f32.mrf.mxu0 }
 0x10a   :  { %v4174_v38 = vadd.f32 %v2894_v32, %v1753_v34  ;;  %v2839_v39 = vadd.f32 %v2838_v37, %v2837_v33  ;;  %v2896_v40 = vpop.f32.mrf.mxu1 }
 0x10b   :  { %v2897_v41 = vadd.f32 %v2896_v40, %v2895_v35  ;;  %v2840_v42 = vpop.f32.mrf.mxu0 }
 0x10c   :  { %v1756_v43 = vadd.f32 %v2839_v39, %v4129_v10  ;;  %v2898_v44 = vpop.f32.mrf.mxu1 }
 0x10d   :  { %v2841_v45 = vpop.f32.mrf.mxu0 }
 0x10e   :  { %v4177_v46 = vadd.f32 %v2897_v41, %v1756_v43  ;;  %v2842_v47 = vadd.f32 %v2841_v45, %v2840_v42  ;;  %v2899_v48 = vpop.f32.mrf.mxu1 }
 0x10f   :  { %v2900_v50 = vadd.f32 %v2899_v48, %v2898_v44  ;;  %v2843_v51 = vpop.f32.mrf.mxu0 }
 0x110   :  { %v1761_v52 = vadd.f32 %v2842_v47, %v4129_v10  ;;  %v2901_v53 = vpop.f32.mrf.mxu1 }
 0x111   :  { %v2844_v54 = vpop.f32.mrf.mxu0 }
 0x112   :  { %v4180_v55 = vadd.f32 %v2900_v50, %v1761_v52  ;;  %v2845_v56 = vadd.f32 %v2844_v54, %v2843_v51  ;;  %v2902_v58 = vpop.f32.mrf.mxu1 }
 0x113   :  { %v2903_v59 = vadd.f32 %v2902_v58, %v2901_v53  ;;  %v2846_v60 = vpop.f32.mrf.mxu0 }
 0x114   :  { %v1764_v61 = vadd.f32 %v2845_v56, %v4129_v10  ;;  %v2904_v62 = vpop.f32.mrf.mxu1 }
 0x115   :  { %v2847_v63 = vpop.f32.mrf.mxu0 }
 0x116   :  { %v4183_v0 = vadd.f32 %v2903_v59, %v1764_v61  ;;  %v2848_v1 = vadd.f32 %v2847_v63, %v2846_v60  ;;  %v2905_v2 = vpop.f32.mrf.mxu1 }
 0x117   :  { %v2906_v4 = vadd.f32 %v2905_v2, %v2904_v62  ;;  %v2849_v5 = vpop.f32.mrf.mxu0 }
 0x118   :  { %v1769_v6 = vadd.f32 %v2848_v1, %v4129_v10  ;;  %v2907_v7 = vpop.f32.mrf.mxu1 }
 0x119   :  { %v2850_v8 = vpop.f32.mrf.mxu0 }
 0x11a   :  { %v4186_v9 = vadd.f32 %v2906_v4, %v1769_v6  ;;  %v2908_v11 = vpop.f32.mrf.mxu1 }
 0x11b   :  { %v2926_v13 = vpop.f32.mrf.mxu0 }
 0x11c   :  { %v2984_v14 = vpop.f32.mrf.mxu1 }
 0x11d   :  { %v2927_v15 = vpop.f32.mrf.mxu0 }
 0x11e   :  { %v2928_v16 = vadd.f32 %v2927_v15, %v2926_v13  ;;  %v2985_v17 = vpop.f32.mrf.mxu1 }
 0x11f   :  { %v2986_v18 = vadd.f32 %v2985_v17, %v2984_v14  ;;  %v2929_v19 = vpop.f32.mrf.mxu0 }
 0x120   :  { %v1897_v21 = vadd.f32 %v2928_v16, %v4144_v27  ;;  %v2987_v22 = vpop.f32.mrf.mxu1 }
 0x121   :  { %v2930_v23 = vpop.f32.mrf.mxu0 }
 0x122   :  { %v4189_v24 = vadd.f32 %v2986_v18, %v1897_v21  ;;  %v2931_v25 = vadd.f32 %v2930_v23, %v2929_v19  ;;  %v2988_v10 = vpop.f32.mrf.mxu1 }
 0x123   :  { %v2989_v26 = vadd.f32 %v2988_v10, %v2987_v22  ;;  %v2932_v28 = vpop.f32.mrf.mxu0 }
 0x124   :  { %v1900_v30 = vadd.f32 %v2931_v25, %v4150_v36  ;;  %v2990_v31 = vpop.f32.mrf.mxu1 }
 0x125   :  { %v2933_v32 = vpop.f32.mrf.mxu0 }
 0x126   :  { %v4192_v33 = vadd.f32 %v2989_v26, %v1900_v30  ;;  %v2934_v34 = vadd.f32 %v2933_v32, %v2932_v28  ;;  %v2991_v35 = vpop.f32.mrf.mxu1 }
 0x127   :  { %v2992_v37 = vadd.f32 %v2991_v35, %v2990_v31  ;;  %v2935_v39 = vpop.f32.mrf.mxu0 }
 0x128   :  { %v1905_v27 = vadd.f32 %v2934_v34, %v4156_v49  ;;  %v2993_v40 = vpop.f32.mrf.mxu1 }
 0x129   :  { %v2936_v41 = vpop.f32.mrf.mxu0 }
 0x12a   :  { %v4195_v42 = vadd.f32 %v2992_v37, %v1905_v27  ;;  %v2937_v43 = vadd.f32 %v2936_v41, %v2935_v39  ;;  %v2994_v44 = vpop.f32.mrf.mxu1 }
 0x12b   :  { %v2995_v45 = vadd.f32 %v2994_v44, %v2993_v40  ;;  %v2938_v47 = vpop.f32.mrf.mxu0 }
 0x12c   :  { %v1908_v36 = vadd.f32 %v2937_v43, %v4159_v57  ;;  %v2996_v48 = vpop.f32.mrf.mxu1 }
 0x12d   :  { %v2939_v50 = vpop.f32.mrf.mxu0 }
 0x12e   :  { %v4198_v51 = vadd.f32 %v2995_v45, %v1908_v36  ;;  %v2940_v52 = vadd.f32 %v2939_v50, %v2938_v47  ;;  %v2997_v53 = vpop.f32.mrf.mxu1 }
 0x12f   :  { %v2998_v54 = vadd.f32 %v2997_v53, %v2996_v48  ;;  %v2941_v56 = vpop.f32.mrf.mxu0 }
 0x130   :  { %v1913_v49 = vadd.f32 %v2940_v52, %v4162_v3  ;;  %v2999_v58 = vpop.f32.mrf.mxu1 }
 0x131   :  { %v2942_v59 = vpop.f32.mrf.mxu0 }
 0x132   :  { %v4201_v60 = vadd.f32 %v2998_v54, %v1913_v49  ;;  %v2943_v61 = vadd.f32 %v2942_v59, %v2941_v56  ;;  %v3000_v62 = vpop.f32.mrf.mxu1 }
 0x133   :  { %v3001_v63 = vadd.f32 %v3000_v62, %v2999_v58  ;;  %v2944_v1 = vpop.f32.mrf.mxu0 }
 0x134   :  { %v1916_v57 = vadd.f32 %v2943_v61, %v4165_v12  ;;  %v3002_v2 = vpop.f32.mrf.mxu1 }
 0x135   :  { %v2945_v4 = vpop.f32.mrf.mxu0 }
 0x136   :  { %v4204_v5 = vadd.f32 %v3001_v63, %v1916_v57  ;;  %v2946_v6 = vadd.f32 %v2945_v4, %v2944_v1  ;;  %v3003_v7 = vpop.f32.mrf.mxu1 }
 0x137   :  { %v3004_v8 = vadd.f32 %v3003_v7, %v3002_v2  ;;  %v2947_v11 = vpop.f32.mrf.mxu0 }
 0x138   :  { %v1921_v3 = vadd.f32 %v2946_v6, %v4168_v20  ;;  %v3005_v13 = vpop.f32.mrf.mxu1 }
 0x139   :  { %v2948_v14 = vpop.f32.mrf.mxu0 }
 0x13a   :  { %v4207_v15 = vadd.f32 %v3004_v8, %v1921_v3  ;;  %v2949_v16 = vadd.f32 %v2948_v14, %v2947_v11  ;;  %v3006_v17 = vpop.f32.mrf.mxu1 }
 0x13b   :  { %v3007_v18 = vadd.f32 %v3006_v17, %v3005_v13  ;;  %v2950_v19 = vpop.f32.mrf.mxu0 }
 0x13c   :  { %v1924_v12 = vadd.f32 %v2949_v16, %v4171_v29  ;;  %v3008_v21 = vpop.f32.mrf.mxu1 }
 0x13d   :  { %v2951_v22 = vpop.f32.mrf.mxu0 }
 0x13e   :  { %v4210_v23 = vadd.f32 %v3007_v18, %v1924_v12  ;;  %v2952_v25 = vadd.f32 %v2951_v22, %v2950_v19  ;;  %v3009_v10 = vpop.f32.mrf.mxu1 }
 0x13f   :  { %v3010_v26 = vadd.f32 %v3009_v10, %v3008_v21  ;;  %v2953_v28 = vpop.f32.mrf.mxu0 }
 0x140   :  { %v1929_v20 = vadd.f32 %v2952_v25, %v4174_v38  ;;  %v3011_v30 = vpop.f32.mrf.mxu1 }
 0x141   :  { %v2954_v31 = vpop.f32.mrf.mxu0 }
 0x142   :  { %v4213_v32 = vadd.f32 %v3010_v26, %v1929_v20  ;;  %v2955_v34 = vadd.f32 %v2954_v31, %v2953_v28  ;;  %v3012_v35 = vpop.f32.mrf.mxu1 }
 0x143   :  { %v3013_v37 = vadd.f32 %v3012_v35, %v3011_v30  ;;  %v2956_v39 = vpop.f32.mrf.mxu0 }
 0x144   :  { %v1932_v29 = vadd.f32 %v2955_v34, %v4177_v46  ;;  %v3014_v27 = vpop.f32.mrf.mxu1 }
 0x145   :  { %v2957_v40 = vpop.f32.mrf.mxu0 }
 0x146   :  { %v4216_v41 = vadd.f32 %v3013_v37, %v1932_v29  ;;  %v2958_v43 = vadd.f32 %v2957_v40, %v2956_v39  ;;  %v3015_v44 = vpop.f32.mrf.mxu1 }
 0x147   :  { %v3016_v45 = vadd.f32 %v3015_v44, %v3014_v27  ;;  %v2959_v47 = vpop.f32.mrf.mxu0 }
 0x148   :  { %4454 = vst [vmem:[#allocation2_spill] sm:$0xff] %v4216_v41  ;;  %v1937_v38 = vadd.f32 %v2958_v43, %v4180_v55  ;;  %v3017_v36 = vpop.f32.mrf.mxu1 }
 0x149   :  { %v2960_v48 = vpop.f32.mrf.mxu0 }
 0x14a   :  { %v4219_v50 = vadd.f32 %v3016_v45, %v1937_v38  ;;  %v2961_v52 = vadd.f32 %v2960_v48, %v2959_v47  ;;  %v3018_v53 = vpop.f32.mrf.mxu1 }
 0x14b   :  { %v3019_v54 = vadd.f32 %v3018_v53, %v3017_v36  ;;  %v2962_v56 = vpop.f32.mrf.mxu0 }
 0x14c   :  { %4455 = vst [vmem:[#allocation3_spill] sm:$0xff] %v4219_v50  ;;  %v1940_v46 = vadd.f32 %v2961_v52, %v4183_v0  ;;  %v3020_v49 = vpop.f32.mrf.mxu1 }
 0x14d   :  { %v2963_v58 = vpop.f32.mrf.mxu0 }
 0x14e   :  { %v4222_v59 = vadd.f32 %v3019_v54, %v1940_v46  ;;  %v2964_v61 = vadd.f32 %v2963_v58, %v2962_v56  ;;  %v3021_v62 = vpop.f32.mrf.mxu1 }
 0x14f   :  { %v3022_v63 = vadd.f32 %v3021_v62, %v3020_v49  ;;  %v2965_v1 = vpop.f32.mrf.mxu0 }
 0x150   :  { %4456 = vst [vmem:[#allocation4_spill] sm:$0xff] %v4222_v59  ;;  %v1945_v55 = vadd.f32 %v2964_v61, %v4186_v9  ;;  %v3023_v57 = vpop.f32.mrf.mxu1 }
 0x151   :  { %v2966_v2 = vpop.f32.mrf.mxu0 }
 0x152   :  { %v4225_v4 = vadd.f32 %v3022_v63, %v1945_v55  ;;  %v3024_v6 = vpop.f32.mrf.mxu1 }
 0x153   :  { %v3042_v7 = vpop.f32.mrf.mxu0 }
 0x154   :  { %4457 = vst [vmem:[#allocation5_spill] sm:$0xff] %v4225_v4  ;;  %v3100_v8 = vpop.f32.mrf.mxu1 }
 0x155   :  { %v3043_v11 = vpop.f32.mrf.mxu0 }
 0x156   :  { %v3101_v3 = vpop.f32.mrf.mxu1  ;;  %v3044_v4 = vadd.f32 %v3043_v11, %v3042_v7 }
 0x157   :  { %v3045_v0 = vpop.f32.mrf.mxu0 }
 0x158   :  { %v4227_v13 = vpop.f32.mrf.mxu1 }
 0x159   :  { %v3046_v14 = vpop.f32.mrf.mxu0 }
 0x15a   :  { %v3104_v16 = vpop.f32.mrf.mxu1 }
 0x15b   :  { %v3048_v17 = vpop.f32.mrf.mxu0  ;;  %v3105_v11 = vadd.f32 %v3104_v16, %v4227_v13 }
 0x15c   :  { %v4229_v18 = vpop.f32.mrf.mxu1 }
 0x15d   :  { %v3049_v19 = vpop.f32.mrf.mxu0 }
 0x15e   :  { %v4231_v12 = vpop.f32.mrf.mxu1 }
 0x15f   :  { %v3051_v9 = vpop.f32.mrf.mxu0 }
 0x160   :  { %v4233_v21 = vpop.f32.mrf.mxu1 }
 0x161   :  { %v3052_v22 = vpop.f32.mrf.mxu0 }
 0x162   :  { %v4235_v25 = vpop.f32.mrf.mxu1 }
 0x163   :  { %v4237_v10 = vpop.f32.mrf.mxu0 }
 0x164   :  { %v4239_v26 = vpop.f32.mrf.mxu1 }
 0x165   :  { %v4241_v28 = vpop.f32.mrf.mxu0 }
 0x166   :  { %v4243_v20 = vpop.f32.mrf.mxu1  ;;  %v3056_v13 = vadd.f32 %v4241_v28, %v4237_v10 }
 0x167   :  { %v4245_v30 = vpop.f32.mrf.mxu0 }
 0x168   :  { %v4247_v31 = vpop.f32.mrf.mxu1 }
 0x169   :  { %v4249_v34 = vpop.f32.mrf.mxu0 }
 0x16a   :  { %v4251_v35 = vpop.f32.mrf.mxu1  ;;  %v3059_v28 = vadd.f32 %v4249_v34, %v4245_v30 }
 0x16b   :  { %v4253_v37 = vpop.f32.mrf.mxu0 }
 0x16c   :  { %v4255_v39 = vpop.f32.mrf.mxu1 }
 0x16d   :  { %v4257_v29 = vpop.f32.mrf.mxu0 }
 0x16e   :  { %v4259_v27 = vpop.f32.mrf.mxu1 }
 0x16f   :  { %v4261_v40 = vpop.f32.mrf.mxu0 }
 0x170   :  { %v4263_v43 = vpop.f32.mrf.mxu1 }
 0x171   :  { %v4265_v44 = vpop.f32.mrf.mxu0 }
 0x172   :  { %v4267_v45 = vpop.f32.mrf.mxu1 }
 0x173   :  { %v4269_v47 = vpop.f32.mrf.mxu0 }
 0x174   :  { %v4271_v38 = vpop.f32.mrf.mxu1 }
 0x175   :  { %v4273_v36 = vpop.f32.mrf.mxu0 }
 0x176   :  { %v4275_v48 = vpop.f32.mrf.mxu1 }
 0x177   :  { %v4277_v52 = vpop.f32.mrf.mxu0 }
 0x178   :  { %v4279_v53 = vpop.f32.mrf.mxu1 }
 0x179   :  { %4458 = vst [vmem:[#allocation6_spill] sm:$0xff] %v4279_v53  ;;  %v4281_v54 = vpop.f32.mrf.mxu0 }
 0x17a   :  { %v4283_v56 = vpop.f32.mrf.mxu1 }
 0x17b   :  { %4459 = vst [vmem:[#allocation7_spill] sm:$0xff] %v4283_v56  ;;  %v4285_v46 = vpop.f32.mrf.mxu0 }
 0x17c   :  { %4460 = vst [vmem:[#allocation8_spill] sm:$0xff] %v4285_v46  ;;  %v4287_v49 = vpop.f32.mrf.mxu1 }
 0x17d   :  { %4461 = vst [vmem:[#allocation9_spill] sm:$0xff] %v4287_v49  ;;  %v4289_v58 = vpop.f32.mrf.mxu0 }
 0x17e   :  { %4462 = vst [vmem:[#allocation10_spill] sm:$0xff] %v4289_v58  ;;  %v4291_v61 = vpop.f32.mrf.mxu1  ;;  %v3047_v58 = vadd.f32 %v3046_v14, %v3045_v0 }
 0x17f   :  { %4463 = vst [vmem:[#allocation11_spill] sm:$0xff] %v4291_v61  ;;  %v4293_v62 = vpop.f32.mrf.mxu0 }
 0x180   :  { %4464 = vst [vmem:[#allocation12_spill] sm:$0xff] %v4293_v62  ;;  %v4295_v63 = vpop.f32.mrf.mxu1  ;;  %v2073_v62 = vadd.f32 %v3044_v4, %v4189_v24 }
 0x181   :  { %4465 = vst [vmem:[#allocation13_spill] sm:$0xff] %v4295_v63  ;;  %v4297_v1 = vpop.f32.mrf.mxu0 }
 0x182   :  { %4466 = vst [vmem:[#allocation14_spill] sm:$0xff] %v4297_v1  ;;  %v4299_v55 = vpop.f32.mrf.mxu1  ;;  %v3102_v1 = vadd.f32 %v3101_v3, %v3100_v8 }
 0x183   :  { %4467 = vst [vmem:[#allocation15_spill] sm:$0xff] %v4299_v55  ;;  %v4301_v57 = vpop.f32.mrf.mxu0 }
 0x184   :  { %4468 = vst [vmem:[#allocation16_spill] sm:$0xff] %v4301_v57  ;;  %v4303_v2 = vpop.f32.mrf.mxu1  ;;  %v2161_v53 = vadd.f32 %v3102_v1, %v2073_v62  ;;  %v2076_v57 = vadd.f32 %v3047_v58, %v4192_v33  ;;  %v3108_v33 = vadd.f32 %v4231_v12, %v4229_v18 }
 0x185   :  { %4469 = vst [vmem:[#allocation17_spill] sm:$0xff] %v4303_v2  ;;  %v4305_v6 = vpop.f32.mrf.mxu0  ;;  %v3050_v2 = vadd.f32 %v3049_v19, %v3048_v17 }
 0x186   :  { %4470 = vst [vmem:[#allocation18_spill] sm:$0xff] %v4305_v6  ;;  %v4307_v59 = vpop.f32.mrf.mxu1  ;;  %v2164_v4 = vadd.f32 %v3105_v11, %v2076_v57 }
 0x187   :  { %4471 = vst [vmem:[#allocation19_spill] sm:$0xff] %v4307_v59  ;;  %v3081_v49 = vpop.f32.mrf.mxu0  ;;  %v3053_v59 = vadd.f32 %v3052_v22, %v3051_v9  ;;  %v2081_v0 = vadd.f32 %v3050_v2, %v4195_v42 }
 0x188   :  { %v3139_v50 = vpop.f32.mrf.mxu1 }
 0x189   :  { %v3082_v61 = vpop.f32.mrf.mxu0  ;;  %v2169_v9 = vadd.f32 %v3108_v33, %v2081_v0  ;;  %v3062_v0 = vadd.f32 %v4257_v29, %v4253_v37 }
 0x18a   :  { %v3140_v63 = vpop.f32.mrf.mxu1 }
 0x18b   :  { %v3158_v46 = vpop.f32.mrf.mxu0  ;;  %v2097_v29 = vadd.f32 %v3062_v0, %v4207_v15 }
 0x18c   :  { %v3216_v56 = vpop.f32.mrf.mxu1 }
 0x18d   :  { %v3159_v55 = vpop.f32.mrf.mxu0 }
 0x18e   :  { %v3160_v41 = vadd.f32 %v3159_v55, %v3158_v46  ;;  %v3217_v6 = vpop.f32.mrf.mxu1 }
 0x18f   :  { %v3161_v7 = vpop.f32.mrf.mxu0  ;;  %v3218_v50 = vadd.f32 %v3217_v6, %v3216_v56  ;;  %v3111_v56 = vadd.f32 %v4235_v25, %v4233_v21  ;;  %v3114_v21 = vadd.f32 %v4243_v20, %v4239_v26  ;;  %v3117_v26 = vadd.f32 %v4251_v35, %v4247_v31 }
 0x190   :  { %v2249_v49 = vadd.f32 %v3160_v41, %v2161_v53  ;;  %v3219_v61 = vpop.f32.mrf.mxu1  ;;  %v2084_v41 = vadd.f32 %v3053_v59, %v4198_v51  ;;  %v2089_v59 = vadd.f32 %v3056_v13, %v4201_v60 }
 0x191   :  { %v3162_v24 = vpop.f32.mrf.mxu0 }
 0x192   :  { %v2337_v8 = vadd.f32 %v3218_v50, %v2249_v49  ;;  %v3163_v3 = vadd.f32 %v3162_v24, %v3161_v7  ;;  %v3220_v14 = vpop.f32.mrf.mxu1  ;;  %v2172_v51 = vadd.f32 %v3111_v56, %v2084_v41  ;;  %v2092_v24 = vadd.f32 %v3059_v28, %v4204_v5 }
 0x193   :  { %v3164_v62 = vpop.f32.mrf.mxu0  ;;  %v3221_v46 = vadd.f32 %v3220_v14, %v3219_v61  ;;  %v2177_v61 = vadd.f32 %v3114_v21, %v2089_v59  ;;  %v3065_v5 = vadd.f32 %v4265_v44, %v4261_v40  ;;  %v3120_v40 = vadd.f32 %v4259_v27, %v4255_v39 }
 0x194   :  { %v2403_v17 = vmul.f32 0.70710677, %v2337_v8  ;;  %v2252_v19 = vadd.f32 %v3163_v3, %v2164_v4  ;;  %v3222_v58 = vpop.f32.mrf.mxu1  ;;  %v2390_v13 = vmul.f32 0.5, %v2337_v8 }
 0x195   :  { %v3165_v16 = vpop.f32.mrf.mxu0  ;;  %v2100_v44 = vadd.f32 %v3065_v5, %v4210_v23  ;;  %v4473_v5 = vld [vmem:[#allocation6_spill] sm:$0xff] }
 0x196   :  { %3402 = verf.f32 %v2403_v17  ;;  %v4318_v42 = vadd.f32 %v3221_v46, %v2252_v19  ;;  %v3166_v22 = vadd.f32 %v3165_v16, %v3164_v62  ;;  %v3223_v53 = vpop.f32.mrf.mxu1  ;;  %v2180_v19 = vadd.f32 %v3117_v26, %v2092_v24 }
 0x197   :  { %v3167_v18 = vpop.f32.mrf.mxu0  ;;  %v3224_v1 = vadd.f32 %v3223_v53, %v3222_v58 }
 0x198   :  { %v2404_v12 = vmul.f32 0.70710677, %v4318_v42  ;;  %v2257_v63 = vadd.f32 %v3166_v22, %v2169_v9  ;;  %v3225_v55 = vpop.f32.mrf.mxu1  ;;  %v2391_v23 = vmul.f32 0.5, %v4318_v42 }
 0x199   :  { %v3168_v10 = vpop.f32.mrf.mxu0 }
 0x19a   :  { %3404 = verf.f32 %v2404_v12  ;;  %v4326_v57 = vadd.f32 %v3224_v1, %v2257_v63  ;;  %v3169_v2 = vadd.f32 %v3168_v10, %v3167_v18  ;;  %v3226_v6 = vpop.f32.mrf.mxu1  ;;  %v2185_v1 = vadd.f32 %v3120_v40, %v2097_v29 }
 0x19b   :  { %v3170_v25 = vpop.f32.mrf.mxu0  ;;  %v3227_v49 = vadd.f32 %v3226_v6, %v3225_v55  ;;  %v3123_v55 = vadd.f32 %v4267_v45, %v4263_v43 }
 0x19c   :  { %v2405_v7 = vmul.f32 0.70710677, %v4326_v57  ;;  %v2260_v11 = vadd.f32 %v3169_v2, %v2172_v51  ;;  %v3228_v50 = vpop.f32.mrf.mxu1  ;;  %v3068_v51 = vadd.f32 %v4273_v36, %v4269_v47 }
 0x19d   :  { %v3171_v60 = vpop.f32.mrf.mxu0  ;;  %v2188_v2 = vadd.f32 %v3123_v55, %v2100_v44 }
 0x19e   :  { %3406 = verf.f32 %v2405_v7  ;;  %v4332_v30 = vadd.f32 %v3227_v49, %v2260_v11  ;;  %v3172_v34 = vadd.f32 %v3171_v60, %v3170_v25  ;;  %v3229_v4 = vpop.f32.mrf.mxu1  ;;  %v3071_v7 = vadd.f32 %v4281_v54, %v4277_v52 }
 0x19f   :  { %v3173_v3 = vpop.f32.mrf.mxu0  ;;  %v3230_v62 = vadd.f32 %v3229_v4, %v3228_v50  ;;  %v2105_v42 = vadd.f32 %v3068_v51, %v4213_v32  ;;  %v2392_v11 = vmul.f32 0.5, %v4326_v57 }
 0x1a0   :  { %v2406_v20 = vmul.f32 0.70710677, %v4332_v30  ;;  %v2265_v14 = vadd.f32 %v3172_v34, %v2177_v61  ;;  %v3231_v33 = vpop.f32.mrf.mxu1  ;;  %v3126_v34 = vadd.f32 %v4275_v48, %v4271_v38  ;;  %v4475_v48 = vld [vmem:[#allocation8_spill] sm:$0xff]  ;;  %v2393_v29 = vmul.f32 0.5, %v4332_v30 }
 0x1a1   :  { %v3174_v17 = vpop.f32.mrf.mxu0 }
 0x1a2   :  { %3408 = verf.f32 %v2406_v20  ;;  %v4341_v46 = vadd.f32 %v3230_v62, %v2265_v14  ;;  %v3175_v58 = vadd.f32 %v3174_v17, %v3173_v3  ;;  %v3232_v41 = vpop.f32.mrf.mxu1  ;;  %v4472_v3 = vld [vmem:[#allocation2_spill] sm:$0xff]  ;;  %v4474_v17 = vld [vmem:[#allocation7_spill] sm:$0xff] }
 0x1a3   :  { %v3403_v37 = vpop.eup %3402  ;;  %v3176_v31 = vpop.f32.mrf.mxu0  ;;  %v3233_v22 = vadd.f32 %v3232_v41, %v3231_v33  ;;  %v2108_v26 = vadd.f32 %v3071_v7, %v4472_v3  ;;  %v2193_v33 = vadd.f32 %v3126_v34, %v2105_v42  ;;  %v3129_v38 = vadd.f32 %v4474_v17, %v4473_v5  ;;  %v4487_v17 = vld [vmem:[#allocation5_spill] sm:$0xff] }
 0x1a4   :  { %v2429_v35 = vadd.f32 1.0, %v3403_v37  ;;  %v2407_v16 = vmul.f32 0.70710677, %v4341_v46  ;;  %v2268_v9 = vadd.f32 %v3175_v58, %v2180_v19  ;;  %v3234_v53 = vpop.f32.mrf.mxu1  ;;  %v4476_v19 = vld [vmem:[#allocation10_spill] sm:$0xff]  ;;  %v2394_v55 = vmul.f32 0.5, %v4341_v46 }
 0x1a5   :  { %v3177_v56 = vpop.f32.mrf.mxu0  ;;  %v3074_v58 = vadd.f32 %v4476_v19, %v4475_v48 }
 0x1a6   :  { %v2442_v18 = vmul.f32 %v2429_v35, %v2390_v13  ;;  %3410 = verf.f32 %v2407_v16  ;;  %v4348_v12 = vadd.f32 %v3233_v22, %v2268_v9  ;;  %v3178_v63 = vadd.f32 %v3177_v56, %v3176_v31  ;;  %v3235_v15 = vpop.f32.mrf.mxu1  ;;  %v4477_v16 = vld [vmem:[#allocation12_spill] sm:$0xff]  ;;  %v4478_v9 = vld [vmem:[#allocation14_spill] sm:$0xff] }
 0x1a7   :  { %v3405_v8 = vpop.eup %3404  ;;  %v3179_v59 = vpop.f32.mrf.mxu0  ;;  %v3236_v21 = vadd.f32 %v3235_v15, %v3234_v53  ;;  %v3077_v22 = vadd.f32 %v4478_v9, %v4477_v16  ;;  %v2196_v56 = vadd.f32 %v3129_v38, %v2108_v26 }
 0x1a8   :  { %v2781_v39 = vpack.c.bf16 %v2442_v18, %v2442_v18  ;;  %v2430_v27 = vadd.f32 1.0, %v3405_v8  ;;  %v2408_v10 = vmul.f32 0.70710677, %v4348_v12  ;;  %v3237_v28 = vpop.f32.mrf.mxu1  ;;  %v2273_v6 = vadd.f32 %v3178_v63, %v2185_v1  ;;  %v4479_v8 = vld [vmem:[#allocation3_spill] sm:$0xff] }
 0x1a9   :  { %v3180_v25 = vpop.f32.mrf.mxu0  ;;  %v2113_v1 = vadd.f32 %v3074_v58, %v4479_v8  ;;  %v2395_v3 = vmul.f32 0.5, %v4348_v12 }
 0x1aa   :  { %2509 = vst.msk [vmem:[%s4453_s3] sm:$0xf] %vm2508_vm0, %v2781_v39  ;;  %v2443_v43 = vmul.f32 %v2430_v27, %v2391_v23  ;;  %3412 = verf.f32 %v2408_v10  ;;  %v3181_v45 = vadd.f32 %v3180_v25, %v3179_v59  ;;  %v3238_v47 = vpop.f32.mrf.mxu1  ;;  %v4364_v49 = vadd.f32 %v3236_v21, %v2273_v6  ;;  %v4481_v6 = vld [vmem:[#allocation11_spill] sm:$0xff]  ;;  %v4482_v25 = vld [vmem:[#allocation4_spill] sm:$0xff] }
 0x1ab   :  { %v3407_v36 = vpop.eup %3406  ;;  %v3182_v50 = vpop.f32.mrf.mxu0  ;;  %v3239_v54 = vadd.f32 %v3238_v47, %v3237_v28  ;;  %v2116_v7 = vadd.f32 %v3077_v22, %v4482_v25  ;;  %v4483_v47 = vld [vmem:[#allocation16_spill] sm:$0xff] }
 0x1ac   :  { %v2782_v61 = vpack.c.bf16 %v2443_v43, %v2443_v43  ;;  %v2431_v60 = vadd.f32 1.0, %v3407_v36  ;;  %v2276_v52 = vadd.f32 %v3181_v45, %v2188_v2  ;;  %v3240_v24 = vpop.f32.mrf.mxu1  ;;  %v2409_v4 = vmul.f32 0.70710677, %v4364_v49  ;;  %v4480_v2 = vld [vmem:[#allocation9_spill] sm:$0xff]  ;;  %v4484_v36 = vld [vmem:[#allocation18_spill] sm:$0xff] }
 0x1ad   :  { %v3183_v0 = vpop.f32.mrf.mxu0  ;;  %v3132_v21 = vadd.f32 %v4481_v6, %v4480_v2  ;;  %v3080_v42 = vadd.f32 %v4484_v36, %v4483_v47 }
 0x1ae   :  { %2510 = vst.msk [vmem:[%s4453_s3 + $0x4] sm:$0xf] %vm2508_vm0, %v2782_v61  ;;  %v2444_v32 = vmul.f32 %v2431_v60, %v2392_v11  ;;  %v4374_v57 = vadd.f32 %v3239_v54, %v2276_v52  ;;  %v3184_v20 = vadd.f32 %v3183_v0, %v3182_v50  ;;  %v3241_v14 = vpop.f32.mrf.mxu1  ;;  %3414 = verf.f32 %v2409_v4  ;;  %v4485_v54 = vld [vmem:[#allocation13_spill] sm:$0xff] }
 0x1af   :  { %v3409_v62 = vpop.eup %3408  ;;  %v3185_v41 = vpop.f32.mrf.mxu0  ;;  %v3242_v40 = vadd.f32 %v3241_v14, %v3240_v24  ;;  %v2201_v52 = vadd.f32 %v3132_v21, %v2113_v1  ;;  %v4486_v24 = vld [vmem:[#allocation15_spill] sm:$0xff]  ;;  %v2121_v38 = vadd.f32 %v3080_v42, %v4487_v17 }
 0x1b0   :  { %v2783_v37 = vpack.c.bf16 %v2444_v32, %v2444_v32  ;;  %v2432_v13 = vadd.f32 1.0, %v3409_v62  ;;  %v2410_v31 = vmul.f32 0.70710677, %v4374_v57  ;;  %v3243_v35 = vpop.f32.mrf.mxu1  ;;  %v2281_v53 = vadd.f32 %v3184_v20, %v2193_v33 }
 0x1b1   :  { %v3186_v44 = vpop.f32.mrf.mxu0  ;;  %v3135_v34 = vadd.f32 %v4486_v24, %v4485_v54 }
 0x1b2   :  { %2511 = vst.msk [vmem:[%s4453_s3 + $0x8] sm:$0xf] %vm2508_vm0, %v2783_v37  ;;  %v2445_v18 = vmul.f32 %v2432_v13, %v2393_v29  ;;  %3416 = verf.f32 %v2410_v31  ;;  %v3187_v63 = vadd.f32 %v3186_v44, %v3185_v41  ;;  %v3244_v30 = vpop.f32.mrf.mxu1  ;;  %v4390_v51 = vadd.f32 %v3242_v40, %v2281_v53  ;;  %v4488_v29 = vld [vmem:[#allocation17_spill] sm:$0xff]  ;;  %v4489_v13 = vld [vmem:[#allocation19_spill] sm:$0xff] }
 0x1b3   :  { %v3411_v15 = vpop.eup %3410  ;;  %v3188_v59 = vpop.f32.mrf.mxu0  ;;  %v3245_v10 = vadd.f32 %v3244_v30, %v3243_v35  ;;  %v2204_v14 = vadd.f32 %v3135_v34, %v2116_v7  ;;  %v3138_v31 = vadd.f32 %v4489_v13, %v4488_v29  ;;  %v2396_v53 = vmul.f32 0.5, %v4364_v49 }
 0x1b4   :  { %v2784_v39 = vpack.c.bf16 %v2445_v18, %v2445_v18  ;;  %v2433_v23 = vadd.f32 1.0, %v3411_v15  ;;  %v2284_v27 = vadd.f32 %v3187_v63, %v2196_v56  ;;  %v3246_v28 = vpop.f32.mrf.mxu1  ;;  %v2411_v43 = vmul.f32 0.70710677, %v4390_v51 }
 0x1b5   :  { %v3189_v45 = vpop.f32.mrf.mxu0  ;;  %v2209_v18 = vadd.f32 %v3138_v31, %v2121_v38 }
 0x1b6   :  { %2512 = vst.msk [vmem:[%s4453_s3 + $0xc] sm:$0xf] %vm2508_vm0, %v2784_v39  ;;  %v2446_v46 = vmul.f32 %v2433_v23, %v2394_v55  ;;  %v4402_v11 = vadd.f32 %v3245_v10, %v2284_v27  ;;  %v3190_v50 = vadd.f32 %v3189_v45, %v3188_v59  ;;  %v3247_v61 = vpop.f32.mrf.mxu1  ;;  %3418 = verf.f32 %v2411_v43 }
 0x1b7   :  { %v3413_v60 = vpop.eup %3412  ;;  %v3191_v4 = vpop.f32.mrf.mxu0  ;;  %v3248_v33 = vadd.f32 %v3247_v61, %v3246_v28  ;;  %v2397_v55 = vmul.f32 0.5, %v4374_v57  ;;  %v2398_v45 = vmul.f32 0.5, %v4390_v51 }
 0x1b8   :  { %v2785_v0 = vpack.c.bf16 %v2446_v46, %v2446_v46  ;;  %v2434_v26 = vadd.f32 1.0, %v3413_v60  ;;  %v2412_v32 = vmul.f32 0.70710677, %v4402_v11  ;;  %v3249_v20 = vpop.f32.mrf.mxu1  ;;  %v2289_v62 = vadd.f32 %v3190_v50, %v2201_v52 }
 0x1b9   :  { %v3192_v5 = vpop.f32.mrf.mxu0  ;;  %v2399_v46 = vmul.f32 0.5, %v4402_v11 }
 0x1ba   :  { %2513 = vst.msk [vmem:[%s4453_s3 + $0x10] sm:$0xf] %vm2508_vm0, %v2785_v0  ;;  %v2447_v48 = vmul.f32 %v2434_v26, %v2395_v3  ;;  %3420 = verf.f32 %v2412_v32  ;;  %v3193_v19 = vadd.f32 %v3192_v5, %v3191_v4  ;;  %v3250_v58 = vpop.f32.mrf.mxu1  ;;  %v2377_v12 = vadd.f32 %v3248_v33, %v2289_v62 }
 0x1bb   :  { %v3194_v41 = vpop.f32.mrf.mxu0  ;;  %v3415_v37 = vpop.eup %3414  ;;  %v3251_v9 = vadd.f32 %v3250_v58, %v3249_v20 }
 0x1bc   :  { %v2786_v35 = vpack.c.bf16 %v2447_v48, %v2447_v48  ;;  %v2292_v16 = vadd.f32 %v3193_v19, %v2204_v14  ;;  %v3252_v22 = vpop.f32.mrf.mxu1  ;;  %v2435_v40 = vadd.f32 1.0, %v3415_v37  ;;  %v2413_v44 = vmul.f32 0.70710677, %v2377_v12 }
 0x1bd   :  { %v3195_v56 = vpop.f32.mrf.mxu0  ;;  %v2400_v54 = vmul.f32 0.5, %v2377_v12 }
 0x1be   :  { %2514 = vst.msk [vmem:[%s4453_s3 + $0x14] sm:$0xf] %vm2508_vm0, %v2786_v35  ;;  %v2380_v63 = vadd.f32 %v3251_v9, %v2292_v16  ;;  %v3196_v30 = vadd.f32 %v3195_v56, %v3194_v41  ;;  %v3253_v15 = vpop.f32.mrf.mxu1  ;;  %v2448_v1 = vmul.f32 %v2435_v40, %v2396_v53  ;;  %3422 = verf.f32 %v2413_v44 }
 0x1bf   :  { %v3417_v8 = vpop.eup %3416  ;;  %v3197_v59 = vpop.f32.mrf.mxu0  ;;  %v3254_v27 = vadd.f32 %v3253_v15, %v3252_v22 }
 0x1c0   :  { %v2436_v39 = vadd.f32 1.0, %v3417_v8  ;;  %v2414_v49 = vmul.f32 0.70710677, %v2380_v63  ;;  %v2297_v23 = vadd.f32 %v3196_v30, %v2209_v18  ;;  %v3255_v10 = vpop.f32.mrf.mxu1  ;;  %v2787_v28 = vpack.c.bf16 %v2448_v1, %v2448_v1 }
 0x1c1   :  { %v3198_v2 = vpop.f32.mrf.mxu0  ;;  %v2401_v11 = vmul.f32 0.5, %v2380_v63 }
 0x1c2   :  { %v2449_v6 = vmul.f32 %v2436_v39, %v2397_v55  ;;  %3424 = verf.f32 %v2414_v49  ;;  %v2385_v21 = vadd.f32 %v3254_v27, %v2297_v23  ;;  %v3256_v25 = vpop.f32.mrf.mxu1  ;;  %2515 = vst.msk [vmem:[%s4453_s3 + $0x18] sm:$0xf] %vm2508_vm0, %v2787_v28 }
 0x1c3   :  { %v3419_v7 = vpop.eup %3418 }
 0x1c4   :  { %v2788_v57 = vpack.c.bf16 %v2449_v6, %v2449_v6  ;;  %v2415_v43 = vmul.f32 0.70710677, %v2385_v21  ;;  %v2437_v47 = vadd.f32 1.0, %v3419_v7  ;;  %v2402_v14 = vmul.f32 0.5, %v2385_v21 }
 0x1c6   :  { %2516 = vst.msk [vmem:[%s4453_s3 + $0x1c] sm:$0xf] %vm2508_vm0, %v2788_v57  ;;  %3426 = verf.f32 %v2415_v43  ;;  %v2450_v42 = vmul.f32 %v2437_v47, %v2398_v45 }
 0x1c7   :  { %v3421_v36 = vpop.eup %3420 }
 0x1c8   :  { %v2438_v50 = vadd.f32 1.0, %v3421_v36  ;;  %v2789_v61 = vpack.c.bf16 %v2450_v42, %v2450_v42 }
 0x1ca   :  { %v2451_v60 = vmul.f32 %v2438_v50, %v2399_v46  ;;  %2517 = vst.msk [vmem:[%s4453_s3 + $0x20] sm:$0xf] %vm2508_vm0, %v2789_v61 }
 0x1cb   :  { %v3423_v51 = vpop.eup %3422 }
 0x1cc   :  { %v2790_v52 = vpack.c.bf16 %v2451_v60, %v2451_v60  ;;  %v2439_v24 = vadd.f32 1.0, %v3423_v51 }
 0x1ce   :  { %2518 = vst.msk [vmem:[%s4453_s3 + $0x24] sm:$0xf] %vm2508_vm0, %v2790_v52  ;;  %v2452_v4 = vmul.f32 %v2439_v24, %v2400_v54 }
 0x1cf   :  { %v3425_v34 = vpop.eup %3424 }
 0x1d0   :  { %v2440_v0 = vadd.f32 1.0, %v3425_v34  ;;  %v2791_v3 = vpack.c.bf16 %v2452_v4, %v2452_v4 }
 0x1d2   :  { %v2453_v26 = vmul.f32 %v2440_v0, %v2401_v11  ;;  %2519 = vst.msk [vmem:[%s4453_s3 + $0x28] sm:$0xf] %vm2508_vm0, %v2791_v3 }
 0x1d3   :  { %v3427_v32 = vpop.eup %3426 }
 0x1d4   :  { %v2792_v20 = vpack.c.bf16 %v2453_v26, %v2453_v26  ;;  %v2441_v62 = vadd.f32 1.0, %v3427_v32 }
 0x1d6   :  { %2520 = vst.msk [vmem:[%s4453_s3 + $0x2c] sm:$0xf] %vm2508_vm0, %v2792_v20  ;;  %v2454_v33 = vmul.f32 %v2441_v62, %v2402_v14 }
 0x1d8   :  { %v2793_v5 = vpack.c.bf16 %v2454_v33, %v2454_v33 }
 0x1da   :  { %2522 = vst.msk [vmem:[%s4453_s3 + $0x30] sm:$0x3] %vm2521_vm1, %v2793_v5 }

// kernel: model_forward.6
= control target key start
LH: loop header
LB: loop body
LE: loop exit
PB: predicated region body
PF: predicated region fallthrough
CT: control target
= control target key end

     0   :  { %vm2936_vm0 = vcmask 519168   ;;  %vm2938_vm1 = vcmask 516096   ;;  %vm2939_vm2 = vsmask.f32 256  ;;  %s4749_s1 = inlined_call_operand.vmem [shape: bf16[4096,64], index: 1, kind: input, shape index: {}]   ;;  %s4750_s0 = inlined_call_operand.vmem [shape: bf16[9,4096], index: 0, kind: input, shape index: {}]   ;;  %s4751_s2 = inlined_call_operand.vmem [shape: f32[1,64], index: 2, kind: input, shape index: {}]   ;;  %s4752_s3 = inlined_call_operand.vmem [shape: bf16[9,64], index: 3, kind: output, shape index: {}]  }
   0x1   :  { %v3593_v0 = vld [vmem:[%s4749_s1 + $0x78] sm:$0xff]   ;;  %v3597_v4 = vld [vmem:[%s4749_s1 + $0x70] sm:$0xff]   ;;  %v3601_v8 = vld [vmem:[%s4749_s1 + $0x68] sm:$0xff]  }
   0x2   :  { %v3594_v1 = vld [vmem:[%s4749_s1 + $0xf8] sm:$0xff]   ;;  %3241 = vmatprep.subr.bf16.mxu0 %v3593_v0  ;;  %v3598_v5 = vld [vmem:[%s4749_s1 + $0xf0] sm:$0xff]   ;;  %v3602_v9 = vld [vmem:[%s4749_s1 + $0xe8] sm:$0xff]  }
   0x3   :  { %v3595_v2 = vld [vmem:[%s4749_s1 + $0x38] sm:$0xff]   ;;  %3263 = vmatprep.subr.bf16.mxu1 %v3594_v1  ;;  %v3599_v6 = vld [vmem:[%s4749_s1 + $0x30] sm:$0xff]   ;;  %v3603_v10 = vld [vmem:[%s4749_s1 + $0x28] sm:$0xff]  }
   0x4   :  { %v3596_v3 = vld [vmem:[%s4749_s1 + $0xb8] sm:$0xff]   ;;  %3242 = vmatpush3.bf16.msra.mxu0 %v3595_v2  ;;  %v3600_v7 = vld [vmem:[%s4749_s1 + $0xb0] sm:$0xff]   ;;  %v3604_v11 = vld [vmem:[%s4749_s1 + $0xa8] sm:$0xff]  }
   0x5   :  { %3264 = vmatpush3.bf16.msra.mxu1 %v3596_v3  ;;  %3243 = vmatprep.subr.bf16.mxu0 %v3597_v4  ;;  %v3605_v12 = vld [vmem:[%s4749_s1 + $0x60] sm:$0xff]   ;;  %v3609_v16 = vld [vmem:[%s4749_s1 + $0x58] sm:$0xff]   ;;  %v3613_v20 = vld [vmem:[%s4749_s1 + $0x50] sm:$0xff]  }
   0x6   :  { %3265 = vmatprep.subr.bf16.mxu1 %v3598_v5  ;;  %v3606_v13 = vld [vmem:[%s4749_s1 + $0xe0] sm:$0xff]   ;;  %v3610_v17 = vld [vmem:[%s4749_s1 + $0xd8] sm:$0xff]   ;;  %v3614_v21 = vld [vmem:[%s4749_s1 + $0xd0] sm:$0xff]  }
   0x7   :  { %v3607_v14 = vld [vmem:[%s4749_s1 + $0x20] sm:$0xff]   ;;  %v3611_v18 = vld [vmem:[%s4749_s1 + $0x18] sm:$0xff]   ;;  %v3615_v22 = vld [vmem:[%s4749_s1 + $0x10] sm:$0xff]  }
   0x8   :  { %3244 = vmatpush3.bf16.msra.mxu0 %v3599_v6  ;;  %v3608_v15 = vld [vmem:[%s4749_s1 + $0xa0] sm:$0xff]   ;;  %v3612_v19 = vld [vmem:[%s4749_s1 + $0x98] sm:$0xff]   ;;  %v3616_v23 = vld [vmem:[%s4749_s1 + $0x90] sm:$0xff]  }
   0x9   :  { %3266 = vmatpush3.bf16.msra.mxu1 %v3600_v7  ;;  %3245 = vmatprep.subr.bf16.mxu0 %v3601_v8  ;;  %v3617_v24 = vld [vmem:[%s4749_s1 + $0x48] sm:$0xff]   ;;  %v3621_v28 = vld [vmem:[%s4749_s1 + $0x40] sm:$0xff]   ;;  %v3625_v40 = vld [vmem:[%s4749_s1 + $0x178] sm:$0xff]  }
   0xa   :  { %3267 = vmatprep.subr.bf16.mxu1 %v3602_v9  ;;  %v3618_v25 = vld [vmem:[%s4749_s1 + $0xc8] sm:$0xff]   ;;  %v3622_v29 = vld [vmem:[%s4749_s1 + $0xc0] sm:$0xff]   ;;  %v3626_v41 = vld [vmem:[%s4749_s1 + $0x1f8] sm:$0xff]  }
   0xb   :  { %v3619_v26 = vld [vmem:[%s4749_s1 + $0x8] sm:$0xff]   ;;  %v3623_v30 = vld [vmem:[%s4749_s1] sm:$0xff]   ;;  %v3627_v42 = vld [vmem:[%s4749_s1 + $0x138] sm:$0xff]  }
   0xc   :  { %3246 = vmatpush3.bf16.msra.mxu0 %v3603_v10  ;;  %v3620_v27 = vld [vmem:[%s4749_s1 + $0x88] sm:$0xff]   ;;  %v3624_v31 = vld [vmem:[%s4749_s1 + $0x80] sm:$0xff]   ;;  %v3628_v43 = vld [vmem:[%s4749_s1 + $0x1b8] sm:$0xff]  }
   0xd   :  { %3268 = vmatpush3.bf16.msra.mxu1 %v3604_v11  ;;  %3247 = vmatprep.subr.bf16.mxu0 %v3605_v12  ;;  %v15_v32 = vld [vmem:[%s4750_s0] sm:$0xff]  ;;  %v16_v34 = vld [vmem:[%s4750_s0 + $0x8] sm:$0xff]  ;;  %v3629_v44 = vld [vmem:[%s4749_s1 + $0x170] sm:$0xff]  }
   0xe   :  { %3269 = vmatprep.subr.bf16.mxu1 %v3606_v13  ;;  %v31_v33 = vld [vmem:[%s4750_s0 + $0x80] sm:$0x11]  ;;  %v32_v37 = vld [vmem:[%s4750_s0 + $0x88] sm:$0x11]  ;;  %v3630_v45 = vld [vmem:[%s4749_s1 + $0x1f0] sm:$0xff]  }
   0xf   :  { %v2949_v35 = vcombine.low %v15_v32, %v31_v33  ;;  %v2950_v36 = vcombine.high %v15_v32, %v31_v33  ;;  %v2951_v38 = vcombine.low %v16_v34, %v32_v37  ;;  %v2952_v39 = vcombine.high %v16_v34, %v32_v37  ;;  %v3631_v46 = vld [vmem:[%s4749_s1 + $0x130] sm:$0xff]   ;;  %v3633_v48 = vld [vmem:[%s4749_s1 + $0x168] sm:$0xff]   ;;  %v3637_v52 = vld [vmem:[%s4749_s1 + $0x160] sm:$0xff]  }
  0x10   :  { %3248 = vmatpush3.bf16.msra.mxu0 %v3607_v14  ;;  %v3632_v47 = vld [vmem:[%s4749_s1 + $0x1b0] sm:$0xff]   ;;  %v3634_v49 = vld [vmem:[%s4749_s1 + $0x1e8] sm:$0xff]   ;;  %v3638_v53 = vld [vmem:[%s4749_s1 + $0x1e0] sm:$0xff]  }
  0x11   :  { %3270 = vmatpush3.bf16.msra.mxu1 %v3608_v15  ;;  %3249 = vmatprep.subr.bf16.mxu0 %v3609_v16  ;;  %v3635_v50 = vld [vmem:[%s4749_s1 + $0x128] sm:$0xff]   ;;  %v3639_v54 = vld [vmem:[%s4749_s1 + $0x120] sm:$0xff]   ;;  %v3641_v56 = vld [vmem:[%s4749_s1 + $0x158] sm:$0xff]  }
  0x12   :  { %3271 = vmatprep.subr.bf16.mxu1 %v3610_v17  ;;  %2294 = vmatprep.mubr.bf16.mxu0 %v2950_v36  ;;  %v3636_v51 = vld [vmem:[%s4749_s1 + $0x1a8] sm:$0xff]   ;;  %v3640_v55 = vld [vmem:[%s4749_s1 + $0x1a0] sm:$0xff]   ;;  %v3642_v57 = vld [vmem:[%s4749_s1 + $0x1d8] sm:$0xff]  }
  0x13   :  { %2335 = vmatprep.mubr.bf16.mxu1 %v2952_v39  ;;  %v3643_v58 = vld [vmem:[%s4749_s1 + $0x118] sm:$0xff]   ;;  %v3645_v60 = vld [vmem:[%s4749_s1 + $0x150] sm:$0xff]   ;;  %v3649_v0 = vld [vmem:[%s4749_s1 + $0x148] sm:$0xff]  }
  0x14   :  { %3250 = vmatpush3.bf16.msra.mxu0 %v3611_v18  ;;  %v3644_v59 = vld [vmem:[%s4749_s1 + $0x198] sm:$0xff]   ;;  %v3646_v61 = vld [vmem:[%s4749_s1 + $0x1d0] sm:$0xff]   ;;  %v3650_v1 = vld [vmem:[%s4749_s1 + $0x1c8] sm:$0xff]  }
  0x15   :  { %3272 = vmatpush3.bf16.msra.mxu1 %v3612_v19  ;;  %3251 = vmatprep.subr.bf16.mxu0 %v3613_v20  ;;  %v3647_v62 = vld [vmem:[%s4749_s1 + $0x110] sm:$0xff]   ;;  %v3651_v2 = vld [vmem:[%s4749_s1 + $0x108] sm:$0xff]   ;;  %v3653_v4 = vld [vmem:[%s4749_s1 + $0x140] sm:$0xff]  }
  0x16   :  { %3273 = vmatprep.subr.bf16.mxu1 %v3614_v21  ;;  %v3648_v63 = vld [vmem:[%s4749_s1 + $0x190] sm:$0xff]   ;;  %v3652_v3 = vld [vmem:[%s4749_s1 + $0x188] sm:$0xff]   ;;  %v3654_v5 = vld [vmem:[%s4749_s1 + $0x1c0] sm:$0xff]  }
  0x17   :  { %v3655_v6 = vld [vmem:[%s4749_s1 + $0x100] sm:$0xff]   ;;  %v17_v8 = vld [vmem:[%s4750_s0 + $0x10] sm:$0xff]  ;;  %v18_v12 = vld [vmem:[%s4750_s0 + $0x18] sm:$0xff] }
  0x18   :  { %3252 = vmatpush3.bf16.msra.mxu0 %v3615_v22  ;;  %v3656_v7 = vld [vmem:[%s4749_s1 + $0x180] sm:$0xff]   ;;  %v33_v9 = vld [vmem:[%s4750_s0 + $0x90] sm:$0x11]  ;;  %v34_v13 = vld [vmem:[%s4750_s0 + $0x98] sm:$0x11] }
  0x19   :  { %3274 = vmatpush3.bf16.msra.mxu1 %v3616_v23  ;;  %3253 = vmatprep.subr.bf16.mxu0 %v3617_v24  ;;  %v2953_v10 = vcombine.low %v17_v8, %v33_v9  ;;  %v2954_v11 = vcombine.high %v17_v8, %v33_v9  ;;  %v2955_v14 = vcombine.low %v18_v12, %v34_v13  ;;  %v3657_v16 = vld [vmem:[%s4749_s1 + $0x278] sm:$0xff]   ;;  %v3661_v20 = vld [vmem:[%s4749_s1 + $0x270] sm:$0xff]   ;;  %v3665_v24 = vld [vmem:[%s4749_s1 + $0x268] sm:$0xff]  }
  0x1a   :  { %3275 = vmatprep.subr.bf16.mxu1 %v3618_v25  ;;  %v2956_v15 = vcombine.high %v18_v12, %v34_v13  ;;  %v3658_v17 = vld [vmem:[%s4749_s1 + $0x2f8] sm:$0xff]   ;;  %v3662_v21 = vld [vmem:[%s4749_s1 + $0x2f0] sm:$0xff]   ;;  %v3666_v25 = vld [vmem:[%s4749_s1 + $0x2e8] sm:$0xff]  }
  0x1b   :  { %v3659_v18 = vld [vmem:[%s4749_s1 + $0x238] sm:$0xff]   ;;  %v3663_v22 = vld [vmem:[%s4749_s1 + $0x230] sm:$0xff]   ;;  %vm2940_vm3 = vmand %vm2938_vm1, %vm2939_vm2 }
  0x1c   :  { %3254 = vmatpush3.bf16.msra.mxu0 %v3619_v26  ;;  %v3660_v19 = vld [vmem:[%s4749_s1 + $0x2b8] sm:$0xff]   ;;  %v3664_v23 = vld [vmem:[%s4749_s1 + $0x2b0] sm:$0xff]   ;;  %v3667_v26 = vld [vmem:[%s4749_s1 + $0x228] sm:$0xff]  }
  0x1d   :  { %3276 = vmatpush3.bf16.msra.mxu1 %v3620_v27  ;;  %3255 = vmatprep.subr.bf16.mxu0 %v3621_v28  ;;  %v3668_v27 = vld [vmem:[%s4749_s1 + $0x2a8] sm:$0xff]   ;;  %v3669_v28 = vld [vmem:[%s4749_s1 + $0x260] sm:$0xff]   ;;  %v3673_v32 = vld [vmem:[%s4749_s1 + $0x258] sm:$0xff]  }
  0x1e   :  { %3277 = vmatprep.subr.bf16.mxu1 %v3622_v29  ;;  %v3670_v29 = vld [vmem:[%s4749_s1 + $0x2e0] sm:$0xff]   ;;  %v3674_v33 = vld [vmem:[%s4749_s1 + $0x2d8] sm:$0xff]   ;;  %v3677_v36 = vld [vmem:[%s4749_s1 + $0x250] sm:$0xff]  }
  0x1f   :  { %v3675_v34 = vld [vmem:[%s4749_s1 + $0x218] sm:$0xff]   ;;  %v3678_v37 = vld [vmem:[%s4749_s1 + $0x2d0] sm:$0xff]  }
  0x20   :  { %3256 = vmatpush3.bf16.msra.mxu0 %v3623_v30  ;;  %v3671_v30 = vld [vmem:[%s4749_s1 + $0x220] sm:$0xff]   ;;  %v3680_v39 = vld [vmem:[%s4749_s1 + $0x290] sm:$0xff]   ;;  %v3705_v8 = vld [vmem:[%s4749_s1 + $0x358] sm:$0xff]  }
  0x21   :  { %3278 = vmatpush3.bf16.msra.mxu1 %v3624_v31  ;;  %3285 = vmatprep.subr.bf16.mxu0 %v3625_v40  ;;  %v3672_v31 = vld [vmem:[%s4749_s1 + $0x2a0] sm:$0xff]   ;;  %v3681_v40 = vld [vmem:[%s4749_s1 + $0x248] sm:$0xff]   ;;  %v3706_v9 = vld [vmem:[%s4749_s1 + $0x3d8] sm:$0xff]  }
  0x22   :  { %3307 = vmatprep.subr.bf16.mxu1 %v3626_v41  ;;  %v3682_v41 = vld [vmem:[%s4749_s1 + $0x2c8] sm:$0xff]   ;;  %v3709_v12 = vld [vmem:[%s4749_s1 + $0x350] sm:$0xff]  }
  0x23   :  { %2295 = vmatmul.mubr.bf16.vlgmr.msra.gmra.mxu0 %v2949_v35  ;;  %v3676_v35 = vld [vmem:[%s4749_s1 + $0x298] sm:$0xff]   ;;  %v3710_v13 = vld [vmem:[%s4749_s1 + $0x3d0] sm:$0xff]  }
  0x24   :  { %2336 = vmatmul.mubr.bf16.vlgmr.msra.gmra.mxu1 %v2951_v38  ;;  %3286 = vmatpush3.bf16.msra.mxu0 %v3627_v42  ;;  %v3679_v38 = vld [vmem:[%s4749_s1 + $0x210] sm:$0xff]   ;;  %v3683_v42 = vld [vmem:[%s4749_s1 + $0x208] sm:$0xff]  }
  0x25   :  { %3308 = vmatpush3.bf16.msra.mxu1 %v3628_v43  ;;  %3287 = vmatprep.subr.bf16.mxu0 %v3629_v44  ;;  %v3684_v43 = vld [vmem:[%s4749_s1 + $0x288] sm:$0xff]   ;;  %v3685_v44 = vld [vmem:[%s4749_s1 + $0x240] sm:$0xff]  }
  0x26   :  { %3309 = vmatprep.subr.bf16.mxu1 %v3630_v45  ;;  %2376 = vmatprep.mubr.bf16.mxu0 %v2954_v11  ;;  %v3686_v45 = vld [vmem:[%s4749_s1 + $0x2c0] sm:$0xff]   ;;  %v3708_v11 = vld [vmem:[%s4749_s1 + $0x398] sm:$0xff]  }
  0x27   :  { %2417 = vmatprep.mubr.bf16.mxu1 %v2956_v15  ;;  %v3712_v15 = vld [vmem:[%s4749_s1 + $0x390] sm:$0xff]  }
  0x28   :  { %3288 = vmatpush3.bf16.msra.mxu0 %v3631_v46  ;;  %v3687_v46 = vld [vmem:[%s4749_s1 + $0x200] sm:$0xff]  }
  0x29   :  { %3310 = vmatpush3.bf16.msra.mxu1 %v3632_v47  ;;  %3289 = vmatprep.subr.bf16.mxu0 %v3633_v48  ;;  %v3688_v47 = vld [vmem:[%s4749_s1 + $0x280] sm:$0xff]  }
  0x2a   :  { %3311 = vmatprep.subr.bf16.mxu1 %v3634_v49  ;;  %v19_v48 = vld [vmem:[%s4750_s0 + $0x20] sm:$0xff] }
  0x2b   :  { %v35_v49 = vld [vmem:[%s4750_s0 + $0xa0] sm:$0x11] }
  0x2c   :  { %3290 = vmatpush3.bf16.msra.mxu0 %v3635_v50  ;;  %v20_v50 = vld [vmem:[%s4750_s0 + $0x28] sm:$0xff] }
  0x2d   :  { %3312 = vmatpush3.bf16.msra.mxu1 %v3636_v51  ;;  %3291 = vmatprep.subr.bf16.mxu0 %v3637_v52  ;;  %v36_v51 = vld [vmem:[%s4750_s0 + $0xa8] sm:$0x11]  ;;  %v2957_v52 = vcombine.low %v19_v48, %v35_v49 }
  0x2e   :  { %3313 = vmatprep.subr.bf16.mxu1 %v3638_v53  ;;  %v2958_v53 = vcombine.high %v19_v48, %v35_v49  ;;  %v3737_v48 = vld [vmem:[%s4749_s1 + $0x458] sm:$0xff]  }
  0x2f   :  { %v3738_v49 = vld [vmem:[%s4749_s1 + $0x4d8] sm:$0xff]  }
  0x30   :  { %3292 = vmatpush3.bf16.msra.mxu0 %v3639_v54  ;;  %v2959_v54 = vcombine.low %v20_v50, %v36_v51 }
  0x31   :  { %3314 = vmatpush3.bf16.msra.mxu1 %v3640_v55  ;;  %3293 = vmatprep.subr.bf16.mxu0 %v3641_v56  ;;  %v2960_v55 = vcombine.high %v20_v50, %v36_v51  ;;  %v3689_v56 = vld [vmem:[%s4749_s1 + $0x378] sm:$0xff]  }
  0x32   :  { %3315 = vmatprep.subr.bf16.mxu1 %v3642_v57  ;;  %v3690_v57 = vld [vmem:[%s4749_s1 + $0x3f8] sm:$0xff]  }
  0x33   :  { %v3739_v50 = vld [vmem:[%s4749_s1 + $0x418] sm:$0xff]  }
  0x34   :  { %3294 = vmatpush3.bf16.msra.mxu0 %v3643_v58  ;;  %v3691_v58 = vld [vmem:[%s4749_s1 + $0x338] sm:$0xff]  }
  0x35   :  { %3316 = vmatpush3.bf16.msra.mxu1 %v3644_v59  ;;  %3295 = vmatprep.subr.bf16.mxu0 %v3645_v60  ;;  %v3692_v59 = vld [vmem:[%s4749_s1 + $0x3b8] sm:$0xff]   ;;  %v3693_v60 = vld [vmem:[%s4749_s1 + $0x370] sm:$0xff]  }
  0x36   :  { %3317 = vmatprep.subr.bf16.mxu1 %v3646_v61  ;;  %v3694_v61 = vld [vmem:[%s4749_s1 + $0x3f0] sm:$0xff]   ;;  %v3740_v51 = vld [vmem:[%s4749_s1 + $0x498] sm:$0xff]  }
  0x38   :  { %3296 = vmatpush3.bf16.msra.mxu0 %v3647_v62  ;;  %v3695_v62 = vld [vmem:[%s4749_s1 + $0x330] sm:$0xff]  }
  0x39   :  { %3318 = vmatpush3.bf16.msra.mxu1 %v3648_v63  ;;  %3297 = vmatprep.subr.bf16.mxu0 %v3649_v0  ;;  %v3696_v63 = vld [vmem:[%s4749_s1 + $0x3b0] sm:$0xff]   ;;  %v3697_v0 = vld [vmem:[%s4749_s1 + $0x368] sm:$0xff]  }
  0x3a   :  { %3319 = vmatprep.subr.bf16.mxu1 %v3650_v1  ;;  %v3698_v1 = vld [vmem:[%s4749_s1 + $0x3e8] sm:$0xff]  }
  0x3c   :  { %3298 = vmatpush3.bf16.msra.mxu0 %v3651_v2  ;;  %v3699_v2 = vld [vmem:[%s4749_s1 + $0x328] sm:$0xff]  }
  0x3d   :  { %3320 = vmatpush3.bf16.msra.mxu1 %v3652_v3  ;;  %3299 = vmatprep.subr.bf16.mxu0 %v3653_v4  ;;  %v3700_v3 = vld [vmem:[%s4749_s1 + $0x3a8] sm:$0xff]   ;;  %v3701_v4 = vld [vmem:[%s4749_s1 + $0x360] sm:$0xff]  }
  0x3e   :  { %3321 = vmatprep.subr.bf16.mxu1 %v3654_v5  ;;  %v3702_v5 = vld [vmem:[%s4749_s1 + $0x3e0] sm:$0xff]  }
  0x40   :  { %3300 = vmatpush3.bf16.msra.mxu0 %v3655_v6  ;;  %v3703_v6 = vld [vmem:[%s4749_s1 + $0x320] sm:$0xff]  }
  0x41   :  { %3322 = vmatpush3.bf16.msra.mxu1 %v3656_v7  ;;  %3329 = vmatprep.subr.bf16.mxu0 %v3657_v16  ;;  %v3704_v7 = vld [vmem:[%s4749_s1 + $0x3a0] sm:$0xff]   ;;  %v3713_v16 = vld [vmem:[%s4749_s1 + $0x348] sm:$0xff]  }
  0x42   :  { %3351 = vmatprep.subr.bf16.mxu1 %v3658_v17  ;;  %v3714_v17 = vld [vmem:[%s4749_s1 + $0x3c8] sm:$0xff]  }
  0x43   :  { %2377 = vmatmul.mubr.bf16.vlgmr.msra.gmra.mxu0 %v2953_v10  ;;  %v3707_v10 = vld [vmem:[%s4749_s1 + $0x318] sm:$0xff]  }
  0x44   :  { %2418 = vmatmul.mubr.bf16.vlgmr.msra.gmra.mxu1 %v2955_v14  ;;  %3330 = vmatpush3.bf16.msra.mxu0 %v3659_v18  ;;  %v3711_v14 = vld [vmem:[%s4749_s1 + $0x310] sm:$0xff]   ;;  %v3715_v18 = vld [vmem:[%s4749_s1 + $0x308] sm:$0xff]  }
  0x45   :  { %3352 = vmatpush3.bf16.msra.mxu1 %v3660_v19  ;;  %3331 = vmatprep.subr.bf16.mxu0 %v3661_v20  ;;  %v3716_v19 = vld [vmem:[%s4749_s1 + $0x388] sm:$0xff]   ;;  %v3717_v20 = vld [vmem:[%s4749_s1 + $0x340] sm:$0xff]  }
  0x46   :  { %3353 = vmatprep.subr.bf16.mxu1 %v3662_v21  ;;  %2458 = vmatprep.mubr.bf16.mxu0 %v2958_v53  ;;  %v3718_v21 = vld [vmem:[%s4749_s1 + $0x3c0] sm:$0xff]   ;;  %v3742_v53 = vld [vmem:[%s4749_s1 + $0x4d0] sm:$0xff]  }
  0x47   :  { %2499 = vmatprep.mubr.bf16.mxu1 %v2960_v55  ;;  %v3744_v55 = vld [vmem:[%s4749_s1 + $0x490] sm:$0xff]  }
  0x48   :  { %3332 = vmatpush3.bf16.msra.mxu0 %v3663_v22  ;;  %v3719_v22 = vld [vmem:[%s4749_s1 + $0x300] sm:$0xff]  }
  0x49   :  { %3354 = vmatpush3.bf16.msra.mxu1 %v3664_v23  ;;  %3333 = vmatprep.subr.bf16.mxu0 %v3665_v24  ;;  %v3720_v23 = vld [vmem:[%s4749_s1 + $0x380] sm:$0xff]   ;;  %v21_v24 = vld [vmem:[%s4750_s0 + $0x30] sm:$0xff] }
  0x4a   :  { %3355 = vmatprep.subr.bf16.mxu1 %v3666_v25  ;;  %v37_v25 = vld [vmem:[%s4750_s0 + $0xb0] sm:$0x11] }
  0x4c   :  { %3334 = vmatpush3.bf16.msra.mxu0 %v3667_v26  ;;  %v22_v26 = vld [vmem:[%s4750_s0 + $0x38] sm:$0xff] }
  0x4d   :  { %3356 = vmatpush3.bf16.msra.mxu1 %v3668_v27  ;;  %3335 = vmatprep.subr.bf16.mxu0 %v3669_v28  ;;  %v2961_v27 = vcombine.low %v21_v24, %v37_v25  ;;  %v2962_v28 = vcombine.high %v21_v24, %v37_v25  ;;  %v3769_v24 = vld [vmem:[%s4749_s1 + $0x558] sm:$0xff]  }
  0x4e   :  { %3357 = vmatprep.subr.bf16.mxu1 %v3670_v29  ;;  %v38_v29 = vld [vmem:[%s4750_s0 + $0xb8] sm:$0x11] }
  0x4f   :  { %v3770_v25 = vld [vmem:[%s4749_s1 + $0x5d8] sm:$0xff]  }
  0x50   :  { %3336 = vmatpush3.bf16.msra.mxu0 %v3671_v30  ;;  %v2963_v30 = vcombine.low %v22_v26, %v38_v29 }
  0x51   :  { %3358 = vmatpush3.bf16.msra.mxu1 %v3672_v31  ;;  %3337 = vmatprep.subr.bf16.mxu0 %v3673_v32  ;;  %v2964_v31 = vcombine.high %v22_v26, %v38_v29  ;;  %v3721_v32 = vld [vmem:[%s4749_s1 + $0x478] sm:$0xff]   ;;  %v3774_v29 = vld [vmem:[%s4749_s1 + $0x5d0] sm:$0xff]  }
  0x52   :  { %3359 = vmatprep.subr.bf16.mxu1 %v3674_v33  ;;  %v3722_v33 = vld [vmem:[%s4749_s1 + $0x4f8] sm:$0xff]  }
  0x53   :  { %v3771_v26 = vld [vmem:[%s4749_s1 + $0x518] sm:$0xff]  }
  0x54   :  { %3338 = vmatpush3.bf16.msra.mxu0 %v3675_v34  ;;  %v3723_v34 = vld [vmem:[%s4749_s1 + $0x438] sm:$0xff]  }
  0x55   :  { %3360 = vmatpush3.bf16.msra.mxu1 %v3676_v35  ;;  %3339 = vmatprep.subr.bf16.mxu0 %v3677_v36  ;;  %v3724_v35 = vld [vmem:[%s4749_s1 + $0x4b8] sm:$0xff]   ;;  %v3725_v36 = vld [vmem:[%s4749_s1 + $0x470] sm:$0xff]  }
  0x56   :  { %3361 = vmatprep.subr.bf16.mxu1 %v3678_v37  ;;  %v3726_v37 = vld [vmem:[%s4749_s1 + $0x4f0] sm:$0xff]  }
  0x58   :  { %3340 = vmatpush3.bf16.msra.mxu0 %v3679_v38  ;;  %v3727_v38 = vld [vmem:[%s4749_s1 + $0x430] sm:$0xff]  }
  0x59   :  { %3362 = vmatpush3.bf16.msra.mxu1 %v3680_v39  ;;  %3341 = vmatprep.subr.bf16.mxu0 %v3681_v40  ;;  %v3728_v39 = vld [vmem:[%s4749_s1 + $0x4b0] sm:$0xff]   ;;  %v3729_v40 = vld [vmem:[%s4749_s1 + $0x468] sm:$0xff]  }
  0x5a   :  { %3363 = vmatprep.subr.bf16.mxu1 %v3682_v41  ;;  %v3730_v41 = vld [vmem:[%s4749_s1 + $0x4e8] sm:$0xff]  }
  0x5c   :  { %3342 = vmatpush3.bf16.msra.mxu0 %v3683_v42  ;;  %v3731_v42 = vld [vmem:[%s4749_s1 + $0x428] sm:$0xff]  }
  0x5d   :  { %3364 = vmatpush3.bf16.msra.mxu1 %v3684_v43  ;;  %3343 = vmatprep.subr.bf16.mxu0 %v3685_v44  ;;  %v3732_v43 = vld [vmem:[%s4749_s1 + $0x4a8] sm:$0xff]   ;;  %v3733_v44 = vld [vmem:[%s4749_s1 + $0x460] sm:$0xff]  }
  0x5e   :  { %3365 = vmatprep.subr.bf16.mxu1 %v3686_v45  ;;  %v3734_v45 = vld [vmem:[%s4749_s1 + $0x4e0] sm:$0xff]  }
  0x60   :  { %3344 = vmatpush3.bf16.msra.mxu0 %v3687_v46  ;;  %v3735_v46 = vld [vmem:[%s4749_s1 + $0x420] sm:$0xff]  }
  0x61   :  { %3366 = vmatpush3.bf16.msra.mxu1 %v3688_v47  ;;  %3373 = vmatprep.subr.bf16.mxu0 %v3689_v56  ;;  %v3736_v47 = vld [vmem:[%s4749_s1 + $0x4a0] sm:$0xff]   ;;  %v3745_v56 = vld [vmem:[%s4749_s1 + $0x448] sm:$0xff]  }
  0x62   :  { %3395 = vmatprep.subr.bf16.mxu1 %v3690_v57  ;;  %v3746_v57 = vld [vmem:[%s4749_s1 + $0x4c8] sm:$0xff]  }
  0x63   :  { %2459 = vmatmul.mubr.bf16.vlgmr.msra.gmra.mxu0 %v2957_v52  ;;  %v3741_v52 = vld [vmem:[%s4749_s1 + $0x450] sm:$0xff]  }
  0x64   :  { %2500 = vmatmul.mubr.bf16.vlgmr.msra.gmra.mxu1 %v2959_v54  ;;  %3374 = vmatpush3.bf16.msra.mxu0 %v3691_v58  ;;  %v3743_v54 = vld [vmem:[%s4749_s1 + $0x410] sm:$0xff]   ;;  %v3747_v58 = vld [vmem:[%s4749_s1 + $0x408] sm:$0xff]  }
  0x65   :  { %3396 = vmatpush3.bf16.msra.mxu1 %v3692_v59  ;;  %3375 = vmatprep.subr.bf16.mxu0 %v3693_v60  ;;  %v3748_v59 = vld [vmem:[%s4749_s1 + $0x488] sm:$0xff]   ;;  %v3749_v60 = vld [vmem:[%s4749_s1 + $0x440] sm:$0xff]  }
  0x66   :  { %3397 = vmatprep.subr.bf16.mxu1 %v3694_v61  ;;  %2540 = vmatprep.mubr.bf16.mxu0 %v2962_v28  ;;  %v3750_v61 = vld [vmem:[%s4749_s1 + $0x4c0] sm:$0xff]   ;;  %v3773_v28 = vld [vmem:[%s4749_s1 + $0x550] sm:$0xff]  }
  0x67   :  { %2581 = vmatprep.mubr.bf16.mxu1 %v2964_v31  ;;  %v3776_v31 = vld [vmem:[%s4749_s1 + $0x590] sm:$0xff]  }
  0x68   :  { %3376 = vmatpush3.bf16.msra.mxu0 %v3695_v62  ;;  %v3751_v62 = vld [vmem:[%s4749_s1 + $0x400] sm:$0xff]  }
  0x69   :  { %3398 = vmatpush3.bf16.msra.mxu1 %v3696_v63  ;;  %3377 = vmatprep.subr.bf16.mxu0 %v3697_v0  ;;  %v3752_v63 = vld [vmem:[%s4749_s1 + $0x480] sm:$0xff]  }
  0x6a   :  { %3399 = vmatprep.subr.bf16.mxu1 %v3698_v1  ;;  %v23_v0 = vld [vmem:[%s4750_s0 + $0x40] sm:$0xff] }
  0x6b   :  { %v39_v1 = vld [vmem:[%s4750_s0 + $0xc0] sm:$0x11] }
  0x6c   :  { %3378 = vmatpush3.bf16.msra.mxu0 %v3699_v2  ;;  %v2965_v2 = vcombine.low %v23_v0, %v39_v1 }
  0x6d   :  { %3400 = vmatpush3.bf16.msra.mxu1 %v3700_v3  ;;  %3379 = vmatprep.subr.bf16.mxu0 %v3701_v4  ;;  %v2966_v3 = vcombine.high %v23_v0, %v39_v1  ;;  %v24_v4 = vld [vmem:[%s4750_s0 + $0x48] sm:$0xff]  ;;  %v3801_v0 = vld [vmem:[%s4749_s1 + $0x658] sm:$0xff]  }
  0x6e   :  { %3401 = vmatprep.subr.bf16.mxu1 %v3702_v5  ;;  %v40_v5 = vld [vmem:[%s4750_s0 + $0xc8] sm:$0x11]  ;;  %v3802_v1 = vld [vmem:[%s4749_s1 + $0x6d8] sm:$0xff]  }
  0x70   :  { %3380 = vmatpush3.bf16.msra.mxu0 %v3703_v6  ;;  %v2967_v6 = vcombine.low %v24_v4, %v40_v5 }
  0x71   :  { %3402 = vmatpush3.bf16.msra.mxu1 %v3704_v7  ;;  %3381 = vmatprep.subr.bf16.mxu0 %v3705_v8  ;;  %v2968_v7 = vcombine.high %v24_v4, %v40_v5  ;;  %v3753_v8 = vld [vmem:[%s4749_s1 + $0x578] sm:$0xff]   ;;  %v3805_v4 = vld [vmem:[%s4749_s1 + $0x650] sm:$0xff]  }
  0x72   :  { %3403 = vmatprep.subr.bf16.mxu1 %v3706_v9  ;;  %v3754_v9 = vld [vmem:[%s4749_s1 + $0x5f8] sm:$0xff]   ;;  %v3806_v5 = vld [vmem:[%s4749_s1 + $0x6d0] sm:$0xff]  }
  0x74   :  { %3382 = vmatpush3.bf16.msra.mxu0 %v3707_v10  ;;  %v3755_v10 = vld [vmem:[%s4749_s1 + $0x538] sm:$0xff]  }
  0x75   :  { %3404 = vmatpush3.bf16.msra.mxu1 %v3708_v11  ;;  %3383 = vmatprep.subr.bf16.mxu0 %v3709_v12  ;;  %v3756_v11 = vld [vmem:[%s4749_s1 + $0x5b8] sm:$0xff]   ;;  %v3757_v12 = vld [vmem:[%s4749_s1 + $0x570] sm:$0xff]  }
  0x76   :  { %3405 = vmatprep.subr.bf16.mxu1 %v3710_v13  ;;  %v3758_v13 = vld [vmem:[%s4749_s1 + $0x5f0] sm:$0xff]  }
  0x78   :  { %3384 = vmatpush3.bf16.msra.mxu0 %v3711_v14  ;;  %v3759_v14 = vld [vmem:[%s4749_s1 + $0x530] sm:$0xff]  }
  0x79   :  { %3406 = vmatpush3.bf16.msra.mxu1 %v3712_v15  ;;  %3385 = vmatprep.subr.bf16.mxu0 %v3713_v16  ;;  %v3760_v15 = vld [vmem:[%s4749_s1 + $0x5b0] sm:$0xff]   ;;  %v3761_v16 = vld [vmem:[%s4749_s1 + $0x568] sm:$0xff]  }
  0x7a   :  { %3407 = vmatprep.subr.bf16.mxu1 %v3714_v17  ;;  %v3762_v17 = vld [vmem:[%s4749_s1 + $0x5e8] sm:$0xff]  }
  0x7c   :  { %3386 = vmatpush3.bf16.msra.mxu0 %v3715_v18  ;;  %v3763_v18 = vld [vmem:[%s4749_s1 + $0x528] sm:$0xff]  }
  0x7d   :  { %3408 = vmatpush3.bf16.msra.mxu1 %v3716_v19  ;;  %3387 = vmatprep.subr.bf16.mxu0 %v3717_v20  ;;  %v3764_v19 = vld [vmem:[%s4749_s1 + $0x5a8] sm:$0xff]   ;;  %v3765_v20 = vld [vmem:[%s4749_s1 + $0x560] sm:$0xff]  }
  0x7e   :  { %3409 = vmatprep.subr.bf16.mxu1 %v3718_v21  ;;  %v3766_v21 = vld [vmem:[%s4749_s1 + $0x5e0] sm:$0xff]  }
  0x80   :  { %3388 = vmatpush3.bf16.msra.mxu0 %v3719_v22  ;;  %v3767_v22 = vld [vmem:[%s4749_s1 + $0x520] sm:$0xff]  }
  0x81   :  { %3410 = vmatpush3.bf16.msra.mxu1 %v3720_v23  ;;  %3417 = vmatprep.subr.bf16.mxu0 %v3721_v32  ;;  %v3768_v23 = vld [vmem:[%s4749_s1 + $0x5a0] sm:$0xff]   ;;  %v3777_v32 = vld [vmem:[%s4749_s1 + $0x548] sm:$0xff]  }
  0x82   :  { %3439 = vmatprep.subr.bf16.mxu1 %v3722_v33  ;;  %v3778_v33 = vld [vmem:[%s4749_s1 + $0x5c8] sm:$0xff]  }
  0x83   :  { %2541 = vmatmul.mubr.bf16.vlgmr.msra.gmra.mxu0 %v2961_v27  ;;  %v3772_v27 = vld [vmem:[%s4749_s1 + $0x598] sm:$0xff]  }
  0x84   :  { %2582 = vmatmul.mubr.bf16.vlgmr.msra.gmra.mxu1 %v2963_v30  ;;  %3418 = vmatpush3.bf16.msra.mxu0 %v3723_v34  ;;  %v3775_v30 = vld [vmem:[%s4749_s1 + $0x510] sm:$0xff]   ;;  %v3779_v34 = vld [vmem:[%s4749_s1 + $0x508] sm:$0xff]  }
  0x85   :  { %3440 = vmatpush3.bf16.msra.mxu1 %v3724_v35  ;;  %3419 = vmatprep.subr.bf16.mxu0 %v3725_v36  ;;  %v3780_v35 = vld [vmem:[%s4749_s1 + $0x588] sm:$0xff]   ;;  %v3781_v36 = vld [vmem:[%s4749_s1 + $0x540] sm:$0xff]  }
  0x86   :  { %3441 = vmatprep.subr.bf16.mxu1 %v3726_v37  ;;  %2622 = vmatprep.mubr.bf16.mxu0 %v2966_v3  ;;  %v3782_v37 = vld [vmem:[%s4749_s1 + $0x5c0] sm:$0xff]   ;;  %v3804_v3 = vld [vmem:[%s4749_s1 + $0x698] sm:$0xff]  }
  0x87   :  { %2663 = vmatprep.mubr.bf16.mxu1 %v2968_v7  ;;  %v3808_v7 = vld [vmem:[%s4749_s1 + $0x690] sm:$0xff]  }
  0x88   :  { %3420 = vmatpush3.bf16.msra.mxu0 %v3727_v38  ;;  %v3783_v38 = vld [vmem:[%s4749_s1 + $0x500] sm:$0xff]  }
  0x89   :  { %3442 = vmatpush3.bf16.msra.mxu1 %v3728_v39  ;;  %3421 = vmatprep.subr.bf16.mxu0 %v3729_v40  ;;  %v3784_v39 = vld [vmem:[%s4749_s1 + $0x580] sm:$0xff]   ;;  %v25_v40 = vld [vmem:[%s4750_s0 + $0x50] sm:$0xff] }
  0x8a   :  { %3443 = vmatprep.subr.bf16.mxu1 %v3730_v41  ;;  %v41_v41 = vld [vmem:[%s4750_s0 + $0xd0] sm:$0x11] }
  0x8c   :  { %3422 = vmatpush3.bf16.msra.mxu0 %v3731_v42  ;;  %v26_v42 = vld [vmem:[%s4750_s0 + $0x58] sm:$0xff] }
  0x8d   :  { %3444 = vmatpush3.bf16.msra.mxu1 %v3732_v43  ;;  %3423 = vmatprep.subr.bf16.mxu0 %v3733_v44  ;;  %v42_v43 = vld [vmem:[%s4750_s0 + $0xd8] sm:$0x11]  ;;  %v2969_v44 = vcombine.low %v25_v40, %v41_v41 }
  0x8e   :  { %3445 = vmatprep.subr.bf16.mxu1 %v3734_v45  ;;  %v2970_v45 = vcombine.high %v25_v40, %v41_v41  ;;  %v3833_v40 = vld [vmem:[%s4749_s1 + $0x758] sm:$0xff]  }
  0x8f   :  { %v3834_v41 = vld [vmem:[%s4749_s1 + $0x7d8] sm:$0xff]  }
  0x90   :  { %3424 = vmatpush3.bf16.msra.mxu0 %v3735_v46  ;;  %v2971_v46 = vcombine.low %v26_v42, %v42_v43 }
  0x91   :  { %3446 = vmatpush3.bf16.msra.mxu1 %v3736_v47  ;;  %3425 = vmatprep.subr.bf16.mxu0 %v3737_v48  ;;  %v2972_v47 = vcombine.high %v26_v42, %v42_v43  ;;  %v3785_v48 = vld [vmem:[%s4749_s1 + $0x678] sm:$0xff]  }
  0x92   :  { %3447 = vmatprep.subr.bf16.mxu1 %v3738_v49  ;;  %v3786_v49 = vld [vmem:[%s4749_s1 + $0x6f8] sm:$0xff]  }
  0x93   :  { %v3835_v42 = vld [vmem:[%s4749_s1 + $0x718] sm:$0xff]  }
  0x94   :  { %3426 = vmatpush3.bf16.msra.mxu0 %v3739_v50  ;;  %v3787_v50 = vld [vmem:[%s4749_s1 + $0x638] sm:$0xff]  }
  0x95   :  { %3448 = vmatpush3.bf16.msra.mxu1 %v3740_v51  ;;  %3427 = vmatprep.subr.bf16.mxu0 %v3741_v52  ;;  %v3788_v51 = vld [vmem:[%s4749_s1 + $0x6b8] sm:$0xff]   ;;  %v3789_v52 = vld [vmem:[%s4749_s1 + $0x670] sm:$0xff]  }
  0x96   :  { %3449 = vmatprep.subr.bf16.mxu1 %v3742_v53  ;;  %v3790_v53 = vld [vmem:[%s4749_s1 + $0x6f0] sm:$0xff]   ;;  %v3836_v43 = vld [vmem:[%s4749_s1 + $0x798] sm:$0xff]  }
  0x98   :  { %3428 = vmatpush3.bf16.msra.mxu0 %v3743_v54  ;;  %v3791_v54 = vld [vmem:[%s4749_s1 + $0x630] sm:$0xff]  }
  0x99   :  { %3450 = vmatpush3.bf16.msra.mxu1 %v3744_v55  ;;  %3429 = vmatprep.subr.bf16.mxu0 %v3745_v56  ;;  %v3792_v55 = vld [vmem:[%s4749_s1 + $0x6b0] sm:$0xff]   ;;  %v3793_v56 = vld [vmem:[%s4749_s1 + $0x668] sm:$0xff]  }
  0x9a   :  { %3451 = vmatprep.subr.bf16.mxu1 %v3746_v57  ;;  %v3794_v57 = vld [vmem:[%s4749_s1 + $0x6e8] sm:$0xff]  }
  0x9c   :  { %3430 = vmatpush3.bf16.msra.mxu0 %v3747_v58  ;;  %v3795_v58 = vld [vmem:[%s4749_s1 + $0x628] sm:$0xff]  }
  0x9d   :  { %3452 = vmatpush3.bf16.msra.mxu1 %v3748_v59  ;;  %3431 = vmatprep.subr.bf16.mxu0 %v3749_v60  ;;  %v3796_v59 = vld [vmem:[%s4749_s1 + $0x6a8] sm:$0xff]   ;;  %v3797_v60 = vld [vmem:[%s4749_s1 + $0x660] sm:$0xff]  }
  0x9e   :  { %3453 = vmatprep.subr.bf16.mxu1 %v3750_v61  ;;  %v3798_v61 = vld [vmem:[%s4749_s1 + $0x6e0] sm:$0xff]  }
  0xa0   :  { %3432 = vmatpush3.bf16.msra.mxu0 %v3751_v62  ;;  %v3799_v62 = vld [vmem:[%s4749_s1 + $0x620] sm:$0xff]  }
  0xa1   :  { %3454 = vmatpush3.bf16.msra.mxu1 %v3752_v63  ;;  %3461 = vmatprep.subr.bf16.mxu0 %v3753_v8  ;;  %v3800_v63 = vld [vmem:[%s4749_s1 + $0x6a0] sm:$0xff]   ;;  %v3809_v8 = vld [vmem:[%s4749_s1 + $0x648] sm:$0xff]  }
  0xa2   :  { %3483 = vmatprep.subr.bf16.mxu1 %v3754_v9  ;;  %v3810_v9 = vld [vmem:[%s4749_s1 + $0x6c8] sm:$0xff]  }
  0xa3   :  { %2623 = vmatmul.mubr.bf16.vlgmr.msra.gmra.mxu0 %v2965_v2  ;;  %v3803_v2 = vld [vmem:[%s4749_s1 + $0x618] sm:$0xff]  }
  0xa4   :  { %2664 = vmatmul.mubr.bf16.vlgmr.msra.gmra.mxu1 %v2967_v6  ;;  %3462 = vmatpush3.bf16.msra.mxu0 %v3755_v10  ;;  %v3807_v6 = vld [vmem:[%s4749_s1 + $0x610] sm:$0xff]   ;;  %v3811_v10 = vld [vmem:[%s4749_s1 + $0x608] sm:$0xff]  }
  0xa5   :  { %3484 = vmatpush3.bf16.msra.mxu1 %v3756_v11  ;;  %3463 = vmatprep.subr.bf16.mxu0 %v3757_v12  ;;  %v3812_v11 = vld [vmem:[%s4749_s1 + $0x688] sm:$0xff]   ;;  %v3813_v12 = vld [vmem:[%s4749_s1 + $0x640] sm:$0xff]  }
  0xa6   :  { %3485 = vmatprep.subr.bf16.mxu1 %v3758_v13  ;;  %2704 = vmatprep.mubr.bf16.mxu0 %v2970_v45  ;;  %v3814_v13 = vld [vmem:[%s4749_s1 + $0x6c0] sm:$0xff]   ;;  %v3838_v45 = vld [vmem:[%s4749_s1 + $0x7d0] sm:$0xff]  }
  0xa7   :  { %2745 = vmatprep.mubr.bf16.mxu1 %v2972_v47  ;;  %v3840_v47 = vld [vmem:[%s4749_s1 + $0x790] sm:$0xff]  }
  0xa8   :  { %3464 = vmatpush3.bf16.msra.mxu0 %v3759_v14  ;;  %v3815_v14 = vld [vmem:[%s4749_s1 + $0x600] sm:$0xff]  }
  0xa9   :  { %3486 = vmatpush3.bf16.msra.mxu1 %v3760_v15  ;;  %3465 = vmatprep.subr.bf16.mxu0 %v3761_v16  ;;  %v3816_v15 = vld [vmem:[%s4749_s1 + $0x680] sm:$0xff]  }
  0xaa   :  { %3487 = vmatprep.subr.bf16.mxu1 %v3762_v17  ;;  %v27_v16 = vld [vmem:[%s4750_s0 + $0x60] sm:$0xff] }
  0xab   :  { %v43_v17 = vld [vmem:[%s4750_s0 + $0xe0] sm:$0x11] }
  0xac   :  { %3466 = vmatpush3.bf16.msra.mxu0 %v3763_v18  ;;  %v28_v18 = vld [vmem:[%s4750_s0 + $0x68] sm:$0xff] }
  0xad   :  { %3488 = vmatpush3.bf16.msra.mxu1 %v3764_v19  ;;  %3467 = vmatprep.subr.bf16.mxu0 %v3765_v20  ;;  %v2973_v19 = vcombine.low %v27_v16, %v43_v17  ;;  %v2974_v20 = vcombine.high %v27_v16, %v43_v17 }
  0xae   :  { %3489 = vmatprep.subr.bf16.mxu1 %v3766_v21  ;;  %v44_v21 = vld [vmem:[%s4750_s0 + $0xe8] sm:$0x11] }
  0xb0   :  { %3468 = vmatpush3.bf16.msra.mxu0 %v3767_v22  ;;  %v2975_v22 = vcombine.low %v28_v18, %v44_v21 }
  0xb1   :  { %3490 = vmatpush3.bf16.msra.mxu1 %v3768_v23  ;;  %3469 = vmatprep.subr.bf16.mxu0 %v3769_v24  ;;  %v2976_v23 = vcombine.high %v28_v18, %v44_v21  ;;  %v3817_v24 = vld [vmem:[%s4749_s1 + $0x778] sm:$0xff]  }
  0xb2   :  { %3491 = vmatprep.subr.bf16.mxu1 %v3770_v25  ;;  %v3818_v25 = vld [vmem:[%s4749_s1 + $0x7f8] sm:$0xff]  }
  0xb4   :  { %3470 = vmatpush3.bf16.msra.mxu0 %v3771_v26  ;;  %v3819_v26 = vld [vmem:[%s4749_s1 + $0x738] sm:$0xff]  }
  0xb5   :  { %3492 = vmatpush3.bf16.msra.mxu1 %v3772_v27  ;;  %3471 = vmatprep.subr.bf16.mxu0 %v3773_v28  ;;  %v3820_v27 = vld [vmem:[%s4749_s1 + $0x7b8] sm:$0xff]   ;;  %v3821_v28 = vld [vmem:[%s4749_s1 + $0x770] sm:$0xff]  }
  0xb6   :  { %3493 = vmatprep.subr.bf16.mxu1 %v3774_v29  ;;  %v3822_v29 = vld [vmem:[%s4749_s1 + $0x7f0] sm:$0xff]  }
  0xb8   :  { %3472 = vmatpush3.bf16.msra.mxu0 %v3775_v30  ;;  %v3823_v30 = vld [vmem:[%s4749_s1 + $0x730] sm:$0xff]  }
  0xb9   :  { %3494 = vmatpush3.bf16.msra.mxu1 %v3776_v31  ;;  %3473 = vmatprep.subr.bf16.mxu0 %v3777_v32  ;;  %v3824_v31 = vld [vmem:[%s4749_s1 + $0x7b0] sm:$0xff]   ;;  %v3825_v32 = vld [vmem:[%s4749_s1 + $0x768] sm:$0xff]  }
  0xba   :  { %3495 = vmatprep.subr.bf16.mxu1 %v3778_v33  ;;  %v3826_v33 = vld [vmem:[%s4749_s1 + $0x7e8] sm:$0xff]  }
  0xbc   :  { %3474 = vmatpush3.bf16.msra.mxu0 %v3779_v34  ;;  %v3827_v34 = vld [vmem:[%s4749_s1 + $0x728] sm:$0xff]  }
  0xbd   :  { %3496 = vmatpush3.bf16.msra.mxu1 %v3780_v35  ;;  %3475 = vmatprep.subr.bf16.mxu0 %v3781_v36  ;;  %v3828_v35 = vld [vmem:[%s4749_s1 + $0x7a8] sm:$0xff]   ;;  %v3829_v36 = vld [vmem:[%s4749_s1 + $0x760] sm:$0xff]  }
  0xbe   :  { %3497 = vmatprep.subr.bf16.mxu1 %v3782_v37  ;;  %v3830_v37 = vld [vmem:[%s4749_s1 + $0x7e0] sm:$0xff]  }
  0xc0   :  { %3476 = vmatpush3.bf16.msra.mxu0 %v3783_v38  ;;  %v3831_v38 = vld [vmem:[%s4749_s1 + $0x720] sm:$0xff]  }
  0xc1   :  { %3498 = vmatpush3.bf16.msra.mxu1 %v3784_v39  ;;  %3505 = vmatprep.subr.bf16.mxu0 %v3785_v48  ;;  %v3832_v39 = vld [vmem:[%s4749_s1 + $0x7a0] sm:$0xff]   ;;  %v3841_v48 = vld [vmem:[%s4749_s1 + $0x748] sm:$0xff]  }
  0xc2   :  { %3527 = vmatprep.subr.bf16.mxu1 %v3786_v49  ;;  %v3842_v49 = vld [vmem:[%s4749_s1 + $0x7c8] sm:$0xff]  }
  0xc3   :  { %2705 = vmatmul.mubr.bf16.vlgmr.msra.gmra.mxu0 %v2969_v44  ;;  %v3837_v44 = vld [vmem:[%s4749_s1 + $0x750] sm:$0xff]  }
  0xc4   :  { %2746 = vmatmul.mubr.bf16.vlgmr.msra.gmra.mxu1 %v2971_v46  ;;  %3506 = vmatpush3.bf16.msra.mxu0 %v3787_v50  ;;  %v3839_v46 = vld [vmem:[%s4749_s1 + $0x710] sm:$0xff]   ;;  %v3843_v50 = vld [vmem:[%s4749_s1 + $0x708] sm:$0xff]  }
  0xc5   :  { %3528 = vmatpush3.bf16.msra.mxu1 %v3788_v51  ;;  %3507 = vmatprep.subr.bf16.mxu0 %v3789_v52  ;;  %v3844_v51 = vld [vmem:[%s4749_s1 + $0x788] sm:$0xff]   ;;  %v3845_v52 = vld [vmem:[%s4749_s1 + $0x740] sm:$0xff]  }
  0xc6   :  { %3529 = vmatprep.subr.bf16.mxu1 %v3790_v53  ;;  %2786 = vmatprep.mubr.bf16.mxu0 %v2974_v20  ;;  %v3846_v53 = vld [vmem:[%s4749_s1 + $0x7c0] sm:$0xff]  }
  0xc7   :  { %2827 = vmatprep.mubr.bf16.mxu1 %v2976_v23 }
  0xc8   :  { %3508 = vmatpush3.bf16.msra.mxu0 %v3791_v54  ;;  %v3847_v54 = vld [vmem:[%s4749_s1 + $0x700] sm:$0xff]  }
  0xc9   :  { %3530 = vmatpush3.bf16.msra.mxu1 %v3792_v55  ;;  %3509 = vmatprep.subr.bf16.mxu0 %v3793_v56  ;;  %v3848_v55 = vld [vmem:[%s4749_s1 + $0x780] sm:$0xff]   ;;  %v29_v56 = vld [vmem:[%s4750_s0 + $0x70] sm:$0xff] }
  0xca   :  { %3531 = vmatprep.subr.bf16.mxu1 %v3794_v57  ;;  %v45_v57 = vld [vmem:[%s4750_s0 + $0xf0] sm:$0x11] }
  0xcc   :  { %3510 = vmatpush3.bf16.msra.mxu0 %v3795_v58  ;;  %v30_v58 = vld [vmem:[%s4750_s0 + $0x78] sm:$0xff] }
  0xcd   :  { %3532 = vmatpush3.bf16.msra.mxu1 %v3796_v59  ;;  %3511 = vmatprep.subr.bf16.mxu0 %v3797_v60  ;;  %v46_v59 = vld [vmem:[%s4750_s0 + $0xf8] sm:$0x11]  ;;  %v2977_v60 = vcombine.low %v29_v56, %v45_v57 }
  0xce   :  { %3533 = vmatprep.subr.bf16.mxu1 %v3798_v61  ;;  %v2978_v61 = vcombine.high %v29_v56, %v45_v57 }
  0xd0   :  { %3512 = vmatpush3.bf16.msra.mxu0 %v3799_v62  ;;  %v2979_v62 = vcombine.low %v30_v58, %v46_v59 }
  0xd1   :  { %3534 = vmatpush3.bf16.msra.mxu1 %v3800_v63  ;;  %3513 = vmatprep.subr.bf16.mxu0 %v3801_v0  ;;  %v2980_v63 = vcombine.high %v30_v58, %v46_v59 }
  0xd2   :  { %3535 = vmatprep.subr.bf16.mxu1 %v3802_v1 }
  0xd4   :  { %3514 = vmatpush3.bf16.msra.mxu0 %v3803_v2 }
  0xd5   :  { %3536 = vmatpush3.bf16.msra.mxu1 %v3804_v3  ;;  %3515 = vmatprep.subr.bf16.mxu0 %v3805_v4 }
  0xd6   :  { %3537 = vmatprep.subr.bf16.mxu1 %v3806_v5 }
  0xd8   :  { %3516 = vmatpush3.bf16.msra.mxu0 %v3807_v6 }
  0xd9   :  { %3538 = vmatpush3.bf16.msra.mxu1 %v3808_v7  ;;  %3517 = vmatprep.subr.bf16.mxu0 %v3809_v8 }
  0xda   :  { %3539 = vmatprep.subr.bf16.mxu1 %v3810_v9 }
  0xdc   :  { %3518 = vmatpush3.bf16.msra.mxu0 %v3811_v10 }
  0xdd   :  { %3540 = vmatpush3.bf16.msra.mxu1 %v3812_v11  ;;  %3519 = vmatprep.subr.bf16.mxu0 %v3813_v12 }
  0xde   :  { %3541 = vmatprep.subr.bf16.mxu1 %v3814_v13 }
  0xe0   :  { %3520 = vmatpush3.bf16.msra.mxu0 %v3815_v14 }
  0xe1   :  { %3542 = vmatpush3.bf16.msra.mxu1 %v3816_v15  ;;  %3549 = vmatprep.subr.bf16.mxu0 %v3817_v24 }
  0xe2   :  { %3571 = vmatprep.subr.bf16.mxu1 %v3818_v25 }
  0xe3   :  { %2787 = vmatmul.mubr.bf16.vlgmr.msra.gmra.mxu0 %v2973_v19  ;;  %v3257_v0 = vpop.f32.mrf.mxu0 }
  0xe4   :  { %2828 = vmatmul.mubr.bf16.vlgmr.msra.gmra.mxu1 %v2975_v22  ;;  %3550 = vmatpush3.bf16.msra.mxu0 %v3819_v26  ;;  %v3279_v1 = vpop.f32.mrf.mxu1 }
  0xe5   :  { %3572 = vmatpush3.bf16.msra.mxu1 %v3820_v27  ;;  %3551 = vmatprep.subr.bf16.mxu0 %v3821_v28  ;;  %v3258_v2 = vpop.f32.mrf.mxu0 }
  0xe6   :  { %3573 = vmatprep.subr.bf16.mxu1 %v3822_v29  ;;  %2868 = vmatprep.mubr.bf16.mxu0 %v2978_v61  ;;  %v3280_v3 = vpop.f32.mrf.mxu1 }
  0xe7   :  { %2909 = vmatprep.mubr.bf16.mxu1 %v2980_v63  ;;  %v3260_v4 = vpop.f32.mrf.mxu0 }
  0xe8   :  { %3552 = vmatpush3.bf16.msra.mxu0 %v3823_v30  ;;  %v3282_v5 = vpop.f32.mrf.mxu1 }
  0xe9   :  { %3574 = vmatpush3.bf16.msra.mxu1 %v3824_v31  ;;  %3553 = vmatprep.subr.bf16.mxu0 %v3825_v32  ;;  %v3261_v6 = vpop.f32.mrf.mxu0 }
  0xea   :  { %3575 = vmatprep.subr.bf16.mxu1 %v3826_v33  ;;  %v3283_v7 = vpop.f32.mrf.mxu1 }
  0xec   :  { %3554 = vmatpush3.bf16.msra.mxu0 %v3827_v34  ;;  %v3259_v34 = vadd.f32 %v3258_v2, %v3257_v0 }
  0xed   :  { %3576 = vmatpush3.bf16.msra.mxu1 %v3828_v35  ;;  %3555 = vmatprep.subr.bf16.mxu0 %v3829_v36  ;;  %v2948_v35 = vld [vmem:[%s4751_s2] ss:$0 sm:$0xff] }
  0xee   :  { %3577 = vmatprep.subr.bf16.mxu1 %v3830_v37 }
  0xf0   :  { %3556 = vmatpush3.bf16.msra.mxu0 %v3831_v38  ;;  %v2297_v38 = vadd.f32 %v3259_v34, %v2948_v35 }
  0xf1   :  { %3578 = vmatpush3.bf16.msra.mxu1 %v3832_v39  ;;  %3557 = vmatprep.subr.bf16.mxu0 %v3833_v40  ;;  %v3281_v39 = vadd.f32 %v3280_v3, %v3279_v1  ;;  %v3262_v40 = vadd.f32 %v3261_v6, %v3260_v4 }
  0xf2   :  { %3579 = vmatprep.subr.bf16.mxu1 %v3834_v41 }
  0xf4   :  { %3558 = vmatpush3.bf16.msra.mxu0 %v3835_v42 }
  0xf5   :  { %3580 = vmatpush3.bf16.msra.mxu1 %v3836_v43  ;;  %3559 = vmatprep.subr.bf16.mxu0 %v3837_v44  ;;  %v2338_v44 = vadd.f32 %v3281_v39, %v2297_v38 }
  0xf6   :  { %3581 = vmatprep.subr.bf16.mxu1 %v3838_v45  ;;  %v2300_v45 = vadd.f32 %v3262_v40, %v2948_v35 }
  0xf8   :  { %3560 = vmatpush3.bf16.msra.mxu0 %v3839_v46 }
  0xf9   :  { %3582 = vmatpush3.bf16.msra.mxu1 %v3840_v47  ;;  %3561 = vmatprep.subr.bf16.mxu0 %v3841_v48  ;;  %v3284_v47 = vadd.f32 %v3283_v7, %v3282_v5 }
  0xfa   :  { %3583 = vmatprep.subr.bf16.mxu1 %v3842_v49 }
  0xfc   :  { %3562 = vmatpush3.bf16.msra.mxu0 %v3843_v50 }
  0xfd   :  { %3584 = vmatpush3.bf16.msra.mxu1 %v3844_v51  ;;  %3563 = vmatprep.subr.bf16.mxu0 %v3845_v52 }
  0xfe   :  { %3585 = vmatprep.subr.bf16.mxu1 %v3846_v53  ;;  %v2341_v53 = vadd.f32 %v3284_v47, %v2300_v45 }
 0x100   :  { %3564 = vmatpush3.bf16.msra.mxu0 %v3847_v54 }
 0x101   :  { %3586 = vmatpush3.bf16.msra.mxu1 %v3848_v55 }
 0x103   :  { %2869 = vmatmul.mubr.bf16.vlgmr.msra.gmra.mxu0 %v2977_v60  ;;  %v3301_v8 = vpop.f32.mrf.mxu0 }
 0x104   :  { %2910 = vmatmul.mubr.bf16.vlgmr.msra.gmra.mxu1 %v2979_v62  ;;  %v3323_v9 = vpop.f32.mrf.mxu1 }
 0x105   :  { %v3302_v10 = vpop.f32.mrf.mxu0 }
 0x106   :  { %v3324_v11 = vpop.f32.mrf.mxu1  ;;  %v3303_v42 = vadd.f32 %v3302_v10, %v3301_v8 }
 0x107   :  { %v3304_v12 = vpop.f32.mrf.mxu0  ;;  %v3325_v49 = vadd.f32 %v3324_v11, %v3323_v9 }
 0x108   :  { %v3326_v13 = vpop.f32.mrf.mxu1  ;;  %v2379_v48 = vadd.f32 %v3303_v42, %v2338_v44 }
 0x109   :  { %v3305_v14 = vpop.f32.mrf.mxu0 }
 0x10a   :  { %v3327_v15 = vpop.f32.mrf.mxu1  ;;  %v3306_v50 = vadd.f32 %v3305_v14, %v3304_v12  ;;  %v2420_v56 = vadd.f32 %v3325_v49, %v2379_v48 }
 0x10b   :  { %v3328_v59 = vadd.f32 %v3327_v15, %v3326_v13 }
 0x10c   :  { %v2382_v57 = vadd.f32 %v3306_v50, %v2341_v53 }
 0x10e   :  { %v2423_v0 = vadd.f32 %v3328_v59, %v2382_v57 }
 0x123   :  { %v3345_v16 = vpop.f32.mrf.mxu0 }
 0x124   :  { %v3367_v17 = vpop.f32.mrf.mxu1 }
 0x125   :  { %v3346_v18 = vpop.f32.mrf.mxu0 }
 0x126   :  { %v3368_v19 = vpop.f32.mrf.mxu1  ;;  %v3347_v54 = vadd.f32 %v3346_v18, %v3345_v16 }
 0x127   :  { %v3348_v20 = vpop.f32.mrf.mxu0  ;;  %v3369_v61 = vadd.f32 %v3368_v19, %v3367_v17 }
 0x128   :  { %v3370_v21 = vpop.f32.mrf.mxu1  ;;  %v2461_v60 = vadd.f32 %v3347_v54, %v2420_v56 }
 0x129   :  { %v3349_v22 = vpop.f32.mrf.mxu0 }
 0x12a   :  { %v3371_v23 = vpop.f32.mrf.mxu1  ;;  %v3350_v62 = vadd.f32 %v3349_v22, %v3348_v20  ;;  %v2502_v3 = vadd.f32 %v3369_v61, %v2461_v60 }
 0x12b   :  { %v3372_v6 = vadd.f32 %v3371_v23, %v3370_v21 }
 0x12c   :  { %v2464_v4 = vadd.f32 %v3350_v62, %v2423_v0 }
 0x12e   :  { %v2505_v11 = vadd.f32 %v3372_v6, %v2464_v4 }
 0x143   :  { %v3389_v24 = vpop.f32.mrf.mxu0 }
 0x144   :  { %v3411_v25 = vpop.f32.mrf.mxu1 }
 0x145   :  { %v3390_v26 = vpop.f32.mrf.mxu0 }
 0x146   :  { %v3412_v27 = vpop.f32.mrf.mxu1  ;;  %v3391_v1 = vadd.f32 %v3390_v26, %v3389_v24 }
 0x147   :  { %v3392_v28 = vpop.f32.mrf.mxu0  ;;  %v3413_v8 = vadd.f32 %v3412_v27, %v3411_v25 }
 0x148   :  { %v3414_v29 = vpop.f32.mrf.mxu1  ;;  %v2543_v7 = vadd.f32 %v3391_v1, %v2502_v3 }
 0x149   :  { %v3393_v30 = vpop.f32.mrf.mxu0 }
 0x14a   :  { %v3415_v31 = vpop.f32.mrf.mxu1  ;;  %v3394_v9 = vadd.f32 %v3393_v30, %v3392_v28  ;;  %v2584_v13 = vadd.f32 %v3413_v8, %v2543_v7 }
 0x14b   :  { %v3416_v18 = vadd.f32 %v3415_v31, %v3414_v29 }
 0x14c   :  { %v2546_v15 = vadd.f32 %v3394_v9, %v2505_v11 }
 0x14e   :  { %v2587_v26 = vadd.f32 %v3416_v18, %v2546_v15 }
 0x163   :  { %v3433_v32 = vpop.f32.mrf.mxu0 }
 0x164   :  { %v3455_v33 = vpop.f32.mrf.mxu1 }
 0x165   :  { %v3434_v36 = vpop.f32.mrf.mxu0 }
 0x166   :  { %v3456_v37 = vpop.f32.mrf.mxu1  ;;  %v3435_v12 = vadd.f32 %v3434_v36, %v3433_v32 }
 0x167   :  { %v3436_v41 = vpop.f32.mrf.mxu0  ;;  %v3457_v20 = vadd.f32 %v3456_v37, %v3455_v33 }
 0x168   :  { %v3458_v43 = vpop.f32.mrf.mxu1  ;;  %v2625_v19 = vadd.f32 %v3435_v12, %v2584_v13  ;;  %v2941_v12 = vld [vmem:[%s4752_s3 + $0x4] sm:$0x1] }
 0x169   :  { %v3437_v46 = vpop.f32.mrf.mxu0 }
 0x16a   :  { %v3459_v51 = vpop.f32.mrf.mxu1  ;;  %v3438_v22 = vadd.f32 %v3437_v46, %v3436_v41  ;;  %v2666_v21 = vadd.f32 %v3457_v20, %v2625_v19 }
 0x16b   :  { %v3460_v27 = vadd.f32 %v3459_v51, %v3458_v43 }
 0x16c   :  { %v2628_v23 = vadd.f32 %v3438_v22, %v2587_v26 }
 0x16e   :  { %v2669_v38 = vadd.f32 %v3460_v27, %v2628_v23 }
 0x183   :  { %v3477_v52 = vpop.f32.mrf.mxu0 }
 0x184   :  { %v3499_v55 = vpop.f32.mrf.mxu1 }
 0x185   :  { %v3478_v58 = vpop.f32.mrf.mxu0 }
 0x186   :  { %v3500_v63 = vpop.f32.mrf.mxu1  ;;  %v3479_v34 = vadd.f32 %v3478_v58, %v3477_v52 }
 0x187   :  { %v3480_v2 = vpop.f32.mrf.mxu0  ;;  %v3501_v30 = vadd.f32 %v3500_v63, %v3499_v55 }
 0x188   :  { %v3502_v5 = vpop.f32.mrf.mxu1  ;;  %v2707_v28 = vadd.f32 %v3479_v34, %v2666_v21 }
 0x189   :  { %v3481_v10 = vpop.f32.mrf.mxu0 }
 0x18a   :  { %v3503_v14 = vpop.f32.mrf.mxu1  ;;  %v3482_v32 = vadd.f32 %v3481_v10, %v3480_v2  ;;  %v2748_v42 = vadd.f32 %v3501_v30, %v2707_v28 }
 0x18b   :  { %v3504_v33 = vadd.f32 %v3503_v14, %v3502_v5 }
 0x18c   :  { %v2710_v29 = vadd.f32 %v3482_v32, %v2669_v38 }
 0x18e   :  { %v2751_v47 = vadd.f32 %v3504_v33, %v2710_v29 }
 0x1a3   :  { %v3521_v16 = vpop.f32.mrf.mxu0 }
 0x1a4   :  { %v3543_v17 = vpop.f32.mrf.mxu1 }
 0x1a5   :  { %v3522_v24 = vpop.f32.mrf.mxu0 }
 0x1a6   :  { %v3544_v35 = vpop.f32.mrf.mxu1  ;;  %v3523_v39 = vadd.f32 %v3522_v24, %v3521_v16 }
 0x1a7   :  { %v3524_v25 = vpop.f32.mrf.mxu0  ;;  %v3545_v41 = vadd.f32 %v3544_v35, %v3543_v17 }
 0x1a8   :  { %v3546_v36 = vpop.f32.mrf.mxu1  ;;  %v2789_v37 = vadd.f32 %v3523_v39, %v2748_v42 }
 0x1a9   :  { %v3525_v40 = vpop.f32.mrf.mxu0 }
 0x1aa   :  { %v3547_v31 = vpop.f32.mrf.mxu1  ;;  %v3526_v44 = vadd.f32 %v3525_v40, %v3524_v25  ;;  %v2830_v43 = vadd.f32 %v3545_v41, %v2789_v37 }
 0x1ab   :  { %v3548_v54 = vadd.f32 %v3547_v31, %v3546_v36 }
 0x1ac   :  { %v2792_v50 = vadd.f32 %v3526_v44, %v2751_v47 }
 0x1ae   :  { %v2833_v59 = vadd.f32 %v3548_v54, %v2792_v50 }
 0x1c3   :  { %v3565_v45 = vpop.f32.mrf.mxu0 }
 0x1c4   :  { %v3587_v46 = vpop.f32.mrf.mxu1 }
 0x1c5   :  { %v3566_v48 = vpop.f32.mrf.mxu0 }
 0x1c6   :  { %v3588_v49 = vpop.f32.mrf.mxu1  ;;  %v3567_v51 = vadd.f32 %v3566_v48, %v3565_v45 }
 0x1c7   :  { %v3568_v52 = vpop.f32.mrf.mxu0  ;;  %v3589_v56 = vadd.f32 %v3588_v49, %v3587_v46 }
 0x1c8   :  { %v3590_v53 = vpop.f32.mrf.mxu1  ;;  %v2871_v55 = vadd.f32 %v3567_v51, %v2830_v43 }
 0x1c9   :  { %v3569_v57 = vpop.f32.mrf.mxu0 }
 0x1ca   :  { %v3591_v58 = vpop.f32.mrf.mxu1  ;;  %v2912_v60 = vadd.f32 %v3589_v56, %v2871_v55  ;;  %v3570_v61 = vadd.f32 %v3569_v57, %v3568_v52 }
 0x1cb   :  { %v3592_v0 = vadd.f32 %v3591_v58, %v3590_v53 }
 0x1cc   :  { %v2920_v62 = vmul.f32 0.70710677, %v2912_v60  ;;  %v2874_v63 = vadd.f32 %v3570_v61, %v2833_v59  ;;  %v2918_v4 = vmul.f32 0.5, %v2912_v60 }
 0x1ce   :  { %3849 = verf.f32 %v2920_v62  ;;  %v2915_v1 = vadd.f32 %v3592_v0, %v2874_v63 }
 0x1d0   :  { %v2921_v2 = vmul.f32 0.70710677, %v2915_v1  ;;  %v2919_v9 = vmul.f32 0.5, %v2915_v1 }
 0x1d2   :  { %3851 = verf.f32 %v2921_v2 }
 0x1db   :  { %v3850_v3 = vpop.eup %3849 }
 0x1dc   :  { %v2924_v5 = vadd.f32 1.0, %v3850_v3 }
 0x1de   :  { %v2926_v6 = vmul.f32 %v2924_v5, %v2918_v4 }
 0x1df   :  { %v3852_v7 = vpop.eup %3851 }
 0x1e0   :  { %v3239_v8 = vpack.c.bf16 %v2926_v6, %v2926_v6  ;;  %v2925_v10 = vadd.f32 1.0, %v3852_v7 }
 0x1e2   :  { %2937 = vst.msk [vmem:[%s4752_s3] sm:$0xf] %vm2936_vm0, %v3239_v8  ;;  %v2927_v11 = vmul.f32 %v2925_v10, %v2919_v9 }
 0x1e4   :  { %v3240_v14 = vpack.c.bf16 %v2927_v11, %v2927_v11 }
 0x1e6   :  { %v2942_v16 = vsel %vm2940_vm3, %v3240_v14, %v2941_v12 }
 0x1e7   :  { %2943 = vst [vmem:[%s4752_s3 + $0x4] sm:$0x1] %v2942_v16 }

// kernel: model_forward.7
= control target key start
LH: loop header
LB: loop body
LE: loop exit
PB: predicated region body
PF: predicated region fallthrough
CT: control target
= control target key end

     0   :  { %v95_v29 = vlaneseq  ;;  %v651_v32 = vmov 1966171168   ;;  %v652_v36 = vmov 0.0   ;;  %s792_s0 = inlined_call_operand.vmem [shape: bf16[1,576], index: 0, kind: input, shape index: {}]   ;;  %s793_s1 = inlined_call_operand.vmem [shape: bf16[576,64], index: 1, kind: input, shape index: {}]   ;;  %s794_s2 = inlined_call_operand.vmem [shape: f32[1,64], index: 2, kind: input, shape index: {}]   ;;  %s795_s3 = inlined_call_operand.hbm [shape: f32[1,64], index: 3, kind: output, shape index: {}]  }
   0x1   :  { %v592_v0 = vld [vmem:[%s793_s1 + $0x78] sm:$0xff]   ;;  %v596_v4 = vld [vmem:[%s793_s1 + $0x70] sm:$0xff]   ;;  %v600_v8 = vld [vmem:[%s793_s1 + $0x68] sm:$0xff]   ;;  %v93_v33 = vunpack.c.l.s4 %v651_v32 }
   0x2   :  { %v593_v1 = vld [vmem:[%s793_s1 + $0x38] sm:$0xff]   ;;  %527 = vmatprep.subr.bf16.mxu0 %v592_v0  ;;  %v597_v5 = vld [vmem:[%s793_s1 + $0x30] sm:$0xff]   ;;  %v601_v9 = vld [vmem:[%s793_s1 + $0x28] sm:$0xff]   ;;  %v96_v34 = vshrl.u32 %v95_v29, 7 }
   0x3   :  { %v594_v2 = vld [vmem:[%s793_s1 + $0xf8] sm:$0xff]   ;;  %528 = vmatpush3.bf16.msra.mxu0 %v593_v1  ;;  %v598_v6 = vld [vmem:[%s793_s1 + $0xf0] sm:$0xff]   ;;  %v602_v10 = vld [vmem:[%s793_s1 + $0xe8] sm:$0xff]   ;;  %v94_v37 = vunpack.c.0.s8 %v93_v33 }
   0x4   :  { %v595_v3 = vld [vmem:[%s793_s1 + $0xb8] sm:$0xff]   ;;  %549 = vmatprep.subr.bf16.mxu1 %v594_v2  ;;  %529 = vmatprep.subr.bf16.mxu0 %v596_v4  ;;  %v599_v7 = vld [vmem:[%s793_s1 + $0xb0] sm:$0xff]   ;;  %v603_v11 = vld [vmem:[%s793_s1 + $0xa8] sm:$0xff]  }
   0x5   :  { %550 = vmatpush3.bf16.msra.mxu1 %v595_v3  ;;  %v604_v12 = vld [vmem:[%s793_s1 + $0x60] sm:$0xff]   ;;  %v608_v16 = vld [vmem:[%s793_s1 + $0x58] sm:$0xff]   ;;  %v612_v20 = vld [vmem:[%s793_s1 + $0x50] sm:$0xff]   ;;  %v97_v39 = vsub.s32 %v94_v37, %v96_v34 }
   0x6   :  { %551 = vmatprep.subr.bf16.mxu1 %v598_v6  ;;  %v605_v13 = vld [vmem:[%s793_s1 + $0x20] sm:$0xff]   ;;  %v609_v17 = vld [vmem:[%s793_s1 + $0x18] sm:$0xff]   ;;  %v613_v21 = vld [vmem:[%s793_s1 + $0x10] sm:$0xff]  }
   0x7   :  { %530 = vmatpush3.bf16.msra.mxu0 %v597_v5  ;;  %v606_v14 = vld [vmem:[%s793_s1 + $0xe0] sm:$0xff]   ;;  %v610_v18 = vld [vmem:[%s793_s1 + $0xd8] sm:$0xff]   ;;  %v614_v22 = vld [vmem:[%s793_s1 + $0xd0] sm:$0xff]  }
   0x8   :  { %531 = vmatprep.subr.bf16.mxu0 %v600_v8  ;;  %v607_v15 = vld [vmem:[%s793_s1 + $0xa0] sm:$0xff]   ;;  %v611_v19 = vld [vmem:[%s793_s1 + $0x98] sm:$0xff]   ;;  %v615_v23 = vld [vmem:[%s793_s1 + $0x90] sm:$0xff]  }
   0x9   :  { %552 = vmatpush3.bf16.msra.mxu1 %v599_v7  ;;  %v616_v24 = vld [vmem:[%s793_s1 + $0x48] sm:$0xff]   ;;  %v620_v28 = vld [vmem:[%s793_s1 + $0x40] sm:$0xff]  }
   0xa   :  { %553 = vmatprep.subr.bf16.mxu1 %v602_v10  ;;  %v617_v25 = vld [vmem:[%s793_s1 + $0x8] sm:$0xff]   ;;  %v621_v30 = vld [vmem:[%s793_s1] sm:$0xff]  }
   0xb   :  { %532 = vmatpush3.bf16.msra.mxu0 %v601_v9  ;;  %v618_v26 = vld [vmem:[%s793_s1 + $0xc8] sm:$0xff]   ;;  %v622_v31 = vld [vmem:[%s793_s1 + $0xc0] sm:$0xff]  }
   0xc   :  { %533 = vmatprep.subr.bf16.mxu0 %v604_v12  ;;  %v619_v27 = vld [vmem:[%s793_s1 + $0x88] sm:$0xff]   ;;  %v624_v35 = vld [vmem:[%s793_s1 + $0x80] sm:$0xff]  }
   0xd   :  { %554 = vmatpush3.bf16.msra.mxu1 %v603_v11  ;;  %v16_v38 = vld [vmem:[%s792_s0] sm:$0x1f] }
   0xe   :  { %555 = vmatprep.subr.bf16.mxu1 %v606_v14 }
   0xf   :  { %534 = vmatpush3.bf16.msra.mxu0 %v605_v13 }
  0x10   :  { %535 = vmatprep.subr.bf16.mxu0 %v608_v16 }
  0x11   :  { %556 = vmatpush3.bf16.msra.mxu1 %v607_v15 }
  0x12   :  { %557 = vmatprep.subr.bf16.mxu1 %v610_v18 }
  0x13   :  { %536 = vmatpush3.bf16.msra.mxu0 %v609_v17 }
  0x14   :  { %537 = vmatprep.subr.bf16.mxu0 %v612_v20 }
  0x15   :  { %558 = vmatpush3.bf16.msra.mxu1 %v611_v19 }
  0x16   :  { %559 = vmatprep.subr.bf16.mxu1 %v614_v22 }
  0x17   :  { %538 = vmatpush3.bf16.msra.mxu0 %v613_v21 }
  0x18   :  { %539 = vmatprep.subr.bf16.mxu0 %v616_v24 }
  0x19   :  { %560 = vmatpush3.bf16.msra.mxu1 %v615_v23 }
  0x1a   :  { %561 = vmatprep.subr.bf16.mxu1 %v618_v26 }
  0x1b   :  { %540 = vmatpush3.bf16.msra.mxu0 %v617_v25 }
  0x1c   :  { %541 = vmatprep.subr.bf16.mxu0 %v620_v28 }
  0x1d   :  { %562 = vmatpush3.bf16.msra.mxu1 %v619_v27 }
  0x1e   :  { %563 = vmatprep.subr.bf16.mxu1 %v622_v31 }
  0x1f   :  { %542 = vmatpush3.bf16.msra.mxu0 %v621_v30 }
  0x20   :  { %576 = vmatprep.subr.bf16.mxu0 %v652_v36 }
  0x21   :  { %564 = vmatpush3.bf16.msra.mxu1 %v624_v35 }
  0x22   :  { %8 = vsyncpa [#allocation3], 0  ;;  %v98_v40 = vrot.slane %v16_v38, %v97_v39  ;;  %v625_v44 = vld [vmem:[%s793_s1 + $0x118] sm:$0xff]   ;;  %v626_v47 = vld [vmem:[%s793_s1 + $0x110] sm:$0xff]   ;;  %vm653_vm0 = vmmov 0   ;;  %v91_v48 = vcombine.high %v16_v38, %v16_v38  ;;  %vm350_vm1 = vcmask 523264  }
  0x23   :  { %v627_v49 = vld [vmem:[%s793_s1 + $0x108] sm:$0xff]   ;;  %v628_v51 = vld [vmem:[%s793_s1 + $0x100] sm:$0xff]   ;;  %s654_s1 = smov [#allocation2]   ;;  %vm474_vm2 = vcmask 516096  }
  0x24   :  { %v106_v41 = vcombine.high %v98_v40, %v98_v40  ;;  %v113_v42 = vrot.slane %v98_v40, %v97_v39  ;;  %v105_v50 = vrot.slane %v91_v48, %v97_v39  ;;  %v89_v61 = vld [vmem:[%s794_s2] sm:$0x1]  ;;  %s482_s6 = sshll.u32 %s654_s1, 4  ;;  %s483_s6 = int_to_ptr.vmem [resolvable:$true] %s482_s6 }
  0x25   :  { %s629_s7 = scalar_lea.vmem %s483_s6, 16  ;;  %s633_s8 = scalar_lea.vmem %s483_s6, 32 }
  0x26   :  { %v127_v43 = vrot.slane %v106_v41, %v97_v39  ;;  %v128_v45 = vcombine.high %v113_v42, %v113_v42  ;;  %v120_v52 = vrot.slane %v105_v50, %v97_v39  ;;  %p630_p0 = scmp.ne.s32.totalorder %s483_s6, %s629_s7  ;;  %p634_p1 = scmp.lt.s32.totalorder %s483_s6, %s483_s6 }
  0x27   :  { %p635_p2 = scmp.lt.s32.totalorder %s633_s8, %s629_s7 }
  0x28   :  { %386 = vmatprep.mubr.bf16.mxu0 %v127_v43  ;;  %v129_v46 = vcombine.high %v127_v43, %v127_v43 }
  0x29   :  { %387 = vmatmul.mubr.bf16.vlgmr.msra.gmra.mxu0 %v113_v42  ;;  %p636_p3 = por %p635_p2, %p634_p1 }
  0x2a   :  { %426 = vmatprep.mubr.bf16.mxu1 %v129_v46  ;;  %577 = vmatpush3.bf16.msra.mxu0 %v625_v44 }
  0x2b   :  { %427 = vmatmul.mubr.bf16.vlgmr.msra.gmra.mxu1 %v128_v45  ;;  %578 = vmatprep.subr.bf16.mxu0 %v652_v36  ;;  %p637_p4 = pnand %p636_p3, %p630_p0 }
  0x2c   :  { %584 = vmatprep.mubr.msk.bf16.mxu0 %vm653_vm0, %v652_v36 }
  0x2e   :  { %579 = vmatpush3.bf16.msra.mxu0 %v626_v47 }
  0x2f   :  { %580 = vmatprep.subr.bf16.mxu0 %v652_v36 }
  0x32   :  { %581 = vmatpush3.bf16.msra.mxu0 %v627_v49 }
  0x33   :  { %582 = vmatprep.subr.bf16.mxu0 %v652_v36 }
  0x36   :  { %583 = vmatpush3.bf16.msra.mxu0 %v628_v51 }
  0x39   :  { %585 = vmatmul.mubr.msk.bf16.vlgmr.msra.gmra.mxu0 %vm350_vm1, %v120_v52 }
  0xe9   :  { %v543_v53 = vpop.f32.mrf.mxu0 }
  0xeb   :  { %v544_v54 = vpop.f32.mrf.mxu0  ;;  %v565_v55 = vpop.f32.mrf.mxu1 }
  0xec   :  { %v545_v60 = vadd.f32 %v544_v54, %v543_v53 }
  0xed   :  { %v546_v56 = vpop.f32.mrf.mxu0  ;;  %v566_v57 = vpop.f32.mrf.mxu1 }
  0xee   :  { %v389_v63 = vadd.f32 %v545_v60, %v89_v61  ;;  %v567_v0 = vadd.f32 %v566_v57, %v565_v55 }
  0xef   :  { %v547_v58 = vpop.f32.mrf.mxu0  ;;  %v568_v59 = vpop.f32.mrf.mxu1 }
  0xf0   :  { %v429_v1 = vadd.f32 %v567_v0, %v389_v63 }
  0xf1   :  { %v569_v62 = vpop.f32.mrf.mxu1 }
  0xf9   :  { %v468_v2 = vpop.f32.mrf.mxu0 }
  0xfa   :  { %v469_v3 = vadd.f32 %v468_v2, %v429_v1 }
  0xfb   :  { %v586_v4 = vpop.f32.mrf.mxu0 }
  0xfc   :  { %475 = vst.msk [vmem:[#allocation2] sm:$0x1] %vm474_vm2, %v469_v3 }
  0xfd   :  { %v471_v5 = vpop.f32.mrf.mxu0 }
  0xfe   :  { %640 = shalt.err (!%p637_p4)
}
  0xff   :  { %485 = dma.vmem_to_hbm [thread:$0]  %s483_s6, 16, %s795_s3, [#allocation3]   ;;  %v587_v6 = vpop.f32.mrf.mxu0 }
 0x100   :  { %649 = dma.done.wait [#allocation3], 16  }
 0x101   :  { %650 = vsyncadd [#allocation3], 4294967280 }
 0x102   :  { %489 = vsyncpa [#allocation3], 1 }

</bundles_post_ra>
